<compile_context>
chip_gen: v5e
topology: v5e:2x2
jax: 0.10.0
libtpu: 0.0.40
codegen_flags: <defaults>
</compile_context>

<pallas_src>
import functools

import jax
import jax.numpy as jnp
from jax import lax
from jax.experimental import pallas as pl
from jax.experimental.pallas import tpu as pltpu

IN_FEATURES = 196608     # matches Linear(196608, 10)
OUT_FEATURES = 10


def _tensorcores_per_chip() -> int:
    """2 for chips exposing 2 TensorCores per JAX device (v7x, v4/v5p), else 1."""
    try:
        kind = jax.devices()[0].device_kind.lower()
    except Exception:
        return 1
    return 2 if any(tag in kind for tag in ("v7", "7x", "v4", "v5p")) else 1


NUM_PARTIALS = _tensorcores_per_chip()


def _round_up(v, m):
    return ((v + m - 1) // m) * m


def linear_kernel(x_ref, w_ref, b_ref, o_ref):
    """One K-slice of a partial sum of y = x @ W.T (+ b on the final step).

    x_ref: (batch, K_TILE)  current K-slice of the input   (K on lanes)
    w_ref: (OUT,   K_TILE)  current bf16 K-slice of weight (K on lanes)
    b_ref: (1, OUT)         f32 bias, tiny resident block
    o_ref: (batch, OUT)     f32 partial-sum block, resident across the kk axis
    """
    kk = pl.program_id(1)

    @pl.when(kk == 0)
    def _():
        o_ref[...] = jnp.zeros_like(o_ref)

    # Both MXU operands bf16 -> native single-pass MXU path; accumulate in f32.
    x_bf16 = x_ref[...].astype(jnp.bfloat16)
    o_ref[...] += lax.dot_general(
        x_bf16,
        w_ref[...],
        dimension_numbers=(((1,), (1,)), ((), ())),   # contract the lane (K) axes
        preferred_element_type=jnp.float32,
    )

    # Fold the bias into the final reduction step of partial 0 only, so it is
    # added exactly once regardless of num_partials.
    @pl.when(jnp.logical_and(kk == pl.num_programs(1) - 1,
                             pl.program_id(0) == 0))
    def _():
        o_ref[...] += b_ref[...]


@functools.partial(jax.jit, static_argnames=("k_tile", "num_partials"))
def _linears_fwd(x, w, b, *, k_tile, num_partials):
    batch, k = x.shape
    n, k_w = w.shape
    assert k == k_w, "weight in_features must match input"
    assert k % (num_partials * k_tile) == 0, "K must divide partials * k_tile"
    assert k_tile % 128 == 0, "K tile must be lane-aligned"
    steps = k // (num_partials * k_tile)   # reduction steps per partial

    # Stream W as bf16 (halves its HBM traffic).  Callers should pre-cast once
    # (amortized across calls); this cast is a no-op in that case.
    if w.dtype != jnp.bfloat16:
        w = w.astype(jnp.bfloat16)
    b2 = b.reshape(1, n).astype(jnp.float32)

    x_item = jnp.dtype(x.dtype).itemsize
    w_item = jnp.dtype(w.dtype).itemsize

    # Double-buffered streaming-tile footprint (sublane-padded) + headroom for
    # compiler-internal temporaries.  ~8 MB data -> ~32 MiB scoped limit.
    x_buf = _round_up(batch, 8 * (4 // x_item)) * k_tile * x_item
    w_buf = _round_up(n, 8 * (4 // w_item)) * k_tile * w_item
    vmem_limit = int(min(max(2 * (x_buf + w_buf) + (16 << 20), 32 << 20),
                         60 << 20))

    cost = pl.CostEstimate(
        flops=2 * batch * k * n,
        transcendentals=0,
        bytes_accessed=int(x.size * x_item + w.size * w_item + b.size * 4
                           + num_partials * batch * n * 4),
    )

    partials = pl.pallas_call(
        linear_kernel,
        out_shape=jax.ShapeDtypeStruct((num_partials, batch, n), jnp.float32),
        grid_spec=pltpu.PrefetchScalarGridSpec(
            num_scalar_prefetch=0,
            grid=(num_partials, steps),
            in_specs=[
                # x: (batch, k_tile) K-slice; K block index = c * steps + kk
                pl.BlockSpec((batch, k_tile),
                             lambda c, kk: (0, c * steps + kk)),
                # w: lane-dense (OUT, k_tile) bf16 slice of torch-layout weight
                pl.BlockSpec((n, k_tile),
                             lambda c, kk: (0, c * steps + kk)),
                # bias: tiny (1, OUT) resident block
                pl.BlockSpec((1, n), lambda c, kk: (0, 0)),
            ],
            # One resident (batch, OUT) f32 partial-sum block per partial.
            out_specs=pl.BlockSpec((None, batch, n), lambda c, kk: (c, 0, 0)),
        ),
        compiler_params=pltpu.CompilerParams(
            dimension_semantics=("parallel", "arbitrary"),
            vmem_limit_bytes=vmem_limit,
        ),
        cost_estimate=cost,
    )(x, w, b2)

    # Tiny fused epilogue: combine partial sums (bias already added in-kernel).
    # With num_partials == 1 this is effectively just a squeeze.
    return partials.sum(axis=0)


def linears_forward(x, w, b, *, k_tile=None, num_partials=None):
    """y = x @ w.T + b  (same math as torch.nn.Linear forward).

    Pass `w` pre-cast to bf16 to avoid a per-call conversion (accumulation is
    always f32).  Batch multiple input rows into a single call — the weight
    stream dominates the cost and is amortized across rows for free.
    """
    if num_partials is None:
        num_partials = NUM_PARTIALS
    if k_tile is None:
        steps = 3 if num_partials == 1 else 2     # 65536 / 49152 lane tiles
        k_tile = x.shape[1] // (num_partials * steps)
    return _linears_fwd(x, w, b, k_tile=k_tile, num_partials=num_partials)


if __name__ == "__main__":
    key = jax.random.PRNGKey(0)
    kx, kw, kb = jax.random.split(key, 3)

    batch = 2
    # Deterministic, PyTorch-style init: U(-1/sqrt(fan_in), 1/sqrt(fan_in)).
    bound = 1.0 / (IN_FEATURES ** 0.5)
    w = jax.random.uniform(
        kw, (OUT_FEATURES, IN_FEATURES), jnp.float32, minval=-bound, maxval=bound
    )
    b = jax.random.uniform(
        kb, (OUT_FEATURES,), jnp.float32, minval=-bound, maxval=bound
    )
    x = jax.random.normal(kx, (batch, IN_FEATURES), jnp.float32)

    # Pre-cast the weight to bf16 once (amortized across calls) to match the
    # kernel's bf16 weight-streaming path.
    w_bf16 = w.astype(jnp.bfloat16)

    out = jax.block_until_ready(linears_forward(x, w_bf16, b))

    assert out.shape == (batch, OUT_FEATURES)
    assert out.dtype == jnp.float32

    # Reference with identical bf16-operand / f32-accumulate numerics.
    ref_bf16 = jnp.dot(x.astype(jnp.bfloat16), w_bf16.T,
                       preferred_element_type=jnp.float32) + b
    assert jnp.allclose(out, ref_bf16, atol=5e-3, rtol=5e-3), "mismatch vs bf16 ref"

    # Sanity vs full-f32 torch-style math (bf16 streaming => ~1e-2 rel error).
    ref_f32 = x @ w.T + b
    assert jnp.allclose(out, ref_f32, atol=5e-2, rtol=5e-2), "mismatch vs f32 ref"

    print("KERNEL_OK")
</pallas_src>

<mosaic_0001>
module attributes {stable_mosaic.version = 11 : i64} {
  func.func @linear_kernel(%arg0: i32, %arg1: i32, %arg2: memref<2x65536xf32, #tpu.memory_space<vmem>>, %arg3: memref<10x65536xbf16, #tpu.memory_space<vmem>>, %arg4: memref<1x10xf32, #tpu.memory_space<vmem>>, %arg5: memref<1x2x10xf32, #tpu.memory_space<vmem>>) attributes {dimension_semantics = [#tpu.dimension_semantics<parallel>, #tpu.dimension_semantics<arbitrary>], iteration_bounds = array<i64: 1, 3>, scalar_prefetch = 0 : i64, scratch_operands = 0 : i64, tpu.core_type = #tpu.core_type<tc>, window_params = [{transform_indices = @transform_0, window_bounds = array<i64: 2, 65536>}, {transform_indices = @transform_1, window_bounds = array<i64: 10, 65536>}, {pipeline_mode = #tpu.pipeline_mode<synchronous>, transform_indices = @transform_2, window_bounds = array<i64: 1, 10>}, {transform_indices = @transform_3, window_bounds = array<i64: 1, 2, 10>}]} {
    %c0_i32 = arith.constant 0 : i32
    %0 = arith.cmpi eq, %arg1, %c0_i32 : i32
    %1 = arith.extui %0 : i1 to i32
    %c0_i32_0 = arith.constant 0 : i32
    %2 = arith.cmpi ne, %1, %c0_i32_0 : i32
    scf.if %2 {
      %cst_12 = arith.constant 0.000000e+00 : f32
      %18 = vector.broadcast %cst_12 : f32 to vector<2x10xf32>
      %c0_13 = arith.constant 0 : index
      %c0_14 = arith.constant 0 : index
      %c0_15 = arith.constant 0 : index
      %19 = vector.load %arg5[%c0_13, %c0_14, %c0_15] : memref<1x2x10xf32, #tpu.memory_space<vmem>>, vector<1x2x10xf32>
      %20 = vector.shape_cast %19 : vector<1x2x10xf32> to vector<2x10xf32>
      %21 = vector.shape_cast %18 : vector<2x10xf32> to vector<1x2x10xf32>
      tpu.vector_store %arg5[%c0_13, %c0_14, %c0_15], %21 {strides = array<i32>} : memref<1x2x10xf32, #tpu.memory_space<vmem>>, vector<1x2x10xf32>,
    } else {
    }
    %c0 = arith.constant 0 : index
    %c0_1 = arith.constant 0 : index
    %3 = vector.load %arg2[%c0, %c0_1] : memref<2x65536xf32, #tpu.memory_space<vmem>>, vector<2x65536xf32>
    %4 = arith.truncf %3 : vector<2x65536xf32> to vector<2x65536xbf16>
    %c0_2 = arith.constant 0 : index
    %c0_3 = arith.constant 0 : index
    %c0_4 = arith.constant 0 : index
    %5 = vector.load %arg5[%c0_2, %c0_3, %c0_4] : memref<1x2x10xf32, #tpu.memory_space<vmem>>, vector<1x2x10xf32>
    %6 = vector.shape_cast %5 : vector<1x2x10xf32> to vector<2x10xf32>
    %c0_5 = arith.constant 0 : index
    %c0_6 = arith.constant 0 : index
    %7 = vector.load %arg3[%c0_5, %c0_6] : memref<10x65536xbf16, #tpu.memory_space<vmem>>, vector<10x65536xbf16>
    %cst = arith.constant dense<0.000000e+00> : vector<2x10xf32>
    %8 = tpu.matmul %4, %7, %cst {dimension_numbers = #tpu.dot_dimension_numbers<[1], [1], [0], [0], [0, 0, 1, 0], [], []>} : vector<2x65536xbf16>, vector<10x65536xbf16>, vector<2x10xf32> -> vector<2x10xf32>
    %9 = arith.addf %6, %8 : vector<2x10xf32>
    %c0_7 = arith.constant 0 : index
    %c0_8 = arith.constant 0 : index
    %c0_9 = arith.constant 0 : index
    %10 = vector.load %arg5[%c0_7, %c0_8, %c0_9] : memref<1x2x10xf32, #tpu.memory_space<vmem>>, vector<1x2x10xf32>
    %11 = vector.shape_cast %10 : vector<1x2x10xf32> to vector<2x10xf32>
    %12 = vector.shape_cast %9 : vector<2x10xf32> to vector<1x2x10xf32>
    tpu.vector_store %arg5[%c0_7, %c0_8, %c0_9], %12 {strides = array<i32>} : memref<1x2x10xf32, #tpu.memory_space<vmem>>, vector<1x2x10xf32>,
    %c2_i32 = arith.constant 2 : i32
    %13 = arith.cmpi eq, %arg1, %c2_i32 : i32
    %c0_i32_10 = arith.constant 0 : i32
    %14 = arith.cmpi eq, %arg0, %c0_i32_10 : i32
    %15 = arith.andi %13, %14 : i1
    %16 = arith.extui %15 : i1 to i32
    %c0_i32_11 = arith.constant 0 : i32
    %17 = arith.cmpi ne, %16, %c0_i32_11 : i32
    scf.if %17 {
      %c0_12 = arith.constant 0 : index
      %c0_13 = arith.constant 0 : index
      %c0_14 = arith.constant 0 : index
      %18 = vector.load %arg5[%c0_12, %c0_13, %c0_14] : memref<1x2x10xf32, #tpu.memory_space<vmem>>, vector<1x2x10xf32>
      %19 = vector.shape_cast %18 : vector<1x2x10xf32> to vector<2x10xf32>
      %c0_15 = arith.constant 0 : index
      %c0_16 = arith.constant 0 : index
      %20 = vector.load %arg4[%c0_15, %c0_16] : memref<1x10xf32, #tpu.memory_space<vmem>>, vector<1x10xf32>
      %21 = vector.broadcast %20 : vector<1x10xf32> to vector<2x10xf32>
      %22 = arith.addf %19, %21 : vector<2x10xf32>
      %c0_17 = arith.constant 0 : index
      %c0_18 = arith.constant 0 : index
      %c0_19 = arith.constant 0 : index
      %23 = vector.load %arg5[%c0_17, %c0_18, %c0_19] : memref<1x2x10xf32, #tpu.memory_space<vmem>>, vector<1x2x10xf32>
      %24 = vector.shape_cast %23 : vector<1x2x10xf32> to vector<2x10xf32>
      %25 = vector.shape_cast %22 : vector<2x10xf32> to vector<1x2x10xf32>
      tpu.vector_store %arg5[%c0_17, %c0_18, %c0_19], %25 {strides = array<i32>} : memref<1x2x10xf32, #tpu.memory_space<vmem>>, vector<1x2x10xf32>,
    } else {
    }
    return
  }
  func.func @transform_0(%arg0: i32, %arg1: i32) -> (i32, i32) {
    %c3_i32 = arith.constant 3 : i32
    %0 = arith.muli %arg0, %c3_i32 : i32
    %1 = arith.addi %0, %arg1 : i32
    %c0_i32 = arith.constant 0 : i32
    %c0_i32_0 = arith.constant 0 : i32
    return %c0_i32, %1 : i32, i32
  }
  func.func @transform_1(%arg0: i32, %arg1: i32) -> (i32, i32) {
    %c3_i32 = arith.constant 3 : i32
    %0 = arith.muli %arg0, %c3_i32 : i32
    %1 = arith.addi %0, %arg1 : i32
    %c0_i32 = arith.constant 0 : i32
    %c0_i32_0 = arith.constant 0 : i32
    return %c0_i32, %1 : i32, i32
  }
  func.func @transform_2(%arg0: i32, %arg1: i32) -> (i32, i32) {
    %c0_i32 = arith.constant 0 : i32
    %c0_i32_0 = arith.constant 0 : i32
    %c0_i32_1 = arith.constant 0 : i32
    return %c0_i32, %c0_i32_0 : i32, i32
  }
  func.func @transform_3(%arg0: i32, %arg1: i32) -> (i32, i32, i32) {
    %c0_i32 = arith.constant 0 : i32
    %c0_i32_0 = arith.constant 0 : i32
    %c0_i32_1 = arith.constant 0 : i32
    return %arg0, %c0_i32, %c0_i32_0 : i32, i32, i32
  }
}

</mosaic_0001>

<bundles_post_ra>
// kernel: _linears_fwd.1
= control target key start
LH: loop header
LB: loop body
LE: loop exit
PB: predicated region body
PF: predicated region fallthrough
CT: control target
= control target key end

     0   :  { %s16212_s0 = inlined_call_operand.hbm [shape: f32[2,196608], index: 0, kind: input, shape index: {}]   ;;  %s16213_s1 = inlined_call_operand.hbm [shape: bf16[10,196608], index: 1, kind: input, shape index: {}]   ;;  %s16214_s2 = inlined_call_operand.hbm [shape: f32[1,10], index: 2, kind: input, shape index: {}]   ;;  %s16215_s3 = inlined_call_operand.hbm [shape: f32[1,2,10], index: 3, kind: output, shape index: {}]  }
   0x1   :  { %16216 = sst [smem:[#allocation13_spill]] %s16212_s0 }
   0x2   :  { %8 = vsyncpa [#allocation3], 0 }
   0x3   :  { %10 = vsyncpa [#allocation3 + $0x1], 0 }
   0x4   :  { %11 = vsyncpa [#allocation6], 0 }
   0x5   :  { %13 = vsyncpa [#allocation6 + $0x1], 0 }
   0x6   :  { %14 = vsyncpa [#allocation4], 0  ;;  %s14923_s12 = smov 0   ;;  %s14925_s13 = smov 0  }
   0x7   :  { %s14927_s14 = smov 0   ;;  %s14929_s15 = smov 0  }
   0x8   :  { %s14931_s16 = smov 0   ;;  %s14933_s17 = smov 0  }
   0x9 LB: > { %s14952_s18 = sadd.s32 4294967295, %s14895_s17   ;;  %p56_p0 = scmp.ne.s32.totalorder %s14879_s13, %s14875_s12  ;;  %s14895_s17 = sphi %s14933_s17, %s20_s17   ;;  %s14891_s16 = sphi %s14931_s16, %s16226_s16   ;;  %s14887_s15 = sphi %s14929_s15, %s16225_s15   ;;  %s14883_s14 = sphi %s14927_s14, %s16224_s14   ;;  %s14879_s13 = sphi %s14925_s13, %s16223_s13   ;;  %s14875_s12 = sphi %s14923_s12, %s16222_s12  }
   0xa   : > { %p57_p1 = scmp.eq.s32.totalorder %s14952_s18, 0  ;;  %p12050_p2 = scmp.ge.s32.totalorder %s14895_s17, 1 }
   0xb   : > { %p144_p3 = scmp.lt.s32.totalorder %s14895_s17, 4  ;;  %s156_s22 = sshll.u32 %s16214_s2, 4  ;;  %s157_s22 = int_to_ptr.hbm [resolvable:$true] %s156_s22 }
   0xc   : > { %p14960_p4 = por %p57_p1, %p56_p0  ;;  %s14897_s24 = smov [#allocation7]  }
   0xd   : > { %p14967_p5 = pnand %p12050_p2, %p144_p3  ;;  %s158_s25 = sshll.u32 %s14897_s24, 4  ;;  %s159_s25 = int_to_ptr.vmem [resolvable:$true] %s158_s25 }
   0xe   : > { %s29_s26 = sadd.s32 1, %s14891_s16  ;;  %s43_s27 = sadd.s32 1, %s14883_s14 }
   0xf   : > { %p14644_p6 = pneg %p14967_p5  ;;  %p30_p8 = scmp.ge.s32.totalorder %s29_s26, 3 }
  0x10   : > { %p50_p9 = scmp.ne.s32.totalorder %s14883_s14, %s14879_s13  ;;  %p51_p10 = scmp.eq.s32.totalorder %s14895_s17, 0 }
  0x11   : > { %p14645_p7 = pnand %p14644_p6, %p57_p1  ;;  %s16228_s26 = smov (%p30_p8, %s29_s26), 0 }
  0x12   : > { %p14982_p11 = por %p51_p10, %p50_p9  ;;  %p14656_p12 = scmp.lt.s32.totalorder %s14895_s17, 3 }
  0x13   : > { %14647 = dma.hbm_to_vmem [thread:$0]  (!%p14645_p7), %s157_s22, 16, %s159_s25, [#allocation6]  }
  0x14   : > { %s40_s29 = ssub.s32 %s14891_s16, %s16228_s26  ;;  %s169_s30 = sand.u32 1, %s14883_s14  }
  0x15   : > { %p41_p13 = scmp.eq.s32.totalorder %s40_s29, 0  ;;  %s12053_s4 = sshll.u32 %s169_s30, 10 }
  0x16   : > { %s14117_s5 = sshll.u32 %s14891_s16, 10  ;;  %s16220_s0 = sld [smem:[#allocation13_spill]] }
  0x17   : > { %s14992_s6 = scalar_select %p41_p13, %s14883_s14, %s43_s27  }
  0x18   : > { %s173_s11 = scalar_lea.vmem [#allocation2], %s12053_s4  ;;  %p15001_p0 = pnand %p14656_p12, %p14982_p11 }
  0x19   : > { %s184_s12 = sshll.u32 %s173_s11, 4  ;;  %s12056_s21 = sshll.u32 %s169_s30, 12  ;;  %s185_s12 = int_to_ptr.vmem [resolvable:$true] %s184_s12 }
  0x1a   : > { %s14118_s22 = sshll.u32 %s14891_s16, 11  ;;  %s170_s29 = scalar_lea.sflag [#allocation3], %s169_s30 }
  0x1b   : > { %s202_s27 = scalar_lea.hbm %s16213_s1, %s14118_s22  ;;  %s191_s28 = sand.u32 1, %s14895_s17  }
  0x1c   : > { %s180_s9 = scalar_lea.hbm %s16220_s0, %s14117_s5  ;;  %s203_s4 = sshll.u32 %s202_s27, 4  ;;  %s204_s4 = int_to_ptr.hbm [resolvable:$true] %s203_s4 }
  0x1d   : > { %s182_s10 = sshll.u32 %s180_s9, 4  ;;  %s195_s5 = scalar_lea.vmem [#allocation5], %s12056_s21  ;;  %s183_s10 = int_to_ptr.hbm [resolvable:$true] %s182_s10 }
  0x1e   : > { %14651 = dma.hbm_to_vmem [thread:$0]  (!%p15001_p0), %s183_s10, 16384, %s185_s12, %s170_s29  }
  0x1f   : > { %s205_s7 = sshll.u32 %s195_s5, 4  ;;  %s192_s8 = scalar_lea.sflag [#allocation6], %s191_s28  ;;  %s206_s7 = int_to_ptr.vmem [resolvable:$true] %s205_s7 }
  0x20   : > { %s14898_s9 = smov 98304   ;;  %s14899_s11 = smov 32768  }
  0x21   : > { %s14900_s0 = smov 2048   ;;  %217 = sbr.rel (%p14967_p5) target bundleno = 2255 (0x8cf), region = 32 }
  0x22   : > { %14654 = dma.hbm_to_vmem [thread:$0]  (!%p15001_p0), %s204_s4, 65536, %s206_s7, %s192_s8, %s14898_s9, %s14899_s11, %s14900_s0  }
  0x23   : > { %s219_s30 = sand.u32 (!%p14967_p5), 1, %s14879_s13  }
  0x24   : > { %s12060_s22 = sshll.u32 (!%p14967_p5), %s219_s30, 10  ;;  %s220_s10 = scalar_lea.sflag (!%p14967_p5), [#allocation3], %s219_s30 }
  0x25   : > { %s15017_s12 = scalar_lea.vmem (!%p14967_p5), [#allocation2], %s12060_s22 }
  0x26   : > { %14858 = dma.done.wait (%p14960_p4), %s220_s10, 16384  }
  0x27   : > { %14860 = vsyncadd (%p14960_p4), %s220_s10, 4294950912  ;;  %s229_s21 = sand.u32 1, %s14952_s18   ;;  %s12061_s20 = sshll.u32 %s219_s30, 12 }
  0x28   : > { %s230_s0 = scalar_lea.sflag [#allocation6], %s229_s21  ;;  %s15024_s24 = scalar_lea.vmem [#allocation5], %s12061_s20 }
  0x29   : > { %14862 = dma.done.wait (%p14960_p4), %s230_s0, 65536  }
  0x2a   : > { %14864 = vsyncadd (%p14960_p4), %s230_s0, 4294901760 }
  0x2b   : > { %14866 = dma.done.wait (%p57_p1), [#allocation6], 16  }
  0x2c   : > { %14868 = vsyncadd (%p57_p1), [#allocation6], 4294967280  ;;  %p12063_p2 = scmp.ne.s32.totalorder %s14887_s15, 0 }
  0x2e   : > { %272 = sbr.rel (%p12063_p2) target bundleno = 53 (0x35), region = 48 }
  0x33   : > { %vm273_vm0 = vcmask 74752   ;;  %v14901_v0 = vmov 0.0  }
  0x34   : > { %274 = vst.msk [vmem:[#allocation8] sm:$0x3] %vm273_vm0, %v14901_v0 }
  0x35 PF: > { %v12066_v1 = vld [vmem:[%s15024_s24] sm:$0xf]  ;;  %v14119_v3 = vld [vmem:[%s15024_s24 + $0x4] sm:$0xf]  ;;  %v12074_v6 = vld [vmem:[%s15024_s24 + $0x8] sm:$0xf] }
  0x36   : > { %v14375_v2 = vld [vmem:[%s15024_s24 + $0x7fc] sm:$0x10]  ;;  %v12068_v5 = vld [vmem:[%s15024_s24 + $0x800] sm:$0x10]  ;;  %v14376_v7 = vld [vmem:[%s15024_s24 + $0x804] sm:$0x10] }
  0x37   : > { %v12067_v4 = vor.u32 %v14375_v2, %v12066_v1  ;;  %v12071_v8 = vor.u32 %v14119_v3, %v12068_v5  ;;  %v12075_v9 = vor.u32 %v14376_v7, %v12074_v6  ;;  %v14120_v10 = vld [vmem:[%s15024_s24 + $0xc] sm:$0xf]  ;;  %v275_v12 = vld [vmem:[%s15017_s12] sm:$0xff]  ;;  %v12090_v14 = vld [vmem:[%s15024_s24 + $0x18] sm:$0xf]  ;;  %p11928_p1 = scmp.eq.s32.totalorder %s14887_s15, 2 }
  0x38   : > { %v12076_v11 = vld [vmem:[%s15024_s24 + $0x808] sm:$0x10]  ;;  %531 = vst [vmem:[#allocation1] ss:$4 sm:$0xff] %v275_v12  ;;  %v14378_v15 = vld [vmem:[%s15024_s24 + $0x814] sm:$0x10] }
  0x39   : > { %5276 = vmatpush.bf16.xpose.msra.mxu0 %v12067_v4  ;;  %v12079_v13 = vor.u32 %v14120_v10, %v12076_v11  ;;  %5289 = vmatpush.bf16.xpose.msra.mxu1 %v12071_v8  ;;  %v12091_v16 = vor.u32 %v14378_v15, %v12090_v14  ;;  %v14122_v17 = vld [vmem:[%s15024_s24 + $0x1c] sm:$0xf]  ;;  %v12082_v19 = vld [vmem:[%s15024_s24 + $0x10] sm:$0xf]  ;;  %v14121_v22 = vld [vmem:[%s15024_s24 + $0x14] sm:$0xf] }
  0x3a   : > { %5302 = vmatpush.bf16.xpose.msra.mxu2 %v12075_v9  ;;  %v12092_v18 = vld [vmem:[%s15024_s24 + $0x818] sm:$0x10]  ;;  %v14377_v21 = vld [vmem:[%s15024_s24 + $0x80c] sm:$0x10]  ;;  %v12084_v23 = vld [vmem:[%s15024_s24 + $0x810] sm:$0x10] }
  0x3b   : > { %5315 = vmatpush.bf16.xpose.msra.mxu3 %v12079_v13  ;;  %v12095_v20 = vor.u32 %v14122_v17, %v12092_v18  ;;  %v12083_v24 = vor.u32 %v14377_v21, %v12082_v19  ;;  %v12087_v25 = vor.u32 %v14121_v22, %v12084_v23  ;;  %v276_v26 = vld [vmem:[%s15017_s12 + $0x8] sm:$0xff]  ;;  %v12098_v31 = vld [vmem:[%s15024_s24 + $0x20] sm:$0xf]  ;;  %v14123_v33 = vld [vmem:[%s15024_s24 + $0x24] sm:$0xf]  ;;  %vm11926_vm1 = vcmask 74752  }
  0x3c   : > { %v12106_v27 = vld [vmem:[%s15024_s24 + $0x28] sm:$0xf]  ;;  %533 = vst [vmem:[#allocation1 + $0x20] ss:$4 sm:$0xff] %v276_v26  ;;  %v14124_v29 = vld [vmem:[%s15024_s24 + $0x2c] sm:$0xf] }
  0x3d   : > { %v14380_v28 = vld [vmem:[%s15024_s24 + $0x824] sm:$0x10]  ;;  %v12108_v30 = vld [vmem:[%s15024_s24 + $0x828] sm:$0x10]  ;;  %v14379_v32 = vld [vmem:[%s15024_s24 + $0x81c] sm:$0x10] }
  0x3e   : > { %v12100_v34 = vld [vmem:[%s15024_s24 + $0x820] sm:$0x10]  ;;  %v277_v35 = vld [vmem:[%s15017_s12 + $0x10] sm:$0xff]  ;;  %v12107_v42 = vor.u32 %v14380_v28, %v12106_v27  ;;  %v12111_v43 = vor.u32 %v14124_v29, %v12108_v30  ;;  %v12099_v46 = vor.u32 %v14379_v32, %v12098_v31  ;;  %v278_v48 = vld [vmem:[%s15017_s12 + $0x18] sm:$0xff] }
  0x3f   : > { %v534_v36 = vld.sshfl [vmem:[#allocation1] sm:$0xff pattern:$0x73625140]  ;;  %v535_v37 = vld.sshfl [vmem:[#allocation1 + $0x8] sm:$0xff pattern:$0x73625140]  ;;  %v12103_v47 = vor.u32 %v14123_v33, %v12100_v34 }
  0x40   : > { %v1684_v38 = vpack.c.bf16 %v534_v36, %v534_v36  ;;  %v1685_v39 = vpack.c.bf16 %v535_v37, %v535_v37  ;;  %v536_v40 = vld.sshfl [vmem:[#allocation1 + $0x10] sm:$0xff pattern:$0x73625140]  ;;  %v537_v41 = vld.sshfl [vmem:[#allocation1 + $0x18] sm:$0xff pattern:$0x73625140] }
  0x41   : > { %5328 = vmatpush.bf16.xpose.msrb.mxu0 %v12083_v24  ;;  %5341 = vmatpush.bf16.xpose.msrb.mxu1 %v12087_v25  ;;  %v1686_v44 = vpack.c.bf16 %v536_v40, %v536_v40  ;;  %v1687_v45 = vpack.c.bf16 %v537_v41, %v537_v41  ;;  %542 = vst [vmem:[#allocation1] ss:$4 sm:$0xff] %v277_v35  ;;  %v12122_v53 = vld [vmem:[%s15024_s24 + $0x38] sm:$0xf]  ;;  %v14126_v55 = vld [vmem:[%s15024_s24 + $0x3c] sm:$0xf] }
  0x42   : > { %5354 = vmatpush.bf16.xpose.msrb.mxu2 %v12091_v16  ;;  %5277 = vmatmul.bf16.vlgmr.msra.gmra.mxu0 %v1684_v38  ;;  %v14382_v54 = vld [vmem:[%s15024_s24 + $0x834] sm:$0x10]  ;;  %v12124_v56 = vld [vmem:[%s15024_s24 + $0x838] sm:$0x10]  ;;  %v12114_v57 = vld [vmem:[%s15024_s24 + $0x30] sm:$0xf] }
  0x43   : > { %5367 = vmatpush.bf16.xpose.msrb.mxu3 %v12095_v20  ;;  %5290 = vmatmul.bf16.vlgmr.msra.gmra.mxu1 %v1685_v39  ;;  %v538_v49 = vld.sshfl [vmem:[#allocation1 + $0x20] sm:$0xff pattern:$0x73625140]  ;;  %v539_v50 = vld.sshfl [vmem:[#allocation1 + $0x28] sm:$0xff pattern:$0x73625140]  ;;  %v12123_v1 = vor.u32 %v14382_v54, %v12122_v53  ;;  %v12127_v2 = vor.u32 %v14126_v55, %v12124_v56 }
  0x44   : > { %5303 = vmatmul.bf16.vlgmr.msra.gmra.mxu2 %v1686_v44  ;;  %5316 = vmatmul.bf16.vlgmr.msra.gmra.mxu3 %v1687_v45  ;;  %v540_v51 = vld.sshfl [vmem:[#allocation1 + $0x30] sm:$0xff pattern:$0x73625140]  ;;  %v541_v52 = vld.sshfl [vmem:[#allocation1 + $0x38] sm:$0xff pattern:$0x73625140]  ;;  %v1688_v58 = vpack.c.bf16 %v538_v49, %v538_v49  ;;  %v1689_v59 = vpack.c.bf16 %v539_v50, %v539_v50 }
  0x45   : > { %543 = vst [vmem:[#allocation1 + $0x20] ss:$4 sm:$0xff] %v278_v48  ;;  %v14381_v60 = vld [vmem:[%s15024_s24 + $0x82c] sm:$0x10]  ;;  %v14125_v61 = vld [vmem:[%s15024_s24 + $0x34] sm:$0xf]  ;;  %v1690_v63 = vpack.c.bf16 %v540_v51, %v540_v51  ;;  %v1691_v0 = vpack.c.bf16 %v541_v52, %v541_v52 }
  0x46   : > { %v12116_v62 = vld [vmem:[%s15024_s24 + $0x830] sm:$0x10]  ;;  %v12115_v3 = vor.u32 %v14381_v60, %v12114_v57  ;;  %v279_v9 = vld [vmem:[%s15017_s12 + $0x20] sm:$0xff]  ;;  %v12138_v10 = vld [vmem:[%s15024_s24 + $0x48] sm:$0xf] }
  0x47   : > { %v12119_v4 = vor.u32 %v14125_v61, %v12116_v62  ;;  %v14384_v11 = vld [vmem:[%s15024_s24 + $0x844] sm:$0x10]  ;;  %v14128_v12 = vld [vmem:[%s15024_s24 + $0x4c] sm:$0xf]  ;;  %v12130_v14 = vld [vmem:[%s15024_s24 + $0x40] sm:$0xf] }
  0x48   : > { %v544_v5 = vld.sshfl [vmem:[#allocation1] sm:$0xff pattern:$0x73625140]  ;;  %v545_v6 = vld.sshfl [vmem:[#allocation1 + $0x8] sm:$0xff pattern:$0x73625140]  ;;  %v12139_v22 = vor.u32 %v14384_v11, %v12138_v10 }
  0x49   : > { %5380 = vmatpush.bf16.xpose.msra.mxu0 %v12099_v46  ;;  %5393 = vmatpush.bf16.xpose.msra.mxu1 %v12103_v47  ;;  %v546_v7 = vld.sshfl [vmem:[#allocation1 + $0x10] sm:$0xff pattern:$0x73625140]  ;;  %v547_v8 = vld.sshfl [vmem:[#allocation1 + $0x18] sm:$0xff pattern:$0x73625140]  ;;  %v1692_v15 = vpack.c.bf16 %v544_v5, %v544_v5  ;;  %v1693_v16 = vpack.c.bf16 %v545_v6, %v545_v6 }
  0x4a   : > { %5406 = vmatpush.bf16.xpose.msra.mxu2 %v12107_v42  ;;  %552 = vst [vmem:[#allocation1] ss:$4 sm:$0xff] %v279_v9  ;;  %v12140_v13 = vld [vmem:[%s15024_s24 + $0x848] sm:$0x10]  ;;  %v14383_v17 = vld [vmem:[%s15024_s24 + $0x83c] sm:$0x10]  ;;  %v1694_v20 = vpack.c.bf16 %v546_v7, %v546_v7  ;;  %v1695_v21 = vpack.c.bf16 %v547_v8, %v547_v8 }
  0x4b   : > { %5419 = vmatpush.bf16.xpose.msra.mxu3 %v12111_v43  ;;  %v14127_v18 = vld [vmem:[%s15024_s24 + $0x44] sm:$0xf]  ;;  %v12143_v23 = vor.u32 %v14128_v12, %v12140_v13  ;;  %v12131_v24 = vor.u32 %v14383_v17, %v12130_v14  ;;  %v280_v30 = vld [vmem:[%s15017_s12 + $0x28] sm:$0xff]  ;;  %v12154_v31 = vld [vmem:[%s15024_s24 + $0x58] sm:$0xf] }
  0x4c   : > { %v12132_v19 = vld [vmem:[%s15024_s24 + $0x840] sm:$0x10]  ;;  %v548_v26 = vld.sshfl [vmem:[#allocation1 + $0x20] sm:$0xff pattern:$0x73625140]  ;;  %v281_v51 = vld [vmem:[%s15017_s12 + $0x30] sm:$0xff] }
  0x4d   : > { %v12135_v25 = vor.u32 %v14127_v18, %v12132_v19  ;;  %v549_v27 = vld.sshfl [vmem:[#allocation1 + $0x28] sm:$0xff pattern:$0x73625140]  ;;  %v550_v28 = vld.sshfl [vmem:[#allocation1 + $0x30] sm:$0xff pattern:$0x73625140]  ;;  %v1696_v36 = vpack.c.bf16 %v548_v26, %v548_v26 }
  0x4e   : > { %v551_v29 = vld.sshfl [vmem:[#allocation1 + $0x38] sm:$0xff pattern:$0x73625140]  ;;  %v14386_v32 = vld [vmem:[%s15024_s24 + $0x854] sm:$0x10]  ;;  %v1697_v37 = vpack.c.bf16 %v549_v27, %v549_v27  ;;  %v1698_v41 = vpack.c.bf16 %v550_v28, %v550_v28 }
  0x4f   : > { %553 = vst [vmem:[#allocation1 + $0x20] ss:$4 sm:$0xff] %v280_v30  ;;  %v14130_v33 = vld [vmem:[%s15024_s24 + $0x5c] sm:$0xf]  ;;  %v12146_v35 = vld [vmem:[%s15024_s24 + $0x50] sm:$0xf]  ;;  %v1699_v42 = vpack.c.bf16 %v551_v29, %v551_v29  ;;  %v12155_v43 = vor.u32 %v14386_v32, %v12154_v31 }
  0x50   : > { %v12156_v34 = vld [vmem:[%s15024_s24 + $0x858] sm:$0x10]  ;;  %v14385_v38 = vld [vmem:[%s15024_s24 + $0x84c] sm:$0x10]  ;;  %v14129_v39 = vld [vmem:[%s15024_s24 + $0x54] sm:$0xf] }
  0x51   : > { %v12148_v40 = vld [vmem:[%s15024_s24 + $0x850] sm:$0x10]  ;;  %v12159_v44 = vor.u32 %v14130_v33, %v12156_v34  ;;  %v12147_v45 = vor.u32 %v14385_v38, %v12146_v35  ;;  %v554_v47 = vld.sshfl [vmem:[#allocation1] sm:$0xff pattern:$0x73625140]  ;;  %v283_v29 = vld [vmem:[%s15017_s12 + $0x40] sm:$0xff] }
  0x52   : > { %5329 = vmatmul.bf16.vlgmr.msrb.gmra.mxu0 %v1688_v58  ;;  %v12151_v46 = vor.u32 %v14129_v39, %v12148_v40  ;;  %v555_v48 = vld.sshfl [vmem:[#allocation1 + $0x8] sm:$0xff pattern:$0x73625140]  ;;  %v556_v49 = vld.sshfl [vmem:[#allocation1 + $0x10] sm:$0xff pattern:$0x73625140]  ;;  %v1700_v57 = vpack.c.bf16 %v554_v47, %v554_v47 }
  0x53   : > { %5342 = vmatmul.bf16.vlgmr.msrb.gmra.mxu1 %v1689_v59  ;;  %5432 = vmatpush.bf16.xpose.msrb.mxu0 %v12115_v3  ;;  %v557_v50 = vld.sshfl [vmem:[#allocation1 + $0x18] sm:$0xff pattern:$0x73625140]  ;;  %v12170_v52 = vld [vmem:[%s15024_s24 + $0x68] sm:$0xf]  ;;  %v1701_v58 = vpack.c.bf16 %v555_v48, %v555_v48  ;;  %v1702_v62 = vpack.c.bf16 %v556_v49, %v556_v49  ;;  %v282_v8 = vld [vmem:[%s15017_s12 + $0x38] sm:$0xff] }
  0x54   : > { %5355 = vmatmul.bf16.vlgmr.msrb.gmra.mxu2 %v1690_v63  ;;  %5368 = vmatmul.bf16.vlgmr.msrb.gmra.mxu3 %v1691_v0  ;;  %562 = vst [vmem:[#allocation1] ss:$4 sm:$0xff] %v281_v51  ;;  %v14388_v53 = vld [vmem:[%s15024_s24 + $0x864] sm:$0x10]  ;;  %v14132_v54 = vld [vmem:[%s15024_s24 + $0x6c] sm:$0xf]  ;;  %v1703_v63 = vpack.c.bf16 %v557_v50, %v557_v50 }
  0x55   : > { %5458 = vmatpush.bf16.xpose.msrb.mxu2 %v12123_v1  ;;  %5471 = vmatpush.bf16.xpose.msrb.mxu3 %v12127_v2  ;;  %v12172_v55 = vld [vmem:[%s15024_s24 + $0x868] sm:$0x10]  ;;  %v12162_v56 = vld [vmem:[%s15024_s24 + $0x60] sm:$0xf]  ;;  %v14131_v60 = vld [vmem:[%s15024_s24 + $0x64] sm:$0xf]  ;;  %v12171_v0 = vor.u32 %v14388_v53, %v12170_v52 }
  0x56   : > { %5445 = vmatpush.bf16.xpose.msrb.mxu1 %v12119_v4  ;;  %v14387_v59 = vld [vmem:[%s15024_s24 + $0x85c] sm:$0x10]  ;;  %v12164_v61 = vld [vmem:[%s15024_s24 + $0x860] sm:$0x10]  ;;  %v12175_v1 = vor.u32 %v14132_v54, %v12172_v55  ;;  %v12186_v9 = vld [vmem:[%s15024_s24 + $0x78] sm:$0xf] }
  0x57   : > { %v12163_v2 = vor.u32 %v14387_v59, %v12162_v56  ;;  %v12167_v3 = vor.u32 %v14131_v60, %v12164_v61  ;;  %v558_v4 = vld.sshfl [vmem:[#allocation1 + $0x20] sm:$0xff pattern:$0x73625140]  ;;  %v559_v5 = vld.sshfl [vmem:[#allocation1 + $0x28] sm:$0xff pattern:$0x73625140] }
  0x58   : > { %v560_v6 = vld.sshfl [vmem:[#allocation1 + $0x30] sm:$0xff pattern:$0x73625140]  ;;  %v561_v7 = vld.sshfl [vmem:[#allocation1 + $0x38] sm:$0xff pattern:$0x73625140]  ;;  %v1704_v14 = vpack.c.bf16 %v558_v4, %v558_v4 }
  0x59   : > { %563 = vst [vmem:[#allocation1 + $0x20] ss:$4 sm:$0xff] %v282_v8  ;;  %v14390_v10 = vld [vmem:[%s15024_s24 + $0x874] sm:$0x10]  ;;  %v14134_v11 = vld [vmem:[%s15024_s24 + $0x7c] sm:$0xf]  ;;  %v1706_v19 = vpack.c.bf16 %v560_v6, %v560_v6 }
  0x5a   : > { %v12188_v12 = vld [vmem:[%s15024_s24 + $0x878] sm:$0x10]  ;;  %v12178_v13 = vld [vmem:[%s15024_s24 + $0x70] sm:$0xf]  ;;  %v14133_v17 = vld [vmem:[%s15024_s24 + $0x74] sm:$0xf] }
  0x5b   : > { %v12180_v18 = vld [vmem:[%s15024_s24 + $0x870] sm:$0x10]  ;;  %v565_v26 = vld.sshfl [vmem:[#allocation1 + $0x8] sm:$0xff pattern:$0x73625140]  ;;  %v284_v48 = vld [vmem:[%s15017_s12 + $0x48] sm:$0xff] }
  0x5c   : > { %v566_v27 = vld.sshfl [vmem:[#allocation1 + $0x10] sm:$0xff pattern:$0x73625140]  ;;  %v567_v28 = vld.sshfl [vmem:[#allocation1 + $0x18] sm:$0xff pattern:$0x73625140] }
  0x5d   : > { %v12202_v30 = vld [vmem:[%s15024_s24 + $0x88] sm:$0xf]  ;;  %v14136_v32 = vld [vmem:[%s15024_s24 + $0x8c] sm:$0xf]  ;;  %v12194_v34 = vld [vmem:[%s15024_s24 + $0x80] sm:$0xf]  ;;  %v1710_v40 = vpack.c.bf16 %v566_v27, %v566_v27 }
  0x5e   : > { %v14392_v31 = vld [vmem:[%s15024_s24 + $0x884] sm:$0x10]  ;;  %v12204_v33 = vld [vmem:[%s15024_s24 + $0x888] sm:$0x10]  ;;  %v14135_v38 = vld [vmem:[%s15024_s24 + $0x84] sm:$0xf] }
  0x5f   : > { %v12196_v39 = vld [vmem:[%s15024_s24 + $0x880] sm:$0x10]  ;;  %v12218_v51 = vld [vmem:[%s15024_s24 + $0x98] sm:$0xf]  ;;  %v14138_v53 = vld [vmem:[%s15024_s24 + $0x9c] sm:$0xf] }
  0x60   : > { %v569_v47 = vld.sshfl [vmem:[#allocation1 + $0x28] sm:$0xff pattern:$0x73625140]  ;;  %v570_v49 = vld.sshfl [vmem:[#allocation1 + $0x30] sm:$0xff pattern:$0x73625140] }
  0x61   : > { %v571_v50 = vld.sshfl [vmem:[#allocation1 + $0x38] sm:$0xff pattern:$0x73625140]  ;;  %v14394_v52 = vld [vmem:[%s15024_s24 + $0x894] sm:$0x10]  ;;  %v1714_v61 = vpack.c.bf16 %v570_v49, %v570_v49 }
  0x62   : > { %5381 = vmatmul.bf16.vlgmr.msra.gmra.mxu0 %v1692_v15  ;;  %v1705_v15 = vpack.c.bf16 %v559_v5, %v559_v5  ;;  %v12220_v54 = vld [vmem:[%s15024_s24 + $0x898] sm:$0x10]  ;;  %v12210_v55 = vld [vmem:[%s15024_s24 + $0x90] sm:$0xf]  ;;  %v14137_v59 = vld [vmem:[%s15024_s24 + $0x94] sm:$0xf] }
  0x63   : > { %5394 = vmatmul.bf16.vlgmr.msra.gmra.mxu1 %v1693_v16  ;;  %5484 = vmatpush.bf16.xpose.msra.mxu0 %v12131_v24  ;;  %v14389_v16 = vld [vmem:[%s15024_s24 + $0x86c] sm:$0x10]  ;;  %v12183_v24 = vor.u32 %v14133_v17, %v12180_v18  ;;  %v12212_v60 = vld [vmem:[%s15024_s24 + $0x890] sm:$0x10]  ;;  %v12234_v8 = vld [vmem:[%s15024_s24 + $0xa8] sm:$0xf] }
  0x64   : > { %5407 = vmatmul.bf16.vlgmr.msra.gmra.mxu2 %v1694_v20  ;;  %5420 = vmatmul.bf16.vlgmr.msra.gmra.mxu3 %v1695_v21  ;;  %v1707_v20 = vpack.c.bf16 %v561_v7, %v561_v7  ;;  %v12187_v21 = vor.u32 %v14390_v10, %v12186_v9  ;;  %v285_v5 = vld [vmem:[%s15017_s12 + $0x50] sm:$0xff]  ;;  %v14396_v9 = vld [vmem:[%s15024_s24 + $0x8a4] sm:$0x10]  ;;  %v14140_v10 = vld [vmem:[%s15024_s24 + $0xac] sm:$0xf] }
  0x65   : > { %5510 = vmatpush.bf16.xpose.msra.mxu2 %v12139_v22  ;;  %5523 = vmatpush.bf16.xpose.msra.mxu3 %v12143_v23  ;;  %v12191_v22 = vor.u32 %v14134_v11, %v12188_v12  ;;  %v12179_v23 = vor.u32 %v14389_v16, %v12178_v13  ;;  %v12236_v11 = vld [vmem:[%s15024_s24 + $0x8a8] sm:$0x10]  ;;  %v12226_v12 = vld [vmem:[%s15024_s24 + $0xa0] sm:$0xf]  ;;  %v14139_v16 = vld [vmem:[%s15024_s24 + $0xa4] sm:$0xf] }
  0x66   : > { %5497 = vmatpush.bf16.xpose.msra.mxu1 %v12135_v25  ;;  %v564_v25 = vld.sshfl [vmem:[#allocation1] sm:$0xff pattern:$0x73625140]  ;;  %v12228_v17 = vld [vmem:[%s15024_s24 + $0x8a0] sm:$0x10] }
  0x67   : > { %572 = vst [vmem:[#allocation1] ss:$4 sm:$0xff] %v283_v29  ;;  %v1708_v35 = vpack.c.bf16 %v564_v25, %v564_v25  ;;  %v12244_v49 = vld [vmem:[%s15024_s24 + $0x8b0] sm:$0x10] }
  0x6e   : > { %v575_v4 = vld.sshfl [vmem:[#allocation1 + $0x8] sm:$0xff pattern:$0x73625140]  ;;  %v576_v6 = vld.sshfl [vmem:[#allocation1 + $0x10] sm:$0xff pattern:$0x73625140] }
  0x6f   : > { %v577_v7 = vld.sshfl [vmem:[#allocation1 + $0x18] sm:$0xff pattern:$0x73625140] }
  0x72   : > { %5433 = vmatmul.bf16.vlgmr.msrb.gmra.mxu0 %v1696_v36  ;;  %v1709_v36 = vpack.c.bf16 %v565_v26, %v565_v26  ;;  %v12231_v26 = vor.u32 %v14139_v16, %v12228_v17  ;;  %v14399_v16 = vld [vmem:[%s15024_s24 + $0x8bc] sm:$0x10]  ;;  %v14143_v17 = vld [vmem:[%s15024_s24 + $0xc4] sm:$0xf] }
  0x73   : > { %5446 = vmatmul.bf16.vlgmr.msrb.gmra.mxu1 %v1697_v37  ;;  %5536 = vmatpush.bf16.xpose.msrb.mxu0 %v12147_v45  ;;  %v14391_v37 = vld [vmem:[%s15024_s24 + $0x87c] sm:$0x10]  ;;  %v12199_v45 = vor.u32 %v14135_v38, %v12196_v39  ;;  %v12250_v38 = vld [vmem:[%s15024_s24 + $0xb8] sm:$0xf] }
  0x74   : > { %5459 = vmatmul.bf16.vlgmr.msrb.gmra.mxu2 %v1698_v41  ;;  %5472 = vmatmul.bf16.vlgmr.msrb.gmra.mxu3 %v1699_v42  ;;  %v1711_v41 = vpack.c.bf16 %v567_v28, %v567_v28  ;;  %v12203_v42 = vor.u32 %v14392_v31, %v12202_v30  ;;  %v14398_v39 = vld [vmem:[%s15024_s24 + $0x8b4] sm:$0x10] }
  0x75   : > { %5562 = vmatpush.bf16.xpose.msrb.mxu2 %v12155_v43  ;;  %5575 = vmatpush.bf16.xpose.msrb.mxu3 %v12159_v44  ;;  %v12207_v43 = vor.u32 %v14136_v32, %v12204_v33  ;;  %v12195_v44 = vor.u32 %v14391_v37, %v12194_v34  ;;  %v286_v34 = vld [vmem:[%s15017_s12 + $0x58] sm:$0xff] }
  0x76   : > { %5549 = vmatpush.bf16.xpose.msrb.mxu1 %v12151_v46  ;;  %v568_v46 = vld.sshfl [vmem:[#allocation1 + $0x20] sm:$0xff pattern:$0x73625140] }
  0x77   : > { %573 = vst [vmem:[#allocation1 + $0x20] ss:$4 sm:$0xff] %v284_v48  ;;  %v1712_v56 = vpack.c.bf16 %v568_v46, %v568_v46  ;;  %v14141_v48 = vld [vmem:[%s15024_s24 + $0xb4] sm:$0xf] }
  0x7e   : > { %v578_v32 = vld.sshfl [vmem:[#allocation1 + $0x20] sm:$0xff pattern:$0x73625140]  ;;  %v579_v33 = vld.sshfl [vmem:[#allocation1 + $0x28] sm:$0xff pattern:$0x73625140] }
  0x7f   : > { %v581_v37 = vld.sshfl [vmem:[#allocation1 + $0x38] sm:$0xff pattern:$0x73625140]  ;;  %v1721_v46 = vpack.c.bf16 %v579_v33, %v579_v33 }
  0x82   : > { %5485 = vmatmul.bf16.vlgmr.msra.gmra.mxu0 %v1700_v57  ;;  %v1713_v57 = vpack.c.bf16 %v569_v47, %v569_v47  ;;  %v14397_v47 = vld [vmem:[%s15024_s24 + $0x8ac] sm:$0x10] }
  0x83   : > { %5498 = vmatmul.bf16.vlgmr.msra.gmra.mxu1 %v1701_v58  ;;  %5588 = vmatpush.bf16.xpose.msra.mxu0 %v12163_v2  ;;  %v14393_v58 = vld [vmem:[%s15024_s24 + $0x88c] sm:$0x10]  ;;  %v12215_v2 = vor.u32 %v14137_v59, %v12212_v60 }
  0x84   : > { %5511 = vmatmul.bf16.vlgmr.msra.gmra.mxu2 %v1702_v62  ;;  %5524 = vmatmul.bf16.vlgmr.msra.gmra.mxu3 %v1703_v63  ;;  %v1715_v62 = vpack.c.bf16 %v571_v50, %v571_v50  ;;  %v12219_v63 = vor.u32 %v14394_v52, %v12218_v51 }
  0x85   : > { %5614 = vmatpush.bf16.xpose.msra.mxu2 %v12171_v0  ;;  %5627 = vmatpush.bf16.xpose.msra.mxu3 %v12175_v1  ;;  %v12223_v0 = vor.u32 %v14138_v53, %v12220_v54  ;;  %v12211_v1 = vor.u32 %v14393_v58, %v12210_v55  ;;  %v1723_v53 = vpack.c.bf16 %v581_v37, %v581_v37 }
  0x86   : > { %5601 = vmatpush.bf16.xpose.msra.mxu1 %v12167_v3  ;;  %v574_v3 = vld.sshfl [vmem:[#allocation1] sm:$0xff pattern:$0x73625140]  ;;  %v12251_v55 = vor.u32 %v14398_v39, %v12250_v38  ;;  %v12247_v58 = vor.u32 %v14141_v48, %v12244_v49  ;;  %v14401_v49 = vld [vmem:[%s15024_s24 + $0x8cc] sm:$0x10] }
  0x87   : > { %582 = vst [vmem:[#allocation1] ss:$4 sm:$0xff] %v285_v5  ;;  %v1716_v13 = vpack.c.bf16 %v574_v3, %v574_v3  ;;  %v287_v3 = vld [vmem:[%s15017_s12 + $0x60] sm:$0xff] }
  0x8e   : > { %v586_v5 = vld.sshfl [vmem:[#allocation1 + $0x10] sm:$0xff pattern:$0x73625140] }
  0x92   : > { %5537 = vmatmul.bf16.vlgmr.msrb.gmra.mxu0 %v1704_v14  ;;  %v1717_v14 = vpack.c.bf16 %v575_v4, %v575_v4 }
  0x93   : > { %5550 = vmatmul.bf16.vlgmr.msrb.gmra.mxu1 %v1705_v15  ;;  %5640 = vmatpush.bf16.xpose.msrb.mxu0 %v12179_v23  ;;  %v14395_v15 = vld [vmem:[%s15024_s24 + $0x89c] sm:$0x10]  ;;  %v12235_v23 = vor.u32 %v14396_v9, %v12234_v8  ;;  %v14400_v8 = vld [vmem:[%s15024_s24 + $0x8c4] sm:$0x10]  ;;  %v14144_v9 = vld [vmem:[%s15024_s24 + $0xcc] sm:$0xf] }
  0x94   : > { %5563 = vmatmul.bf16.vlgmr.msrb.gmra.mxu2 %v1706_v19  ;;  %5576 = vmatmul.bf16.vlgmr.msrb.gmra.mxu3 %v1707_v20  ;;  %v1718_v20 = vpack.c.bf16 %v576_v6, %v576_v6  ;;  %v12227_v25 = vor.u32 %v14395_v15, %v12226_v12  ;;  %v587_v6 = vld.sshfl [vmem:[#allocation1 + $0x18] sm:$0xff pattern:$0x73625140] }
  0x95   : > { %5666 = vmatpush.bf16.xpose.msrb.mxu2 %v12187_v21  ;;  %5679 = vmatpush.bf16.xpose.msrb.mxu3 %v12191_v22  ;;  %v1719_v21 = vpack.c.bf16 %v577_v7, %v577_v7  ;;  %v12266_v7 = vld [vmem:[%s15024_s24 + $0xc8] sm:$0xf] }
  0x96   : > { %5653 = vmatpush.bf16.xpose.msrb.mxu1 %v12183_v24  ;;  %v12239_v24 = vor.u32 %v14140_v10, %v12236_v11  ;;  %v12268_v10 = vld [vmem:[%s15024_s24 + $0x8c8] sm:$0x10]  ;;  %v12258_v11 = vld [vmem:[%s15024_s24 + $0xc0] sm:$0xf] }
  0xa2   : > { %5589 = vmatmul.bf16.vlgmr.msra.gmra.mxu0 %v1708_v35 }
  0xa3   : > { %5602 = vmatmul.bf16.vlgmr.msra.gmra.mxu1 %v1709_v36  ;;  %5692 = vmatpush.bf16.xpose.msra.mxu0 %v12195_v44  ;;  %v580_v36 = vld.sshfl [vmem:[#allocation1 + $0x30] sm:$0xff pattern:$0x73625140] }
  0xa4   : > { %5615 = vmatmul.bf16.vlgmr.msra.gmra.mxu2 %v1710_v40  ;;  %5628 = vmatmul.bf16.vlgmr.msra.gmra.mxu3 %v1711_v41  ;;  %583 = vst [vmem:[#allocation1 + $0x20] ss:$4 sm:$0xff] %v286_v34  ;;  %v14142_v40 = vld [vmem:[%s15024_s24 + $0xbc] sm:$0xf]  ;;  %v1722_v52 = vpack.c.bf16 %v580_v36, %v580_v36  ;;  %v288_v36 = vld [vmem:[%s15017_s12 + $0x68] sm:$0xff] }
  0xa5   : > { %5718 = vmatpush.bf16.xpose.msra.mxu2 %v12203_v42  ;;  %5731 = vmatpush.bf16.xpose.msra.mxu3 %v12207_v43  ;;  %v12252_v41 = vld [vmem:[%s15024_s24 + $0x8b8] sm:$0x10]  ;;  %v12242_v42 = vld [vmem:[%s15024_s24 + $0xb0] sm:$0xf] }
  0xa6   : > { %5705 = vmatpush.bf16.xpose.msra.mxu1 %v12199_v45  ;;  %v1720_v45 = vpack.c.bf16 %v578_v32, %v578_v32 }
  0xab   : > { %v588_v34 = vld.sshfl [vmem:[#allocation1 + $0x20] sm:$0xff pattern:$0x73625140]  ;;  %v590_v38 = vld.sshfl [vmem:[#allocation1 + $0x30] sm:$0xff pattern:$0x73625140] }
  0xac   : > { %v591_v39 = vld.sshfl [vmem:[#allocation1 + $0x38] sm:$0xff pattern:$0x73625140] }
  0xb2   : > { %5641 = vmatmul.bf16.vlgmr.msrb.gmra.mxu0 %v1712_v56  ;;  %v12255_v56 = vor.u32 %v14142_v40, %v12252_v41  ;;  %v12282_v40 = vld [vmem:[%s15024_s24 + $0xd8] sm:$0xf] }
  0xb3   : > { %5654 = vmatmul.bf16.vlgmr.msrb.gmra.mxu1 %v1713_v57  ;;  %5744 = vmatpush.bf16.xpose.msrb.mxu0 %v12211_v1  ;;  %v12243_v57 = vor.u32 %v14397_v47, %v12242_v42  ;;  %v584_v1 = vld.sshfl [vmem:[#allocation1] sm:$0xff pattern:$0x73625140]  ;;  %v1728_v47 = vpack.c.bf16 %v588_v34, %v588_v34 }
  0xb4   : > { %5667 = vmatmul.bf16.vlgmr.msrb.gmra.mxu2 %v1714_v61  ;;  %5680 = vmatmul.bf16.vlgmr.msrb.gmra.mxu3 %v1715_v62  ;;  %v14402_v41 = vld [vmem:[%s15024_s24 + $0x8d4] sm:$0x10]  ;;  %v14146_v42 = vld [vmem:[%s15024_s24 + $0xdc] sm:$0xf] }
  0xb5   : > { %5770 = vmatpush.bf16.xpose.msrb.mxu2 %v12219_v63  ;;  %5783 = vmatpush.bf16.xpose.msrb.mxu3 %v12223_v0 }
  0xb6   : > { %5757 = vmatpush.bf16.xpose.msrb.mxu1 %v12215_v2  ;;  %v585_v2 = vld.sshfl [vmem:[#allocation1 + $0x8] sm:$0xff pattern:$0x73625140] }
  0xb7   : > { %592 = vst [vmem:[#allocation1] ss:$4 sm:$0xff] %v287_v3  ;;  %v1725_v15 = vpack.c.bf16 %v585_v2, %v585_v2 }
  0xbe   : > { %v594_v3 = vld.sshfl [vmem:[#allocation1] sm:$0xff pattern:$0x73625140] }
  0xbf   : > { %v5278_v18 = vpop.f32.mrf.mxu0 }
  0xc0   : > { %v5291_v19 = vpop.f32.mrf.mxu1 }
  0xc1   : > { %v5292_v22 = vadd.f32 %v5291_v19, %v5278_v18  ;;  %v12260_v18 = vld [vmem:[%s15024_s24 + $0x8c0] sm:$0x10] }
  0xc2   : > { %5693 = vmatmul.bf16.vlgmr.msra.gmra.mxu0 %v1716_v13 }
  0xc3   : > { %5706 = vmatmul.bf16.vlgmr.msra.gmra.mxu1 %v1717_v14  ;;  %5796 = vmatpush.bf16.xpose.msra.mxu0 %v12227_v25  ;;  %v1724_v14 = vpack.c.bf16 %v584_v1, %v584_v1  ;;  %v12271_v25 = vor.u32 %v14144_v9, %v12268_v10  ;;  %v12298_v9 = vld [vmem:[%s15024_s24 + $0xe8] sm:$0xf] }
  0xc4   : > { %5719 = vmatmul.bf16.vlgmr.msra.gmra.mxu2 %v1718_v20  ;;  %5732 = vmatmul.bf16.vlgmr.msra.gmra.mxu3 %v1719_v21  ;;  %v1726_v21 = vpack.c.bf16 %v586_v5, %v586_v5  ;;  %v289_v5 = vld [vmem:[%s15017_s12 + $0x70] sm:$0xff]  ;;  %v14404_v10 = vld [vmem:[%s15024_s24 + $0x8e4] sm:$0x10] }
  0xc5   : > { %5822 = vmatpush.bf16.xpose.msra.mxu2 %v12235_v23  ;;  %5835 = vmatpush.bf16.xpose.msra.mxu3 %v12239_v24  ;;  %v12267_v24 = vor.u32 %v14400_v8, %v12266_v7  ;;  %v596_v7 = vld.sshfl [vmem:[#allocation1 + $0x10] sm:$0xff pattern:$0x73625140]  ;;  %v597_v8 = vld.sshfl [vmem:[#allocation1 + $0x18] sm:$0xff pattern:$0x73625140] }
  0xc6   : > { %5809 = vmatpush.bf16.xpose.msra.mxu1 %v12231_v26  ;;  %v12259_v26 = vor.u32 %v14399_v16, %v12258_v11  ;;  %v14148_v11 = vld [vmem:[%s15024_s24 + $0xec] sm:$0xf]  ;;  %v1732_v16 = vpack.c.bf16 %v594_v3, %v594_v3 }
  0xc7   : > { %v5304_v27 = vpop.f32.mrf.mxu2  ;;  %v5317_v28 = vpop.f32.mrf.mxu3 }
  0xc8   : > { %v5305_v29 = vadd.f32 %v5304_v27, %v5292_v22  ;;  %v5280_v30 = vpop.f32.mrf.mxu0  ;;  %v5293_v31 = vpop.f32.mrf.mxu1  ;;  %v1727_v22 = vpack.c.bf16 %v587_v6, %v587_v6  ;;  %v12263_v27 = vor.u32 %v14143_v17, %v12260_v18  ;;  %v14403_v18 = vld [vmem:[%s15024_s24 + $0x8dc] sm:$0x10] }
  0xca   : > { %v5318_v35 = vadd.f32 %v5317_v28, %v5305_v29 }
  0xcf   : > { %v5306_v43 = vpop.f32.mrf.mxu2  ;;  %v5319_v44 = vpop.f32.mrf.mxu3 }
  0xd0   : > { %v5330_v50 = vpop.f32.mrf.mxu0  ;;  %v5343_v51 = vpop.f32.mrf.mxu1  ;;  %v12284_v43 = vld [vmem:[%s15024_s24 + $0x8d8] sm:$0x10]  ;;  %v12274_v44 = vld [vmem:[%s15024_s24 + $0xd0] sm:$0xf] }
  0xd1   : > { %v5331_v54 = vadd.f32 %v5330_v50, %v5318_v35  ;;  %v589_v35 = vld.sshfl [vmem:[#allocation1 + $0x28] sm:$0xff pattern:$0x73625140]  ;;  %v14145_v50 = vld [vmem:[%s15024_s24 + $0xd4] sm:$0xf] }
  0xd2   : > { %5745 = vmatmul.bf16.vlgmr.msrb.gmra.mxu0 %v1720_v45  ;;  %593 = vst [vmem:[#allocation1 + $0x20] ss:$4 sm:$0xff] %v288_v36  ;;  %v1729_v48 = vpack.c.bf16 %v589_v35, %v589_v35 }
  0xd3   : > { %v5344_v59 = vadd.f32 %v5343_v51, %v5331_v54  ;;  %5758 = vmatmul.bf16.vlgmr.msrb.gmra.mxu1 %v1721_v46  ;;  %5848 = vmatpush.bf16.xpose.msrb.mxu0 %v12243_v57  ;;  %v12276_v51 = vld [vmem:[%s15024_s24 + $0x8d0] sm:$0x10]  ;;  %v1730_v54 = vpack.c.bf16 %v590_v38, %v590_v38  ;;  %v12283_v57 = vor.u32 %v14402_v41, %v12282_v40  ;;  %v290_v38 = vld [vmem:[%s15017_s12 + $0x78] sm:$0xff] }
  0xd4   : > { %5771 = vmatmul.bf16.vlgmr.msrb.gmra.mxu2 %v1722_v52  ;;  %5784 = vmatmul.bf16.vlgmr.msrb.gmra.mxu3 %v1723_v53 }
  0xd5   : > { %5874 = vmatpush.bf16.xpose.msrb.mxu2 %v12251_v55  ;;  %5887 = vmatpush.bf16.xpose.msrb.mxu3 %v12255_v56  ;;  %v1731_v55 = vpack.c.bf16 %v591_v39, %v591_v39 }
  0xd6   : > { %5861 = vmatpush.bf16.xpose.msrb.mxu1 %v12247_v58  ;;  %v12287_v58 = vor.u32 %v14146_v42, %v12284_v43  ;;  %v12314_v42 = vld [vmem:[%s15024_s24 + $0xf8] sm:$0xf] }
  0xd7   : > { %v5356_v60 = vpop.f32.mrf.mxu2  ;;  %v5369_v61 = vpop.f32.mrf.mxu3  ;;  %v14406_v43 = vld [vmem:[%s15024_s24 + $0x8f4] sm:$0x10] }
  0xd8   : > { %v5357_v62 = vadd.f32 %v5356_v60, %v5344_v59  ;;  %v5332_v63 = vpop.f32.mrf.mxu0  ;;  %v5345_v0 = vpop.f32.mrf.mxu1  ;;  %v12275_v59 = vor.u32 %v14401_v49, %v12274_v44  ;;  %v12279_v60 = vor.u32 %v14145_v50, %v12276_v51  ;;  %v14150_v44 = vld [vmem:[%s15024_s24 + $0xfc] sm:$0xf]  ;;  %v14405_v51 = vld [vmem:[%s15024_s24 + $0x8ec] sm:$0x10] }
  0xd9   : > { %v598_v36 = vld.sshfl [vmem:[#allocation1 + $0x20] sm:$0xff pattern:$0x73625140]  ;;  %v600_v40 = vld.sshfl [vmem:[#allocation1 + $0x30] sm:$0xff pattern:$0x73625140] }
  0xda   : > { %v5370_v4 = vadd.f32 %v5369_v61, %v5357_v62  ;;  %v601_v41 = vld.sshfl [vmem:[#allocation1 + $0x38] sm:$0xff pattern:$0x73625140]  ;;  %v1736_v49 = vpack.c.bf16 %v598_v36, %v598_v36 }
  0xdf   : > { %v5358_v12 = vpop.f32.mrf.mxu2  ;;  %v5371_v13 = vpop.f32.mrf.mxu3 }
  0xe0   : > { %v5382_v19 = vpop.f32.mrf.mxu0  ;;  %v5395_v20 = vpop.f32.mrf.mxu1  ;;  %v12300_v12 = vld [vmem:[%s15024_s24 + $0x8e8] sm:$0x10]  ;;  %v12290_v13 = vld [vmem:[%s15024_s24 + $0xe0] sm:$0xf] }
  0xe1   : > { %v5383_v23 = vadd.f32 %v5382_v19, %v5370_v4  ;;  %v595_v4 = vld.sshfl [vmem:[#allocation1 + $0x8] sm:$0xff pattern:$0x73625140] }
  0xe2   : > { %5797 = vmatmul.bf16.vlgmr.msra.gmra.mxu0 %v1724_v14  ;;  %602 = vst [vmem:[#allocation1] ss:$4 sm:$0xff] %v289_v5  ;;  %v1733_v17 = vpack.c.bf16 %v595_v4, %v595_v4  ;;  %v14147_v19 = vld [vmem:[%s15024_s24 + $0xe4] sm:$0xf] }
  0xe3   : > { %v5396_v28 = vadd.f32 %v5395_v20, %v5383_v23  ;;  %5810 = vmatmul.bf16.vlgmr.msra.gmra.mxu1 %v1725_v15  ;;  %5900 = vmatpush.bf16.xpose.msra.mxu0 %v12259_v26  ;;  %v12292_v20 = vld [vmem:[%s15024_s24 + $0x8e0] sm:$0x10]  ;;  %v1734_v23 = vpack.c.bf16 %v596_v7, %v596_v7  ;;  %v12299_v26 = vor.u32 %v14404_v10, %v12298_v9 }
  0xe4   : > { %5823 = vmatmul.bf16.vlgmr.msra.gmra.mxu2 %v1726_v21  ;;  %5836 = vmatmul.bf16.vlgmr.msra.gmra.mxu3 %v1727_v22  ;;  %v291_v7 = vld [vmem:[%s15017_s12 + $0x80] sm:$0xff] }
  0xe5   : > { %5926 = vmatpush.bf16.xpose.msra.mxu2 %v12267_v24  ;;  %5939 = vmatpush.bf16.xpose.msra.mxu3 %v12271_v25  ;;  %v1735_v24 = vpack.c.bf16 %v597_v8, %v597_v8 }
  0xe6   : > { %5913 = vmatpush.bf16.xpose.msra.mxu1 %v12263_v27  ;;  %v12303_v27 = vor.u32 %v14148_v11, %v12300_v12  ;;  %v12330_v11 = vld [vmem:[%s15024_s24 + $0x108] sm:$0xf] }
  0xe7   : > { %v5408_v29 = vpop.f32.mrf.mxu2  ;;  %v5421_v30 = vpop.f32.mrf.mxu3  ;;  %v14408_v12 = vld [vmem:[%s15024_s24 + $0x904] sm:$0x10] }
  0xe8   : > { %v5409_v31 = vadd.f32 %v5408_v29, %v5396_v28  ;;  %v5384_v32 = vpop.f32.mrf.mxu0  ;;  %v5397_v33 = vpop.f32.mrf.mxu1  ;;  %v12291_v28 = vor.u32 %v14403_v18, %v12290_v13  ;;  %v12295_v29 = vor.u32 %v14147_v19, %v12292_v20  ;;  %v14152_v13 = vld [vmem:[%s15024_s24 + $0x10c] sm:$0xf]  ;;  %v14407_v20 = vld [vmem:[%s15024_s24 + $0x8fc] sm:$0x10] }
  0xe9   : > { %v604_v5 = vld.sshfl [vmem:[#allocation1] sm:$0xff pattern:$0x73625140]  ;;  %v606_v9 = vld.sshfl [vmem:[#allocation1 + $0x10] sm:$0xff pattern:$0x73625140] }
  0xea   : > { %v5422_v37 = vadd.f32 %v5421_v30, %v5409_v31  ;;  %v607_v10 = vld.sshfl [vmem:[#allocation1 + $0x18] sm:$0xff pattern:$0x73625140]  ;;  %v1740_v18 = vpack.c.bf16 %v604_v5, %v604_v5 }
  0xef   : > { %v5410_v45 = vpop.f32.mrf.mxu2  ;;  %v5423_v46 = vpop.f32.mrf.mxu3 }
  0xf0   : > { %v5434_v52 = vpop.f32.mrf.mxu0  ;;  %v5447_v53 = vpop.f32.mrf.mxu1  ;;  %v12316_v45 = vld [vmem:[%s15024_s24 + $0x8f8] sm:$0x10]  ;;  %v12306_v46 = vld [vmem:[%s15024_s24 + $0xf0] sm:$0xf] }
  0xf1   : > { %v5435_v56 = vadd.f32 %v5434_v52, %v5422_v37  ;;  %v599_v37 = vld.sshfl [vmem:[#allocation1 + $0x28] sm:$0xff pattern:$0x73625140]  ;;  %v14149_v52 = vld [vmem:[%s15024_s24 + $0xf4] sm:$0xf] }
  0xf2   : > { %5849 = vmatmul.bf16.vlgmr.msrb.gmra.mxu0 %v1728_v47  ;;  %603 = vst [vmem:[#allocation1 + $0x20] ss:$4 sm:$0xff] %v290_v38  ;;  %v1737_v50 = vpack.c.bf16 %v599_v37, %v599_v37 }
  0xf3   : > { %v5448_v61 = vadd.f32 %v5447_v53, %v5435_v56  ;;  %5862 = vmatmul.bf16.vlgmr.msrb.gmra.mxu1 %v1729_v48  ;;  %5952 = vmatpush.bf16.xpose.msrb.mxu0 %v12275_v59  ;;  %v12308_v53 = vld [vmem:[%s15024_s24 + $0x8f0] sm:$0x10]  ;;  %v1738_v56 = vpack.c.bf16 %v600_v40, %v600_v40  ;;  %v12315_v59 = vor.u32 %v14406_v43, %v12314_v42  ;;  %v292_v40 = vld [vmem:[%s15017_s12 + $0x88] sm:$0xff] }
  0xf4   : > { %5875 = vmatmul.bf16.vlgmr.msrb.gmra.mxu2 %v1730_v54  ;;  %5888 = vmatmul.bf16.vlgmr.msrb.gmra.mxu3 %v1731_v55 }
  0xf5   : > { %5978 = vmatpush.bf16.xpose.msrb.mxu2 %v12283_v57  ;;  %5991 = vmatpush.bf16.xpose.msrb.mxu3 %v12287_v58  ;;  %v1739_v57 = vpack.c.bf16 %v601_v41, %v601_v41 }
  0xf6   : > { %5965 = vmatpush.bf16.xpose.msrb.mxu1 %v12279_v60  ;;  %v12319_v60 = vor.u32 %v14150_v44, %v12316_v45  ;;  %v12346_v44 = vld [vmem:[%s15024_s24 + $0x118] sm:$0xf] }
  0xf7   : > { %v5460_v62 = vpop.f32.mrf.mxu2  ;;  %v5473_v63 = vpop.f32.mrf.mxu3  ;;  %v14410_v45 = vld [vmem:[%s15024_s24 + $0x914] sm:$0x10] }
  0xf8   : > { %v5461_v0 = vadd.f32 %v5460_v62, %v5448_v61  ;;  %v5436_v1 = vpop.f32.mrf.mxu0  ;;  %v5449_v2 = vpop.f32.mrf.mxu1  ;;  %v12307_v61 = vor.u32 %v14405_v51, %v12306_v46  ;;  %v12311_v62 = vor.u32 %v14149_v52, %v12308_v53  ;;  %v14154_v46 = vld [vmem:[%s15024_s24 + $0x11c] sm:$0xf]  ;;  %v14409_v53 = vld [vmem:[%s15024_s24 + $0x90c] sm:$0x10] }
  0xf9   : > { %v608_v38 = vld.sshfl [vmem:[#allocation1 + $0x20] sm:$0xff pattern:$0x73625140]  ;;  %v610_v42 = vld.sshfl [vmem:[#allocation1 + $0x30] sm:$0xff pattern:$0x73625140] }
  0xfa   : > { %v5474_v6 = vadd.f32 %v5473_v63, %v5461_v0  ;;  %v611_v43 = vld.sshfl [vmem:[#allocation1 + $0x38] sm:$0xff pattern:$0x73625140]  ;;  %v1744_v51 = vpack.c.bf16 %v608_v38, %v608_v38 }
  0xff   : > { %v5462_v14 = vpop.f32.mrf.mxu2  ;;  %v5475_v15 = vpop.f32.mrf.mxu3 }
 0x100   : > { %v5486_v21 = vpop.f32.mrf.mxu0  ;;  %v5499_v22 = vpop.f32.mrf.mxu1  ;;  %v12332_v14 = vld [vmem:[%s15024_s24 + $0x908] sm:$0x10]  ;;  %v12322_v15 = vld [vmem:[%s15024_s24 + $0x100] sm:$0xf] }
 0x101   : > { %v5487_v25 = vadd.f32 %v5486_v21, %v5474_v6  ;;  %v605_v6 = vld.sshfl [vmem:[#allocation1 + $0x8] sm:$0xff pattern:$0x73625140] }
 0x102   : > { %5901 = vmatmul.bf16.vlgmr.msra.gmra.mxu0 %v1732_v16  ;;  %612 = vst [vmem:[#allocation1] ss:$4 sm:$0xff] %v291_v7  ;;  %v1741_v19 = vpack.c.bf16 %v605_v6, %v605_v6  ;;  %v14151_v21 = vld [vmem:[%s15024_s24 + $0x104] sm:$0xf] }
 0x103   : > { %v5500_v30 = vadd.f32 %v5499_v22, %v5487_v25  ;;  %5914 = vmatmul.bf16.vlgmr.msra.gmra.mxu1 %v1733_v17  ;;  %6004 = vmatpush.bf16.xpose.msra.mxu0 %v12291_v28  ;;  %v12324_v22 = vld [vmem:[%s15024_s24 + $0x900] sm:$0x10]  ;;  %v1742_v25 = vpack.c.bf16 %v606_v9, %v606_v9  ;;  %v12331_v28 = vor.u32 %v14408_v12, %v12330_v11  ;;  %v293_v9 = vld [vmem:[%s15017_s12 + $0x90] sm:$0xff] }
 0x104   : > { %5927 = vmatmul.bf16.vlgmr.msra.gmra.mxu2 %v1734_v23  ;;  %5940 = vmatmul.bf16.vlgmr.msra.gmra.mxu3 %v1735_v24 }
 0x105   : > { %6030 = vmatpush.bf16.xpose.msra.mxu2 %v12299_v26  ;;  %6043 = vmatpush.bf16.xpose.msra.mxu3 %v12303_v27  ;;  %v1743_v26 = vpack.c.bf16 %v607_v10, %v607_v10 }
 0x106   : > { %6017 = vmatpush.bf16.xpose.msra.mxu1 %v12295_v29  ;;  %v12335_v29 = vor.u32 %v14152_v13, %v12332_v14  ;;  %v12362_v13 = vld [vmem:[%s15024_s24 + $0x128] sm:$0xf] }
 0x107   : > { %v5512_v31 = vpop.f32.mrf.mxu2  ;;  %v5525_v32 = vpop.f32.mrf.mxu3  ;;  %v14412_v14 = vld [vmem:[%s15024_s24 + $0x924] sm:$0x10] }
 0x108   : > { %v5513_v33 = vadd.f32 %v5512_v31, %v5500_v30  ;;  %v5488_v34 = vpop.f32.mrf.mxu0  ;;  %v5501_v35 = vpop.f32.mrf.mxu1  ;;  %v12323_v30 = vor.u32 %v14407_v20, %v12322_v15  ;;  %v12327_v31 = vor.u32 %v14151_v21, %v12324_v22  ;;  %v14156_v15 = vld [vmem:[%s15024_s24 + $0x12c] sm:$0xf]  ;;  %v14411_v22 = vld [vmem:[%s15024_s24 + $0x91c] sm:$0x10] }
 0x109   : > { %v614_v7 = vld.sshfl [vmem:[#allocation1] sm:$0xff pattern:$0x73625140]  ;;  %v616_v11 = vld.sshfl [vmem:[#allocation1 + $0x10] sm:$0xff pattern:$0x73625140] }
 0x10a   : > { %v5526_v39 = vadd.f32 %v5525_v32, %v5513_v33  ;;  %v617_v12 = vld.sshfl [vmem:[#allocation1 + $0x18] sm:$0xff pattern:$0x73625140]  ;;  %v1748_v20 = vpack.c.bf16 %v614_v7, %v614_v7 }
 0x10f   : > { %v5514_v47 = vpop.f32.mrf.mxu2  ;;  %v5527_v48 = vpop.f32.mrf.mxu3 }
 0x110   : > { %v5538_v54 = vpop.f32.mrf.mxu0  ;;  %v5551_v55 = vpop.f32.mrf.mxu1  ;;  %v12348_v47 = vld [vmem:[%s15024_s24 + $0x918] sm:$0x10]  ;;  %v12338_v48 = vld [vmem:[%s15024_s24 + $0x110] sm:$0xf] }
 0x111   : > { %v5539_v58 = vadd.f32 %v5538_v54, %v5526_v39  ;;  %v609_v39 = vld.sshfl [vmem:[#allocation1 + $0x28] sm:$0xff pattern:$0x73625140]  ;;  %v14153_v54 = vld [vmem:[%s15024_s24 + $0x114] sm:$0xf] }
 0x112   : > { %5953 = vmatmul.bf16.vlgmr.msrb.gmra.mxu0 %v1736_v49  ;;  %613 = vst [vmem:[#allocation1 + $0x20] ss:$4 sm:$0xff] %v292_v40  ;;  %v1745_v52 = vpack.c.bf16 %v609_v39, %v609_v39 }
 0x113   : > { %v5552_v63 = vadd.f32 %v5551_v55, %v5539_v58  ;;  %5966 = vmatmul.bf16.vlgmr.msrb.gmra.mxu1 %v1737_v50  ;;  %6056 = vmatpush.bf16.xpose.msrb.mxu0 %v12307_v61  ;;  %v12340_v55 = vld [vmem:[%s15024_s24 + $0x910] sm:$0x10]  ;;  %v1746_v58 = vpack.c.bf16 %v610_v42, %v610_v42  ;;  %v12347_v61 = vor.u32 %v14410_v45, %v12346_v44  ;;  %v294_v42 = vld [vmem:[%s15017_s12 + $0x98] sm:$0xff] }
 0x114   : > { %5979 = vmatmul.bf16.vlgmr.msrb.gmra.mxu2 %v1738_v56  ;;  %5992 = vmatmul.bf16.vlgmr.msrb.gmra.mxu3 %v1739_v57 }
 0x115   : > { %6082 = vmatpush.bf16.xpose.msrb.mxu2 %v12315_v59  ;;  %6095 = vmatpush.bf16.xpose.msrb.mxu3 %v12319_v60  ;;  %v1747_v59 = vpack.c.bf16 %v611_v43, %v611_v43 }
 0x116   : > { %6069 = vmatpush.bf16.xpose.msrb.mxu1 %v12311_v62  ;;  %v12351_v62 = vor.u32 %v14154_v46, %v12348_v47  ;;  %v12378_v46 = vld [vmem:[%s15024_s24 + $0x138] sm:$0xf] }
 0x117   : > { %v5564_v0 = vpop.f32.mrf.mxu2  ;;  %v5577_v1 = vpop.f32.mrf.mxu3  ;;  %v14414_v47 = vld [vmem:[%s15024_s24 + $0x934] sm:$0x10] }
 0x118   : > { %v5565_v2 = vadd.f32 %v5564_v0, %v5552_v63  ;;  %v5540_v3 = vpop.f32.mrf.mxu0  ;;  %v5553_v4 = vpop.f32.mrf.mxu1  ;;  %v12339_v63 = vor.u32 %v14409_v53, %v12338_v48  ;;  %v12343_v0 = vor.u32 %v14153_v54, %v12340_v55  ;;  %v14158_v48 = vld [vmem:[%s15024_s24 + $0x13c] sm:$0xf]  ;;  %v14413_v55 = vld [vmem:[%s15024_s24 + $0x92c] sm:$0x10] }
 0x119   : > { %v618_v40 = vld.sshfl [vmem:[#allocation1 + $0x20] sm:$0xff pattern:$0x73625140]  ;;  %v620_v44 = vld.sshfl [vmem:[#allocation1 + $0x30] sm:$0xff pattern:$0x73625140] }
 0x11a   : > { %v5578_v8 = vadd.f32 %v5577_v1, %v5565_v2  ;;  %v621_v45 = vld.sshfl [vmem:[#allocation1 + $0x38] sm:$0xff pattern:$0x73625140]  ;;  %v1752_v53 = vpack.c.bf16 %v618_v40, %v618_v40 }
 0x11f   : > { %v5566_v16 = vpop.f32.mrf.mxu2  ;;  %v5579_v17 = vpop.f32.mrf.mxu3 }
 0x120   : > { %v5590_v23 = vpop.f32.mrf.mxu0  ;;  %v5603_v24 = vpop.f32.mrf.mxu1  ;;  %v12364_v16 = vld [vmem:[%s15024_s24 + $0x928] sm:$0x10]  ;;  %v12354_v17 = vld [vmem:[%s15024_s24 + $0x120] sm:$0xf] }
 0x121   : > { %v5591_v27 = vadd.f32 %v5590_v23, %v5578_v8  ;;  %v615_v8 = vld.sshfl [vmem:[#allocation1 + $0x8] sm:$0xff pattern:$0x73625140] }
 0x122   : > { %6005 = vmatmul.bf16.vlgmr.msra.gmra.mxu0 %v1740_v18  ;;  %622 = vst [vmem:[#allocation1] ss:$4 sm:$0xff] %v293_v9  ;;  %v1749_v21 = vpack.c.bf16 %v615_v8, %v615_v8  ;;  %v14155_v23 = vld [vmem:[%s15024_s24 + $0x124] sm:$0xf] }
 0x123   : > { %v5604_v32 = vadd.f32 %v5603_v24, %v5591_v27  ;;  %6018 = vmatmul.bf16.vlgmr.msra.gmra.mxu1 %v1741_v19  ;;  %6108 = vmatpush.bf16.xpose.msra.mxu0 %v12323_v30  ;;  %v12356_v24 = vld [vmem:[%s15024_s24 + $0x920] sm:$0x10]  ;;  %v1750_v27 = vpack.c.bf16 %v616_v11, %v616_v11  ;;  %v12363_v30 = vor.u32 %v14412_v14, %v12362_v13 }
 0x124   : > { %6031 = vmatmul.bf16.vlgmr.msra.gmra.mxu2 %v1742_v25  ;;  %6044 = vmatmul.bf16.vlgmr.msra.gmra.mxu3 %v1743_v26  ;;  %v295_v11 = vld [vmem:[%s15017_s12 + $0xa0] sm:$0xff] }
 0x125   : > { %6134 = vmatpush.bf16.xpose.msra.mxu2 %v12331_v28  ;;  %6147 = vmatpush.bf16.xpose.msra.mxu3 %v12335_v29  ;;  %v1751_v28 = vpack.c.bf16 %v617_v12, %v617_v12 }
 0x126   : > { %6121 = vmatpush.bf16.xpose.msra.mxu1 %v12327_v31  ;;  %v12367_v31 = vor.u32 %v14156_v15, %v12364_v16  ;;  %v12394_v15 = vld [vmem:[%s15024_s24 + $0x148] sm:$0xf] }
 0x127   : > { %v5616_v33 = vpop.f32.mrf.mxu2  ;;  %v5629_v34 = vpop.f32.mrf.mxu3  ;;  %v14416_v16 = vld [vmem:[%s15024_s24 + $0x944] sm:$0x10] }
 0x128   : > { %v5617_v35 = vadd.f32 %v5616_v33, %v5604_v32  ;;  %v5592_v36 = vpop.f32.mrf.mxu0  ;;  %v5605_v37 = vpop.f32.mrf.mxu1  ;;  %v12355_v32 = vor.u32 %v14411_v22, %v12354_v17  ;;  %v12359_v33 = vor.u32 %v14155_v23, %v12356_v24  ;;  %v14160_v17 = vld [vmem:[%s15024_s24 + $0x14c] sm:$0xf]  ;;  %v14415_v24 = vld [vmem:[%s15024_s24 + $0x93c] sm:$0x10] }
 0x129   : > { %v624_v9 = vld.sshfl [vmem:[#allocation1] sm:$0xff pattern:$0x73625140]  ;;  %v626_v13 = vld.sshfl [vmem:[#allocation1 + $0x10] sm:$0xff pattern:$0x73625140] }
 0x12a   : > { %v5630_v41 = vadd.f32 %v5629_v34, %v5617_v35  ;;  %v627_v14 = vld.sshfl [vmem:[#allocation1 + $0x18] sm:$0xff pattern:$0x73625140]  ;;  %v1756_v22 = vpack.c.bf16 %v624_v9, %v624_v9 }
 0x12f   : > { %v5618_v49 = vpop.f32.mrf.mxu2  ;;  %v5631_v50 = vpop.f32.mrf.mxu3 }
 0x130   : > { %v5642_v56 = vpop.f32.mrf.mxu0  ;;  %v5655_v57 = vpop.f32.mrf.mxu1  ;;  %v12380_v49 = vld [vmem:[%s15024_s24 + $0x938] sm:$0x10]  ;;  %v12370_v50 = vld [vmem:[%s15024_s24 + $0x130] sm:$0xf] }
 0x131   : > { %v5643_v60 = vadd.f32 %v5642_v56, %v5630_v41  ;;  %v619_v41 = vld.sshfl [vmem:[#allocation1 + $0x28] sm:$0xff pattern:$0x73625140]  ;;  %v14157_v56 = vld [vmem:[%s15024_s24 + $0x134] sm:$0xf] }
 0x132   : > { %6057 = vmatmul.bf16.vlgmr.msrb.gmra.mxu0 %v1744_v51  ;;  %623 = vst [vmem:[#allocation1 + $0x20] ss:$4 sm:$0xff] %v294_v42  ;;  %v1753_v54 = vpack.c.bf16 %v619_v41, %v619_v41 }
 0x133   : > { %v5656_v1 = vadd.f32 %v5655_v57, %v5643_v60  ;;  %6070 = vmatmul.bf16.vlgmr.msrb.gmra.mxu1 %v1745_v52  ;;  %6160 = vmatpush.bf16.xpose.msrb.mxu0 %v12339_v63  ;;  %v12372_v57 = vld [vmem:[%s15024_s24 + $0x930] sm:$0x10]  ;;  %v1754_v60 = vpack.c.bf16 %v620_v44, %v620_v44  ;;  %v12379_v63 = vor.u32 %v14414_v47, %v12378_v46  ;;  %v296_v44 = vld [vmem:[%s15017_s12 + $0xa8] sm:$0xff] }
 0x134   : > { %6083 = vmatmul.bf16.vlgmr.msrb.gmra.mxu2 %v1746_v58  ;;  %6096 = vmatmul.bf16.vlgmr.msrb.gmra.mxu3 %v1747_v59 }
 0x135   : > { %6186 = vmatpush.bf16.xpose.msrb.mxu2 %v12347_v61  ;;  %6199 = vmatpush.bf16.xpose.msrb.mxu3 %v12351_v62  ;;  %v1755_v61 = vpack.c.bf16 %v621_v45, %v621_v45 }
 0x136   : > { %6173 = vmatpush.bf16.xpose.msrb.mxu1 %v12343_v0  ;;  %v12383_v0 = vor.u32 %v14158_v48, %v12380_v49  ;;  %v12410_v48 = vld [vmem:[%s15024_s24 + $0x158] sm:$0xf] }
 0x137   : > { %v5668_v2 = vpop.f32.mrf.mxu2  ;;  %v5681_v3 = vpop.f32.mrf.mxu3  ;;  %v14418_v49 = vld [vmem:[%s15024_s24 + $0x954] sm:$0x10] }
 0x138   : > { %v5669_v4 = vadd.f32 %v5668_v2, %v5656_v1  ;;  %v5644_v5 = vpop.f32.mrf.mxu0  ;;  %v5657_v6 = vpop.f32.mrf.mxu1  ;;  %v12371_v1 = vor.u32 %v14413_v55, %v12370_v50  ;;  %v12375_v2 = vor.u32 %v14157_v56, %v12372_v57  ;;  %v14162_v50 = vld [vmem:[%s15024_s24 + $0x15c] sm:$0xf]  ;;  %v14417_v57 = vld [vmem:[%s15024_s24 + $0x94c] sm:$0x10] }
 0x139   : > { %v628_v42 = vld.sshfl [vmem:[#allocation1 + $0x20] sm:$0xff pattern:$0x73625140]  ;;  %v630_v46 = vld.sshfl [vmem:[#allocation1 + $0x30] sm:$0xff pattern:$0x73625140] }
 0x13a   : > { %v5682_v10 = vadd.f32 %v5681_v3, %v5669_v4  ;;  %v631_v47 = vld.sshfl [vmem:[#allocation1 + $0x38] sm:$0xff pattern:$0x73625140]  ;;  %v1760_v55 = vpack.c.bf16 %v628_v42, %v628_v42 }
 0x13f   : > { %v5670_v18 = vpop.f32.mrf.mxu2  ;;  %v5683_v19 = vpop.f32.mrf.mxu3 }
 0x140   : > { %v5694_v25 = vpop.f32.mrf.mxu0  ;;  %v5707_v26 = vpop.f32.mrf.mxu1  ;;  %v12396_v18 = vld [vmem:[%s15024_s24 + $0x948] sm:$0x10]  ;;  %v12386_v19 = vld [vmem:[%s15024_s24 + $0x140] sm:$0xf] }
 0x141   : > { %v5695_v29 = vadd.f32 %v5694_v25, %v5682_v10  ;;  %v625_v10 = vld.sshfl [vmem:[#allocation1 + $0x8] sm:$0xff pattern:$0x73625140] }
 0x142   : > { %6109 = vmatmul.bf16.vlgmr.msra.gmra.mxu0 %v1748_v20  ;;  %632 = vst [vmem:[#allocation1] ss:$4 sm:$0xff] %v295_v11  ;;  %v1757_v23 = vpack.c.bf16 %v625_v10, %v625_v10  ;;  %v14159_v25 = vld [vmem:[%s15024_s24 + $0x144] sm:$0xf] }
 0x143   : > { %v5708_v34 = vadd.f32 %v5707_v26, %v5695_v29  ;;  %6122 = vmatmul.bf16.vlgmr.msra.gmra.mxu1 %v1749_v21  ;;  %6212 = vmatpush.bf16.xpose.msra.mxu0 %v12355_v32  ;;  %v12388_v26 = vld [vmem:[%s15024_s24 + $0x940] sm:$0x10]  ;;  %v1758_v29 = vpack.c.bf16 %v626_v13, %v626_v13  ;;  %v12395_v32 = vor.u32 %v14416_v16, %v12394_v15  ;;  %v297_v13 = vld [vmem:[%s15017_s12 + $0xb0] sm:$0xff] }
 0x144   : > { %6135 = vmatmul.bf16.vlgmr.msra.gmra.mxu2 %v1750_v27  ;;  %6148 = vmatmul.bf16.vlgmr.msra.gmra.mxu3 %v1751_v28 }
 0x145   : > { %6238 = vmatpush.bf16.xpose.msra.mxu2 %v12363_v30  ;;  %6251 = vmatpush.bf16.xpose.msra.mxu3 %v12367_v31  ;;  %v1759_v30 = vpack.c.bf16 %v627_v14, %v627_v14 }
 0x146   : > { %6225 = vmatpush.bf16.xpose.msra.mxu1 %v12359_v33  ;;  %v12399_v33 = vor.u32 %v14160_v17, %v12396_v18  ;;  %v12426_v17 = vld [vmem:[%s15024_s24 + $0x168] sm:$0xf] }
 0x147   : > { %v5720_v35 = vpop.f32.mrf.mxu2  ;;  %v5733_v36 = vpop.f32.mrf.mxu3  ;;  %v14420_v18 = vld [vmem:[%s15024_s24 + $0x964] sm:$0x10] }
 0x148   : > { %v5721_v37 = vadd.f32 %v5720_v35, %v5708_v34  ;;  %v5696_v38 = vpop.f32.mrf.mxu0  ;;  %v5709_v39 = vpop.f32.mrf.mxu1  ;;  %v12387_v34 = vor.u32 %v14415_v24, %v12386_v19  ;;  %v12391_v35 = vor.u32 %v14159_v25, %v12388_v26  ;;  %v14164_v19 = vld [vmem:[%s15024_s24 + $0x16c] sm:$0xf]  ;;  %v14419_v26 = vld [vmem:[%s15024_s24 + $0x95c] sm:$0x10] }
 0x149   : > { %v634_v11 = vld.sshfl [vmem:[#allocation1] sm:$0xff pattern:$0x73625140]  ;;  %v636_v15 = vld.sshfl [vmem:[#allocation1 + $0x10] sm:$0xff pattern:$0x73625140] }
 0x14a   : > { %v5734_v43 = vadd.f32 %v5733_v36, %v5721_v37  ;;  %v637_v16 = vld.sshfl [vmem:[#allocation1 + $0x18] sm:$0xff pattern:$0x73625140]  ;;  %v1764_v24 = vpack.c.bf16 %v634_v11, %v634_v11 }
 0x14f   : > { %v5722_v51 = vpop.f32.mrf.mxu2  ;;  %v5735_v52 = vpop.f32.mrf.mxu3 }
 0x150   : > { %v5746_v58 = vpop.f32.mrf.mxu0  ;;  %v5759_v59 = vpop.f32.mrf.mxu1  ;;  %v12412_v51 = vld [vmem:[%s15024_s24 + $0x958] sm:$0x10]  ;;  %v12402_v52 = vld [vmem:[%s15024_s24 + $0x150] sm:$0xf] }
 0x151   : > { %v5747_v62 = vadd.f32 %v5746_v58, %v5734_v43  ;;  %v629_v43 = vld.sshfl [vmem:[#allocation1 + $0x28] sm:$0xff pattern:$0x73625140]  ;;  %v14161_v58 = vld [vmem:[%s15024_s24 + $0x154] sm:$0xf] }
 0x152   : > { %6161 = vmatmul.bf16.vlgmr.msrb.gmra.mxu0 %v1752_v53  ;;  %633 = vst [vmem:[#allocation1 + $0x20] ss:$4 sm:$0xff] %v296_v44  ;;  %v1761_v56 = vpack.c.bf16 %v629_v43, %v629_v43 }
 0x153   : > { %v5760_v3 = vadd.f32 %v5759_v59, %v5747_v62  ;;  %6174 = vmatmul.bf16.vlgmr.msrb.gmra.mxu1 %v1753_v54  ;;  %6264 = vmatpush.bf16.xpose.msrb.mxu0 %v12371_v1  ;;  %v12404_v59 = vld [vmem:[%s15024_s24 + $0x950] sm:$0x10]  ;;  %v1762_v62 = vpack.c.bf16 %v630_v46, %v630_v46  ;;  %v12411_v1 = vor.u32 %v14418_v49, %v12410_v48  ;;  %v298_v46 = vld [vmem:[%s15017_s12 + $0xb8] sm:$0xff] }
 0x154   : > { %6187 = vmatmul.bf16.vlgmr.msrb.gmra.mxu2 %v1754_v60  ;;  %6200 = vmatmul.bf16.vlgmr.msrb.gmra.mxu3 %v1755_v61 }
 0x155   : > { %6290 = vmatpush.bf16.xpose.msrb.mxu2 %v12379_v63  ;;  %6303 = vmatpush.bf16.xpose.msrb.mxu3 %v12383_v0  ;;  %v1763_v63 = vpack.c.bf16 %v631_v47, %v631_v47 }
 0x156   : > { %6277 = vmatpush.bf16.xpose.msrb.mxu1 %v12375_v2  ;;  %v12415_v2 = vor.u32 %v14162_v50, %v12412_v51  ;;  %v12442_v50 = vld [vmem:[%s15024_s24 + $0x178] sm:$0xf] }
 0x157   : > { %v5772_v4 = vpop.f32.mrf.mxu2  ;;  %v5785_v5 = vpop.f32.mrf.mxu3  ;;  %v14422_v51 = vld [vmem:[%s15024_s24 + $0x974] sm:$0x10] }
 0x158   : > { %v5773_v6 = vadd.f32 %v5772_v4, %v5760_v3  ;;  %v5748_v7 = vpop.f32.mrf.mxu0  ;;  %v5761_v8 = vpop.f32.mrf.mxu1  ;;  %v12403_v3 = vor.u32 %v14417_v57, %v12402_v52  ;;  %v12407_v4 = vor.u32 %v14161_v58, %v12404_v59  ;;  %v14166_v52 = vld [vmem:[%s15024_s24 + $0x17c] sm:$0xf]  ;;  %v14421_v59 = vld [vmem:[%s15024_s24 + $0x96c] sm:$0x10] }
 0x159   : > { %v638_v44 = vld.sshfl [vmem:[#allocation1 + $0x20] sm:$0xff pattern:$0x73625140]  ;;  %v640_v48 = vld.sshfl [vmem:[#allocation1 + $0x30] sm:$0xff pattern:$0x73625140] }
 0x15a   : > { %v5786_v12 = vadd.f32 %v5785_v5, %v5773_v6  ;;  %v641_v49 = vld.sshfl [vmem:[#allocation1 + $0x38] sm:$0xff pattern:$0x73625140]  ;;  %v1768_v57 = vpack.c.bf16 %v638_v44, %v638_v44 }
 0x15f   : > { %v5774_v20 = vpop.f32.mrf.mxu2  ;;  %v5787_v21 = vpop.f32.mrf.mxu3 }
 0x160   : > { %v5798_v27 = vpop.f32.mrf.mxu0  ;;  %v5811_v28 = vpop.f32.mrf.mxu1  ;;  %v12428_v20 = vld [vmem:[%s15024_s24 + $0x968] sm:$0x10]  ;;  %v12418_v21 = vld [vmem:[%s15024_s24 + $0x160] sm:$0xf] }
 0x161   : > { %v5799_v31 = vadd.f32 %v5798_v27, %v5786_v12  ;;  %v635_v12 = vld.sshfl [vmem:[#allocation1 + $0x8] sm:$0xff pattern:$0x73625140] }
 0x162   : > { %6213 = vmatmul.bf16.vlgmr.msra.gmra.mxu0 %v1756_v22  ;;  %642 = vst [vmem:[#allocation1] ss:$4 sm:$0xff] %v297_v13  ;;  %v1765_v25 = vpack.c.bf16 %v635_v12, %v635_v12  ;;  %v14163_v27 = vld [vmem:[%s15024_s24 + $0x164] sm:$0xf] }
 0x163   : > { %v5812_v36 = vadd.f32 %v5811_v28, %v5799_v31  ;;  %6226 = vmatmul.bf16.vlgmr.msra.gmra.mxu1 %v1757_v23  ;;  %6316 = vmatpush.bf16.xpose.msra.mxu0 %v12387_v34  ;;  %v12420_v28 = vld [vmem:[%s15024_s24 + $0x960] sm:$0x10]  ;;  %v1766_v31 = vpack.c.bf16 %v636_v15, %v636_v15  ;;  %v12427_v34 = vor.u32 %v14420_v18, %v12426_v17 }
 0x164   : > { %6239 = vmatmul.bf16.vlgmr.msra.gmra.mxu2 %v1758_v29  ;;  %6252 = vmatmul.bf16.vlgmr.msra.gmra.mxu3 %v1759_v30  ;;  %v299_v15 = vld [vmem:[%s15017_s12 + $0xc0] sm:$0xff] }
 0x165   : > { %6342 = vmatpush.bf16.xpose.msra.mxu2 %v12395_v32  ;;  %6355 = vmatpush.bf16.xpose.msra.mxu3 %v12399_v33  ;;  %v1767_v32 = vpack.c.bf16 %v637_v16, %v637_v16 }
 0x166   : > { %6329 = vmatpush.bf16.xpose.msra.mxu1 %v12391_v35  ;;  %v12431_v35 = vor.u32 %v14164_v19, %v12428_v20  ;;  %v12458_v19 = vld [vmem:[%s15024_s24 + $0x188] sm:$0xf] }
 0x167   : > { %v5824_v37 = vpop.f32.mrf.mxu2  ;;  %v5837_v38 = vpop.f32.mrf.mxu3  ;;  %v14424_v20 = vld [vmem:[%s15024_s24 + $0x984] sm:$0x10] }
 0x168   : > { %v5825_v39 = vadd.f32 %v5824_v37, %v5812_v36  ;;  %v5800_v40 = vpop.f32.mrf.mxu0  ;;  %v5813_v41 = vpop.f32.mrf.mxu1  ;;  %v12419_v36 = vor.u32 %v14419_v26, %v12418_v21  ;;  %v12423_v37 = vor.u32 %v14163_v27, %v12420_v28  ;;  %v14168_v21 = vld [vmem:[%s15024_s24 + $0x18c] sm:$0xf]  ;;  %v14423_v28 = vld [vmem:[%s15024_s24 + $0x97c] sm:$0x10] }
 0x169   : > { %v644_v13 = vld.sshfl [vmem:[#allocation1] sm:$0xff pattern:$0x73625140]  ;;  %v646_v17 = vld.sshfl [vmem:[#allocation1 + $0x10] sm:$0xff pattern:$0x73625140] }
 0x16a   : > { %v5838_v45 = vadd.f32 %v5837_v38, %v5825_v39  ;;  %v647_v18 = vld.sshfl [vmem:[#allocation1 + $0x18] sm:$0xff pattern:$0x73625140]  ;;  %v1772_v26 = vpack.c.bf16 %v644_v13, %v644_v13 }
 0x16f   : > { %v5826_v53 = vpop.f32.mrf.mxu2  ;;  %v5839_v54 = vpop.f32.mrf.mxu3 }
 0x170   : > { %v5850_v60 = vpop.f32.mrf.mxu0  ;;  %v5863_v61 = vpop.f32.mrf.mxu1  ;;  %v12444_v53 = vld [vmem:[%s15024_s24 + $0x978] sm:$0x10]  ;;  %v12434_v54 = vld [vmem:[%s15024_s24 + $0x170] sm:$0xf] }
 0x171   : > { %v5851_v0 = vadd.f32 %v5850_v60, %v5838_v45  ;;  %v639_v45 = vld.sshfl [vmem:[#allocation1 + $0x28] sm:$0xff pattern:$0x73625140]  ;;  %v14165_v60 = vld [vmem:[%s15024_s24 + $0x174] sm:$0xf] }
 0x172   : > { %6265 = vmatmul.bf16.vlgmr.msrb.gmra.mxu0 %v1760_v55  ;;  %643 = vst [vmem:[#allocation1 + $0x20] ss:$4 sm:$0xff] %v298_v46  ;;  %v1769_v58 = vpack.c.bf16 %v639_v45, %v639_v45 }
 0x173   : > { %v5864_v5 = vadd.f32 %v5863_v61, %v5851_v0  ;;  %6278 = vmatmul.bf16.vlgmr.msrb.gmra.mxu1 %v1761_v56  ;;  %6368 = vmatpush.bf16.xpose.msrb.mxu0 %v12403_v3  ;;  %v12436_v61 = vld [vmem:[%s15024_s24 + $0x970] sm:$0x10]  ;;  %v1770_v0 = vpack.c.bf16 %v640_v48, %v640_v48  ;;  %v12443_v3 = vor.u32 %v14422_v51, %v12442_v50  ;;  %v300_v48 = vld [vmem:[%s15017_s12 + $0xc8] sm:$0xff] }
 0x174   : > { %6291 = vmatmul.bf16.vlgmr.msrb.gmra.mxu2 %v1762_v62  ;;  %6304 = vmatmul.bf16.vlgmr.msrb.gmra.mxu3 %v1763_v63 }
 0x175   : > { %6394 = vmatpush.bf16.xpose.msrb.mxu2 %v12411_v1  ;;  %6407 = vmatpush.bf16.xpose.msrb.mxu3 %v12415_v2  ;;  %v1771_v1 = vpack.c.bf16 %v641_v49, %v641_v49 }
 0x176   : > { %6381 = vmatpush.bf16.xpose.msrb.mxu1 %v12407_v4  ;;  %v12447_v4 = vor.u32 %v14166_v52, %v12444_v53  ;;  %v12474_v52 = vld [vmem:[%s15024_s24 + $0x198] sm:$0xf] }
 0x177   : > { %v5876_v6 = vpop.f32.mrf.mxu2  ;;  %v5889_v7 = vpop.f32.mrf.mxu3  ;;  %v14426_v53 = vld [vmem:[%s15024_s24 + $0x994] sm:$0x10] }
 0x178   : > { %v5877_v8 = vadd.f32 %v5876_v6, %v5864_v5  ;;  %v5852_v9 = vpop.f32.mrf.mxu0  ;;  %v5865_v10 = vpop.f32.mrf.mxu1  ;;  %v12435_v5 = vor.u32 %v14421_v59, %v12434_v54  ;;  %v12439_v6 = vor.u32 %v14165_v60, %v12436_v61  ;;  %v14170_v54 = vld [vmem:[%s15024_s24 + $0x19c] sm:$0xf]  ;;  %v14425_v61 = vld [vmem:[%s15024_s24 + $0x98c] sm:$0x10] }
 0x179   : > { %v648_v46 = vld.sshfl [vmem:[#allocation1 + $0x20] sm:$0xff pattern:$0x73625140]  ;;  %v650_v50 = vld.sshfl [vmem:[#allocation1 + $0x30] sm:$0xff pattern:$0x73625140] }
 0x17a   : > { %v5890_v14 = vadd.f32 %v5889_v7, %v5877_v8  ;;  %v651_v51 = vld.sshfl [vmem:[#allocation1 + $0x38] sm:$0xff pattern:$0x73625140]  ;;  %v1776_v59 = vpack.c.bf16 %v648_v46, %v648_v46 }
 0x17f   : > { %v5878_v22 = vpop.f32.mrf.mxu2  ;;  %v5891_v23 = vpop.f32.mrf.mxu3 }
 0x180   : > { %v5902_v29 = vpop.f32.mrf.mxu0  ;;  %v5915_v30 = vpop.f32.mrf.mxu1  ;;  %v12460_v22 = vld [vmem:[%s15024_s24 + $0x988] sm:$0x10]  ;;  %v12450_v23 = vld [vmem:[%s15024_s24 + $0x180] sm:$0xf] }
 0x181   : > { %v5903_v33 = vadd.f32 %v5902_v29, %v5890_v14  ;;  %v645_v14 = vld.sshfl [vmem:[#allocation1 + $0x8] sm:$0xff pattern:$0x73625140] }
 0x182   : > { %6317 = vmatmul.bf16.vlgmr.msra.gmra.mxu0 %v1764_v24  ;;  %652 = vst [vmem:[#allocation1] ss:$4 sm:$0xff] %v299_v15  ;;  %v1773_v27 = vpack.c.bf16 %v645_v14, %v645_v14  ;;  %v14167_v29 = vld [vmem:[%s15024_s24 + $0x184] sm:$0xf] }
 0x183   : > { %v5916_v38 = vadd.f32 %v5915_v30, %v5903_v33  ;;  %6330 = vmatmul.bf16.vlgmr.msra.gmra.mxu1 %v1765_v25  ;;  %6420 = vmatpush.bf16.xpose.msra.mxu0 %v12419_v36  ;;  %v12452_v30 = vld [vmem:[%s15024_s24 + $0x980] sm:$0x10]  ;;  %v1774_v33 = vpack.c.bf16 %v646_v17, %v646_v17  ;;  %v12459_v36 = vor.u32 %v14424_v20, %v12458_v19  ;;  %v301_v17 = vld [vmem:[%s15017_s12 + $0xd0] sm:$0xff] }
 0x184   : > { %6343 = vmatmul.bf16.vlgmr.msra.gmra.mxu2 %v1766_v31  ;;  %6356 = vmatmul.bf16.vlgmr.msra.gmra.mxu3 %v1767_v32 }
 0x185   : > { %6446 = vmatpush.bf16.xpose.msra.mxu2 %v12427_v34  ;;  %6459 = vmatpush.bf16.xpose.msra.mxu3 %v12431_v35  ;;  %v1775_v34 = vpack.c.bf16 %v647_v18, %v647_v18 }
 0x186   : > { %6433 = vmatpush.bf16.xpose.msra.mxu1 %v12423_v37  ;;  %v12463_v37 = vor.u32 %v14168_v21, %v12460_v22  ;;  %v12490_v21 = vld [vmem:[%s15024_s24 + $0x1a8] sm:$0xf] }
 0x187   : > { %v5928_v39 = vpop.f32.mrf.mxu2  ;;  %v5941_v40 = vpop.f32.mrf.mxu3  ;;  %v14428_v22 = vld [vmem:[%s15024_s24 + $0x9a4] sm:$0x10] }
 0x188   : > { %v5929_v41 = vadd.f32 %v5928_v39, %v5916_v38  ;;  %v5904_v42 = vpop.f32.mrf.mxu0  ;;  %v5917_v43 = vpop.f32.mrf.mxu1  ;;  %v12451_v38 = vor.u32 %v14423_v28, %v12450_v23  ;;  %v12455_v39 = vor.u32 %v14167_v29, %v12452_v30  ;;  %v14172_v23 = vld [vmem:[%s15024_s24 + $0x1ac] sm:$0xf]  ;;  %v14427_v30 = vld [vmem:[%s15024_s24 + $0x99c] sm:$0x10] }
 0x189   : > { %v654_v15 = vld.sshfl [vmem:[#allocation1] sm:$0xff pattern:$0x73625140]  ;;  %v656_v19 = vld.sshfl [vmem:[#allocation1 + $0x10] sm:$0xff pattern:$0x73625140] }
 0x18a   : > { %v5942_v47 = vadd.f32 %v5941_v40, %v5929_v41  ;;  %v657_v20 = vld.sshfl [vmem:[#allocation1 + $0x18] sm:$0xff pattern:$0x73625140]  ;;  %v1780_v28 = vpack.c.bf16 %v654_v15, %v654_v15 }
 0x18f   : > { %v5930_v55 = vpop.f32.mrf.mxu2  ;;  %v5943_v56 = vpop.f32.mrf.mxu3 }
 0x190   : > { %v5954_v62 = vpop.f32.mrf.mxu0  ;;  %v5967_v63 = vpop.f32.mrf.mxu1  ;;  %v12476_v55 = vld [vmem:[%s15024_s24 + $0x998] sm:$0x10]  ;;  %v12466_v56 = vld [vmem:[%s15024_s24 + $0x190] sm:$0xf] }
 0x191   : > { %v5955_v2 = vadd.f32 %v5954_v62, %v5942_v47  ;;  %v649_v47 = vld.sshfl [vmem:[#allocation1 + $0x28] sm:$0xff pattern:$0x73625140]  ;;  %v14169_v62 = vld [vmem:[%s15024_s24 + $0x194] sm:$0xf] }
 0x192   : > { %6369 = vmatmul.bf16.vlgmr.msrb.gmra.mxu0 %v1768_v57  ;;  %653 = vst [vmem:[#allocation1 + $0x20] ss:$4 sm:$0xff] %v300_v48  ;;  %v1777_v60 = vpack.c.bf16 %v649_v47, %v649_v47 }
 0x193   : > { %v5968_v7 = vadd.f32 %v5967_v63, %v5955_v2  ;;  %6382 = vmatmul.bf16.vlgmr.msrb.gmra.mxu1 %v1769_v58  ;;  %6472 = vmatpush.bf16.xpose.msrb.mxu0 %v12435_v5  ;;  %v12468_v63 = vld [vmem:[%s15024_s24 + $0x990] sm:$0x10]  ;;  %v1778_v2 = vpack.c.bf16 %v650_v50, %v650_v50  ;;  %v12475_v5 = vor.u32 %v14426_v53, %v12474_v52  ;;  %v302_v50 = vld [vmem:[%s15017_s12 + $0xd8] sm:$0xff] }
 0x194   : > { %6395 = vmatmul.bf16.vlgmr.msrb.gmra.mxu2 %v1770_v0  ;;  %6408 = vmatmul.bf16.vlgmr.msrb.gmra.mxu3 %v1771_v1 }
 0x195   : > { %6498 = vmatpush.bf16.xpose.msrb.mxu2 %v12443_v3  ;;  %6511 = vmatpush.bf16.xpose.msrb.mxu3 %v12447_v4  ;;  %v1779_v3 = vpack.c.bf16 %v651_v51, %v651_v51 }
 0x196   : > { %6485 = vmatpush.bf16.xpose.msrb.mxu1 %v12439_v6  ;;  %v12479_v6 = vor.u32 %v14170_v54, %v12476_v55  ;;  %v12506_v54 = vld [vmem:[%s15024_s24 + $0x1b8] sm:$0xf] }
 0x197   : > { %v5980_v8 = vpop.f32.mrf.mxu2  ;;  %v5993_v9 = vpop.f32.mrf.mxu3  ;;  %v14430_v55 = vld [vmem:[%s15024_s24 + $0x9b4] sm:$0x10] }
 0x198   : > { %v5981_v10 = vadd.f32 %v5980_v8, %v5968_v7  ;;  %v5956_v11 = vpop.f32.mrf.mxu0  ;;  %v5969_v12 = vpop.f32.mrf.mxu1  ;;  %v12467_v7 = vor.u32 %v14425_v61, %v12466_v56  ;;  %v12471_v8 = vor.u32 %v14169_v62, %v12468_v63  ;;  %v14174_v56 = vld [vmem:[%s15024_s24 + $0x1bc] sm:$0xf]  ;;  %v14429_v63 = vld [vmem:[%s15024_s24 + $0x9ac] sm:$0x10] }
 0x199   : > { %v658_v48 = vld.sshfl [vmem:[#allocation1 + $0x20] sm:$0xff pattern:$0x73625140]  ;;  %v660_v52 = vld.sshfl [vmem:[#allocation1 + $0x30] sm:$0xff pattern:$0x73625140] }
 0x19a   : > { %v5994_v16 = vadd.f32 %v5993_v9, %v5981_v10  ;;  %v661_v53 = vld.sshfl [vmem:[#allocation1 + $0x38] sm:$0xff pattern:$0x73625140]  ;;  %v1784_v61 = vpack.c.bf16 %v658_v48, %v658_v48 }
 0x19f   : > { %v5982_v24 = vpop.f32.mrf.mxu2  ;;  %v5995_v25 = vpop.f32.mrf.mxu3 }
 0x1a0   : > { %v6006_v31 = vpop.f32.mrf.mxu0  ;;  %v6019_v32 = vpop.f32.mrf.mxu1  ;;  %v12492_v24 = vld [vmem:[%s15024_s24 + $0x9a8] sm:$0x10]  ;;  %v12482_v25 = vld [vmem:[%s15024_s24 + $0x1a0] sm:$0xf] }
 0x1a1   : > { %v6007_v35 = vadd.f32 %v6006_v31, %v5994_v16  ;;  %v655_v16 = vld.sshfl [vmem:[#allocation1 + $0x8] sm:$0xff pattern:$0x73625140] }
 0x1a2   : > { %6421 = vmatmul.bf16.vlgmr.msra.gmra.mxu0 %v1772_v26  ;;  %662 = vst [vmem:[#allocation1] ss:$4 sm:$0xff] %v301_v17  ;;  %v1781_v29 = vpack.c.bf16 %v655_v16, %v655_v16  ;;  %v14171_v31 = vld [vmem:[%s15024_s24 + $0x1a4] sm:$0xf] }
 0x1a3   : > { %v6020_v40 = vadd.f32 %v6019_v32, %v6007_v35  ;;  %6434 = vmatmul.bf16.vlgmr.msra.gmra.mxu1 %v1773_v27  ;;  %6524 = vmatpush.bf16.xpose.msra.mxu0 %v12451_v38  ;;  %v12484_v32 = vld [vmem:[%s15024_s24 + $0x9a0] sm:$0x10]  ;;  %v1782_v35 = vpack.c.bf16 %v656_v19, %v656_v19  ;;  %v12491_v38 = vor.u32 %v14428_v22, %v12490_v21 }
 0x1a4   : > { %6447 = vmatmul.bf16.vlgmr.msra.gmra.mxu2 %v1774_v33  ;;  %6460 = vmatmul.bf16.vlgmr.msra.gmra.mxu3 %v1775_v34  ;;  %v303_v19 = vld [vmem:[%s15017_s12 + $0xe0] sm:$0xff] }
 0x1a5   : > { %6550 = vmatpush.bf16.xpose.msra.mxu2 %v12459_v36  ;;  %6563 = vmatpush.bf16.xpose.msra.mxu3 %v12463_v37  ;;  %v1783_v36 = vpack.c.bf16 %v657_v20, %v657_v20 }
 0x1a6   : > { %6537 = vmatpush.bf16.xpose.msra.mxu1 %v12455_v39  ;;  %v12495_v39 = vor.u32 %v14172_v23, %v12492_v24  ;;  %v12522_v23 = vld [vmem:[%s15024_s24 + $0x1c8] sm:$0xf] }
 0x1a7   : > { %v6032_v41 = vpop.f32.mrf.mxu2  ;;  %v6045_v42 = vpop.f32.mrf.mxu3  ;;  %v14432_v24 = vld [vmem:[%s15024_s24 + $0x9c4] sm:$0x10] }
 0x1a8   : > { %v6033_v43 = vadd.f32 %v6032_v41, %v6020_v40  ;;  %v6008_v44 = vpop.f32.mrf.mxu0  ;;  %v6021_v45 = vpop.f32.mrf.mxu1  ;;  %v12483_v40 = vor.u32 %v14427_v30, %v12482_v25  ;;  %v12487_v41 = vor.u32 %v14171_v31, %v12484_v32  ;;  %v14176_v25 = vld [vmem:[%s15024_s24 + $0x1cc] sm:$0xf]  ;;  %v14431_v32 = vld [vmem:[%s15024_s24 + $0x9bc] sm:$0x10] }
 0x1a9   : > { %v664_v17 = vld.sshfl [vmem:[#allocation1] sm:$0xff pattern:$0x73625140]  ;;  %v666_v21 = vld.sshfl [vmem:[#allocation1 + $0x10] sm:$0xff pattern:$0x73625140] }
 0x1aa   : > { %v6046_v49 = vadd.f32 %v6045_v42, %v6033_v43  ;;  %v667_v22 = vld.sshfl [vmem:[#allocation1 + $0x18] sm:$0xff pattern:$0x73625140]  ;;  %v1788_v30 = vpack.c.bf16 %v664_v17, %v664_v17 }
 0x1af   : > { %v6034_v57 = vpop.f32.mrf.mxu2  ;;  %v6047_v58 = vpop.f32.mrf.mxu3 }
 0x1b0   : > { %v6058_v0 = vpop.f32.mrf.mxu0  ;;  %v6071_v1 = vpop.f32.mrf.mxu1  ;;  %v12508_v57 = vld [vmem:[%s15024_s24 + $0x9b8] sm:$0x10]  ;;  %v12498_v58 = vld [vmem:[%s15024_s24 + $0x1b0] sm:$0xf] }
 0x1b1   : > { %v6059_v4 = vadd.f32 %v6058_v0, %v6046_v49  ;;  %v659_v49 = vld.sshfl [vmem:[#allocation1 + $0x28] sm:$0xff pattern:$0x73625140]  ;;  %v14173_v0 = vld [vmem:[%s15024_s24 + $0x1b4] sm:$0xf] }
 0x1b2   : > { %6473 = vmatmul.bf16.vlgmr.msrb.gmra.mxu0 %v1776_v59  ;;  %663 = vst [vmem:[#allocation1 + $0x20] ss:$4 sm:$0xff] %v302_v50  ;;  %v1785_v62 = vpack.c.bf16 %v659_v49, %v659_v49 }
 0x1b3   : > { %v6072_v9 = vadd.f32 %v6071_v1, %v6059_v4  ;;  %6486 = vmatmul.bf16.vlgmr.msrb.gmra.mxu1 %v1777_v60  ;;  %6576 = vmatpush.bf16.xpose.msrb.mxu0 %v12467_v7  ;;  %v12500_v1 = vld [vmem:[%s15024_s24 + $0x9b0] sm:$0x10]  ;;  %v1786_v4 = vpack.c.bf16 %v660_v52, %v660_v52  ;;  %v12507_v7 = vor.u32 %v14430_v55, %v12506_v54  ;;  %v304_v52 = vld [vmem:[%s15017_s12 + $0xe8] sm:$0xff] }
 0x1b4   : > { %6499 = vmatmul.bf16.vlgmr.msrb.gmra.mxu2 %v1778_v2  ;;  %6512 = vmatmul.bf16.vlgmr.msrb.gmra.mxu3 %v1779_v3 }
 0x1b5   : > { %6602 = vmatpush.bf16.xpose.msrb.mxu2 %v12475_v5  ;;  %6615 = vmatpush.bf16.xpose.msrb.mxu3 %v12479_v6  ;;  %v1787_v5 = vpack.c.bf16 %v661_v53, %v661_v53 }
 0x1b6   : > { %6589 = vmatpush.bf16.xpose.msrb.mxu1 %v12471_v8  ;;  %v12511_v8 = vor.u32 %v14174_v56, %v12508_v57  ;;  %v12538_v56 = vld [vmem:[%s15024_s24 + $0x1d8] sm:$0xf] }
 0x1b7   : > { %v6084_v10 = vpop.f32.mrf.mxu2  ;;  %v6097_v11 = vpop.f32.mrf.mxu3  ;;  %v14434_v57 = vld [vmem:[%s15024_s24 + $0x9d4] sm:$0x10] }
 0x1b8   : > { %v6085_v12 = vadd.f32 %v6084_v10, %v6072_v9  ;;  %v6060_v13 = vpop.f32.mrf.mxu0  ;;  %v6073_v14 = vpop.f32.mrf.mxu1  ;;  %v12499_v9 = vor.u32 %v14429_v63, %v12498_v58  ;;  %v12503_v10 = vor.u32 %v14173_v0, %v12500_v1  ;;  %v14178_v58 = vld [vmem:[%s15024_s24 + $0x1dc] sm:$0xf]  ;;  %v14433_v1 = vld [vmem:[%s15024_s24 + $0x9cc] sm:$0x10] }
 0x1b9   : > { %v668_v50 = vld.sshfl [vmem:[#allocation1 + $0x20] sm:$0xff pattern:$0x73625140]  ;;  %v670_v54 = vld.sshfl [vmem:[#allocation1 + $0x30] sm:$0xff pattern:$0x73625140] }
 0x1ba   : > { %v6098_v18 = vadd.f32 %v6097_v11, %v6085_v12  ;;  %v671_v55 = vld.sshfl [vmem:[#allocation1 + $0x38] sm:$0xff pattern:$0x73625140]  ;;  %v1792_v63 = vpack.c.bf16 %v668_v50, %v668_v50 }
 0x1bf   : > { %v6086_v26 = vpop.f32.mrf.mxu2  ;;  %v6099_v27 = vpop.f32.mrf.mxu3 }
 0x1c0   : > { %v6110_v33 = vpop.f32.mrf.mxu0  ;;  %v6123_v34 = vpop.f32.mrf.mxu1  ;;  %v12524_v26 = vld [vmem:[%s15024_s24 + $0x9c8] sm:$0x10]  ;;  %v12514_v27 = vld [vmem:[%s15024_s24 + $0x1c0] sm:$0xf] }
 0x1c1   : > { %v6111_v37 = vadd.f32 %v6110_v33, %v6098_v18  ;;  %v665_v18 = vld.sshfl [vmem:[#allocation1 + $0x8] sm:$0xff pattern:$0x73625140] }
 0x1c2   : > { %6525 = vmatmul.bf16.vlgmr.msra.gmra.mxu0 %v1780_v28  ;;  %672 = vst [vmem:[#allocation1] ss:$4 sm:$0xff] %v303_v19  ;;  %v1789_v31 = vpack.c.bf16 %v665_v18, %v665_v18  ;;  %v14175_v33 = vld [vmem:[%s15024_s24 + $0x1c4] sm:$0xf] }
 0x1c3   : > { %v6124_v42 = vadd.f32 %v6123_v34, %v6111_v37  ;;  %6538 = vmatmul.bf16.vlgmr.msra.gmra.mxu1 %v1781_v29  ;;  %6628 = vmatpush.bf16.xpose.msra.mxu0 %v12483_v40  ;;  %v12516_v34 = vld [vmem:[%s15024_s24 + $0x9c0] sm:$0x10]  ;;  %v1790_v37 = vpack.c.bf16 %v666_v21, %v666_v21  ;;  %v12523_v40 = vor.u32 %v14432_v24, %v12522_v23  ;;  %v305_v21 = vld [vmem:[%s15017_s12 + $0xf0] sm:$0xff] }
 0x1c4   : > { %6551 = vmatmul.bf16.vlgmr.msra.gmra.mxu2 %v1782_v35  ;;  %6564 = vmatmul.bf16.vlgmr.msra.gmra.mxu3 %v1783_v36 }
 0x1c5   : > { %6654 = vmatpush.bf16.xpose.msra.mxu2 %v12491_v38  ;;  %6667 = vmatpush.bf16.xpose.msra.mxu3 %v12495_v39  ;;  %v1791_v38 = vpack.c.bf16 %v667_v22, %v667_v22 }
 0x1c6   : > { %6641 = vmatpush.bf16.xpose.msra.mxu1 %v12487_v41  ;;  %v12527_v41 = vor.u32 %v14176_v25, %v12524_v26  ;;  %v12554_v25 = vld [vmem:[%s15024_s24 + $0x1e8] sm:$0xf] }
 0x1c7   : > { %v6136_v43 = vpop.f32.mrf.mxu2  ;;  %v6149_v44 = vpop.f32.mrf.mxu3  ;;  %v14436_v26 = vld [vmem:[%s15024_s24 + $0x9e4] sm:$0x10] }
 0x1c8   : > { %v6137_v45 = vadd.f32 %v6136_v43, %v6124_v42  ;;  %v6112_v46 = vpop.f32.mrf.mxu0  ;;  %v6125_v47 = vpop.f32.mrf.mxu1  ;;  %v12515_v42 = vor.u32 %v14431_v32, %v12514_v27  ;;  %v12519_v43 = vor.u32 %v14175_v33, %v12516_v34  ;;  %v14180_v27 = vld [vmem:[%s15024_s24 + $0x1ec] sm:$0xf]  ;;  %v14435_v34 = vld [vmem:[%s15024_s24 + $0x9dc] sm:$0x10] }
 0x1c9   : > { %v674_v19 = vld.sshfl [vmem:[#allocation1] sm:$0xff pattern:$0x73625140]  ;;  %v676_v23 = vld.sshfl [vmem:[#allocation1 + $0x10] sm:$0xff pattern:$0x73625140] }
 0x1ca   : > { %v6150_v51 = vadd.f32 %v6149_v44, %v6137_v45  ;;  %v677_v24 = vld.sshfl [vmem:[#allocation1 + $0x18] sm:$0xff pattern:$0x73625140]  ;;  %v1796_v32 = vpack.c.bf16 %v674_v19, %v674_v19 }
 0x1cf   : > { %v6138_v59 = vpop.f32.mrf.mxu2  ;;  %v6151_v60 = vpop.f32.mrf.mxu3 }
 0x1d0   : > { %v6162_v2 = vpop.f32.mrf.mxu0  ;;  %v6175_v3 = vpop.f32.mrf.mxu1  ;;  %v12540_v59 = vld [vmem:[%s15024_s24 + $0x9d8] sm:$0x10]  ;;  %v12530_v60 = vld [vmem:[%s15024_s24 + $0x1d0] sm:$0xf] }
 0x1d1   : > { %v6163_v6 = vadd.f32 %v6162_v2, %v6150_v51  ;;  %v669_v51 = vld.sshfl [vmem:[#allocation1 + $0x28] sm:$0xff pattern:$0x73625140]  ;;  %v14177_v2 = vld [vmem:[%s15024_s24 + $0x1d4] sm:$0xf] }
 0x1d2   : > { %6577 = vmatmul.bf16.vlgmr.msrb.gmra.mxu0 %v1784_v61  ;;  %673 = vst [vmem:[#allocation1 + $0x20] ss:$4 sm:$0xff] %v304_v52  ;;  %v1793_v0 = vpack.c.bf16 %v669_v51, %v669_v51 }
 0x1d3   : > { %v6176_v11 = vadd.f32 %v6175_v3, %v6163_v6  ;;  %6590 = vmatmul.bf16.vlgmr.msrb.gmra.mxu1 %v1785_v62  ;;  %6680 = vmatpush.bf16.xpose.msrb.mxu0 %v12499_v9  ;;  %v12532_v3 = vld [vmem:[%s15024_s24 + $0x9d0] sm:$0x10]  ;;  %v1794_v6 = vpack.c.bf16 %v670_v54, %v670_v54  ;;  %v12539_v9 = vor.u32 %v14434_v57, %v12538_v56  ;;  %v306_v54 = vld [vmem:[%s15017_s12 + $0xf8] sm:$0xff] }
 0x1d4   : > { %6603 = vmatmul.bf16.vlgmr.msrb.gmra.mxu2 %v1786_v4  ;;  %6616 = vmatmul.bf16.vlgmr.msrb.gmra.mxu3 %v1787_v5 }
 0x1d5   : > { %6706 = vmatpush.bf16.xpose.msrb.mxu2 %v12507_v7  ;;  %6719 = vmatpush.bf16.xpose.msrb.mxu3 %v12511_v8  ;;  %v1795_v7 = vpack.c.bf16 %v671_v55, %v671_v55 }
 0x1d6   : > { %6693 = vmatpush.bf16.xpose.msrb.mxu1 %v12503_v10  ;;  %v12543_v10 = vor.u32 %v14178_v58, %v12540_v59  ;;  %v12570_v58 = vld [vmem:[%s15024_s24 + $0x1f8] sm:$0xf] }
 0x1d7   : > { %v6188_v12 = vpop.f32.mrf.mxu2  ;;  %v6201_v13 = vpop.f32.mrf.mxu3  ;;  %v14438_v59 = vld [vmem:[%s15024_s24 + $0x9f4] sm:$0x10] }
 0x1d8   : > { %v6189_v14 = vadd.f32 %v6188_v12, %v6176_v11  ;;  %v6164_v15 = vpop.f32.mrf.mxu0  ;;  %v6177_v16 = vpop.f32.mrf.mxu1  ;;  %v12531_v11 = vor.u32 %v14433_v1, %v12530_v60  ;;  %v12535_v12 = vor.u32 %v14177_v2, %v12532_v3  ;;  %v14182_v60 = vld [vmem:[%s15024_s24 + $0x1fc] sm:$0xf]  ;;  %v14437_v3 = vld [vmem:[%s15024_s24 + $0x9ec] sm:$0x10] }
 0x1d9   : > { %v678_v52 = vld.sshfl [vmem:[#allocation1 + $0x20] sm:$0xff pattern:$0x73625140]  ;;  %v680_v56 = vld.sshfl [vmem:[#allocation1 + $0x30] sm:$0xff pattern:$0x73625140] }
 0x1da   : > { %v6202_v20 = vadd.f32 %v6201_v13, %v6189_v14  ;;  %v681_v57 = vld.sshfl [vmem:[#allocation1 + $0x38] sm:$0xff pattern:$0x73625140]  ;;  %v1800_v1 = vpack.c.bf16 %v678_v52, %v678_v52 }
 0x1df   : > { %v6190_v28 = vpop.f32.mrf.mxu2  ;;  %v6203_v29 = vpop.f32.mrf.mxu3 }
 0x1e0   : > { %v6214_v35 = vpop.f32.mrf.mxu0  ;;  %v6227_v36 = vpop.f32.mrf.mxu1  ;;  %v12556_v28 = vld [vmem:[%s15024_s24 + $0x9e8] sm:$0x10]  ;;  %v12546_v29 = vld [vmem:[%s15024_s24 + $0x1e0] sm:$0xf] }
 0x1e1   : > { %v6215_v39 = vadd.f32 %v6214_v35, %v6202_v20  ;;  %v675_v20 = vld.sshfl [vmem:[#allocation1 + $0x8] sm:$0xff pattern:$0x73625140] }
 0x1e2   : > { %6629 = vmatmul.bf16.vlgmr.msra.gmra.mxu0 %v1788_v30  ;;  %682 = vst [vmem:[#allocation1] ss:$4 sm:$0xff] %v305_v21  ;;  %v1797_v33 = vpack.c.bf16 %v675_v20, %v675_v20  ;;  %v14179_v35 = vld [vmem:[%s15024_s24 + $0x1e4] sm:$0xf] }
 0x1e3   : > { %v6228_v44 = vadd.f32 %v6227_v36, %v6215_v39  ;;  %6642 = vmatmul.bf16.vlgmr.msra.gmra.mxu1 %v1789_v31  ;;  %6732 = vmatpush.bf16.xpose.msra.mxu0 %v12515_v42  ;;  %v12548_v36 = vld [vmem:[%s15024_s24 + $0x9e0] sm:$0x10]  ;;  %v1798_v39 = vpack.c.bf16 %v676_v23, %v676_v23  ;;  %v12555_v42 = vor.u32 %v14436_v26, %v12554_v25 }
 0x1e4   : > { %6655 = vmatmul.bf16.vlgmr.msra.gmra.mxu2 %v1790_v37  ;;  %6668 = vmatmul.bf16.vlgmr.msra.gmra.mxu3 %v1791_v38  ;;  %v307_v23 = vld [vmem:[%s15017_s12 + $0x100] sm:$0xff] }
 0x1e5   : > { %6758 = vmatpush.bf16.xpose.msra.mxu2 %v12523_v40  ;;  %6771 = vmatpush.bf16.xpose.msra.mxu3 %v12527_v41  ;;  %v1799_v40 = vpack.c.bf16 %v677_v24, %v677_v24 }
 0x1e6   : > { %6745 = vmatpush.bf16.xpose.msra.mxu1 %v12519_v43  ;;  %v12559_v43 = vor.u32 %v14180_v27, %v12556_v28  ;;  %v12586_v27 = vld [vmem:[%s15024_s24 + $0x208] sm:$0xf] }
 0x1e7   : > { %v6240_v45 = vpop.f32.mrf.mxu2  ;;  %v6253_v46 = vpop.f32.mrf.mxu3  ;;  %v14440_v28 = vld [vmem:[%s15024_s24 + $0xa04] sm:$0x10] }
 0x1e8   : > { %v6241_v47 = vadd.f32 %v6240_v45, %v6228_v44  ;;  %v6216_v48 = vpop.f32.mrf.mxu0  ;;  %v6229_v49 = vpop.f32.mrf.mxu1  ;;  %v12547_v44 = vor.u32 %v14435_v34, %v12546_v29  ;;  %v12551_v45 = vor.u32 %v14179_v35, %v12548_v36  ;;  %v14184_v29 = vld [vmem:[%s15024_s24 + $0x20c] sm:$0xf]  ;;  %v14439_v36 = vld [vmem:[%s15024_s24 + $0x9fc] sm:$0x10] }
 0x1e9   : > { %v684_v21 = vld.sshfl [vmem:[#allocation1] sm:$0xff pattern:$0x73625140]  ;;  %v686_v25 = vld.sshfl [vmem:[#allocation1 + $0x10] sm:$0xff pattern:$0x73625140] }
 0x1ea   : > { %v6254_v53 = vadd.f32 %v6253_v46, %v6241_v47  ;;  %v687_v26 = vld.sshfl [vmem:[#allocation1 + $0x18] sm:$0xff pattern:$0x73625140]  ;;  %v1804_v34 = vpack.c.bf16 %v684_v21, %v684_v21 }
 0x1ef   : > { %v6242_v61 = vpop.f32.mrf.mxu2  ;;  %v6255_v62 = vpop.f32.mrf.mxu3 }
 0x1f0   : > { %v6266_v4 = vpop.f32.mrf.mxu0  ;;  %v6279_v5 = vpop.f32.mrf.mxu1  ;;  %v12572_v61 = vld [vmem:[%s15024_s24 + $0x9f8] sm:$0x10]  ;;  %v12562_v62 = vld [vmem:[%s15024_s24 + $0x1f0] sm:$0xf] }
 0x1f1   : > { %v6267_v8 = vadd.f32 %v6266_v4, %v6254_v53  ;;  %v679_v53 = vld.sshfl [vmem:[#allocation1 + $0x28] sm:$0xff pattern:$0x73625140]  ;;  %v14181_v4 = vld [vmem:[%s15024_s24 + $0x1f4] sm:$0xf] }
 0x1f2   : > { %6681 = vmatmul.bf16.vlgmr.msrb.gmra.mxu0 %v1792_v63  ;;  %683 = vst [vmem:[#allocation1 + $0x20] ss:$4 sm:$0xff] %v306_v54  ;;  %v1801_v2 = vpack.c.bf16 %v679_v53, %v679_v53 }
 0x1f3   : > { %v6280_v13 = vadd.f32 %v6279_v5, %v6267_v8  ;;  %6694 = vmatmul.bf16.vlgmr.msrb.gmra.mxu1 %v1793_v0  ;;  %6784 = vmatpush.bf16.xpose.msrb.mxu0 %v12531_v11  ;;  %v12564_v5 = vld [vmem:[%s15024_s24 + $0x9f0] sm:$0x10]  ;;  %v1802_v8 = vpack.c.bf16 %v680_v56, %v680_v56  ;;  %v12571_v11 = vor.u32 %v14438_v59, %v12570_v58  ;;  %v308_v56 = vld [vmem:[%s15017_s12 + $0x108] sm:$0xff] }
 0x1f4   : > { %6707 = vmatmul.bf16.vlgmr.msrb.gmra.mxu2 %v1794_v6  ;;  %6720 = vmatmul.bf16.vlgmr.msrb.gmra.mxu3 %v1795_v7 }
 0x1f5   : > { %6810 = vmatpush.bf16.xpose.msrb.mxu2 %v12539_v9  ;;  %6823 = vmatpush.bf16.xpose.msrb.mxu3 %v12543_v10  ;;  %v1803_v9 = vpack.c.bf16 %v681_v57, %v681_v57 }
 0x1f6   : > { %6797 = vmatpush.bf16.xpose.msrb.mxu1 %v12535_v12  ;;  %v12575_v12 = vor.u32 %v14182_v60, %v12572_v61  ;;  %v12602_v60 = vld [vmem:[%s15024_s24 + $0x218] sm:$0xf] }
 0x1f7   : > { %v6292_v14 = vpop.f32.mrf.mxu2  ;;  %v6305_v15 = vpop.f32.mrf.mxu3  ;;  %v14442_v61 = vld [vmem:[%s15024_s24 + $0xa14] sm:$0x10] }
 0x1f8   : > { %v6293_v16 = vadd.f32 %v6292_v14, %v6280_v13  ;;  %v6268_v17 = vpop.f32.mrf.mxu0  ;;  %v6281_v18 = vpop.f32.mrf.mxu1  ;;  %v12563_v13 = vor.u32 %v14437_v3, %v12562_v62  ;;  %v12567_v14 = vor.u32 %v14181_v4, %v12564_v5  ;;  %v14186_v62 = vld [vmem:[%s15024_s24 + $0x21c] sm:$0xf]  ;;  %v14441_v5 = vld [vmem:[%s15024_s24 + $0xa0c] sm:$0x10] }
 0x1f9   : > { %v688_v54 = vld.sshfl [vmem:[#allocation1 + $0x20] sm:$0xff pattern:$0x73625140]  ;;  %v690_v58 = vld.sshfl [vmem:[#allocation1 + $0x30] sm:$0xff pattern:$0x73625140] }
 0x1fa   : > { %v6306_v22 = vadd.f32 %v6305_v15, %v6293_v16  ;;  %v691_v59 = vld.sshfl [vmem:[#allocation1 + $0x38] sm:$0xff pattern:$0x73625140]  ;;  %v1808_v3 = vpack.c.bf16 %v688_v54, %v688_v54 }
 0x1ff   : > { %v6294_v30 = vpop.f32.mrf.mxu2  ;;  %v6307_v31 = vpop.f32.mrf.mxu3 }
 0x200   : > { %v6318_v37 = vpop.f32.mrf.mxu0  ;;  %v6331_v38 = vpop.f32.mrf.mxu1  ;;  %v12588_v30 = vld [vmem:[%s15024_s24 + $0xa08] sm:$0x10]  ;;  %v12578_v31 = vld [vmem:[%s15024_s24 + $0x200] sm:$0xf] }
 0x201   : > { %v6319_v41 = vadd.f32 %v6318_v37, %v6306_v22  ;;  %v685_v22 = vld.sshfl [vmem:[#allocation1 + $0x8] sm:$0xff pattern:$0x73625140] }
 0x202   : > { %6733 = vmatmul.bf16.vlgmr.msra.gmra.mxu0 %v1796_v32  ;;  %692 = vst [vmem:[#allocation1] ss:$4 sm:$0xff] %v307_v23  ;;  %v1805_v35 = vpack.c.bf16 %v685_v22, %v685_v22  ;;  %v14183_v37 = vld [vmem:[%s15024_s24 + $0x204] sm:$0xf] }
 0x203   : > { %v6332_v46 = vadd.f32 %v6331_v38, %v6319_v41  ;;  %6746 = vmatmul.bf16.vlgmr.msra.gmra.mxu1 %v1797_v33  ;;  %6836 = vmatpush.bf16.xpose.msra.mxu0 %v12547_v44  ;;  %v12580_v38 = vld [vmem:[%s15024_s24 + $0xa00] sm:$0x10]  ;;  %v1806_v41 = vpack.c.bf16 %v686_v25, %v686_v25  ;;  %v12587_v44 = vor.u32 %v14440_v28, %v12586_v27  ;;  %v309_v25 = vld [vmem:[%s15017_s12 + $0x110] sm:$0xff] }
 0x204   : > { %6759 = vmatmul.bf16.vlgmr.msra.gmra.mxu2 %v1798_v39  ;;  %6772 = vmatmul.bf16.vlgmr.msra.gmra.mxu3 %v1799_v40 }
 0x205   : > { %6862 = vmatpush.bf16.xpose.msra.mxu2 %v12555_v42  ;;  %6875 = vmatpush.bf16.xpose.msra.mxu3 %v12559_v43  ;;  %v1807_v42 = vpack.c.bf16 %v687_v26, %v687_v26 }
 0x206   : > { %6849 = vmatpush.bf16.xpose.msra.mxu1 %v12551_v45  ;;  %v12591_v45 = vor.u32 %v14184_v29, %v12588_v30  ;;  %v12618_v29 = vld [vmem:[%s15024_s24 + $0x228] sm:$0xf] }
 0x207   : > { %v6344_v47 = vpop.f32.mrf.mxu2  ;;  %v6357_v48 = vpop.f32.mrf.mxu3  ;;  %v14444_v30 = vld [vmem:[%s15024_s24 + $0xa24] sm:$0x10] }
 0x208   : > { %v6345_v49 = vadd.f32 %v6344_v47, %v6332_v46  ;;  %v6320_v50 = vpop.f32.mrf.mxu0  ;;  %v6333_v51 = vpop.f32.mrf.mxu1  ;;  %v12579_v46 = vor.u32 %v14439_v36, %v12578_v31  ;;  %v12583_v47 = vor.u32 %v14183_v37, %v12580_v38  ;;  %v14188_v31 = vld [vmem:[%s15024_s24 + $0x22c] sm:$0xf]  ;;  %v14443_v38 = vld [vmem:[%s15024_s24 + $0xa1c] sm:$0x10] }
 0x209   : > { %v694_v23 = vld.sshfl [vmem:[#allocation1] sm:$0xff pattern:$0x73625140]  ;;  %v696_v27 = vld.sshfl [vmem:[#allocation1 + $0x10] sm:$0xff pattern:$0x73625140] }
 0x20a   : > { %v6358_v55 = vadd.f32 %v6357_v48, %v6345_v49  ;;  %v697_v28 = vld.sshfl [vmem:[#allocation1 + $0x18] sm:$0xff pattern:$0x73625140]  ;;  %v1812_v36 = vpack.c.bf16 %v694_v23, %v694_v23 }
 0x20f   : > { %v6346_v63 = vpop.f32.mrf.mxu2  ;;  %v6359_v0 = vpop.f32.mrf.mxu3 }
 0x210   : > { %v6370_v6 = vpop.f32.mrf.mxu0  ;;  %v6383_v7 = vpop.f32.mrf.mxu1  ;;  %v12604_v63 = vld [vmem:[%s15024_s24 + $0xa18] sm:$0x10]  ;;  %v12594_v0 = vld [vmem:[%s15024_s24 + $0x210] sm:$0xf] }
 0x211   : > { %v6371_v10 = vadd.f32 %v6370_v6, %v6358_v55  ;;  %v689_v55 = vld.sshfl [vmem:[#allocation1 + $0x28] sm:$0xff pattern:$0x73625140]  ;;  %v14185_v6 = vld [vmem:[%s15024_s24 + $0x214] sm:$0xf] }
 0x212   : > { %6785 = vmatmul.bf16.vlgmr.msrb.gmra.mxu0 %v1800_v1  ;;  %693 = vst [vmem:[#allocation1 + $0x20] ss:$4 sm:$0xff] %v308_v56  ;;  %v1809_v4 = vpack.c.bf16 %v689_v55, %v689_v55 }
 0x213   : > { %v6384_v15 = vadd.f32 %v6383_v7, %v6371_v10  ;;  %6798 = vmatmul.bf16.vlgmr.msrb.gmra.mxu1 %v1801_v2  ;;  %6888 = vmatpush.bf16.xpose.msrb.mxu0 %v12563_v13  ;;  %v12596_v7 = vld [vmem:[%s15024_s24 + $0xa10] sm:$0x10]  ;;  %v1810_v10 = vpack.c.bf16 %v690_v58, %v690_v58  ;;  %v12603_v13 = vor.u32 %v14442_v61, %v12602_v60  ;;  %v310_v58 = vld [vmem:[%s15017_s12 + $0x118] sm:$0xff] }
 0x214   : > { %6811 = vmatmul.bf16.vlgmr.msrb.gmra.mxu2 %v1802_v8  ;;  %6824 = vmatmul.bf16.vlgmr.msrb.gmra.mxu3 %v1803_v9 }
 0x215   : > { %6914 = vmatpush.bf16.xpose.msrb.mxu2 %v12571_v11  ;;  %6927 = vmatpush.bf16.xpose.msrb.mxu3 %v12575_v12  ;;  %v1811_v11 = vpack.c.bf16 %v691_v59, %v691_v59 }
 0x216   : > { %6901 = vmatpush.bf16.xpose.msrb.mxu1 %v12567_v14  ;;  %v12607_v14 = vor.u32 %v14186_v62, %v12604_v63  ;;  %v12634_v62 = vld [vmem:[%s15024_s24 + $0x238] sm:$0xf] }
 0x217   : > { %v6396_v16 = vpop.f32.mrf.mxu2  ;;  %v6409_v17 = vpop.f32.mrf.mxu3  ;;  %v14446_v63 = vld [vmem:[%s15024_s24 + $0xa34] sm:$0x10] }
 0x218   : > { %v6397_v18 = vadd.f32 %v6396_v16, %v6384_v15  ;;  %v6372_v19 = vpop.f32.mrf.mxu0  ;;  %v6385_v20 = vpop.f32.mrf.mxu1  ;;  %v12595_v15 = vor.u32 %v14441_v5, %v12594_v0  ;;  %v12599_v16 = vor.u32 %v14185_v6, %v12596_v7  ;;  %v14190_v0 = vld [vmem:[%s15024_s24 + $0x23c] sm:$0xf]  ;;  %v14445_v7 = vld [vmem:[%s15024_s24 + $0xa2c] sm:$0x10] }
 0x219   : > { %v698_v56 = vld.sshfl [vmem:[#allocation1 + $0x20] sm:$0xff pattern:$0x73625140]  ;;  %v700_v60 = vld.sshfl [vmem:[#allocation1 + $0x30] sm:$0xff pattern:$0x73625140] }
 0x21a   : > { %v6410_v24 = vadd.f32 %v6409_v17, %v6397_v18  ;;  %v701_v61 = vld.sshfl [vmem:[#allocation1 + $0x38] sm:$0xff pattern:$0x73625140]  ;;  %v1816_v5 = vpack.c.bf16 %v698_v56, %v698_v56 }
 0x21f   : > { %v6398_v32 = vpop.f32.mrf.mxu2  ;;  %v6411_v33 = vpop.f32.mrf.mxu3 }
 0x220   : > { %v6422_v39 = vpop.f32.mrf.mxu0  ;;  %v6435_v40 = vpop.f32.mrf.mxu1  ;;  %v12620_v32 = vld [vmem:[%s15024_s24 + $0xa28] sm:$0x10]  ;;  %v12610_v33 = vld [vmem:[%s15024_s24 + $0x220] sm:$0xf] }
 0x221   : > { %v6423_v43 = vadd.f32 %v6422_v39, %v6410_v24  ;;  %v695_v24 = vld.sshfl [vmem:[#allocation1 + $0x8] sm:$0xff pattern:$0x73625140] }
 0x222   : > { %6837 = vmatmul.bf16.vlgmr.msra.gmra.mxu0 %v1804_v34  ;;  %702 = vst [vmem:[#allocation1] ss:$4 sm:$0xff] %v309_v25  ;;  %v1813_v37 = vpack.c.bf16 %v695_v24, %v695_v24  ;;  %v14187_v39 = vld [vmem:[%s15024_s24 + $0x224] sm:$0xf] }
 0x223   : > { %v6436_v48 = vadd.f32 %v6435_v40, %v6423_v43  ;;  %6850 = vmatmul.bf16.vlgmr.msra.gmra.mxu1 %v1805_v35  ;;  %6940 = vmatpush.bf16.xpose.msra.mxu0 %v12579_v46  ;;  %v12612_v40 = vld [vmem:[%s15024_s24 + $0xa20] sm:$0x10]  ;;  %v1814_v43 = vpack.c.bf16 %v696_v27, %v696_v27  ;;  %v12619_v46 = vor.u32 %v14444_v30, %v12618_v29 }
 0x224   : > { %6863 = vmatmul.bf16.vlgmr.msra.gmra.mxu2 %v1806_v41  ;;  %6876 = vmatmul.bf16.vlgmr.msra.gmra.mxu3 %v1807_v42  ;;  %v311_v27 = vld [vmem:[%s15017_s12 + $0x120] sm:$0xff] }
 0x225   : > { %6966 = vmatpush.bf16.xpose.msra.mxu2 %v12587_v44  ;;  %6979 = vmatpush.bf16.xpose.msra.mxu3 %v12591_v45  ;;  %v1815_v44 = vpack.c.bf16 %v697_v28, %v697_v28 }
 0x226   : > { %6953 = vmatpush.bf16.xpose.msra.mxu1 %v12583_v47  ;;  %v12623_v47 = vor.u32 %v14188_v31, %v12620_v32  ;;  %v12650_v31 = vld [vmem:[%s15024_s24 + $0x248] sm:$0xf] }
 0x227   : > { %v6448_v49 = vpop.f32.mrf.mxu2  ;;  %v6461_v50 = vpop.f32.mrf.mxu3  ;;  %v14448_v32 = vld [vmem:[%s15024_s24 + $0xa44] sm:$0x10] }
 0x228   : > { %v6449_v51 = vadd.f32 %v6448_v49, %v6436_v48  ;;  %v6424_v52 = vpop.f32.mrf.mxu0  ;;  %v6437_v53 = vpop.f32.mrf.mxu1  ;;  %v12611_v48 = vor.u32 %v14443_v38, %v12610_v33  ;;  %v12615_v49 = vor.u32 %v14187_v39, %v12612_v40  ;;  %v14192_v33 = vld [vmem:[%s15024_s24 + $0x24c] sm:$0xf]  ;;  %v14447_v40 = vld [vmem:[%s15024_s24 + $0xa3c] sm:$0x10] }
 0x229   : > { %v704_v25 = vld.sshfl [vmem:[#allocation1] sm:$0xff pattern:$0x73625140]  ;;  %v706_v29 = vld.sshfl [vmem:[#allocation1 + $0x10] sm:$0xff pattern:$0x73625140] }
 0x22a   : > { %v6462_v57 = vadd.f32 %v6461_v50, %v6449_v51  ;;  %v707_v30 = vld.sshfl [vmem:[#allocation1 + $0x18] sm:$0xff pattern:$0x73625140]  ;;  %v1820_v38 = vpack.c.bf16 %v704_v25, %v704_v25 }
 0x22f   : > { %v6450_v1 = vpop.f32.mrf.mxu2  ;;  %v6463_v2 = vpop.f32.mrf.mxu3 }
 0x230   : > { %v6474_v8 = vpop.f32.mrf.mxu0  ;;  %v6487_v9 = vpop.f32.mrf.mxu1  ;;  %v12636_v1 = vld [vmem:[%s15024_s24 + $0xa38] sm:$0x10]  ;;  %v12626_v2 = vld [vmem:[%s15024_s24 + $0x230] sm:$0xf] }
 0x231   : > { %v6475_v12 = vadd.f32 %v6474_v8, %v6462_v57  ;;  %v699_v57 = vld.sshfl [vmem:[#allocation1 + $0x28] sm:$0xff pattern:$0x73625140]  ;;  %v14189_v8 = vld [vmem:[%s15024_s24 + $0x234] sm:$0xf] }
 0x232   : > { %6889 = vmatmul.bf16.vlgmr.msrb.gmra.mxu0 %v1808_v3  ;;  %703 = vst [vmem:[#allocation1 + $0x20] ss:$4 sm:$0xff] %v310_v58  ;;  %v1817_v6 = vpack.c.bf16 %v699_v57, %v699_v57 }
 0x233   : > { %v6488_v17 = vadd.f32 %v6487_v9, %v6475_v12  ;;  %6902 = vmatmul.bf16.vlgmr.msrb.gmra.mxu1 %v1809_v4  ;;  %6992 = vmatpush.bf16.xpose.msrb.mxu0 %v12595_v15  ;;  %v12628_v9 = vld [vmem:[%s15024_s24 + $0xa30] sm:$0x10]  ;;  %v1818_v12 = vpack.c.bf16 %v700_v60, %v700_v60  ;;  %v12635_v15 = vor.u32 %v14446_v63, %v12634_v62  ;;  %v312_v60 = vld [vmem:[%s15017_s12 + $0x128] sm:$0xff] }
 0x234   : > { %6915 = vmatmul.bf16.vlgmr.msrb.gmra.mxu2 %v1810_v10  ;;  %6928 = vmatmul.bf16.vlgmr.msrb.gmra.mxu3 %v1811_v11 }
 0x235   : > { %7018 = vmatpush.bf16.xpose.msrb.mxu2 %v12603_v13  ;;  %7031 = vmatpush.bf16.xpose.msrb.mxu3 %v12607_v14  ;;  %v1819_v13 = vpack.c.bf16 %v701_v61, %v701_v61 }
 0x236   : > { %7005 = vmatpush.bf16.xpose.msrb.mxu1 %v12599_v16  ;;  %v12639_v16 = vor.u32 %v14190_v0, %v12636_v1  ;;  %v12666_v0 = vld [vmem:[%s15024_s24 + $0x258] sm:$0xf] }
 0x237   : > { %v6500_v18 = vpop.f32.mrf.mxu2  ;;  %v6513_v19 = vpop.f32.mrf.mxu3  ;;  %v14450_v1 = vld [vmem:[%s15024_s24 + $0xa54] sm:$0x10] }
 0x238   : > { %v6501_v20 = vadd.f32 %v6500_v18, %v6488_v17  ;;  %v6476_v21 = vpop.f32.mrf.mxu0  ;;  %v6489_v22 = vpop.f32.mrf.mxu1  ;;  %v12627_v17 = vor.u32 %v14445_v7, %v12626_v2  ;;  %v12631_v18 = vor.u32 %v14189_v8, %v12628_v9  ;;  %v14194_v2 = vld [vmem:[%s15024_s24 + $0x25c] sm:$0xf]  ;;  %v14449_v9 = vld [vmem:[%s15024_s24 + $0xa4c] sm:$0x10] }
 0x239   : > { %v708_v58 = vld.sshfl [vmem:[#allocation1 + $0x20] sm:$0xff pattern:$0x73625140]  ;;  %v710_v62 = vld.sshfl [vmem:[#allocation1 + $0x30] sm:$0xff pattern:$0x73625140] }
 0x23a   : > { %v6514_v26 = vadd.f32 %v6513_v19, %v6501_v20  ;;  %v711_v63 = vld.sshfl [vmem:[#allocation1 + $0x38] sm:$0xff pattern:$0x73625140]  ;;  %v1824_v7 = vpack.c.bf16 %v708_v58, %v708_v58 }
 0x23f   : > { %v6502_v34 = vpop.f32.mrf.mxu2  ;;  %v6515_v35 = vpop.f32.mrf.mxu3 }
 0x240   : > { %v6526_v41 = vpop.f32.mrf.mxu0  ;;  %v6539_v42 = vpop.f32.mrf.mxu1  ;;  %v12652_v34 = vld [vmem:[%s15024_s24 + $0xa48] sm:$0x10]  ;;  %v12642_v35 = vld [vmem:[%s15024_s24 + $0x240] sm:$0xf] }
 0x241   : > { %v6527_v45 = vadd.f32 %v6526_v41, %v6514_v26  ;;  %v705_v26 = vld.sshfl [vmem:[#allocation1 + $0x8] sm:$0xff pattern:$0x73625140] }
 0x242   : > { %6941 = vmatmul.bf16.vlgmr.msra.gmra.mxu0 %v1812_v36  ;;  %712 = vst [vmem:[#allocation1] ss:$4 sm:$0xff] %v311_v27  ;;  %v1821_v39 = vpack.c.bf16 %v705_v26, %v705_v26  ;;  %v14191_v41 = vld [vmem:[%s15024_s24 + $0x244] sm:$0xf] }
 0x243   : > { %v6540_v50 = vadd.f32 %v6539_v42, %v6527_v45  ;;  %6954 = vmatmul.bf16.vlgmr.msra.gmra.mxu1 %v1813_v37  ;;  %7044 = vmatpush.bf16.xpose.msra.mxu0 %v12611_v48  ;;  %v12644_v42 = vld [vmem:[%s15024_s24 + $0xa40] sm:$0x10]  ;;  %v1822_v45 = vpack.c.bf16 %v706_v29, %v706_v29  ;;  %v12651_v48 = vor.u32 %v14448_v32, %v12650_v31  ;;  %v313_v29 = vld [vmem:[%s15017_s12 + $0x130] sm:$0xff] }
 0x244   : > { %6967 = vmatmul.bf16.vlgmr.msra.gmra.mxu2 %v1814_v43  ;;  %6980 = vmatmul.bf16.vlgmr.msra.gmra.mxu3 %v1815_v44 }
 0x245   : > { %7070 = vmatpush.bf16.xpose.msra.mxu2 %v12619_v46  ;;  %7083 = vmatpush.bf16.xpose.msra.mxu3 %v12623_v47  ;;  %v1823_v46 = vpack.c.bf16 %v707_v30, %v707_v30 }
 0x246   : > { %7057 = vmatpush.bf16.xpose.msra.mxu1 %v12615_v49  ;;  %v12655_v49 = vor.u32 %v14192_v33, %v12652_v34  ;;  %v12682_v33 = vld [vmem:[%s15024_s24 + $0x268] sm:$0xf] }
 0x247   : > { %v6552_v51 = vpop.f32.mrf.mxu2  ;;  %v6565_v52 = vpop.f32.mrf.mxu3  ;;  %v14452_v34 = vld [vmem:[%s15024_s24 + $0xa64] sm:$0x10] }
 0x248   : > { %v6553_v53 = vadd.f32 %v6552_v51, %v6540_v50  ;;  %v6528_v54 = vpop.f32.mrf.mxu0  ;;  %v6541_v55 = vpop.f32.mrf.mxu1  ;;  %v12643_v50 = vor.u32 %v14447_v40, %v12642_v35  ;;  %v12647_v51 = vor.u32 %v14191_v41, %v12644_v42  ;;  %v14196_v35 = vld [vmem:[%s15024_s24 + $0x26c] sm:$0xf]  ;;  %v14451_v42 = vld [vmem:[%s15024_s24 + $0xa5c] sm:$0x10] }
 0x249   : > { %v714_v27 = vld.sshfl [vmem:[#allocation1] sm:$0xff pattern:$0x73625140]  ;;  %v716_v31 = vld.sshfl [vmem:[#allocation1 + $0x10] sm:$0xff pattern:$0x73625140] }
 0x24a   : > { %v6566_v59 = vadd.f32 %v6565_v52, %v6553_v53  ;;  %v717_v32 = vld.sshfl [vmem:[#allocation1 + $0x18] sm:$0xff pattern:$0x73625140]  ;;  %v1828_v40 = vpack.c.bf16 %v714_v27, %v714_v27 }
 0x24f   : > { %v6554_v3 = vpop.f32.mrf.mxu2  ;;  %v6567_v4 = vpop.f32.mrf.mxu3 }
 0x250   : > { %v6578_v10 = vpop.f32.mrf.mxu0  ;;  %v6591_v11 = vpop.f32.mrf.mxu1  ;;  %v12668_v3 = vld [vmem:[%s15024_s24 + $0xa58] sm:$0x10]  ;;  %v12658_v4 = vld [vmem:[%s15024_s24 + $0x250] sm:$0xf] }
 0x251   : > { %v6579_v14 = vadd.f32 %v6578_v10, %v6566_v59  ;;  %v709_v59 = vld.sshfl [vmem:[#allocation1 + $0x28] sm:$0xff pattern:$0x73625140]  ;;  %v14193_v10 = vld [vmem:[%s15024_s24 + $0x254] sm:$0xf] }
 0x252   : > { %6993 = vmatmul.bf16.vlgmr.msrb.gmra.mxu0 %v1816_v5  ;;  %713 = vst [vmem:[#allocation1 + $0x20] ss:$4 sm:$0xff] %v312_v60  ;;  %v1825_v8 = vpack.c.bf16 %v709_v59, %v709_v59 }
 0x253   : > { %v6592_v19 = vadd.f32 %v6591_v11, %v6579_v14  ;;  %7006 = vmatmul.bf16.vlgmr.msrb.gmra.mxu1 %v1817_v6  ;;  %7096 = vmatpush.bf16.xpose.msrb.mxu0 %v12627_v17  ;;  %v12660_v11 = vld [vmem:[%s15024_s24 + $0xa50] sm:$0x10]  ;;  %v1826_v14 = vpack.c.bf16 %v710_v62, %v710_v62  ;;  %v12667_v17 = vor.u32 %v14450_v1, %v12666_v0  ;;  %v314_v62 = vld [vmem:[%s15017_s12 + $0x138] sm:$0xff] }
 0x254   : > { %7019 = vmatmul.bf16.vlgmr.msrb.gmra.mxu2 %v1818_v12  ;;  %7032 = vmatmul.bf16.vlgmr.msrb.gmra.mxu3 %v1819_v13 }
 0x255   : > { %7122 = vmatpush.bf16.xpose.msrb.mxu2 %v12635_v15  ;;  %7135 = vmatpush.bf16.xpose.msrb.mxu3 %v12639_v16  ;;  %v1827_v15 = vpack.c.bf16 %v711_v63, %v711_v63 }
 0x256   : > { %7109 = vmatpush.bf16.xpose.msrb.mxu1 %v12631_v18  ;;  %v12671_v18 = vor.u32 %v14194_v2, %v12668_v3  ;;  %v12698_v2 = vld [vmem:[%s15024_s24 + $0x278] sm:$0xf] }
 0x257   : > { %v6604_v20 = vpop.f32.mrf.mxu2  ;;  %v6617_v21 = vpop.f32.mrf.mxu3  ;;  %v14454_v3 = vld [vmem:[%s15024_s24 + $0xa74] sm:$0x10] }
 0x258   : > { %v6605_v22 = vadd.f32 %v6604_v20, %v6592_v19  ;;  %v6580_v23 = vpop.f32.mrf.mxu0  ;;  %v6593_v24 = vpop.f32.mrf.mxu1  ;;  %v12659_v19 = vor.u32 %v14449_v9, %v12658_v4  ;;  %v12663_v20 = vor.u32 %v14193_v10, %v12660_v11  ;;  %v14198_v4 = vld [vmem:[%s15024_s24 + $0x27c] sm:$0xf]  ;;  %v14453_v11 = vld [vmem:[%s15024_s24 + $0xa6c] sm:$0x10] }
 0x259   : > { %v718_v60 = vld.sshfl [vmem:[#allocation1 + $0x20] sm:$0xff pattern:$0x73625140]  ;;  %v720_v0 = vld.sshfl [vmem:[#allocation1 + $0x30] sm:$0xff pattern:$0x73625140] }
 0x25a   : > { %v6618_v28 = vadd.f32 %v6617_v21, %v6605_v22  ;;  %v721_v1 = vld.sshfl [vmem:[#allocation1 + $0x38] sm:$0xff pattern:$0x73625140]  ;;  %v1832_v9 = vpack.c.bf16 %v718_v60, %v718_v60 }
 0x25f   : > { %v6606_v36 = vpop.f32.mrf.mxu2  ;;  %v6619_v37 = vpop.f32.mrf.mxu3 }
 0x260   : > { %v6630_v43 = vpop.f32.mrf.mxu0  ;;  %v6643_v44 = vpop.f32.mrf.mxu1  ;;  %v12684_v36 = vld [vmem:[%s15024_s24 + $0xa68] sm:$0x10]  ;;  %v12674_v37 = vld [vmem:[%s15024_s24 + $0x260] sm:$0xf] }
 0x261   : > { %v6631_v47 = vadd.f32 %v6630_v43, %v6618_v28  ;;  %v715_v28 = vld.sshfl [vmem:[#allocation1 + $0x8] sm:$0xff pattern:$0x73625140] }
 0x262   : > { %7045 = vmatmul.bf16.vlgmr.msra.gmra.mxu0 %v1820_v38  ;;  %722 = vst [vmem:[#allocation1] ss:$4 sm:$0xff] %v313_v29  ;;  %v1829_v41 = vpack.c.bf16 %v715_v28, %v715_v28  ;;  %v14195_v43 = vld [vmem:[%s15024_s24 + $0x264] sm:$0xf] }
 0x263   : > { %v6644_v52 = vadd.f32 %v6643_v44, %v6631_v47  ;;  %7058 = vmatmul.bf16.vlgmr.msra.gmra.mxu1 %v1821_v39  ;;  %7148 = vmatpush.bf16.xpose.msra.mxu0 %v12643_v50  ;;  %v12676_v44 = vld [vmem:[%s15024_s24 + $0xa60] sm:$0x10]  ;;  %v1830_v47 = vpack.c.bf16 %v716_v31, %v716_v31  ;;  %v12683_v50 = vor.u32 %v14452_v34, %v12682_v33 }
 0x264   : > { %7071 = vmatmul.bf16.vlgmr.msra.gmra.mxu2 %v1822_v45  ;;  %7084 = vmatmul.bf16.vlgmr.msra.gmra.mxu3 %v1823_v46  ;;  %v315_v31 = vld [vmem:[%s15017_s12 + $0x140] sm:$0xff] }
 0x265   : > { %7174 = vmatpush.bf16.xpose.msra.mxu2 %v12651_v48  ;;  %7187 = vmatpush.bf16.xpose.msra.mxu3 %v12655_v49  ;;  %v1831_v48 = vpack.c.bf16 %v717_v32, %v717_v32 }
 0x266   : > { %7161 = vmatpush.bf16.xpose.msra.mxu1 %v12647_v51  ;;  %v12687_v51 = vor.u32 %v14196_v35, %v12684_v36  ;;  %v12714_v35 = vld [vmem:[%s15024_s24 + $0x288] sm:$0xf] }
 0x267   : > { %v6656_v53 = vpop.f32.mrf.mxu2  ;;  %v6669_v54 = vpop.f32.mrf.mxu3  ;;  %v14456_v36 = vld [vmem:[%s15024_s24 + $0xa84] sm:$0x10] }
 0x268   : > { %v6657_v55 = vadd.f32 %v6656_v53, %v6644_v52  ;;  %v6632_v56 = vpop.f32.mrf.mxu0  ;;  %v6645_v57 = vpop.f32.mrf.mxu1  ;;  %v12675_v52 = vor.u32 %v14451_v42, %v12674_v37  ;;  %v12679_v53 = vor.u32 %v14195_v43, %v12676_v44  ;;  %v14200_v37 = vld [vmem:[%s15024_s24 + $0x28c] sm:$0xf]  ;;  %v14455_v44 = vld [vmem:[%s15024_s24 + $0xa7c] sm:$0x10] }
 0x269   : > { %v724_v29 = vld.sshfl [vmem:[#allocation1] sm:$0xff pattern:$0x73625140]  ;;  %v726_v33 = vld.sshfl [vmem:[#allocation1 + $0x10] sm:$0xff pattern:$0x73625140] }
 0x26a   : > { %v6670_v61 = vadd.f32 %v6669_v54, %v6657_v55  ;;  %v727_v34 = vld.sshfl [vmem:[#allocation1 + $0x18] sm:$0xff pattern:$0x73625140]  ;;  %v1836_v42 = vpack.c.bf16 %v724_v29, %v724_v29 }
 0x26f   : > { %v6658_v5 = vpop.f32.mrf.mxu2  ;;  %v6671_v6 = vpop.f32.mrf.mxu3 }
 0x270   : > { %v6682_v12 = vpop.f32.mrf.mxu0  ;;  %v6695_v13 = vpop.f32.mrf.mxu1  ;;  %v12700_v5 = vld [vmem:[%s15024_s24 + $0xa78] sm:$0x10]  ;;  %v12690_v6 = vld [vmem:[%s15024_s24 + $0x270] sm:$0xf] }
 0x271   : > { %v6683_v16 = vadd.f32 %v6682_v12, %v6670_v61  ;;  %v719_v61 = vld.sshfl [vmem:[#allocation1 + $0x28] sm:$0xff pattern:$0x73625140]  ;;  %v14197_v12 = vld [vmem:[%s15024_s24 + $0x274] sm:$0xf] }
 0x272   : > { %7097 = vmatmul.bf16.vlgmr.msrb.gmra.mxu0 %v1824_v7  ;;  %723 = vst [vmem:[#allocation1 + $0x20] ss:$4 sm:$0xff] %v314_v62  ;;  %v1833_v10 = vpack.c.bf16 %v719_v61, %v719_v61 }
 0x273   : > { %v6696_v21 = vadd.f32 %v6695_v13, %v6683_v16  ;;  %7110 = vmatmul.bf16.vlgmr.msrb.gmra.mxu1 %v1825_v8  ;;  %7200 = vmatpush.bf16.xpose.msrb.mxu0 %v12659_v19  ;;  %v12692_v13 = vld [vmem:[%s15024_s24 + $0xa70] sm:$0x10]  ;;  %v1834_v16 = vpack.c.bf16 %v720_v0, %v720_v0  ;;  %v12699_v19 = vor.u32 %v14454_v3, %v12698_v2  ;;  %v316_v0 = vld [vmem:[%s15017_s12 + $0x148] sm:$0xff] }
 0x274   : > { %7123 = vmatmul.bf16.vlgmr.msrb.gmra.mxu2 %v1826_v14  ;;  %7136 = vmatmul.bf16.vlgmr.msrb.gmra.mxu3 %v1827_v15 }
 0x275   : > { %7226 = vmatpush.bf16.xpose.msrb.mxu2 %v12667_v17  ;;  %7239 = vmatpush.bf16.xpose.msrb.mxu3 %v12671_v18  ;;  %v1835_v17 = vpack.c.bf16 %v721_v1, %v721_v1 }
 0x276   : > { %7213 = vmatpush.bf16.xpose.msrb.mxu1 %v12663_v20  ;;  %v12703_v20 = vor.u32 %v14198_v4, %v12700_v5  ;;  %v12730_v4 = vld [vmem:[%s15024_s24 + $0x298] sm:$0xf] }
 0x277   : > { %v6708_v22 = vpop.f32.mrf.mxu2  ;;  %v6721_v23 = vpop.f32.mrf.mxu3  ;;  %v14458_v5 = vld [vmem:[%s15024_s24 + $0xa94] sm:$0x10] }
 0x278   : > { %v6709_v24 = vadd.f32 %v6708_v22, %v6696_v21  ;;  %v6684_v25 = vpop.f32.mrf.mxu0  ;;  %v6697_v26 = vpop.f32.mrf.mxu1  ;;  %v12691_v21 = vor.u32 %v14453_v11, %v12690_v6  ;;  %v12695_v22 = vor.u32 %v14197_v12, %v12692_v13  ;;  %v14202_v6 = vld [vmem:[%s15024_s24 + $0x29c] sm:$0xf]  ;;  %v14457_v13 = vld [vmem:[%s15024_s24 + $0xa8c] sm:$0x10] }
 0x279   : > { %v728_v62 = vld.sshfl [vmem:[#allocation1 + $0x20] sm:$0xff pattern:$0x73625140]  ;;  %v730_v2 = vld.sshfl [vmem:[#allocation1 + $0x30] sm:$0xff pattern:$0x73625140] }
 0x27a   : > { %v6722_v30 = vadd.f32 %v6721_v23, %v6709_v24  ;;  %v731_v3 = vld.sshfl [vmem:[#allocation1 + $0x38] sm:$0xff pattern:$0x73625140]  ;;  %v1840_v11 = vpack.c.bf16 %v728_v62, %v728_v62 }
 0x27f   : > { %v6710_v38 = vpop.f32.mrf.mxu2  ;;  %v6723_v39 = vpop.f32.mrf.mxu3 }
 0x280   : > { %v6734_v45 = vpop.f32.mrf.mxu0  ;;  %v6747_v46 = vpop.f32.mrf.mxu1  ;;  %v12716_v38 = vld [vmem:[%s15024_s24 + $0xa88] sm:$0x10]  ;;  %v12706_v39 = vld [vmem:[%s15024_s24 + $0x280] sm:$0xf] }
 0x281   : > { %v6735_v49 = vadd.f32 %v6734_v45, %v6722_v30  ;;  %v725_v30 = vld.sshfl [vmem:[#allocation1 + $0x8] sm:$0xff pattern:$0x73625140] }
 0x282   : > { %7149 = vmatmul.bf16.vlgmr.msra.gmra.mxu0 %v1828_v40  ;;  %732 = vst [vmem:[#allocation1] ss:$4 sm:$0xff] %v315_v31  ;;  %v1837_v43 = vpack.c.bf16 %v725_v30, %v725_v30  ;;  %v14199_v45 = vld [vmem:[%s15024_s24 + $0x284] sm:$0xf] }
 0x283   : > { %v6748_v54 = vadd.f32 %v6747_v46, %v6735_v49  ;;  %7162 = vmatmul.bf16.vlgmr.msra.gmra.mxu1 %v1829_v41  ;;  %7252 = vmatpush.bf16.xpose.msra.mxu0 %v12675_v52  ;;  %v12708_v46 = vld [vmem:[%s15024_s24 + $0xa80] sm:$0x10]  ;;  %v1838_v49 = vpack.c.bf16 %v726_v33, %v726_v33  ;;  %v12715_v52 = vor.u32 %v14456_v36, %v12714_v35  ;;  %v317_v33 = vld [vmem:[%s15017_s12 + $0x150] sm:$0xff] }
 0x284   : > { %7175 = vmatmul.bf16.vlgmr.msra.gmra.mxu2 %v1830_v47  ;;  %7188 = vmatmul.bf16.vlgmr.msra.gmra.mxu3 %v1831_v48 }
 0x285   : > { %7278 = vmatpush.bf16.xpose.msra.mxu2 %v12683_v50  ;;  %7291 = vmatpush.bf16.xpose.msra.mxu3 %v12687_v51  ;;  %v1839_v50 = vpack.c.bf16 %v727_v34, %v727_v34 }
 0x286   : > { %7265 = vmatpush.bf16.xpose.msra.mxu1 %v12679_v53  ;;  %v12719_v53 = vor.u32 %v14200_v37, %v12716_v38  ;;  %v12746_v37 = vld [vmem:[%s15024_s24 + $0x2a8] sm:$0xf] }
 0x287   : > { %v6760_v55 = vpop.f32.mrf.mxu2  ;;  %v6773_v56 = vpop.f32.mrf.mxu3  ;;  %v14460_v38 = vld [vmem:[%s15024_s24 + $0xaa4] sm:$0x10] }
 0x288   : > { %v6761_v57 = vadd.f32 %v6760_v55, %v6748_v54  ;;  %v6736_v58 = vpop.f32.mrf.mxu0  ;;  %v6749_v59 = vpop.f32.mrf.mxu1  ;;  %v12707_v54 = vor.u32 %v14455_v44, %v12706_v39  ;;  %v12711_v55 = vor.u32 %v14199_v45, %v12708_v46  ;;  %v14204_v39 = vld [vmem:[%s15024_s24 + $0x2ac] sm:$0xf]  ;;  %v14459_v46 = vld [vmem:[%s15024_s24 + $0xa9c] sm:$0x10] }
 0x289   : > { %v734_v31 = vld.sshfl [vmem:[#allocation1] sm:$0xff pattern:$0x73625140]  ;;  %v736_v35 = vld.sshfl [vmem:[#allocation1 + $0x10] sm:$0xff pattern:$0x73625140] }
 0x28a   : > { %v6774_v63 = vadd.f32 %v6773_v56, %v6761_v57  ;;  %v737_v36 = vld.sshfl [vmem:[#allocation1 + $0x18] sm:$0xff pattern:$0x73625140]  ;;  %v1844_v44 = vpack.c.bf16 %v734_v31, %v734_v31 }
 0x28f   : > { %v6762_v7 = vpop.f32.mrf.mxu2  ;;  %v6775_v8 = vpop.f32.mrf.mxu3 }
 0x290   : > { %v6786_v14 = vpop.f32.mrf.mxu0  ;;  %v6799_v15 = vpop.f32.mrf.mxu1  ;;  %v12732_v7 = vld [vmem:[%s15024_s24 + $0xa98] sm:$0x10]  ;;  %v12722_v8 = vld [vmem:[%s15024_s24 + $0x290] sm:$0xf] }
 0x291   : > { %v6787_v18 = vadd.f32 %v6786_v14, %v6774_v63  ;;  %v729_v63 = vld.sshfl [vmem:[#allocation1 + $0x28] sm:$0xff pattern:$0x73625140]  ;;  %v14201_v14 = vld [vmem:[%s15024_s24 + $0x294] sm:$0xf] }
 0x292   : > { %7201 = vmatmul.bf16.vlgmr.msrb.gmra.mxu0 %v1832_v9  ;;  %733 = vst [vmem:[#allocation1 + $0x20] ss:$4 sm:$0xff] %v316_v0  ;;  %v1841_v12 = vpack.c.bf16 %v729_v63, %v729_v63 }
 0x293   : > { %v6800_v23 = vadd.f32 %v6799_v15, %v6787_v18  ;;  %7214 = vmatmul.bf16.vlgmr.msrb.gmra.mxu1 %v1833_v10  ;;  %7304 = vmatpush.bf16.xpose.msrb.mxu0 %v12691_v21  ;;  %v12724_v15 = vld [vmem:[%s15024_s24 + $0xa90] sm:$0x10]  ;;  %v1842_v18 = vpack.c.bf16 %v730_v2, %v730_v2  ;;  %v12731_v21 = vor.u32 %v14458_v5, %v12730_v4  ;;  %v318_v2 = vld [vmem:[%s15017_s12 + $0x158] sm:$0xff] }
 0x294   : > { %7227 = vmatmul.bf16.vlgmr.msrb.gmra.mxu2 %v1834_v16  ;;  %7240 = vmatmul.bf16.vlgmr.msrb.gmra.mxu3 %v1835_v17 }
 0x295   : > { %7330 = vmatpush.bf16.xpose.msrb.mxu2 %v12699_v19  ;;  %7343 = vmatpush.bf16.xpose.msrb.mxu3 %v12703_v20  ;;  %v1843_v19 = vpack.c.bf16 %v731_v3, %v731_v3 }
 0x296   : > { %7317 = vmatpush.bf16.xpose.msrb.mxu1 %v12695_v22  ;;  %v12735_v22 = vor.u32 %v14202_v6, %v12732_v7  ;;  %v12762_v6 = vld [vmem:[%s15024_s24 + $0x2b8] sm:$0xf] }
 0x297   : > { %v6812_v24 = vpop.f32.mrf.mxu2  ;;  %v6825_v25 = vpop.f32.mrf.mxu3  ;;  %v14462_v7 = vld [vmem:[%s15024_s24 + $0xab4] sm:$0x10] }
 0x298   : > { %v6813_v26 = vadd.f32 %v6812_v24, %v6800_v23  ;;  %v6788_v27 = vpop.f32.mrf.mxu0  ;;  %v6801_v28 = vpop.f32.mrf.mxu1  ;;  %v12723_v23 = vor.u32 %v14457_v13, %v12722_v8  ;;  %v12727_v24 = vor.u32 %v14201_v14, %v12724_v15  ;;  %v14206_v8 = vld [vmem:[%s15024_s24 + $0x2bc] sm:$0xf]  ;;  %v14461_v15 = vld [vmem:[%s15024_s24 + $0xaac] sm:$0x10] }
 0x299   : > { %v738_v0 = vld.sshfl [vmem:[#allocation1 + $0x20] sm:$0xff pattern:$0x73625140]  ;;  %v740_v4 = vld.sshfl [vmem:[#allocation1 + $0x30] sm:$0xff pattern:$0x73625140] }
 0x29a   : > { %v6826_v32 = vadd.f32 %v6825_v25, %v6813_v26  ;;  %v741_v5 = vld.sshfl [vmem:[#allocation1 + $0x38] sm:$0xff pattern:$0x73625140]  ;;  %v1848_v13 = vpack.c.bf16 %v738_v0, %v738_v0 }
 0x29f   : > { %v6814_v40 = vpop.f32.mrf.mxu2  ;;  %v6827_v41 = vpop.f32.mrf.mxu3 }
 0x2a0   : > { %v6838_v47 = vpop.f32.mrf.mxu0  ;;  %v6851_v48 = vpop.f32.mrf.mxu1  ;;  %v12748_v40 = vld [vmem:[%s15024_s24 + $0xaa8] sm:$0x10]  ;;  %v12738_v41 = vld [vmem:[%s15024_s24 + $0x2a0] sm:$0xf] }
 0x2a1   : > { %v6839_v51 = vadd.f32 %v6838_v47, %v6826_v32  ;;  %v735_v32 = vld.sshfl [vmem:[#allocation1 + $0x8] sm:$0xff pattern:$0x73625140] }
 0x2a2   : > { %7253 = vmatmul.bf16.vlgmr.msra.gmra.mxu0 %v1836_v42  ;;  %742 = vst [vmem:[#allocation1] ss:$4 sm:$0xff] %v317_v33  ;;  %v1845_v45 = vpack.c.bf16 %v735_v32, %v735_v32  ;;  %v14203_v47 = vld [vmem:[%s15024_s24 + $0x2a4] sm:$0xf] }
 0x2a3   : > { %v6852_v56 = vadd.f32 %v6851_v48, %v6839_v51  ;;  %7266 = vmatmul.bf16.vlgmr.msra.gmra.mxu1 %v1837_v43  ;;  %7356 = vmatpush.bf16.xpose.msra.mxu0 %v12707_v54  ;;  %v12740_v48 = vld [vmem:[%s15024_s24 + $0xaa0] sm:$0x10]  ;;  %v1846_v51 = vpack.c.bf16 %v736_v35, %v736_v35  ;;  %v12747_v54 = vor.u32 %v14460_v38, %v12746_v37 }
 0x2a4   : > { %7279 = vmatmul.bf16.vlgmr.msra.gmra.mxu2 %v1838_v49  ;;  %7292 = vmatmul.bf16.vlgmr.msra.gmra.mxu3 %v1839_v50  ;;  %v319_v35 = vld [vmem:[%s15017_s12 + $0x160] sm:$0xff] }
 0x2a5   : > { %7382 = vmatpush.bf16.xpose.msra.mxu2 %v12715_v52  ;;  %7395 = vmatpush.bf16.xpose.msra.mxu3 %v12719_v53  ;;  %v1847_v52 = vpack.c.bf16 %v737_v36, %v737_v36 }
 0x2a6   : > { %7369 = vmatpush.bf16.xpose.msra.mxu1 %v12711_v55  ;;  %v12751_v55 = vor.u32 %v14204_v39, %v12748_v40  ;;  %v12778_v39 = vld [vmem:[%s15024_s24 + $0x2c8] sm:$0xf] }
 0x2a7   : > { %v6864_v57 = vpop.f32.mrf.mxu2  ;;  %v6877_v58 = vpop.f32.mrf.mxu3  ;;  %v14464_v40 = vld [vmem:[%s15024_s24 + $0xac4] sm:$0x10] }
 0x2a8   : > { %v6865_v59 = vadd.f32 %v6864_v57, %v6852_v56  ;;  %v6840_v60 = vpop.f32.mrf.mxu0  ;;  %v6853_v61 = vpop.f32.mrf.mxu1  ;;  %v12739_v56 = vor.u32 %v14459_v46, %v12738_v41  ;;  %v12743_v57 = vor.u32 %v14203_v47, %v12740_v48  ;;  %v14208_v41 = vld [vmem:[%s15024_s24 + $0x2cc] sm:$0xf]  ;;  %v14463_v48 = vld [vmem:[%s15024_s24 + $0xabc] sm:$0x10] }
 0x2a9   : > { %v744_v33 = vld.sshfl [vmem:[#allocation1] sm:$0xff pattern:$0x73625140]  ;;  %v746_v37 = vld.sshfl [vmem:[#allocation1 + $0x10] sm:$0xff pattern:$0x73625140] }
 0x2aa   : > { %v6878_v1 = vadd.f32 %v6877_v58, %v6865_v59  ;;  %v747_v38 = vld.sshfl [vmem:[#allocation1 + $0x18] sm:$0xff pattern:$0x73625140]  ;;  %v1852_v46 = vpack.c.bf16 %v744_v33, %v744_v33 }
 0x2af   : > { %v6866_v9 = vpop.f32.mrf.mxu2  ;;  %v6879_v10 = vpop.f32.mrf.mxu3 }
 0x2b0   : > { %v6890_v16 = vpop.f32.mrf.mxu0  ;;  %v6903_v17 = vpop.f32.mrf.mxu1  ;;  %v12764_v9 = vld [vmem:[%s15024_s24 + $0xab8] sm:$0x10]  ;;  %v12754_v10 = vld [vmem:[%s15024_s24 + $0x2b0] sm:$0xf] }
 0x2b1   : > { %v6891_v20 = vadd.f32 %v6890_v16, %v6878_v1  ;;  %v739_v1 = vld.sshfl [vmem:[#allocation1 + $0x28] sm:$0xff pattern:$0x73625140]  ;;  %v14205_v16 = vld [vmem:[%s15024_s24 + $0x2b4] sm:$0xf] }
 0x2b2   : > { %7305 = vmatmul.bf16.vlgmr.msrb.gmra.mxu0 %v1840_v11  ;;  %743 = vst [vmem:[#allocation1 + $0x20] ss:$4 sm:$0xff] %v318_v2  ;;  %v1849_v14 = vpack.c.bf16 %v739_v1, %v739_v1 }
 0x2b3   : > { %v6904_v25 = vadd.f32 %v6903_v17, %v6891_v20  ;;  %7318 = vmatmul.bf16.vlgmr.msrb.gmra.mxu1 %v1841_v12  ;;  %7408 = vmatpush.bf16.xpose.msrb.mxu0 %v12723_v23  ;;  %v12756_v17 = vld [vmem:[%s15024_s24 + $0xab0] sm:$0x10]  ;;  %v1850_v20 = vpack.c.bf16 %v740_v4, %v740_v4  ;;  %v12763_v23 = vor.u32 %v14462_v7, %v12762_v6  ;;  %v320_v4 = vld [vmem:[%s15017_s12 + $0x168] sm:$0xff] }
 0x2b4   : > { %7331 = vmatmul.bf16.vlgmr.msrb.gmra.mxu2 %v1842_v18  ;;  %7344 = vmatmul.bf16.vlgmr.msrb.gmra.mxu3 %v1843_v19 }
 0x2b5   : > { %7434 = vmatpush.bf16.xpose.msrb.mxu2 %v12731_v21  ;;  %7447 = vmatpush.bf16.xpose.msrb.mxu3 %v12735_v22  ;;  %v1851_v21 = vpack.c.bf16 %v741_v5, %v741_v5 }
 0x2b6   : > { %7421 = vmatpush.bf16.xpose.msrb.mxu1 %v12727_v24  ;;  %v12767_v24 = vor.u32 %v14206_v8, %v12764_v9  ;;  %v12794_v8 = vld [vmem:[%s15024_s24 + $0x2d8] sm:$0xf] }
 0x2b7   : > { %v6916_v26 = vpop.f32.mrf.mxu2  ;;  %v6929_v27 = vpop.f32.mrf.mxu3  ;;  %v14466_v9 = vld [vmem:[%s15024_s24 + $0xad4] sm:$0x10] }
 0x2b8   : > { %v6917_v28 = vadd.f32 %v6916_v26, %v6904_v25  ;;  %v6892_v29 = vpop.f32.mrf.mxu0  ;;  %v6905_v30 = vpop.f32.mrf.mxu1  ;;  %v12755_v25 = vor.u32 %v14461_v15, %v12754_v10  ;;  %v12759_v26 = vor.u32 %v14205_v16, %v12756_v17  ;;  %v14210_v10 = vld [vmem:[%s15024_s24 + $0x2dc] sm:$0xf]  ;;  %v14465_v17 = vld [vmem:[%s15024_s24 + $0xacc] sm:$0x10] }
 0x2b9   : > { %v748_v2 = vld.sshfl [vmem:[#allocation1 + $0x20] sm:$0xff pattern:$0x73625140]  ;;  %v750_v6 = vld.sshfl [vmem:[#allocation1 + $0x30] sm:$0xff pattern:$0x73625140] }
 0x2ba   : > { %v6930_v34 = vadd.f32 %v6929_v27, %v6917_v28  ;;  %v751_v7 = vld.sshfl [vmem:[#allocation1 + $0x38] sm:$0xff pattern:$0x73625140]  ;;  %v1856_v15 = vpack.c.bf16 %v748_v2, %v748_v2 }
 0x2bf   : > { %v6918_v42 = vpop.f32.mrf.mxu2  ;;  %v6931_v43 = vpop.f32.mrf.mxu3 }
 0x2c0   : > { %v6942_v49 = vpop.f32.mrf.mxu0  ;;  %v6955_v50 = vpop.f32.mrf.mxu1  ;;  %v12780_v42 = vld [vmem:[%s15024_s24 + $0xac8] sm:$0x10]  ;;  %v12770_v43 = vld [vmem:[%s15024_s24 + $0x2c0] sm:$0xf] }
 0x2c1   : > { %v6943_v53 = vadd.f32 %v6942_v49, %v6930_v34  ;;  %v745_v34 = vld.sshfl [vmem:[#allocation1 + $0x8] sm:$0xff pattern:$0x73625140] }
 0x2c2   : > { %7357 = vmatmul.bf16.vlgmr.msra.gmra.mxu0 %v1844_v44  ;;  %752 = vst [vmem:[#allocation1] ss:$4 sm:$0xff] %v319_v35  ;;  %v1853_v47 = vpack.c.bf16 %v745_v34, %v745_v34  ;;  %v14207_v49 = vld [vmem:[%s15024_s24 + $0x2c4] sm:$0xf] }
 0x2c3   : > { %v6956_v58 = vadd.f32 %v6955_v50, %v6943_v53  ;;  %7370 = vmatmul.bf16.vlgmr.msra.gmra.mxu1 %v1845_v45  ;;  %7460 = vmatpush.bf16.xpose.msra.mxu0 %v12739_v56  ;;  %v12772_v50 = vld [vmem:[%s15024_s24 + $0xac0] sm:$0x10]  ;;  %v1854_v53 = vpack.c.bf16 %v746_v37, %v746_v37  ;;  %v12779_v56 = vor.u32 %v14464_v40, %v12778_v39  ;;  %v321_v37 = vld [vmem:[%s15017_s12 + $0x170] sm:$0xff] }
 0x2c4   : > { %7383 = vmatmul.bf16.vlgmr.msra.gmra.mxu2 %v1846_v51  ;;  %7396 = vmatmul.bf16.vlgmr.msra.gmra.mxu3 %v1847_v52 }
 0x2c5   : > { %7486 = vmatpush.bf16.xpose.msra.mxu2 %v12747_v54  ;;  %7499 = vmatpush.bf16.xpose.msra.mxu3 %v12751_v55  ;;  %v1855_v54 = vpack.c.bf16 %v747_v38, %v747_v38 }
 0x2c6   : > { %7473 = vmatpush.bf16.xpose.msra.mxu1 %v12743_v57  ;;  %v12783_v57 = vor.u32 %v14208_v41, %v12780_v42  ;;  %v12810_v41 = vld [vmem:[%s15024_s24 + $0x2e8] sm:$0xf] }
 0x2c7   : > { %v6968_v59 = vpop.f32.mrf.mxu2  ;;  %v6981_v60 = vpop.f32.mrf.mxu3  ;;  %v14468_v42 = vld [vmem:[%s15024_s24 + $0xae4] sm:$0x10] }
 0x2c8   : > { %v6969_v61 = vadd.f32 %v6968_v59, %v6956_v58  ;;  %v6944_v62 = vpop.f32.mrf.mxu0  ;;  %v6957_v63 = vpop.f32.mrf.mxu1  ;;  %v12771_v58 = vor.u32 %v14463_v48, %v12770_v43  ;;  %v12775_v59 = vor.u32 %v14207_v49, %v12772_v50  ;;  %v14212_v43 = vld [vmem:[%s15024_s24 + $0x2ec] sm:$0xf]  ;;  %v14467_v50 = vld [vmem:[%s15024_s24 + $0xadc] sm:$0x10] }
 0x2c9   : > { %v754_v35 = vld.sshfl [vmem:[#allocation1] sm:$0xff pattern:$0x73625140]  ;;  %v756_v39 = vld.sshfl [vmem:[#allocation1 + $0x10] sm:$0xff pattern:$0x73625140] }
 0x2ca   : > { %v6982_v3 = vadd.f32 %v6981_v60, %v6969_v61  ;;  %v757_v40 = vld.sshfl [vmem:[#allocation1 + $0x18] sm:$0xff pattern:$0x73625140]  ;;  %v1860_v48 = vpack.c.bf16 %v754_v35, %v754_v35 }
 0x2cf   : > { %v6970_v11 = vpop.f32.mrf.mxu2  ;;  %v6983_v12 = vpop.f32.mrf.mxu3 }
 0x2d0   : > { %v6994_v18 = vpop.f32.mrf.mxu0  ;;  %v7007_v19 = vpop.f32.mrf.mxu1  ;;  %v12796_v11 = vld [vmem:[%s15024_s24 + $0xad8] sm:$0x10]  ;;  %v12786_v12 = vld [vmem:[%s15024_s24 + $0x2d0] sm:$0xf] }
 0x2d1   : > { %v6995_v22 = vadd.f32 %v6994_v18, %v6982_v3  ;;  %v749_v3 = vld.sshfl [vmem:[#allocation1 + $0x28] sm:$0xff pattern:$0x73625140]  ;;  %v14209_v18 = vld [vmem:[%s15024_s24 + $0x2d4] sm:$0xf] }
 0x2d2   : > { %7409 = vmatmul.bf16.vlgmr.msrb.gmra.mxu0 %v1848_v13  ;;  %753 = vst [vmem:[#allocation1 + $0x20] ss:$4 sm:$0xff] %v320_v4  ;;  %v1857_v16 = vpack.c.bf16 %v749_v3, %v749_v3 }
 0x2d3   : > { %v7008_v27 = vadd.f32 %v7007_v19, %v6995_v22  ;;  %7422 = vmatmul.bf16.vlgmr.msrb.gmra.mxu1 %v1849_v14  ;;  %7512 = vmatpush.bf16.xpose.msrb.mxu0 %v12755_v25  ;;  %v12788_v19 = vld [vmem:[%s15024_s24 + $0xad0] sm:$0x10]  ;;  %v1858_v22 = vpack.c.bf16 %v750_v6, %v750_v6  ;;  %v12795_v25 = vor.u32 %v14466_v9, %v12794_v8  ;;  %v322_v6 = vld [vmem:[%s15017_s12 + $0x178] sm:$0xff] }
 0x2d4   : > { %7435 = vmatmul.bf16.vlgmr.msrb.gmra.mxu2 %v1850_v20  ;;  %7448 = vmatmul.bf16.vlgmr.msrb.gmra.mxu3 %v1851_v21 }
 0x2d5   : > { %7538 = vmatpush.bf16.xpose.msrb.mxu2 %v12763_v23  ;;  %7551 = vmatpush.bf16.xpose.msrb.mxu3 %v12767_v24  ;;  %v1859_v23 = vpack.c.bf16 %v751_v7, %v751_v7 }
 0x2d6   : > { %7525 = vmatpush.bf16.xpose.msrb.mxu1 %v12759_v26  ;;  %v12799_v26 = vor.u32 %v14210_v10, %v12796_v11  ;;  %v12826_v10 = vld [vmem:[%s15024_s24 + $0x2f8] sm:$0xf] }
 0x2d7   : > { %v7020_v28 = vpop.f32.mrf.mxu2  ;;  %v7033_v29 = vpop.f32.mrf.mxu3  ;;  %v14470_v11 = vld [vmem:[%s15024_s24 + $0xaf4] sm:$0x10] }
 0x2d8   : > { %v7021_v30 = vadd.f32 %v7020_v28, %v7008_v27  ;;  %v6996_v31 = vpop.f32.mrf.mxu0  ;;  %v7009_v32 = vpop.f32.mrf.mxu1  ;;  %v12787_v27 = vor.u32 %v14465_v17, %v12786_v12  ;;  %v12791_v28 = vor.u32 %v14209_v18, %v12788_v19  ;;  %v14214_v12 = vld [vmem:[%s15024_s24 + $0x2fc] sm:$0xf]  ;;  %v14469_v19 = vld [vmem:[%s15024_s24 + $0xaec] sm:$0x10] }
 0x2d9   : > { %v758_v4 = vld.sshfl [vmem:[#allocation1 + $0x20] sm:$0xff pattern:$0x73625140]  ;;  %v760_v8 = vld.sshfl [vmem:[#allocation1 + $0x30] sm:$0xff pattern:$0x73625140] }
 0x2da   : > { %v7034_v36 = vadd.f32 %v7033_v29, %v7021_v30  ;;  %v761_v9 = vld.sshfl [vmem:[#allocation1 + $0x38] sm:$0xff pattern:$0x73625140]  ;;  %v1864_v17 = vpack.c.bf16 %v758_v4, %v758_v4 }
 0x2df   : > { %v7022_v44 = vpop.f32.mrf.mxu2  ;;  %v7035_v45 = vpop.f32.mrf.mxu3 }
 0x2e0   : > { %v7046_v51 = vpop.f32.mrf.mxu0  ;;  %v7059_v52 = vpop.f32.mrf.mxu1  ;;  %v12812_v44 = vld [vmem:[%s15024_s24 + $0xae8] sm:$0x10]  ;;  %v12802_v45 = vld [vmem:[%s15024_s24 + $0x2e0] sm:$0xf] }
 0x2e1   : > { %v7047_v55 = vadd.f32 %v7046_v51, %v7034_v36  ;;  %v755_v36 = vld.sshfl [vmem:[#allocation1 + $0x8] sm:$0xff pattern:$0x73625140] }
 0x2e2   : > { %7461 = vmatmul.bf16.vlgmr.msra.gmra.mxu0 %v1852_v46  ;;  %762 = vst [vmem:[#allocation1] ss:$4 sm:$0xff] %v321_v37  ;;  %v1861_v49 = vpack.c.bf16 %v755_v36, %v755_v36  ;;  %v14211_v51 = vld [vmem:[%s15024_s24 + $0x2e4] sm:$0xf] }
 0x2e3   : > { %v7060_v60 = vadd.f32 %v7059_v52, %v7047_v55  ;;  %7474 = vmatmul.bf16.vlgmr.msra.gmra.mxu1 %v1853_v47  ;;  %7564 = vmatpush.bf16.xpose.msra.mxu0 %v12771_v58  ;;  %v12804_v52 = vld [vmem:[%s15024_s24 + $0xae0] sm:$0x10]  ;;  %v1862_v55 = vpack.c.bf16 %v756_v39, %v756_v39  ;;  %v12811_v58 = vor.u32 %v14468_v42, %v12810_v41 }
 0x2e4   : > { %7487 = vmatmul.bf16.vlgmr.msra.gmra.mxu2 %v1854_v53  ;;  %7500 = vmatmul.bf16.vlgmr.msra.gmra.mxu3 %v1855_v54  ;;  %v323_v39 = vld [vmem:[%s15017_s12 + $0x180] sm:$0xff] }
 0x2e5   : > { %7590 = vmatpush.bf16.xpose.msra.mxu2 %v12779_v56  ;;  %7603 = vmatpush.bf16.xpose.msra.mxu3 %v12783_v57  ;;  %v1863_v56 = vpack.c.bf16 %v757_v40, %v757_v40 }
 0x2e6   : > { %7577 = vmatpush.bf16.xpose.msra.mxu1 %v12775_v59  ;;  %v12815_v59 = vor.u32 %v14212_v43, %v12812_v44  ;;  %v12842_v43 = vld [vmem:[%s15024_s24 + $0x308] sm:$0xf] }
 0x2e7   : > { %v7072_v61 = vpop.f32.mrf.mxu2  ;;  %v7085_v62 = vpop.f32.mrf.mxu3  ;;  %v14472_v44 = vld [vmem:[%s15024_s24 + $0xb04] sm:$0x10] }
 0x2e8   : > { %v7073_v63 = vadd.f32 %v7072_v61, %v7060_v60  ;;  %v7048_v0 = vpop.f32.mrf.mxu0  ;;  %v7061_v1 = vpop.f32.mrf.mxu1  ;;  %v12803_v60 = vor.u32 %v14467_v50, %v12802_v45  ;;  %v12807_v61 = vor.u32 %v14211_v51, %v12804_v52  ;;  %v14216_v45 = vld [vmem:[%s15024_s24 + $0x30c] sm:$0xf]  ;;  %v14471_v52 = vld [vmem:[%s15024_s24 + $0xafc] sm:$0x10] }
 0x2e9   : > { %v764_v37 = vld.sshfl [vmem:[#allocation1] sm:$0xff pattern:$0x73625140]  ;;  %v766_v41 = vld.sshfl [vmem:[#allocation1 + $0x10] sm:$0xff pattern:$0x73625140] }
 0x2ea   : > { %v7086_v5 = vadd.f32 %v7085_v62, %v7073_v63  ;;  %v767_v42 = vld.sshfl [vmem:[#allocation1 + $0x18] sm:$0xff pattern:$0x73625140]  ;;  %v1868_v50 = vpack.c.bf16 %v764_v37, %v764_v37 }
 0x2ef   : > { %v7074_v13 = vpop.f32.mrf.mxu2  ;;  %v7087_v14 = vpop.f32.mrf.mxu3 }
 0x2f0   : > { %v7098_v20 = vpop.f32.mrf.mxu0  ;;  %v7111_v21 = vpop.f32.mrf.mxu1  ;;  %v12828_v13 = vld [vmem:[%s15024_s24 + $0xaf8] sm:$0x10]  ;;  %v12818_v14 = vld [vmem:[%s15024_s24 + $0x2f0] sm:$0xf] }
 0x2f1   : > { %v7099_v24 = vadd.f32 %v7098_v20, %v7086_v5  ;;  %v759_v5 = vld.sshfl [vmem:[#allocation1 + $0x28] sm:$0xff pattern:$0x73625140]  ;;  %v14213_v20 = vld [vmem:[%s15024_s24 + $0x2f4] sm:$0xf] }
 0x2f2   : > { %7513 = vmatmul.bf16.vlgmr.msrb.gmra.mxu0 %v1856_v15  ;;  %763 = vst [vmem:[#allocation1 + $0x20] ss:$4 sm:$0xff] %v322_v6  ;;  %v1865_v18 = vpack.c.bf16 %v759_v5, %v759_v5 }
 0x2f3   : > { %v7112_v29 = vadd.f32 %v7111_v21, %v7099_v24  ;;  %7526 = vmatmul.bf16.vlgmr.msrb.gmra.mxu1 %v1857_v16  ;;  %7616 = vmatpush.bf16.xpose.msrb.mxu0 %v12787_v27  ;;  %v12820_v21 = vld [vmem:[%s15024_s24 + $0xaf0] sm:$0x10]  ;;  %v1866_v24 = vpack.c.bf16 %v760_v8, %v760_v8  ;;  %v12827_v27 = vor.u32 %v14470_v11, %v12826_v10  ;;  %v324_v8 = vld [vmem:[%s15017_s12 + $0x188] sm:$0xff] }
 0x2f4   : > { %7539 = vmatmul.bf16.vlgmr.msrb.gmra.mxu2 %v1858_v22  ;;  %7552 = vmatmul.bf16.vlgmr.msrb.gmra.mxu3 %v1859_v23 }
 0x2f5   : > { %7642 = vmatpush.bf16.xpose.msrb.mxu2 %v12795_v25  ;;  %7655 = vmatpush.bf16.xpose.msrb.mxu3 %v12799_v26  ;;  %v1867_v25 = vpack.c.bf16 %v761_v9, %v761_v9 }
 0x2f6   : > { %7629 = vmatpush.bf16.xpose.msrb.mxu1 %v12791_v28  ;;  %v12831_v28 = vor.u32 %v14214_v12, %v12828_v13  ;;  %v12858_v12 = vld [vmem:[%s15024_s24 + $0x318] sm:$0xf] }
 0x2f7   : > { %v7124_v30 = vpop.f32.mrf.mxu2  ;;  %v7137_v31 = vpop.f32.mrf.mxu3  ;;  %v14474_v13 = vld [vmem:[%s15024_s24 + $0xb14] sm:$0x10] }
 0x2f8   : > { %v7125_v32 = vadd.f32 %v7124_v30, %v7112_v29  ;;  %v7100_v33 = vpop.f32.mrf.mxu0  ;;  %v7113_v34 = vpop.f32.mrf.mxu1  ;;  %v12819_v29 = vor.u32 %v14469_v19, %v12818_v14  ;;  %v12823_v30 = vor.u32 %v14213_v20, %v12820_v21  ;;  %v14218_v14 = vld [vmem:[%s15024_s24 + $0x31c] sm:$0xf]  ;;  %v14473_v21 = vld [vmem:[%s15024_s24 + $0xb0c] sm:$0x10] }
 0x2f9   : > { %v768_v6 = vld.sshfl [vmem:[#allocation1 + $0x20] sm:$0xff pattern:$0x73625140]  ;;  %v770_v10 = vld.sshfl [vmem:[#allocation1 + $0x30] sm:$0xff pattern:$0x73625140] }
 0x2fa   : > { %v7138_v38 = vadd.f32 %v7137_v31, %v7125_v32  ;;  %v771_v11 = vld.sshfl [vmem:[#allocation1 + $0x38] sm:$0xff pattern:$0x73625140]  ;;  %v1872_v19 = vpack.c.bf16 %v768_v6, %v768_v6 }
 0x2ff   : > { %v7126_v46 = vpop.f32.mrf.mxu2  ;;  %v7139_v47 = vpop.f32.mrf.mxu3 }
 0x300   : > { %v7150_v53 = vpop.f32.mrf.mxu0  ;;  %v7163_v54 = vpop.f32.mrf.mxu1  ;;  %v12844_v46 = vld [vmem:[%s15024_s24 + $0xb08] sm:$0x10]  ;;  %v12834_v47 = vld [vmem:[%s15024_s24 + $0x300] sm:$0xf] }
 0x301   : > { %v7151_v57 = vadd.f32 %v7150_v53, %v7138_v38  ;;  %v765_v38 = vld.sshfl [vmem:[#allocation1 + $0x8] sm:$0xff pattern:$0x73625140] }
 0x302   : > { %7565 = vmatmul.bf16.vlgmr.msra.gmra.mxu0 %v1860_v48  ;;  %772 = vst [vmem:[#allocation1] ss:$4 sm:$0xff] %v323_v39  ;;  %v1869_v51 = vpack.c.bf16 %v765_v38, %v765_v38  ;;  %v14215_v53 = vld [vmem:[%s15024_s24 + $0x304] sm:$0xf] }
 0x303   : > { %v7164_v62 = vadd.f32 %v7163_v54, %v7151_v57  ;;  %7578 = vmatmul.bf16.vlgmr.msra.gmra.mxu1 %v1861_v49  ;;  %7668 = vmatpush.bf16.xpose.msra.mxu0 %v12803_v60  ;;  %v12836_v54 = vld [vmem:[%s15024_s24 + $0xb00] sm:$0x10]  ;;  %v1870_v57 = vpack.c.bf16 %v766_v41, %v766_v41  ;;  %v12843_v60 = vor.u32 %v14472_v44, %v12842_v43  ;;  %v325_v41 = vld [vmem:[%s15017_s12 + $0x190] sm:$0xff] }
 0x304   : > { %7591 = vmatmul.bf16.vlgmr.msra.gmra.mxu2 %v1862_v55  ;;  %7604 = vmatmul.bf16.vlgmr.msra.gmra.mxu3 %v1863_v56 }
 0x305   : > { %7694 = vmatpush.bf16.xpose.msra.mxu2 %v12811_v58  ;;  %7707 = vmatpush.bf16.xpose.msra.mxu3 %v12815_v59  ;;  %v1871_v58 = vpack.c.bf16 %v767_v42, %v767_v42 }
 0x306   : > { %7681 = vmatpush.bf16.xpose.msra.mxu1 %v12807_v61  ;;  %v12847_v61 = vor.u32 %v14216_v45, %v12844_v46  ;;  %v12874_v45 = vld [vmem:[%s15024_s24 + $0x328] sm:$0xf] }
 0x307   : > { %v7176_v63 = vpop.f32.mrf.mxu2  ;;  %v7189_v0 = vpop.f32.mrf.mxu3  ;;  %v14476_v46 = vld [vmem:[%s15024_s24 + $0xb24] sm:$0x10] }
 0x308   : > { %v7177_v1 = vadd.f32 %v7176_v63, %v7164_v62  ;;  %v7152_v2 = vpop.f32.mrf.mxu0  ;;  %v7165_v3 = vpop.f32.mrf.mxu1  ;;  %v12835_v62 = vor.u32 %v14471_v52, %v12834_v47  ;;  %v12839_v63 = vor.u32 %v14215_v53, %v12836_v54  ;;  %v14220_v47 = vld [vmem:[%s15024_s24 + $0x32c] sm:$0xf]  ;;  %v14475_v54 = vld [vmem:[%s15024_s24 + $0xb1c] sm:$0x10] }
 0x309   : > { %v774_v39 = vld.sshfl [vmem:[#allocation1] sm:$0xff pattern:$0x73625140]  ;;  %v776_v43 = vld.sshfl [vmem:[#allocation1 + $0x10] sm:$0xff pattern:$0x73625140] }
 0x30a   : > { %v7190_v7 = vadd.f32 %v7189_v0, %v7177_v1  ;;  %v777_v44 = vld.sshfl [vmem:[#allocation1 + $0x18] sm:$0xff pattern:$0x73625140]  ;;  %v1876_v52 = vpack.c.bf16 %v774_v39, %v774_v39 }
 0x30f   : > { %v7178_v15 = vpop.f32.mrf.mxu2  ;;  %v7191_v16 = vpop.f32.mrf.mxu3 }
 0x310   : > { %v7202_v22 = vpop.f32.mrf.mxu0  ;;  %v7215_v23 = vpop.f32.mrf.mxu1  ;;  %v12860_v15 = vld [vmem:[%s15024_s24 + $0xb18] sm:$0x10]  ;;  %v12850_v16 = vld [vmem:[%s15024_s24 + $0x310] sm:$0xf] }
 0x311   : > { %v7203_v26 = vadd.f32 %v7202_v22, %v7190_v7  ;;  %v769_v7 = vld.sshfl [vmem:[#allocation1 + $0x28] sm:$0xff pattern:$0x73625140]  ;;  %v14217_v22 = vld [vmem:[%s15024_s24 + $0x314] sm:$0xf] }
 0x312   : > { %7617 = vmatmul.bf16.vlgmr.msrb.gmra.mxu0 %v1864_v17  ;;  %773 = vst [vmem:[#allocation1 + $0x20] ss:$4 sm:$0xff] %v324_v8  ;;  %v1873_v20 = vpack.c.bf16 %v769_v7, %v769_v7 }
 0x313   : > { %v7216_v31 = vadd.f32 %v7215_v23, %v7203_v26  ;;  %7630 = vmatmul.bf16.vlgmr.msrb.gmra.mxu1 %v1865_v18  ;;  %7720 = vmatpush.bf16.xpose.msrb.mxu0 %v12819_v29  ;;  %v12852_v23 = vld [vmem:[%s15024_s24 + $0xb10] sm:$0x10]  ;;  %v1874_v26 = vpack.c.bf16 %v770_v10, %v770_v10  ;;  %v12859_v29 = vor.u32 %v14474_v13, %v12858_v12  ;;  %v326_v10 = vld [vmem:[%s15017_s12 + $0x198] sm:$0xff] }
 0x314   : > { %7643 = vmatmul.bf16.vlgmr.msrb.gmra.mxu2 %v1866_v24  ;;  %7656 = vmatmul.bf16.vlgmr.msrb.gmra.mxu3 %v1867_v25 }
 0x315   : > { %7746 = vmatpush.bf16.xpose.msrb.mxu2 %v12827_v27  ;;  %7759 = vmatpush.bf16.xpose.msrb.mxu3 %v12831_v28  ;;  %v1875_v27 = vpack.c.bf16 %v771_v11, %v771_v11 }
 0x316   : > { %7733 = vmatpush.bf16.xpose.msrb.mxu1 %v12823_v30  ;;  %v12863_v30 = vor.u32 %v14218_v14, %v12860_v15  ;;  %v12890_v14 = vld [vmem:[%s15024_s24 + $0x338] sm:$0xf] }
 0x317   : > { %v7228_v32 = vpop.f32.mrf.mxu2  ;;  %v7241_v33 = vpop.f32.mrf.mxu3  ;;  %v14478_v15 = vld [vmem:[%s15024_s24 + $0xb34] sm:$0x10] }
 0x318   : > { %v7229_v34 = vadd.f32 %v7228_v32, %v7216_v31  ;;  %v7204_v35 = vpop.f32.mrf.mxu0  ;;  %v7217_v36 = vpop.f32.mrf.mxu1  ;;  %v12851_v31 = vor.u32 %v14473_v21, %v12850_v16  ;;  %v12855_v32 = vor.u32 %v14217_v22, %v12852_v23  ;;  %v14222_v16 = vld [vmem:[%s15024_s24 + $0x33c] sm:$0xf]  ;;  %v14477_v23 = vld [vmem:[%s15024_s24 + $0xb2c] sm:$0x10] }
 0x319   : > { %v778_v8 = vld.sshfl [vmem:[#allocation1 + $0x20] sm:$0xff pattern:$0x73625140]  ;;  %v780_v12 = vld.sshfl [vmem:[#allocation1 + $0x30] sm:$0xff pattern:$0x73625140] }
 0x31a   : > { %v7242_v40 = vadd.f32 %v7241_v33, %v7229_v34  ;;  %v781_v13 = vld.sshfl [vmem:[#allocation1 + $0x38] sm:$0xff pattern:$0x73625140]  ;;  %v1880_v21 = vpack.c.bf16 %v778_v8, %v778_v8 }
 0x31f   : > { %v7230_v48 = vpop.f32.mrf.mxu2  ;;  %v7243_v49 = vpop.f32.mrf.mxu3 }
 0x320   : > { %v7254_v55 = vpop.f32.mrf.mxu0  ;;  %v7267_v56 = vpop.f32.mrf.mxu1  ;;  %v12876_v48 = vld [vmem:[%s15024_s24 + $0xb28] sm:$0x10]  ;;  %v12866_v49 = vld [vmem:[%s15024_s24 + $0x320] sm:$0xf] }
 0x321   : > { %v7255_v59 = vadd.f32 %v7254_v55, %v7242_v40  ;;  %v775_v40 = vld.sshfl [vmem:[#allocation1 + $0x8] sm:$0xff pattern:$0x73625140] }
 0x322   : > { %7669 = vmatmul.bf16.vlgmr.msra.gmra.mxu0 %v1868_v50  ;;  %782 = vst [vmem:[#allocation1] ss:$4 sm:$0xff] %v325_v41  ;;  %v1877_v53 = vpack.c.bf16 %v775_v40, %v775_v40  ;;  %v14219_v55 = vld [vmem:[%s15024_s24 + $0x324] sm:$0xf] }
 0x323   : > { %v7268_v0 = vadd.f32 %v7267_v56, %v7255_v59  ;;  %7682 = vmatmul.bf16.vlgmr.msra.gmra.mxu1 %v1869_v51  ;;  %7772 = vmatpush.bf16.xpose.msra.mxu0 %v12835_v62  ;;  %v12868_v56 = vld [vmem:[%s15024_s24 + $0xb20] sm:$0x10]  ;;  %v1878_v59 = vpack.c.bf16 %v776_v43, %v776_v43  ;;  %v12875_v62 = vor.u32 %v14476_v46, %v12874_v45 }
 0x324   : > { %7695 = vmatmul.bf16.vlgmr.msra.gmra.mxu2 %v1870_v57  ;;  %7708 = vmatmul.bf16.vlgmr.msra.gmra.mxu3 %v1871_v58  ;;  %v327_v43 = vld [vmem:[%s15017_s12 + $0x1a0] sm:$0xff] }
 0x325   : > { %7798 = vmatpush.bf16.xpose.msra.mxu2 %v12843_v60  ;;  %7811 = vmatpush.bf16.xpose.msra.mxu3 %v12847_v61  ;;  %v1879_v60 = vpack.c.bf16 %v777_v44, %v777_v44 }
 0x326   : > { %7785 = vmatpush.bf16.xpose.msra.mxu1 %v12839_v63  ;;  %v12879_v63 = vor.u32 %v14220_v47, %v12876_v48  ;;  %v12906_v47 = vld [vmem:[%s15024_s24 + $0x348] sm:$0xf] }
 0x327   : > { %v7280_v1 = vpop.f32.mrf.mxu2  ;;  %v7293_v2 = vpop.f32.mrf.mxu3  ;;  %v14480_v48 = vld [vmem:[%s15024_s24 + $0xb44] sm:$0x10] }
 0x328   : > { %v7281_v3 = vadd.f32 %v7280_v1, %v7268_v0  ;;  %v7256_v4 = vpop.f32.mrf.mxu0  ;;  %v7269_v5 = vpop.f32.mrf.mxu1  ;;  %v12867_v0 = vor.u32 %v14475_v54, %v12866_v49  ;;  %v12871_v1 = vor.u32 %v14219_v55, %v12868_v56  ;;  %v14224_v49 = vld [vmem:[%s15024_s24 + $0x34c] sm:$0xf]  ;;  %v14479_v56 = vld [vmem:[%s15024_s24 + $0xb3c] sm:$0x10] }
 0x329   : > { %v784_v41 = vld.sshfl [vmem:[#allocation1] sm:$0xff pattern:$0x73625140]  ;;  %v786_v45 = vld.sshfl [vmem:[#allocation1 + $0x10] sm:$0xff pattern:$0x73625140] }
 0x32a   : > { %v7294_v9 = vadd.f32 %v7293_v2, %v7281_v3  ;;  %v787_v46 = vld.sshfl [vmem:[#allocation1 + $0x18] sm:$0xff pattern:$0x73625140]  ;;  %v1884_v54 = vpack.c.bf16 %v784_v41, %v784_v41 }
 0x32f   : > { %v7282_v17 = vpop.f32.mrf.mxu2  ;;  %v7295_v18 = vpop.f32.mrf.mxu3 }
 0x330   : > { %v7306_v24 = vpop.f32.mrf.mxu0  ;;  %v7319_v25 = vpop.f32.mrf.mxu1  ;;  %v12892_v17 = vld [vmem:[%s15024_s24 + $0xb38] sm:$0x10]  ;;  %v12882_v18 = vld [vmem:[%s15024_s24 + $0x330] sm:$0xf] }
 0x331   : > { %v7307_v28 = vadd.f32 %v7306_v24, %v7294_v9  ;;  %v779_v9 = vld.sshfl [vmem:[#allocation1 + $0x28] sm:$0xff pattern:$0x73625140]  ;;  %v14221_v24 = vld [vmem:[%s15024_s24 + $0x334] sm:$0xf] }
 0x332   : > { %7721 = vmatmul.bf16.vlgmr.msrb.gmra.mxu0 %v1872_v19  ;;  %783 = vst [vmem:[#allocation1 + $0x20] ss:$4 sm:$0xff] %v326_v10  ;;  %v1881_v22 = vpack.c.bf16 %v779_v9, %v779_v9 }
 0x333   : > { %v7320_v33 = vadd.f32 %v7319_v25, %v7307_v28  ;;  %7734 = vmatmul.bf16.vlgmr.msrb.gmra.mxu1 %v1873_v20  ;;  %7824 = vmatpush.bf16.xpose.msrb.mxu0 %v12851_v31  ;;  %v12884_v25 = vld [vmem:[%s15024_s24 + $0xb30] sm:$0x10]  ;;  %v1882_v28 = vpack.c.bf16 %v780_v12, %v780_v12  ;;  %v12891_v31 = vor.u32 %v14478_v15, %v12890_v14  ;;  %v328_v12 = vld [vmem:[%s15017_s12 + $0x1a8] sm:$0xff] }
 0x334   : > { %7747 = vmatmul.bf16.vlgmr.msrb.gmra.mxu2 %v1874_v26  ;;  %7760 = vmatmul.bf16.vlgmr.msrb.gmra.mxu3 %v1875_v27 }
 0x335   : > { %7850 = vmatpush.bf16.xpose.msrb.mxu2 %v12859_v29  ;;  %7863 = vmatpush.bf16.xpose.msrb.mxu3 %v12863_v30  ;;  %v1883_v29 = vpack.c.bf16 %v781_v13, %v781_v13 }
 0x336   : > { %7837 = vmatpush.bf16.xpose.msrb.mxu1 %v12855_v32  ;;  %v12895_v32 = vor.u32 %v14222_v16, %v12892_v17  ;;  %v12922_v16 = vld [vmem:[%s15024_s24 + $0x358] sm:$0xf] }
 0x337   : > { %v7332_v34 = vpop.f32.mrf.mxu2  ;;  %v7345_v35 = vpop.f32.mrf.mxu3  ;;  %v14482_v17 = vld [vmem:[%s15024_s24 + $0xb54] sm:$0x10] }
 0x338   : > { %v7333_v36 = vadd.f32 %v7332_v34, %v7320_v33  ;;  %v7308_v37 = vpop.f32.mrf.mxu0  ;;  %v7321_v38 = vpop.f32.mrf.mxu1  ;;  %v12883_v33 = vor.u32 %v14477_v23, %v12882_v18  ;;  %v12887_v34 = vor.u32 %v14221_v24, %v12884_v25  ;;  %v14226_v18 = vld [vmem:[%s15024_s24 + $0x35c] sm:$0xf]  ;;  %v14481_v25 = vld [vmem:[%s15024_s24 + $0xb4c] sm:$0x10] }
 0x339   : > { %v788_v10 = vld.sshfl [vmem:[#allocation1 + $0x20] sm:$0xff pattern:$0x73625140]  ;;  %v790_v14 = vld.sshfl [vmem:[#allocation1 + $0x30] sm:$0xff pattern:$0x73625140] }
 0x33a   : > { %v7346_v42 = vadd.f32 %v7345_v35, %v7333_v36  ;;  %v791_v15 = vld.sshfl [vmem:[#allocation1 + $0x38] sm:$0xff pattern:$0x73625140]  ;;  %v1888_v23 = vpack.c.bf16 %v788_v10, %v788_v10 }
 0x33f   : > { %v7334_v50 = vpop.f32.mrf.mxu2  ;;  %v7347_v51 = vpop.f32.mrf.mxu3 }
 0x340   : > { %v7358_v57 = vpop.f32.mrf.mxu0  ;;  %v7371_v58 = vpop.f32.mrf.mxu1  ;;  %v12908_v50 = vld [vmem:[%s15024_s24 + $0xb48] sm:$0x10]  ;;  %v12898_v51 = vld [vmem:[%s15024_s24 + $0x340] sm:$0xf] }
 0x341   : > { %v7359_v61 = vadd.f32 %v7358_v57, %v7346_v42  ;;  %v785_v42 = vld.sshfl [vmem:[#allocation1 + $0x8] sm:$0xff pattern:$0x73625140] }
 0x342   : > { %7773 = vmatmul.bf16.vlgmr.msra.gmra.mxu0 %v1876_v52  ;;  %792 = vst [vmem:[#allocation1] ss:$4 sm:$0xff] %v327_v43  ;;  %v1885_v55 = vpack.c.bf16 %v785_v42, %v785_v42  ;;  %v14223_v57 = vld [vmem:[%s15024_s24 + $0x344] sm:$0xf] }
 0x343   : > { %v7372_v2 = vadd.f32 %v7371_v58, %v7359_v61  ;;  %7786 = vmatmul.bf16.vlgmr.msra.gmra.mxu1 %v1877_v53  ;;  %7876 = vmatpush.bf16.xpose.msra.mxu0 %v12867_v0  ;;  %v12900_v58 = vld [vmem:[%s15024_s24 + $0xb40] sm:$0x10]  ;;  %v1886_v61 = vpack.c.bf16 %v786_v45, %v786_v45  ;;  %v12907_v0 = vor.u32 %v14480_v48, %v12906_v47  ;;  %v329_v45 = vld [vmem:[%s15017_s12 + $0x1b0] sm:$0xff] }
 0x344   : > { %7799 = vmatmul.bf16.vlgmr.msra.gmra.mxu2 %v1878_v59  ;;  %7812 = vmatmul.bf16.vlgmr.msra.gmra.mxu3 %v1879_v60 }
 0x345   : > { %7902 = vmatpush.bf16.xpose.msra.mxu2 %v12875_v62  ;;  %7915 = vmatpush.bf16.xpose.msra.mxu3 %v12879_v63  ;;  %v1887_v62 = vpack.c.bf16 %v787_v46, %v787_v46 }
 0x346   : > { %7889 = vmatpush.bf16.xpose.msra.mxu1 %v12871_v1  ;;  %v12911_v1 = vor.u32 %v14224_v49, %v12908_v50  ;;  %v12938_v49 = vld [vmem:[%s15024_s24 + $0x368] sm:$0xf] }
 0x347   : > { %v7384_v3 = vpop.f32.mrf.mxu2  ;;  %v7397_v4 = vpop.f32.mrf.mxu3  ;;  %v14484_v50 = vld [vmem:[%s15024_s24 + $0xb64] sm:$0x10] }
 0x348   : > { %v7385_v5 = vadd.f32 %v7384_v3, %v7372_v2  ;;  %v7360_v6 = vpop.f32.mrf.mxu0  ;;  %v7373_v7 = vpop.f32.mrf.mxu1  ;;  %v12899_v2 = vor.u32 %v14479_v56, %v12898_v51  ;;  %v12903_v3 = vor.u32 %v14223_v57, %v12900_v58  ;;  %v14228_v51 = vld [vmem:[%s15024_s24 + $0x36c] sm:$0xf]  ;;  %v14483_v58 = vld [vmem:[%s15024_s24 + $0xb5c] sm:$0x10] }
 0x349   : > { %v794_v43 = vld.sshfl [vmem:[#allocation1] sm:$0xff pattern:$0x73625140]  ;;  %v796_v47 = vld.sshfl [vmem:[#allocation1 + $0x10] sm:$0xff pattern:$0x73625140] }
 0x34a   : > { %v7398_v11 = vadd.f32 %v7397_v4, %v7385_v5  ;;  %v797_v48 = vld.sshfl [vmem:[#allocation1 + $0x18] sm:$0xff pattern:$0x73625140]  ;;  %v1892_v56 = vpack.c.bf16 %v794_v43, %v794_v43 }
 0x34f   : > { %v7386_v19 = vpop.f32.mrf.mxu2  ;;  %v7399_v20 = vpop.f32.mrf.mxu3 }
 0x350   : > { %v7410_v26 = vpop.f32.mrf.mxu0  ;;  %v7423_v27 = vpop.f32.mrf.mxu1  ;;  %v12924_v19 = vld [vmem:[%s15024_s24 + $0xb58] sm:$0x10]  ;;  %v12914_v20 = vld [vmem:[%s15024_s24 + $0x350] sm:$0xf] }
 0x351   : > { %v7411_v30 = vadd.f32 %v7410_v26, %v7398_v11  ;;  %v789_v11 = vld.sshfl [vmem:[#allocation1 + $0x28] sm:$0xff pattern:$0x73625140]  ;;  %v14225_v26 = vld [vmem:[%s15024_s24 + $0x354] sm:$0xf] }
 0x352   : > { %7825 = vmatmul.bf16.vlgmr.msrb.gmra.mxu0 %v1880_v21  ;;  %793 = vst [vmem:[#allocation1 + $0x20] ss:$4 sm:$0xff] %v328_v12  ;;  %v1889_v24 = vpack.c.bf16 %v789_v11, %v789_v11 }
 0x353   : > { %v7424_v35 = vadd.f32 %v7423_v27, %v7411_v30  ;;  %7838 = vmatmul.bf16.vlgmr.msrb.gmra.mxu1 %v1881_v22  ;;  %7928 = vmatpush.bf16.xpose.msrb.mxu0 %v12883_v33  ;;  %v12916_v27 = vld [vmem:[%s15024_s24 + $0xb50] sm:$0x10]  ;;  %v1890_v30 = vpack.c.bf16 %v790_v14, %v790_v14  ;;  %v12923_v33 = vor.u32 %v14482_v17, %v12922_v16  ;;  %v330_v14 = vld [vmem:[%s15017_s12 + $0x1b8] sm:$0xff] }
 0x354   : > { %7851 = vmatmul.bf16.vlgmr.msrb.gmra.mxu2 %v1882_v28  ;;  %7864 = vmatmul.bf16.vlgmr.msrb.gmra.mxu3 %v1883_v29 }
 0x355   : > { %7954 = vmatpush.bf16.xpose.msrb.mxu2 %v12891_v31  ;;  %7967 = vmatpush.bf16.xpose.msrb.mxu3 %v12895_v32  ;;  %v1891_v31 = vpack.c.bf16 %v791_v15, %v791_v15 }
 0x356   : > { %7941 = vmatpush.bf16.xpose.msrb.mxu1 %v12887_v34  ;;  %v12927_v34 = vor.u32 %v14226_v18, %v12924_v19  ;;  %v12954_v18 = vld [vmem:[%s15024_s24 + $0x378] sm:$0xf] }
 0x357   : > { %v7436_v36 = vpop.f32.mrf.mxu2  ;;  %v7449_v37 = vpop.f32.mrf.mxu3  ;;  %v14486_v19 = vld [vmem:[%s15024_s24 + $0xb74] sm:$0x10] }
 0x358   : > { %v7437_v38 = vadd.f32 %v7436_v36, %v7424_v35  ;;  %v7412_v39 = vpop.f32.mrf.mxu0  ;;  %v7425_v40 = vpop.f32.mrf.mxu1  ;;  %v12915_v35 = vor.u32 %v14481_v25, %v12914_v20  ;;  %v12919_v36 = vor.u32 %v14225_v26, %v12916_v27  ;;  %v14230_v20 = vld [vmem:[%s15024_s24 + $0x37c] sm:$0xf]  ;;  %v14485_v27 = vld [vmem:[%s15024_s24 + $0xb6c] sm:$0x10] }
 0x359   : > { %v798_v12 = vld.sshfl [vmem:[#allocation1 + $0x20] sm:$0xff pattern:$0x73625140]  ;;  %v800_v16 = vld.sshfl [vmem:[#allocation1 + $0x30] sm:$0xff pattern:$0x73625140] }
 0x35a   : > { %v7450_v44 = vadd.f32 %v7449_v37, %v7437_v38  ;;  %v801_v17 = vld.sshfl [vmem:[#allocation1 + $0x38] sm:$0xff pattern:$0x73625140]  ;;  %v1896_v25 = vpack.c.bf16 %v798_v12, %v798_v12 }
 0x35f   : > { %v7438_v52 = vpop.f32.mrf.mxu2  ;;  %v7451_v53 = vpop.f32.mrf.mxu3 }
 0x360   : > { %v7462_v59 = vpop.f32.mrf.mxu0  ;;  %v7475_v60 = vpop.f32.mrf.mxu1  ;;  %v12940_v52 = vld [vmem:[%s15024_s24 + $0xb68] sm:$0x10]  ;;  %v12930_v53 = vld [vmem:[%s15024_s24 + $0x360] sm:$0xf] }
 0x361   : > { %v7463_v63 = vadd.f32 %v7462_v59, %v7450_v44  ;;  %v795_v44 = vld.sshfl [vmem:[#allocation1 + $0x8] sm:$0xff pattern:$0x73625140] }
 0x362   : > { %7877 = vmatmul.bf16.vlgmr.msra.gmra.mxu0 %v1884_v54  ;;  %802 = vst [vmem:[#allocation1] ss:$4 sm:$0xff] %v329_v45  ;;  %v1893_v57 = vpack.c.bf16 %v795_v44, %v795_v44  ;;  %v14227_v59 = vld [vmem:[%s15024_s24 + $0x364] sm:$0xf] }
 0x363   : > { %v7476_v4 = vadd.f32 %v7475_v60, %v7463_v63  ;;  %7890 = vmatmul.bf16.vlgmr.msra.gmra.mxu1 %v1885_v55  ;;  %7980 = vmatpush.bf16.xpose.msra.mxu0 %v12899_v2  ;;  %v12932_v60 = vld [vmem:[%s15024_s24 + $0xb60] sm:$0x10]  ;;  %v1894_v63 = vpack.c.bf16 %v796_v47, %v796_v47  ;;  %v12939_v2 = vor.u32 %v14484_v50, %v12938_v49 }
 0x364   : > { %7903 = vmatmul.bf16.vlgmr.msra.gmra.mxu2 %v1886_v61  ;;  %7916 = vmatmul.bf16.vlgmr.msra.gmra.mxu3 %v1887_v62  ;;  %v331_v47 = vld [vmem:[%s15017_s12 + $0x1c0] sm:$0xff] }
 0x365   : > { %8006 = vmatpush.bf16.xpose.msra.mxu2 %v12907_v0  ;;  %8019 = vmatpush.bf16.xpose.msra.mxu3 %v12911_v1  ;;  %v1895_v0 = vpack.c.bf16 %v797_v48, %v797_v48 }
 0x366   : > { %7993 = vmatpush.bf16.xpose.msra.mxu1 %v12903_v3  ;;  %v12943_v3 = vor.u32 %v14228_v51, %v12940_v52  ;;  %v12970_v51 = vld [vmem:[%s15024_s24 + $0x388] sm:$0xf] }
 0x367   : > { %v7488_v5 = vpop.f32.mrf.mxu2  ;;  %v7501_v6 = vpop.f32.mrf.mxu3  ;;  %v14488_v52 = vld [vmem:[%s15024_s24 + $0xb84] sm:$0x10] }
 0x368   : > { %v7489_v7 = vadd.f32 %v7488_v5, %v7476_v4  ;;  %v7464_v8 = vpop.f32.mrf.mxu0  ;;  %v7477_v9 = vpop.f32.mrf.mxu1  ;;  %v12931_v4 = vor.u32 %v14483_v58, %v12930_v53  ;;  %v12935_v5 = vor.u32 %v14227_v59, %v12932_v60  ;;  %v14232_v53 = vld [vmem:[%s15024_s24 + $0x38c] sm:$0xf]  ;;  %v14487_v60 = vld [vmem:[%s15024_s24 + $0xb7c] sm:$0x10] }
 0x369   : > { %v804_v45 = vld.sshfl [vmem:[#allocation1] sm:$0xff pattern:$0x73625140]  ;;  %v806_v49 = vld.sshfl [vmem:[#allocation1 + $0x10] sm:$0xff pattern:$0x73625140] }
 0x36a   : > { %v7502_v13 = vadd.f32 %v7501_v6, %v7489_v7  ;;  %v807_v50 = vld.sshfl [vmem:[#allocation1 + $0x18] sm:$0xff pattern:$0x73625140]  ;;  %v1900_v58 = vpack.c.bf16 %v804_v45, %v804_v45 }
 0x36f   : > { %v7490_v21 = vpop.f32.mrf.mxu2  ;;  %v7503_v22 = vpop.f32.mrf.mxu3 }
 0x370   : > { %v7514_v28 = vpop.f32.mrf.mxu0  ;;  %v7527_v29 = vpop.f32.mrf.mxu1  ;;  %v12956_v21 = vld [vmem:[%s15024_s24 + $0xb78] sm:$0x10]  ;;  %v12946_v22 = vld [vmem:[%s15024_s24 + $0x370] sm:$0xf] }
 0x371   : > { %v7515_v32 = vadd.f32 %v7514_v28, %v7502_v13  ;;  %v799_v13 = vld.sshfl [vmem:[#allocation1 + $0x28] sm:$0xff pattern:$0x73625140]  ;;  %v14229_v28 = vld [vmem:[%s15024_s24 + $0x374] sm:$0xf] }
 0x372   : > { %7929 = vmatmul.bf16.vlgmr.msrb.gmra.mxu0 %v1888_v23  ;;  %803 = vst [vmem:[#allocation1 + $0x20] ss:$4 sm:$0xff] %v330_v14  ;;  %v1897_v26 = vpack.c.bf16 %v799_v13, %v799_v13 }
 0x373   : > { %v7528_v37 = vadd.f32 %v7527_v29, %v7515_v32  ;;  %7942 = vmatmul.bf16.vlgmr.msrb.gmra.mxu1 %v1889_v24  ;;  %8032 = vmatpush.bf16.xpose.msrb.mxu0 %v12915_v35  ;;  %v12948_v29 = vld [vmem:[%s15024_s24 + $0xb70] sm:$0x10]  ;;  %v1898_v32 = vpack.c.bf16 %v800_v16, %v800_v16  ;;  %v12955_v35 = vor.u32 %v14486_v19, %v12954_v18  ;;  %v332_v16 = vld [vmem:[%s15017_s12 + $0x1c8] sm:$0xff] }
 0x374   : > { %7955 = vmatmul.bf16.vlgmr.msrb.gmra.mxu2 %v1890_v30  ;;  %7968 = vmatmul.bf16.vlgmr.msrb.gmra.mxu3 %v1891_v31 }
 0x375   : > { %8058 = vmatpush.bf16.xpose.msrb.mxu2 %v12923_v33  ;;  %8071 = vmatpush.bf16.xpose.msrb.mxu3 %v12927_v34  ;;  %v1899_v33 = vpack.c.bf16 %v801_v17, %v801_v17 }
 0x376   : > { %8045 = vmatpush.bf16.xpose.msrb.mxu1 %v12919_v36  ;;  %v12959_v36 = vor.u32 %v14230_v20, %v12956_v21  ;;  %v12986_v20 = vld [vmem:[%s15024_s24 + $0x398] sm:$0xf] }
 0x377   : > { %v7540_v38 = vpop.f32.mrf.mxu2  ;;  %v7553_v39 = vpop.f32.mrf.mxu3  ;;  %v14490_v21 = vld [vmem:[%s15024_s24 + $0xb94] sm:$0x10] }
 0x378   : > { %v7541_v40 = vadd.f32 %v7540_v38, %v7528_v37  ;;  %v7516_v41 = vpop.f32.mrf.mxu0  ;;  %v7529_v42 = vpop.f32.mrf.mxu1  ;;  %v12947_v37 = vor.u32 %v14485_v27, %v12946_v22  ;;  %v12951_v38 = vor.u32 %v14229_v28, %v12948_v29  ;;  %v14234_v22 = vld [vmem:[%s15024_s24 + $0x39c] sm:$0xf]  ;;  %v14489_v29 = vld [vmem:[%s15024_s24 + $0xb8c] sm:$0x10] }
 0x379   : > { %v808_v14 = vld.sshfl [vmem:[#allocation1 + $0x20] sm:$0xff pattern:$0x73625140]  ;;  %v810_v18 = vld.sshfl [vmem:[#allocation1 + $0x30] sm:$0xff pattern:$0x73625140] }
 0x37a   : > { %v7554_v46 = vadd.f32 %v7553_v39, %v7541_v40  ;;  %v811_v19 = vld.sshfl [vmem:[#allocation1 + $0x38] sm:$0xff pattern:$0x73625140]  ;;  %v1904_v27 = vpack.c.bf16 %v808_v14, %v808_v14 }
 0x37f   : > { %v7542_v54 = vpop.f32.mrf.mxu2  ;;  %v7555_v55 = vpop.f32.mrf.mxu3 }
 0x380   : > { %v7566_v61 = vpop.f32.mrf.mxu0  ;;  %v7579_v62 = vpop.f32.mrf.mxu1  ;;  %v12972_v54 = vld [vmem:[%s15024_s24 + $0xb88] sm:$0x10]  ;;  %v12962_v55 = vld [vmem:[%s15024_s24 + $0x380] sm:$0xf] }
 0x381   : > { %v7567_v1 = vadd.f32 %v7566_v61, %v7554_v46  ;;  %v805_v46 = vld.sshfl [vmem:[#allocation1 + $0x8] sm:$0xff pattern:$0x73625140] }
 0x382   : > { %7981 = vmatmul.bf16.vlgmr.msra.gmra.mxu0 %v1892_v56  ;;  %812 = vst [vmem:[#allocation1] ss:$4 sm:$0xff] %v331_v47  ;;  %v1901_v59 = vpack.c.bf16 %v805_v46, %v805_v46  ;;  %v14231_v61 = vld [vmem:[%s15024_s24 + $0x384] sm:$0xf] }
 0x383   : > { %v7580_v6 = vadd.f32 %v7579_v62, %v7567_v1  ;;  %7994 = vmatmul.bf16.vlgmr.msra.gmra.mxu1 %v1893_v57  ;;  %8084 = vmatpush.bf16.xpose.msra.mxu0 %v12931_v4  ;;  %v12964_v62 = vld [vmem:[%s15024_s24 + $0xb80] sm:$0x10]  ;;  %v1902_v1 = vpack.c.bf16 %v806_v49, %v806_v49  ;;  %v12971_v4 = vor.u32 %v14488_v52, %v12970_v51  ;;  %v333_v49 = vld [vmem:[%s15017_s12 + $0x1d0] sm:$0xff] }
 0x384   : > { %8007 = vmatmul.bf16.vlgmr.msra.gmra.mxu2 %v1894_v63  ;;  %8020 = vmatmul.bf16.vlgmr.msra.gmra.mxu3 %v1895_v0 }
 0x385   : > { %8110 = vmatpush.bf16.xpose.msra.mxu2 %v12939_v2  ;;  %8123 = vmatpush.bf16.xpose.msra.mxu3 %v12943_v3  ;;  %v1903_v2 = vpack.c.bf16 %v807_v50, %v807_v50 }
 0x386   : > { %8097 = vmatpush.bf16.xpose.msra.mxu1 %v12935_v5  ;;  %v12975_v5 = vor.u32 %v14232_v53, %v12972_v54  ;;  %v13002_v53 = vld [vmem:[%s15024_s24 + $0x3a8] sm:$0xf] }
 0x387   : > { %v7592_v7 = vpop.f32.mrf.mxu2  ;;  %v7605_v8 = vpop.f32.mrf.mxu3  ;;  %v14492_v54 = vld [vmem:[%s15024_s24 + $0xba4] sm:$0x10] }
 0x388   : > { %v7593_v9 = vadd.f32 %v7592_v7, %v7580_v6  ;;  %v7568_v10 = vpop.f32.mrf.mxu0  ;;  %v7581_v11 = vpop.f32.mrf.mxu1  ;;  %v12963_v6 = vor.u32 %v14487_v60, %v12962_v55  ;;  %v12967_v7 = vor.u32 %v14231_v61, %v12964_v62  ;;  %v14236_v55 = vld [vmem:[%s15024_s24 + $0x3ac] sm:$0xf]  ;;  %v14491_v62 = vld [vmem:[%s15024_s24 + $0xb9c] sm:$0x10] }
 0x389   : > { %v814_v47 = vld.sshfl [vmem:[#allocation1] sm:$0xff pattern:$0x73625140]  ;;  %v816_v51 = vld.sshfl [vmem:[#allocation1 + $0x10] sm:$0xff pattern:$0x73625140] }
 0x38a   : > { %v7606_v15 = vadd.f32 %v7605_v8, %v7593_v9  ;;  %v817_v52 = vld.sshfl [vmem:[#allocation1 + $0x18] sm:$0xff pattern:$0x73625140]  ;;  %v1908_v60 = vpack.c.bf16 %v814_v47, %v814_v47 }
 0x38f   : > { %v7594_v23 = vpop.f32.mrf.mxu2  ;;  %v7607_v24 = vpop.f32.mrf.mxu3 }
 0x390   : > { %v7618_v30 = vpop.f32.mrf.mxu0  ;;  %v7631_v31 = vpop.f32.mrf.mxu1  ;;  %v12988_v23 = vld [vmem:[%s15024_s24 + $0xb98] sm:$0x10]  ;;  %v12978_v24 = vld [vmem:[%s15024_s24 + $0x390] sm:$0xf] }
 0x391   : > { %v7619_v34 = vadd.f32 %v7618_v30, %v7606_v15  ;;  %v809_v15 = vld.sshfl [vmem:[#allocation1 + $0x28] sm:$0xff pattern:$0x73625140]  ;;  %v14233_v30 = vld [vmem:[%s15024_s24 + $0x394] sm:$0xf] }
 0x392   : > { %8033 = vmatmul.bf16.vlgmr.msrb.gmra.mxu0 %v1896_v25  ;;  %813 = vst [vmem:[#allocation1 + $0x20] ss:$4 sm:$0xff] %v332_v16  ;;  %v1905_v28 = vpack.c.bf16 %v809_v15, %v809_v15 }
 0x393   : > { %v7632_v39 = vadd.f32 %v7631_v31, %v7619_v34  ;;  %8046 = vmatmul.bf16.vlgmr.msrb.gmra.mxu1 %v1897_v26  ;;  %8136 = vmatpush.bf16.xpose.msrb.mxu0 %v12947_v37  ;;  %v12980_v31 = vld [vmem:[%s15024_s24 + $0xb90] sm:$0x10]  ;;  %v1906_v34 = vpack.c.bf16 %v810_v18, %v810_v18  ;;  %v12987_v37 = vor.u32 %v14490_v21, %v12986_v20  ;;  %v334_v18 = vld [vmem:[%s15017_s12 + $0x1d8] sm:$0xff] }
 0x394   : > { %8059 = vmatmul.bf16.vlgmr.msrb.gmra.mxu2 %v1898_v32  ;;  %8072 = vmatmul.bf16.vlgmr.msrb.gmra.mxu3 %v1899_v33 }
 0x395   : > { %8162 = vmatpush.bf16.xpose.msrb.mxu2 %v12955_v35  ;;  %8175 = vmatpush.bf16.xpose.msrb.mxu3 %v12959_v36  ;;  %v1907_v35 = vpack.c.bf16 %v811_v19, %v811_v19 }
 0x396   : > { %8149 = vmatpush.bf16.xpose.msrb.mxu1 %v12951_v38  ;;  %v12991_v38 = vor.u32 %v14234_v22, %v12988_v23  ;;  %v13018_v22 = vld [vmem:[%s15024_s24 + $0x3b8] sm:$0xf] }
 0x397   : > { %v7644_v40 = vpop.f32.mrf.mxu2  ;;  %v7657_v41 = vpop.f32.mrf.mxu3  ;;  %v14494_v23 = vld [vmem:[%s15024_s24 + $0xbb4] sm:$0x10] }
 0x398   : > { %v7645_v42 = vadd.f32 %v7644_v40, %v7632_v39  ;;  %v7620_v43 = vpop.f32.mrf.mxu0  ;;  %v7633_v44 = vpop.f32.mrf.mxu1  ;;  %v12979_v39 = vor.u32 %v14489_v29, %v12978_v24  ;;  %v12983_v40 = vor.u32 %v14233_v30, %v12980_v31  ;;  %v14238_v24 = vld [vmem:[%s15024_s24 + $0x3bc] sm:$0xf]  ;;  %v14493_v31 = vld [vmem:[%s15024_s24 + $0xbac] sm:$0x10] }
 0x399   : > { %v818_v16 = vld.sshfl [vmem:[#allocation1 + $0x20] sm:$0xff pattern:$0x73625140]  ;;  %v820_v20 = vld.sshfl [vmem:[#allocation1 + $0x30] sm:$0xff pattern:$0x73625140] }
 0x39a   : > { %v7658_v48 = vadd.f32 %v7657_v41, %v7645_v42  ;;  %v821_v21 = vld.sshfl [vmem:[#allocation1 + $0x38] sm:$0xff pattern:$0x73625140]  ;;  %v1912_v29 = vpack.c.bf16 %v818_v16, %v818_v16 }
 0x39f   : > { %v7646_v56 = vpop.f32.mrf.mxu2  ;;  %v7659_v57 = vpop.f32.mrf.mxu3 }
 0x3a0   : > { %v7670_v63 = vpop.f32.mrf.mxu0  ;;  %v7683_v0 = vpop.f32.mrf.mxu1  ;;  %v13004_v56 = vld [vmem:[%s15024_s24 + $0xba8] sm:$0x10]  ;;  %v12994_v57 = vld [vmem:[%s15024_s24 + $0x3a0] sm:$0xf] }
 0x3a1   : > { %v7671_v3 = vadd.f32 %v7670_v63, %v7658_v48  ;;  %v815_v48 = vld.sshfl [vmem:[#allocation1 + $0x8] sm:$0xff pattern:$0x73625140] }
 0x3a2   : > { %8085 = vmatmul.bf16.vlgmr.msra.gmra.mxu0 %v1900_v58  ;;  %822 = vst [vmem:[#allocation1] ss:$4 sm:$0xff] %v333_v49  ;;  %v1909_v61 = vpack.c.bf16 %v815_v48, %v815_v48  ;;  %v14235_v63 = vld [vmem:[%s15024_s24 + $0x3a4] sm:$0xf] }
 0x3a3   : > { %v7684_v8 = vadd.f32 %v7683_v0, %v7671_v3  ;;  %8098 = vmatmul.bf16.vlgmr.msra.gmra.mxu1 %v1901_v59  ;;  %8188 = vmatpush.bf16.xpose.msra.mxu0 %v12963_v6  ;;  %v12996_v0 = vld [vmem:[%s15024_s24 + $0xba0] sm:$0x10]  ;;  %v1910_v3 = vpack.c.bf16 %v816_v51, %v816_v51  ;;  %v13003_v6 = vor.u32 %v14492_v54, %v13002_v53 }
 0x3a4   : > { %8111 = vmatmul.bf16.vlgmr.msra.gmra.mxu2 %v1902_v1  ;;  %8124 = vmatmul.bf16.vlgmr.msra.gmra.mxu3 %v1903_v2  ;;  %v335_v51 = vld [vmem:[%s15017_s12 + $0x1e0] sm:$0xff] }
 0x3a5   : > { %8214 = vmatpush.bf16.xpose.msra.mxu2 %v12971_v4  ;;  %8227 = vmatpush.bf16.xpose.msra.mxu3 %v12975_v5  ;;  %v1911_v4 = vpack.c.bf16 %v817_v52, %v817_v52 }
 0x3a6   : > { %8201 = vmatpush.bf16.xpose.msra.mxu1 %v12967_v7  ;;  %v13007_v7 = vor.u32 %v14236_v55, %v13004_v56  ;;  %v13034_v55 = vld [vmem:[%s15024_s24 + $0x3c8] sm:$0xf] }
 0x3a7   : > { %v7696_v9 = vpop.f32.mrf.mxu2  ;;  %v7709_v10 = vpop.f32.mrf.mxu3  ;;  %v14496_v56 = vld [vmem:[%s15024_s24 + $0xbc4] sm:$0x10] }
 0x3a8   : > { %v7697_v11 = vadd.f32 %v7696_v9, %v7684_v8  ;;  %v7672_v12 = vpop.f32.mrf.mxu0  ;;  %v7685_v13 = vpop.f32.mrf.mxu1  ;;  %v12995_v8 = vor.u32 %v14491_v62, %v12994_v57  ;;  %v12999_v9 = vor.u32 %v14235_v63, %v12996_v0  ;;  %v14240_v57 = vld [vmem:[%s15024_s24 + $0x3cc] sm:$0xf]  ;;  %v14495_v0 = vld [vmem:[%s15024_s24 + $0xbbc] sm:$0x10] }
 0x3a9   : > { %v824_v49 = vld.sshfl [vmem:[#allocation1] sm:$0xff pattern:$0x73625140]  ;;  %v826_v53 = vld.sshfl [vmem:[#allocation1 + $0x10] sm:$0xff pattern:$0x73625140] }
 0x3aa   : > { %v7710_v17 = vadd.f32 %v7709_v10, %v7697_v11  ;;  %v827_v54 = vld.sshfl [vmem:[#allocation1 + $0x18] sm:$0xff pattern:$0x73625140]  ;;  %v1916_v62 = vpack.c.bf16 %v824_v49, %v824_v49 }
 0x3af   : > { %v7698_v25 = vpop.f32.mrf.mxu2  ;;  %v7711_v26 = vpop.f32.mrf.mxu3 }
 0x3b0   : > { %v7722_v32 = vpop.f32.mrf.mxu0  ;;  %v7735_v33 = vpop.f32.mrf.mxu1  ;;  %v13020_v25 = vld [vmem:[%s15024_s24 + $0xbb8] sm:$0x10]  ;;  %v13010_v26 = vld [vmem:[%s15024_s24 + $0x3b0] sm:$0xf] }
 0x3b1   : > { %v7723_v36 = vadd.f32 %v7722_v32, %v7710_v17  ;;  %v819_v17 = vld.sshfl [vmem:[#allocation1 + $0x28] sm:$0xff pattern:$0x73625140]  ;;  %v14237_v32 = vld [vmem:[%s15024_s24 + $0x3b4] sm:$0xf] }
 0x3b2   : > { %8137 = vmatmul.bf16.vlgmr.msrb.gmra.mxu0 %v1904_v27  ;;  %823 = vst [vmem:[#allocation1 + $0x20] ss:$4 sm:$0xff] %v334_v18  ;;  %v1913_v30 = vpack.c.bf16 %v819_v17, %v819_v17 }
 0x3b3   : > { %v7736_v41 = vadd.f32 %v7735_v33, %v7723_v36  ;;  %8150 = vmatmul.bf16.vlgmr.msrb.gmra.mxu1 %v1905_v28  ;;  %8240 = vmatpush.bf16.xpose.msrb.mxu0 %v12979_v39  ;;  %v13012_v33 = vld [vmem:[%s15024_s24 + $0xbb0] sm:$0x10]  ;;  %v1914_v36 = vpack.c.bf16 %v820_v20, %v820_v20  ;;  %v13019_v39 = vor.u32 %v14494_v23, %v13018_v22  ;;  %v336_v20 = vld [vmem:[%s15017_s12 + $0x1e8] sm:$0xff] }
 0x3b4   : > { %8163 = vmatmul.bf16.vlgmr.msrb.gmra.mxu2 %v1906_v34  ;;  %8176 = vmatmul.bf16.vlgmr.msrb.gmra.mxu3 %v1907_v35 }
 0x3b5   : > { %8266 = vmatpush.bf16.xpose.msrb.mxu2 %v12987_v37  ;;  %8279 = vmatpush.bf16.xpose.msrb.mxu3 %v12991_v38  ;;  %v1915_v37 = vpack.c.bf16 %v821_v21, %v821_v21 }
 0x3b6   : > { %8253 = vmatpush.bf16.xpose.msrb.mxu1 %v12983_v40  ;;  %v13023_v40 = vor.u32 %v14238_v24, %v13020_v25  ;;  %v13050_v24 = vld [vmem:[%s15024_s24 + $0x3d8] sm:$0xf] }
 0x3b7   : > { %v7748_v42 = vpop.f32.mrf.mxu2  ;;  %v7761_v43 = vpop.f32.mrf.mxu3  ;;  %v14498_v25 = vld [vmem:[%s15024_s24 + $0xbd4] sm:$0x10] }
 0x3b8   : > { %v7749_v44 = vadd.f32 %v7748_v42, %v7736_v41  ;;  %v7724_v45 = vpop.f32.mrf.mxu0  ;;  %v7737_v46 = vpop.f32.mrf.mxu1  ;;  %v13011_v41 = vor.u32 %v14493_v31, %v13010_v26  ;;  %v13015_v42 = vor.u32 %v14237_v32, %v13012_v33  ;;  %v14242_v26 = vld [vmem:[%s15024_s24 + $0x3dc] sm:$0xf]  ;;  %v14497_v33 = vld [vmem:[%s15024_s24 + $0xbcc] sm:$0x10] }
 0x3b9   : > { %v828_v18 = vld.sshfl [vmem:[#allocation1 + $0x20] sm:$0xff pattern:$0x73625140]  ;;  %v830_v22 = vld.sshfl [vmem:[#allocation1 + $0x30] sm:$0xff pattern:$0x73625140] }
 0x3ba   : > { %v7762_v50 = vadd.f32 %v7761_v43, %v7749_v44  ;;  %v831_v23 = vld.sshfl [vmem:[#allocation1 + $0x38] sm:$0xff pattern:$0x73625140]  ;;  %v1920_v31 = vpack.c.bf16 %v828_v18, %v828_v18 }
 0x3bf   : > { %v7750_v58 = vpop.f32.mrf.mxu2  ;;  %v7763_v59 = vpop.f32.mrf.mxu3 }
 0x3c0   : > { %v7774_v1 = vpop.f32.mrf.mxu0  ;;  %v7787_v2 = vpop.f32.mrf.mxu1  ;;  %v13036_v58 = vld [vmem:[%s15024_s24 + $0xbc8] sm:$0x10]  ;;  %v13026_v59 = vld [vmem:[%s15024_s24 + $0x3c0] sm:$0xf] }
 0x3c1   : > { %v7775_v5 = vadd.f32 %v7774_v1, %v7762_v50  ;;  %v825_v50 = vld.sshfl [vmem:[#allocation1 + $0x8] sm:$0xff pattern:$0x73625140] }
 0x3c2   : > { %8189 = vmatmul.bf16.vlgmr.msra.gmra.mxu0 %v1908_v60  ;;  %832 = vst [vmem:[#allocation1] ss:$4 sm:$0xff] %v335_v51  ;;  %v1917_v63 = vpack.c.bf16 %v825_v50, %v825_v50  ;;  %v14239_v1 = vld [vmem:[%s15024_s24 + $0x3c4] sm:$0xf] }
 0x3c3   : > { %v7788_v10 = vadd.f32 %v7787_v2, %v7775_v5  ;;  %8202 = vmatmul.bf16.vlgmr.msra.gmra.mxu1 %v1909_v61  ;;  %8292 = vmatpush.bf16.xpose.msra.mxu0 %v12995_v8  ;;  %v13028_v2 = vld [vmem:[%s15024_s24 + $0xbc0] sm:$0x10]  ;;  %v1918_v5 = vpack.c.bf16 %v826_v53, %v826_v53  ;;  %v13035_v8 = vor.u32 %v14496_v56, %v13034_v55  ;;  %v337_v53 = vld [vmem:[%s15017_s12 + $0x1f0] sm:$0xff] }
 0x3c4   : > { %8215 = vmatmul.bf16.vlgmr.msra.gmra.mxu2 %v1910_v3  ;;  %8228 = vmatmul.bf16.vlgmr.msra.gmra.mxu3 %v1911_v4 }
 0x3c5   : > { %8318 = vmatpush.bf16.xpose.msra.mxu2 %v13003_v6  ;;  %8331 = vmatpush.bf16.xpose.msra.mxu3 %v13007_v7  ;;  %v1919_v6 = vpack.c.bf16 %v827_v54, %v827_v54 }
 0x3c6   : > { %8305 = vmatpush.bf16.xpose.msra.mxu1 %v12999_v9  ;;  %v13039_v9 = vor.u32 %v14240_v57, %v13036_v58  ;;  %v13066_v57 = vld [vmem:[%s15024_s24 + $0x3e8] sm:$0xf] }
 0x3c7   : > { %v7800_v11 = vpop.f32.mrf.mxu2  ;;  %v7813_v12 = vpop.f32.mrf.mxu3  ;;  %v14500_v58 = vld [vmem:[%s15024_s24 + $0xbe4] sm:$0x10] }
 0x3c8   : > { %v7801_v13 = vadd.f32 %v7800_v11, %v7788_v10  ;;  %v7776_v14 = vpop.f32.mrf.mxu0  ;;  %v7789_v15 = vpop.f32.mrf.mxu1  ;;  %v13027_v10 = vor.u32 %v14495_v0, %v13026_v59  ;;  %v13031_v11 = vor.u32 %v14239_v1, %v13028_v2  ;;  %v14244_v59 = vld [vmem:[%s15024_s24 + $0x3ec] sm:$0xf]  ;;  %v14499_v2 = vld [vmem:[%s15024_s24 + $0xbdc] sm:$0x10] }
 0x3c9   : > { %v834_v51 = vld.sshfl [vmem:[#allocation1] sm:$0xff pattern:$0x73625140]  ;;  %v836_v55 = vld.sshfl [vmem:[#allocation1 + $0x10] sm:$0xff pattern:$0x73625140] }
 0x3ca   : > { %v7814_v19 = vadd.f32 %v7813_v12, %v7801_v13  ;;  %v837_v56 = vld.sshfl [vmem:[#allocation1 + $0x18] sm:$0xff pattern:$0x73625140]  ;;  %v1924_v0 = vpack.c.bf16 %v834_v51, %v834_v51 }
 0x3cf   : > { %v7802_v27 = vpop.f32.mrf.mxu2  ;;  %v7815_v28 = vpop.f32.mrf.mxu3 }
 0x3d0   : > { %v7826_v34 = vpop.f32.mrf.mxu0  ;;  %v7839_v35 = vpop.f32.mrf.mxu1  ;;  %v13052_v27 = vld [vmem:[%s15024_s24 + $0xbd8] sm:$0x10]  ;;  %v13042_v28 = vld [vmem:[%s15024_s24 + $0x3d0] sm:$0xf] }
 0x3d1   : > { %v7827_v38 = vadd.f32 %v7826_v34, %v7814_v19  ;;  %v829_v19 = vld.sshfl [vmem:[#allocation1 + $0x28] sm:$0xff pattern:$0x73625140]  ;;  %v14241_v34 = vld [vmem:[%s15024_s24 + $0x3d4] sm:$0xf] }
 0x3d2   : > { %8241 = vmatmul.bf16.vlgmr.msrb.gmra.mxu0 %v1912_v29  ;;  %833 = vst [vmem:[#allocation1 + $0x20] ss:$4 sm:$0xff] %v336_v20  ;;  %v1921_v32 = vpack.c.bf16 %v829_v19, %v829_v19 }
 0x3d3   : > { %v7840_v43 = vadd.f32 %v7839_v35, %v7827_v38  ;;  %8254 = vmatmul.bf16.vlgmr.msrb.gmra.mxu1 %v1913_v30  ;;  %8344 = vmatpush.bf16.xpose.msrb.mxu0 %v13011_v41  ;;  %v13044_v35 = vld [vmem:[%s15024_s24 + $0xbd0] sm:$0x10]  ;;  %v1922_v38 = vpack.c.bf16 %v830_v22, %v830_v22  ;;  %v13051_v41 = vor.u32 %v14498_v25, %v13050_v24  ;;  %v338_v22 = vld [vmem:[%s15017_s12 + $0x1f8] sm:$0xff] }
 0x3d4   : > { %8267 = vmatmul.bf16.vlgmr.msrb.gmra.mxu2 %v1914_v36  ;;  %8280 = vmatmul.bf16.vlgmr.msrb.gmra.mxu3 %v1915_v37 }
 0x3d5   : > { %8370 = vmatpush.bf16.xpose.msrb.mxu2 %v13019_v39  ;;  %8383 = vmatpush.bf16.xpose.msrb.mxu3 %v13023_v40  ;;  %v1923_v39 = vpack.c.bf16 %v831_v23, %v831_v23 }
 0x3d6   : > { %8357 = vmatpush.bf16.xpose.msrb.mxu1 %v13015_v42  ;;  %v13055_v42 = vor.u32 %v14242_v26, %v13052_v27  ;;  %v13082_v26 = vld [vmem:[%s15024_s24 + $0x3f8] sm:$0xf] }
 0x3d7   : > { %v7852_v44 = vpop.f32.mrf.mxu2  ;;  %v7865_v45 = vpop.f32.mrf.mxu3  ;;  %v14502_v27 = vld [vmem:[%s15024_s24 + $0xbf4] sm:$0x10] }
 0x3d8   : > { %v7853_v46 = vadd.f32 %v7852_v44, %v7840_v43  ;;  %v7828_v47 = vpop.f32.mrf.mxu0  ;;  %v7841_v48 = vpop.f32.mrf.mxu1  ;;  %v13043_v43 = vor.u32 %v14497_v33, %v13042_v28  ;;  %v13047_v44 = vor.u32 %v14241_v34, %v13044_v35  ;;  %v14246_v28 = vld [vmem:[%s15024_s24 + $0x3fc] sm:$0xf]  ;;  %v14501_v35 = vld [vmem:[%s15024_s24 + $0xbec] sm:$0x10] }
 0x3d9   : > { %v838_v20 = vld.sshfl [vmem:[#allocation1 + $0x20] sm:$0xff pattern:$0x73625140]  ;;  %v840_v24 = vld.sshfl [vmem:[#allocation1 + $0x30] sm:$0xff pattern:$0x73625140] }
 0x3da   : > { %v7866_v52 = vadd.f32 %v7865_v45, %v7853_v46  ;;  %v841_v25 = vld.sshfl [vmem:[#allocation1 + $0x38] sm:$0xff pattern:$0x73625140]  ;;  %v1928_v33 = vpack.c.bf16 %v838_v20, %v838_v20 }
 0x3df   : > { %v7854_v60 = vpop.f32.mrf.mxu2  ;;  %v7867_v61 = vpop.f32.mrf.mxu3 }
 0x3e0   : > { %v7878_v3 = vpop.f32.mrf.mxu0  ;;  %v7891_v4 = vpop.f32.mrf.mxu1  ;;  %v13068_v60 = vld [vmem:[%s15024_s24 + $0xbe8] sm:$0x10]  ;;  %v13058_v61 = vld [vmem:[%s15024_s24 + $0x3e0] sm:$0xf] }
 0x3e1   : > { %v7879_v7 = vadd.f32 %v7878_v3, %v7866_v52  ;;  %v835_v52 = vld.sshfl [vmem:[#allocation1 + $0x8] sm:$0xff pattern:$0x73625140] }
 0x3e2   : > { %8293 = vmatmul.bf16.vlgmr.msra.gmra.mxu0 %v1916_v62  ;;  %842 = vst [vmem:[#allocation1] ss:$4 sm:$0xff] %v337_v53  ;;  %v1925_v1 = vpack.c.bf16 %v835_v52, %v835_v52  ;;  %v14243_v3 = vld [vmem:[%s15024_s24 + $0x3e4] sm:$0xf] }
 0x3e3   : > { %v7892_v12 = vadd.f32 %v7891_v4, %v7879_v7  ;;  %8306 = vmatmul.bf16.vlgmr.msra.gmra.mxu1 %v1917_v63  ;;  %8396 = vmatpush.bf16.xpose.msra.mxu0 %v13027_v10  ;;  %v13060_v4 = vld [vmem:[%s15024_s24 + $0xbe0] sm:$0x10]  ;;  %v1926_v7 = vpack.c.bf16 %v836_v55, %v836_v55  ;;  %v13067_v10 = vor.u32 %v14500_v58, %v13066_v57 }
 0x3e4   : > { %8319 = vmatmul.bf16.vlgmr.msra.gmra.mxu2 %v1918_v5  ;;  %8332 = vmatmul.bf16.vlgmr.msra.gmra.mxu3 %v1919_v6  ;;  %v339_v55 = vld [vmem:[%s15017_s12 + $0x200] sm:$0xff] }
 0x3e5   : > { %8422 = vmatpush.bf16.xpose.msra.mxu2 %v13035_v8  ;;  %8435 = vmatpush.bf16.xpose.msra.mxu3 %v13039_v9  ;;  %v1927_v8 = vpack.c.bf16 %v837_v56, %v837_v56 }
 0x3e6   : > { %8409 = vmatpush.bf16.xpose.msra.mxu1 %v13031_v11  ;;  %v13071_v11 = vor.u32 %v14244_v59, %v13068_v60  ;;  %v13098_v59 = vld [vmem:[%s15024_s24 + $0x408] sm:$0xf] }
 0x3e7   : > { %v7904_v13 = vpop.f32.mrf.mxu2  ;;  %v7917_v14 = vpop.f32.mrf.mxu3  ;;  %v14504_v60 = vld [vmem:[%s15024_s24 + $0xc04] sm:$0x10] }
 0x3e8   : > { %v7905_v15 = vadd.f32 %v7904_v13, %v7892_v12  ;;  %v7880_v16 = vpop.f32.mrf.mxu0  ;;  %v7893_v17 = vpop.f32.mrf.mxu1  ;;  %v13059_v12 = vor.u32 %v14499_v2, %v13058_v61  ;;  %v13063_v13 = vor.u32 %v14243_v3, %v13060_v4  ;;  %v14248_v61 = vld [vmem:[%s15024_s24 + $0x40c] sm:$0xf]  ;;  %v14503_v4 = vld [vmem:[%s15024_s24 + $0xbfc] sm:$0x10] }
 0x3e9   : > { %v844_v53 = vld.sshfl [vmem:[#allocation1] sm:$0xff pattern:$0x73625140]  ;;  %v846_v57 = vld.sshfl [vmem:[#allocation1 + $0x10] sm:$0xff pattern:$0x73625140] }
 0x3ea   : > { %v7918_v21 = vadd.f32 %v7917_v14, %v7905_v15  ;;  %v847_v58 = vld.sshfl [vmem:[#allocation1 + $0x18] sm:$0xff pattern:$0x73625140]  ;;  %v1932_v2 = vpack.c.bf16 %v844_v53, %v844_v53 }
 0x3ef   : > { %v7906_v29 = vpop.f32.mrf.mxu2  ;;  %v7919_v30 = vpop.f32.mrf.mxu3 }
 0x3f0   : > { %v7930_v36 = vpop.f32.mrf.mxu0  ;;  %v7943_v37 = vpop.f32.mrf.mxu1  ;;  %v13084_v29 = vld [vmem:[%s15024_s24 + $0xbf8] sm:$0x10]  ;;  %v13074_v30 = vld [vmem:[%s15024_s24 + $0x3f0] sm:$0xf] }
 0x3f1   : > { %v7931_v40 = vadd.f32 %v7930_v36, %v7918_v21  ;;  %v839_v21 = vld.sshfl [vmem:[#allocation1 + $0x28] sm:$0xff pattern:$0x73625140]  ;;  %v14245_v36 = vld [vmem:[%s15024_s24 + $0x3f4] sm:$0xf] }
 0x3f2   : > { %8345 = vmatmul.bf16.vlgmr.msrb.gmra.mxu0 %v1920_v31  ;;  %843 = vst [vmem:[#allocation1 + $0x20] ss:$4 sm:$0xff] %v338_v22  ;;  %v1929_v34 = vpack.c.bf16 %v839_v21, %v839_v21 }
 0x3f3   : > { %v7944_v45 = vadd.f32 %v7943_v37, %v7931_v40  ;;  %8358 = vmatmul.bf16.vlgmr.msrb.gmra.mxu1 %v1921_v32  ;;  %8448 = vmatpush.bf16.xpose.msrb.mxu0 %v13043_v43  ;;  %v13076_v37 = vld [vmem:[%s15024_s24 + $0xbf0] sm:$0x10]  ;;  %v1930_v40 = vpack.c.bf16 %v840_v24, %v840_v24  ;;  %v13083_v43 = vor.u32 %v14502_v27, %v13082_v26  ;;  %v340_v24 = vld [vmem:[%s15017_s12 + $0x208] sm:$0xff] }
 0x3f4   : > { %8371 = vmatmul.bf16.vlgmr.msrb.gmra.mxu2 %v1922_v38  ;;  %8384 = vmatmul.bf16.vlgmr.msrb.gmra.mxu3 %v1923_v39 }
 0x3f5   : > { %8474 = vmatpush.bf16.xpose.msrb.mxu2 %v13051_v41  ;;  %8487 = vmatpush.bf16.xpose.msrb.mxu3 %v13055_v42  ;;  %v1931_v41 = vpack.c.bf16 %v841_v25, %v841_v25 }
 0x3f6   : > { %8461 = vmatpush.bf16.xpose.msrb.mxu1 %v13047_v44  ;;  %v13087_v44 = vor.u32 %v14246_v28, %v13084_v29  ;;  %v13114_v28 = vld [vmem:[%s15024_s24 + $0x418] sm:$0xf] }
 0x3f7   : > { %v7956_v46 = vpop.f32.mrf.mxu2  ;;  %v7969_v47 = vpop.f32.mrf.mxu3  ;;  %v14506_v29 = vld [vmem:[%s15024_s24 + $0xc14] sm:$0x10] }
 0x3f8   : > { %v7957_v48 = vadd.f32 %v7956_v46, %v7944_v45  ;;  %v7932_v49 = vpop.f32.mrf.mxu0  ;;  %v7945_v50 = vpop.f32.mrf.mxu1  ;;  %v13075_v45 = vor.u32 %v14501_v35, %v13074_v30  ;;  %v13079_v46 = vor.u32 %v14245_v36, %v13076_v37  ;;  %v14250_v30 = vld [vmem:[%s15024_s24 + $0x41c] sm:$0xf]  ;;  %v14505_v37 = vld [vmem:[%s15024_s24 + $0xc0c] sm:$0x10] }
 0x3f9   : > { %v848_v22 = vld.sshfl [vmem:[#allocation1 + $0x20] sm:$0xff pattern:$0x73625140]  ;;  %v850_v26 = vld.sshfl [vmem:[#allocation1 + $0x30] sm:$0xff pattern:$0x73625140] }
 0x3fa   : > { %v7970_v54 = vadd.f32 %v7969_v47, %v7957_v48  ;;  %v851_v27 = vld.sshfl [vmem:[#allocation1 + $0x38] sm:$0xff pattern:$0x73625140]  ;;  %v1936_v35 = vpack.c.bf16 %v848_v22, %v848_v22 }
 0x3ff   : > { %v7958_v62 = vpop.f32.mrf.mxu2  ;;  %v7971_v63 = vpop.f32.mrf.mxu3 }
 0x400   : > { %v7982_v5 = vpop.f32.mrf.mxu0  ;;  %v7995_v6 = vpop.f32.mrf.mxu1  ;;  %v13100_v62 = vld [vmem:[%s15024_s24 + $0xc08] sm:$0x10]  ;;  %v13090_v63 = vld [vmem:[%s15024_s24 + $0x400] sm:$0xf] }
 0x401   : > { %v7983_v9 = vadd.f32 %v7982_v5, %v7970_v54  ;;  %v845_v54 = vld.sshfl [vmem:[#allocation1 + $0x8] sm:$0xff pattern:$0x73625140] }
 0x402   : > { %8397 = vmatmul.bf16.vlgmr.msra.gmra.mxu0 %v1924_v0  ;;  %852 = vst [vmem:[#allocation1] ss:$4 sm:$0xff] %v339_v55  ;;  %v1933_v3 = vpack.c.bf16 %v845_v54, %v845_v54  ;;  %v14247_v5 = vld [vmem:[%s15024_s24 + $0x404] sm:$0xf] }
 0x403   : > { %v7996_v14 = vadd.f32 %v7995_v6, %v7983_v9  ;;  %8410 = vmatmul.bf16.vlgmr.msra.gmra.mxu1 %v1925_v1  ;;  %8500 = vmatpush.bf16.xpose.msra.mxu0 %v13059_v12  ;;  %v13092_v6 = vld [vmem:[%s15024_s24 + $0xc00] sm:$0x10]  ;;  %v1934_v9 = vpack.c.bf16 %v846_v57, %v846_v57  ;;  %v13099_v12 = vor.u32 %v14504_v60, %v13098_v59  ;;  %v341_v57 = vld [vmem:[%s15017_s12 + $0x210] sm:$0xff] }
 0x404   : > { %8423 = vmatmul.bf16.vlgmr.msra.gmra.mxu2 %v1926_v7  ;;  %8436 = vmatmul.bf16.vlgmr.msra.gmra.mxu3 %v1927_v8 }
 0x405   : > { %8526 = vmatpush.bf16.xpose.msra.mxu2 %v13067_v10  ;;  %8539 = vmatpush.bf16.xpose.msra.mxu3 %v13071_v11  ;;  %v1935_v10 = vpack.c.bf16 %v847_v58, %v847_v58 }
 0x406   : > { %8513 = vmatpush.bf16.xpose.msra.mxu1 %v13063_v13  ;;  %v13103_v13 = vor.u32 %v14248_v61, %v13100_v62  ;;  %v13130_v61 = vld [vmem:[%s15024_s24 + $0x428] sm:$0xf] }
 0x407   : > { %v8008_v15 = vpop.f32.mrf.mxu2  ;;  %v8021_v16 = vpop.f32.mrf.mxu3  ;;  %v14508_v62 = vld [vmem:[%s15024_s24 + $0xc24] sm:$0x10] }
 0x408   : > { %v8009_v17 = vadd.f32 %v8008_v15, %v7996_v14  ;;  %v7984_v18 = vpop.f32.mrf.mxu0  ;;  %v7997_v19 = vpop.f32.mrf.mxu1  ;;  %v13091_v14 = vor.u32 %v14503_v4, %v13090_v63  ;;  %v13095_v15 = vor.u32 %v14247_v5, %v13092_v6  ;;  %v14252_v63 = vld [vmem:[%s15024_s24 + $0x42c] sm:$0xf]  ;;  %v14507_v6 = vld [vmem:[%s15024_s24 + $0xc1c] sm:$0x10] }
 0x409   : > { %v854_v55 = vld.sshfl [vmem:[#allocation1] sm:$0xff pattern:$0x73625140]  ;;  %v856_v59 = vld.sshfl [vmem:[#allocation1 + $0x10] sm:$0xff pattern:$0x73625140] }
 0x40a   : > { %v8022_v23 = vadd.f32 %v8021_v16, %v8009_v17  ;;  %v857_v60 = vld.sshfl [vmem:[#allocation1 + $0x18] sm:$0xff pattern:$0x73625140]  ;;  %v1940_v4 = vpack.c.bf16 %v854_v55, %v854_v55 }
 0x40f   : > { %v8010_v31 = vpop.f32.mrf.mxu2  ;;  %v8023_v32 = vpop.f32.mrf.mxu3 }
 0x410   : > { %v8034_v38 = vpop.f32.mrf.mxu0  ;;  %v8047_v39 = vpop.f32.mrf.mxu1  ;;  %v13116_v31 = vld [vmem:[%s15024_s24 + $0xc18] sm:$0x10]  ;;  %v13106_v32 = vld [vmem:[%s15024_s24 + $0x410] sm:$0xf] }
 0x411   : > { %v8035_v42 = vadd.f32 %v8034_v38, %v8022_v23  ;;  %v849_v23 = vld.sshfl [vmem:[#allocation1 + $0x28] sm:$0xff pattern:$0x73625140]  ;;  %v14249_v38 = vld [vmem:[%s15024_s24 + $0x414] sm:$0xf] }
 0x412   : > { %8449 = vmatmul.bf16.vlgmr.msrb.gmra.mxu0 %v1928_v33  ;;  %853 = vst [vmem:[#allocation1 + $0x20] ss:$4 sm:$0xff] %v340_v24  ;;  %v1937_v36 = vpack.c.bf16 %v849_v23, %v849_v23 }
 0x413   : > { %v8048_v47 = vadd.f32 %v8047_v39, %v8035_v42  ;;  %8462 = vmatmul.bf16.vlgmr.msrb.gmra.mxu1 %v1929_v34  ;;  %8552 = vmatpush.bf16.xpose.msrb.mxu0 %v13075_v45  ;;  %v13108_v39 = vld [vmem:[%s15024_s24 + $0xc10] sm:$0x10]  ;;  %v1938_v42 = vpack.c.bf16 %v850_v26, %v850_v26  ;;  %v13115_v45 = vor.u32 %v14506_v29, %v13114_v28  ;;  %v342_v26 = vld [vmem:[%s15017_s12 + $0x218] sm:$0xff] }
 0x414   : > { %8475 = vmatmul.bf16.vlgmr.msrb.gmra.mxu2 %v1930_v40  ;;  %8488 = vmatmul.bf16.vlgmr.msrb.gmra.mxu3 %v1931_v41 }
 0x415   : > { %8578 = vmatpush.bf16.xpose.msrb.mxu2 %v13083_v43  ;;  %8591 = vmatpush.bf16.xpose.msrb.mxu3 %v13087_v44  ;;  %v1939_v43 = vpack.c.bf16 %v851_v27, %v851_v27 }
 0x416   : > { %8565 = vmatpush.bf16.xpose.msrb.mxu1 %v13079_v46  ;;  %v13119_v46 = vor.u32 %v14250_v30, %v13116_v31  ;;  %v13146_v30 = vld [vmem:[%s15024_s24 + $0x438] sm:$0xf] }
 0x417   : > { %v8060_v48 = vpop.f32.mrf.mxu2  ;;  %v8073_v49 = vpop.f32.mrf.mxu3  ;;  %v14510_v31 = vld [vmem:[%s15024_s24 + $0xc34] sm:$0x10] }
 0x418   : > { %v8061_v50 = vadd.f32 %v8060_v48, %v8048_v47  ;;  %v8036_v51 = vpop.f32.mrf.mxu0  ;;  %v8049_v52 = vpop.f32.mrf.mxu1  ;;  %v13107_v47 = vor.u32 %v14505_v37, %v13106_v32  ;;  %v13111_v48 = vor.u32 %v14249_v38, %v13108_v39  ;;  %v14254_v32 = vld [vmem:[%s15024_s24 + $0x43c] sm:$0xf]  ;;  %v14509_v39 = vld [vmem:[%s15024_s24 + $0xc2c] sm:$0x10] }
 0x419   : > { %v858_v24 = vld.sshfl [vmem:[#allocation1 + $0x20] sm:$0xff pattern:$0x73625140]  ;;  %v860_v28 = vld.sshfl [vmem:[#allocation1 + $0x30] sm:$0xff pattern:$0x73625140] }
 0x41a   : > { %v8074_v56 = vadd.f32 %v8073_v49, %v8061_v50  ;;  %v861_v29 = vld.sshfl [vmem:[#allocation1 + $0x38] sm:$0xff pattern:$0x73625140]  ;;  %v1944_v37 = vpack.c.bf16 %v858_v24, %v858_v24 }
 0x41f   : > { %v8062_v0 = vpop.f32.mrf.mxu2  ;;  %v8075_v1 = vpop.f32.mrf.mxu3 }
 0x420   : > { %v8086_v7 = vpop.f32.mrf.mxu0  ;;  %v8099_v8 = vpop.f32.mrf.mxu1  ;;  %v13132_v0 = vld [vmem:[%s15024_s24 + $0xc28] sm:$0x10]  ;;  %v13122_v1 = vld [vmem:[%s15024_s24 + $0x420] sm:$0xf] }
 0x421   : > { %v8087_v11 = vadd.f32 %v8086_v7, %v8074_v56  ;;  %v855_v56 = vld.sshfl [vmem:[#allocation1 + $0x8] sm:$0xff pattern:$0x73625140] }
 0x422   : > { %8501 = vmatmul.bf16.vlgmr.msra.gmra.mxu0 %v1932_v2  ;;  %862 = vst [vmem:[#allocation1] ss:$4 sm:$0xff] %v341_v57  ;;  %v1941_v5 = vpack.c.bf16 %v855_v56, %v855_v56  ;;  %v14251_v7 = vld [vmem:[%s15024_s24 + $0x424] sm:$0xf] }
 0x423   : > { %v8100_v16 = vadd.f32 %v8099_v8, %v8087_v11  ;;  %8514 = vmatmul.bf16.vlgmr.msra.gmra.mxu1 %v1933_v3  ;;  %8604 = vmatpush.bf16.xpose.msra.mxu0 %v13091_v14  ;;  %v13124_v8 = vld [vmem:[%s15024_s24 + $0xc20] sm:$0x10]  ;;  %v1942_v11 = vpack.c.bf16 %v856_v59, %v856_v59  ;;  %v13131_v14 = vor.u32 %v14508_v62, %v13130_v61 }
 0x424   : > { %8527 = vmatmul.bf16.vlgmr.msra.gmra.mxu2 %v1934_v9  ;;  %8540 = vmatmul.bf16.vlgmr.msra.gmra.mxu3 %v1935_v10  ;;  %v343_v59 = vld [vmem:[%s15017_s12 + $0x220] sm:$0xff] }
 0x425   : > { %8630 = vmatpush.bf16.xpose.msra.mxu2 %v13099_v12  ;;  %8643 = vmatpush.bf16.xpose.msra.mxu3 %v13103_v13  ;;  %v1943_v12 = vpack.c.bf16 %v857_v60, %v857_v60 }
 0x426   : > { %8617 = vmatpush.bf16.xpose.msra.mxu1 %v13095_v15  ;;  %v13135_v15 = vor.u32 %v14252_v63, %v13132_v0  ;;  %v13162_v63 = vld [vmem:[%s15024_s24 + $0x448] sm:$0xf] }
 0x427   : > { %v8112_v17 = vpop.f32.mrf.mxu2  ;;  %v8125_v18 = vpop.f32.mrf.mxu3  ;;  %v14512_v0 = vld [vmem:[%s15024_s24 + $0xc44] sm:$0x10] }
 0x428   : > { %v8113_v19 = vadd.f32 %v8112_v17, %v8100_v16  ;;  %v8088_v20 = vpop.f32.mrf.mxu0  ;;  %v8101_v21 = vpop.f32.mrf.mxu1  ;;  %v13123_v16 = vor.u32 %v14507_v6, %v13122_v1  ;;  %v13127_v17 = vor.u32 %v14251_v7, %v13124_v8  ;;  %v14256_v1 = vld [vmem:[%s15024_s24 + $0x44c] sm:$0xf]  ;;  %v14511_v8 = vld [vmem:[%s15024_s24 + $0xc3c] sm:$0x10] }
 0x429   : > { %v864_v57 = vld.sshfl [vmem:[#allocation1] sm:$0xff pattern:$0x73625140]  ;;  %v866_v61 = vld.sshfl [vmem:[#allocation1 + $0x10] sm:$0xff pattern:$0x73625140] }
 0x42a   : > { %v8126_v25 = vadd.f32 %v8125_v18, %v8113_v19  ;;  %v867_v62 = vld.sshfl [vmem:[#allocation1 + $0x18] sm:$0xff pattern:$0x73625140]  ;;  %v1948_v6 = vpack.c.bf16 %v864_v57, %v864_v57 }
 0x42f   : > { %v8114_v33 = vpop.f32.mrf.mxu2  ;;  %v8127_v34 = vpop.f32.mrf.mxu3 }
 0x430   : > { %v8138_v40 = vpop.f32.mrf.mxu0  ;;  %v8151_v41 = vpop.f32.mrf.mxu1  ;;  %v13148_v33 = vld [vmem:[%s15024_s24 + $0xc38] sm:$0x10]  ;;  %v13138_v34 = vld [vmem:[%s15024_s24 + $0x430] sm:$0xf] }
 0x431   : > { %v8139_v44 = vadd.f32 %v8138_v40, %v8126_v25  ;;  %v859_v25 = vld.sshfl [vmem:[#allocation1 + $0x28] sm:$0xff pattern:$0x73625140]  ;;  %v14253_v40 = vld [vmem:[%s15024_s24 + $0x434] sm:$0xf] }
 0x432   : > { %8553 = vmatmul.bf16.vlgmr.msrb.gmra.mxu0 %v1936_v35  ;;  %863 = vst [vmem:[#allocation1 + $0x20] ss:$4 sm:$0xff] %v342_v26  ;;  %v1945_v38 = vpack.c.bf16 %v859_v25, %v859_v25 }
 0x433   : > { %v8152_v49 = vadd.f32 %v8151_v41, %v8139_v44  ;;  %8566 = vmatmul.bf16.vlgmr.msrb.gmra.mxu1 %v1937_v36  ;;  %8656 = vmatpush.bf16.xpose.msrb.mxu0 %v13107_v47  ;;  %v13140_v41 = vld [vmem:[%s15024_s24 + $0xc30] sm:$0x10]  ;;  %v1946_v44 = vpack.c.bf16 %v860_v28, %v860_v28  ;;  %v13147_v47 = vor.u32 %v14510_v31, %v13146_v30  ;;  %v344_v28 = vld [vmem:[%s15017_s12 + $0x228] sm:$0xff] }
 0x434   : > { %8579 = vmatmul.bf16.vlgmr.msrb.gmra.mxu2 %v1938_v42  ;;  %8592 = vmatmul.bf16.vlgmr.msrb.gmra.mxu3 %v1939_v43 }
 0x435   : > { %8682 = vmatpush.bf16.xpose.msrb.mxu2 %v13115_v45  ;;  %8695 = vmatpush.bf16.xpose.msrb.mxu3 %v13119_v46  ;;  %v1947_v45 = vpack.c.bf16 %v861_v29, %v861_v29 }
 0x436   : > { %8669 = vmatpush.bf16.xpose.msrb.mxu1 %v13111_v48  ;;  %v13151_v48 = vor.u32 %v14254_v32, %v13148_v33  ;;  %v13178_v32 = vld [vmem:[%s15024_s24 + $0x458] sm:$0xf] }
 0x437   : > { %v8164_v50 = vpop.f32.mrf.mxu2  ;;  %v8177_v51 = vpop.f32.mrf.mxu3  ;;  %v14514_v33 = vld [vmem:[%s15024_s24 + $0xc54] sm:$0x10] }
 0x438   : > { %v8165_v52 = vadd.f32 %v8164_v50, %v8152_v49  ;;  %v8140_v53 = vpop.f32.mrf.mxu0  ;;  %v8153_v54 = vpop.f32.mrf.mxu1  ;;  %v13139_v49 = vor.u32 %v14509_v39, %v13138_v34  ;;  %v13143_v50 = vor.u32 %v14253_v40, %v13140_v41  ;;  %v14258_v34 = vld [vmem:[%s15024_s24 + $0x45c] sm:$0xf]  ;;  %v14513_v41 = vld [vmem:[%s15024_s24 + $0xc4c] sm:$0x10] }
 0x439   : > { %v868_v26 = vld.sshfl [vmem:[#allocation1 + $0x20] sm:$0xff pattern:$0x73625140]  ;;  %v870_v30 = vld.sshfl [vmem:[#allocation1 + $0x30] sm:$0xff pattern:$0x73625140] }
 0x43a   : > { %v8178_v58 = vadd.f32 %v8177_v51, %v8165_v52  ;;  %v871_v31 = vld.sshfl [vmem:[#allocation1 + $0x38] sm:$0xff pattern:$0x73625140]  ;;  %v1952_v39 = vpack.c.bf16 %v868_v26, %v868_v26 }
 0x43f   : > { %v8166_v2 = vpop.f32.mrf.mxu2  ;;  %v8179_v3 = vpop.f32.mrf.mxu3 }
 0x440   : > { %v8190_v9 = vpop.f32.mrf.mxu0  ;;  %v8203_v10 = vpop.f32.mrf.mxu1  ;;  %v13164_v2 = vld [vmem:[%s15024_s24 + $0xc48] sm:$0x10]  ;;  %v13154_v3 = vld [vmem:[%s15024_s24 + $0x440] sm:$0xf] }
 0x441   : > { %v8191_v13 = vadd.f32 %v8190_v9, %v8178_v58  ;;  %v865_v58 = vld.sshfl [vmem:[#allocation1 + $0x8] sm:$0xff pattern:$0x73625140] }
 0x442   : > { %8605 = vmatmul.bf16.vlgmr.msra.gmra.mxu0 %v1940_v4  ;;  %872 = vst [vmem:[#allocation1] ss:$4 sm:$0xff] %v343_v59  ;;  %v1949_v7 = vpack.c.bf16 %v865_v58, %v865_v58  ;;  %v14255_v9 = vld [vmem:[%s15024_s24 + $0x444] sm:$0xf] }
 0x443   : > { %v8204_v18 = vadd.f32 %v8203_v10, %v8191_v13  ;;  %8618 = vmatmul.bf16.vlgmr.msra.gmra.mxu1 %v1941_v5  ;;  %8708 = vmatpush.bf16.xpose.msra.mxu0 %v13123_v16  ;;  %v13156_v10 = vld [vmem:[%s15024_s24 + $0xc40] sm:$0x10]  ;;  %v1950_v13 = vpack.c.bf16 %v866_v61, %v866_v61  ;;  %v13163_v16 = vor.u32 %v14512_v0, %v13162_v63  ;;  %v345_v61 = vld [vmem:[%s15017_s12 + $0x230] sm:$0xff] }
 0x444   : > { %8631 = vmatmul.bf16.vlgmr.msra.gmra.mxu2 %v1942_v11  ;;  %8644 = vmatmul.bf16.vlgmr.msra.gmra.mxu3 %v1943_v12 }
 0x445   : > { %8734 = vmatpush.bf16.xpose.msra.mxu2 %v13131_v14  ;;  %8747 = vmatpush.bf16.xpose.msra.mxu3 %v13135_v15  ;;  %v1951_v14 = vpack.c.bf16 %v867_v62, %v867_v62 }
 0x446   : > { %8721 = vmatpush.bf16.xpose.msra.mxu1 %v13127_v17  ;;  %v13167_v17 = vor.u32 %v14256_v1, %v13164_v2  ;;  %v13194_v1 = vld [vmem:[%s15024_s24 + $0x468] sm:$0xf] }
 0x447   : > { %v8216_v19 = vpop.f32.mrf.mxu2  ;;  %v8229_v20 = vpop.f32.mrf.mxu3  ;;  %v14516_v2 = vld [vmem:[%s15024_s24 + $0xc64] sm:$0x10] }
 0x448   : > { %v8217_v21 = vadd.f32 %v8216_v19, %v8204_v18  ;;  %v8192_v22 = vpop.f32.mrf.mxu0  ;;  %v8205_v23 = vpop.f32.mrf.mxu1  ;;  %v13155_v18 = vor.u32 %v14511_v8, %v13154_v3  ;;  %v13159_v19 = vor.u32 %v14255_v9, %v13156_v10  ;;  %v14260_v3 = vld [vmem:[%s15024_s24 + $0x46c] sm:$0xf]  ;;  %v14515_v10 = vld [vmem:[%s15024_s24 + $0xc5c] sm:$0x10] }
 0x449   : > { %v874_v59 = vld.sshfl [vmem:[#allocation1] sm:$0xff pattern:$0x73625140]  ;;  %v876_v63 = vld.sshfl [vmem:[#allocation1 + $0x10] sm:$0xff pattern:$0x73625140] }
 0x44a   : > { %v8230_v27 = vadd.f32 %v8229_v20, %v8217_v21  ;;  %v877_v0 = vld.sshfl [vmem:[#allocation1 + $0x18] sm:$0xff pattern:$0x73625140]  ;;  %v1956_v8 = vpack.c.bf16 %v874_v59, %v874_v59 }
 0x44f   : > { %v8218_v35 = vpop.f32.mrf.mxu2  ;;  %v8231_v36 = vpop.f32.mrf.mxu3 }
 0x450   : > { %v8242_v42 = vpop.f32.mrf.mxu0  ;;  %v8255_v43 = vpop.f32.mrf.mxu1  ;;  %v13180_v35 = vld [vmem:[%s15024_s24 + $0xc58] sm:$0x10]  ;;  %v13170_v36 = vld [vmem:[%s15024_s24 + $0x450] sm:$0xf] }
 0x451   : > { %v8243_v46 = vadd.f32 %v8242_v42, %v8230_v27  ;;  %v869_v27 = vld.sshfl [vmem:[#allocation1 + $0x28] sm:$0xff pattern:$0x73625140]  ;;  %v14257_v42 = vld [vmem:[%s15024_s24 + $0x454] sm:$0xf] }
 0x452   : > { %8657 = vmatmul.bf16.vlgmr.msrb.gmra.mxu0 %v1944_v37  ;;  %873 = vst [vmem:[#allocation1 + $0x20] ss:$4 sm:$0xff] %v344_v28  ;;  %v1953_v40 = vpack.c.bf16 %v869_v27, %v869_v27 }
 0x453   : > { %v8256_v51 = vadd.f32 %v8255_v43, %v8243_v46  ;;  %8670 = vmatmul.bf16.vlgmr.msrb.gmra.mxu1 %v1945_v38  ;;  %8760 = vmatpush.bf16.xpose.msrb.mxu0 %v13139_v49  ;;  %v13172_v43 = vld [vmem:[%s15024_s24 + $0xc50] sm:$0x10]  ;;  %v1954_v46 = vpack.c.bf16 %v870_v30, %v870_v30  ;;  %v13179_v49 = vor.u32 %v14514_v33, %v13178_v32  ;;  %v346_v30 = vld [vmem:[%s15017_s12 + $0x238] sm:$0xff] }
 0x454   : > { %8683 = vmatmul.bf16.vlgmr.msrb.gmra.mxu2 %v1946_v44  ;;  %8696 = vmatmul.bf16.vlgmr.msrb.gmra.mxu3 %v1947_v45 }
 0x455   : > { %8786 = vmatpush.bf16.xpose.msrb.mxu2 %v13147_v47  ;;  %8799 = vmatpush.bf16.xpose.msrb.mxu3 %v13151_v48  ;;  %v1955_v47 = vpack.c.bf16 %v871_v31, %v871_v31 }
 0x456   : > { %8773 = vmatpush.bf16.xpose.msrb.mxu1 %v13143_v50  ;;  %v13183_v50 = vor.u32 %v14258_v34, %v13180_v35  ;;  %v13210_v34 = vld [vmem:[%s15024_s24 + $0x478] sm:$0xf] }
 0x457   : > { %v8268_v52 = vpop.f32.mrf.mxu2  ;;  %v8281_v53 = vpop.f32.mrf.mxu3  ;;  %v14518_v35 = vld [vmem:[%s15024_s24 + $0xc74] sm:$0x10] }
 0x458   : > { %v8269_v54 = vadd.f32 %v8268_v52, %v8256_v51  ;;  %v8244_v55 = vpop.f32.mrf.mxu0  ;;  %v8257_v56 = vpop.f32.mrf.mxu1  ;;  %v13171_v51 = vor.u32 %v14513_v41, %v13170_v36  ;;  %v13175_v52 = vor.u32 %v14257_v42, %v13172_v43  ;;  %v14262_v36 = vld [vmem:[%s15024_s24 + $0x47c] sm:$0xf]  ;;  %v14517_v43 = vld [vmem:[%s15024_s24 + $0xc6c] sm:$0x10] }
 0x459   : > { %v878_v28 = vld.sshfl [vmem:[#allocation1 + $0x20] sm:$0xff pattern:$0x73625140]  ;;  %v880_v32 = vld.sshfl [vmem:[#allocation1 + $0x30] sm:$0xff pattern:$0x73625140] }
 0x45a   : > { %v8282_v60 = vadd.f32 %v8281_v53, %v8269_v54  ;;  %v881_v33 = vld.sshfl [vmem:[#allocation1 + $0x38] sm:$0xff pattern:$0x73625140]  ;;  %v1960_v41 = vpack.c.bf16 %v878_v28, %v878_v28 }
 0x45f   : > { %v8270_v4 = vpop.f32.mrf.mxu2  ;;  %v8283_v5 = vpop.f32.mrf.mxu3 }
 0x460   : > { %v8294_v11 = vpop.f32.mrf.mxu0  ;;  %v8307_v12 = vpop.f32.mrf.mxu1  ;;  %v13196_v4 = vld [vmem:[%s15024_s24 + $0xc68] sm:$0x10]  ;;  %v13186_v5 = vld [vmem:[%s15024_s24 + $0x460] sm:$0xf] }
 0x461   : > { %v8295_v15 = vadd.f32 %v8294_v11, %v8282_v60  ;;  %v875_v60 = vld.sshfl [vmem:[#allocation1 + $0x8] sm:$0xff pattern:$0x73625140] }
 0x462   : > { %8709 = vmatmul.bf16.vlgmr.msra.gmra.mxu0 %v1948_v6  ;;  %882 = vst [vmem:[#allocation1] ss:$4 sm:$0xff] %v345_v61  ;;  %v1957_v9 = vpack.c.bf16 %v875_v60, %v875_v60  ;;  %v14259_v11 = vld [vmem:[%s15024_s24 + $0x464] sm:$0xf] }
 0x463   : > { %v8308_v20 = vadd.f32 %v8307_v12, %v8295_v15  ;;  %8722 = vmatmul.bf16.vlgmr.msra.gmra.mxu1 %v1949_v7  ;;  %8812 = vmatpush.bf16.xpose.msra.mxu0 %v13155_v18  ;;  %v13188_v12 = vld [vmem:[%s15024_s24 + $0xc60] sm:$0x10]  ;;  %v1958_v15 = vpack.c.bf16 %v876_v63, %v876_v63  ;;  %v13195_v18 = vor.u32 %v14516_v2, %v13194_v1 }
 0x464   : > { %8735 = vmatmul.bf16.vlgmr.msra.gmra.mxu2 %v1950_v13  ;;  %8748 = vmatmul.bf16.vlgmr.msra.gmra.mxu3 %v1951_v14  ;;  %v347_v63 = vld [vmem:[%s15017_s12 + $0x240] sm:$0xff] }
 0x465   : > { %8838 = vmatpush.bf16.xpose.msra.mxu2 %v13163_v16  ;;  %8851 = vmatpush.bf16.xpose.msra.mxu3 %v13167_v17  ;;  %v1959_v16 = vpack.c.bf16 %v877_v0, %v877_v0 }
 0x466   : > { %8825 = vmatpush.bf16.xpose.msra.mxu1 %v13159_v19  ;;  %v13199_v19 = vor.u32 %v14260_v3, %v13196_v4  ;;  %v13226_v3 = vld [vmem:[%s15024_s24 + $0x488] sm:$0xf] }
 0x467   : > { %v8320_v21 = vpop.f32.mrf.mxu2  ;;  %v8333_v22 = vpop.f32.mrf.mxu3  ;;  %v14520_v4 = vld [vmem:[%s15024_s24 + $0xc84] sm:$0x10] }
 0x468   : > { %v8321_v23 = vadd.f32 %v8320_v21, %v8308_v20  ;;  %v8296_v24 = vpop.f32.mrf.mxu0  ;;  %v8309_v25 = vpop.f32.mrf.mxu1  ;;  %v13187_v20 = vor.u32 %v14515_v10, %v13186_v5  ;;  %v13191_v21 = vor.u32 %v14259_v11, %v13188_v12  ;;  %v14264_v5 = vld [vmem:[%s15024_s24 + $0x48c] sm:$0xf]  ;;  %v14519_v12 = vld [vmem:[%s15024_s24 + $0xc7c] sm:$0x10] }
 0x469   : > { %v884_v61 = vld.sshfl [vmem:[#allocation1] sm:$0xff pattern:$0x73625140]  ;;  %v886_v1 = vld.sshfl [vmem:[#allocation1 + $0x10] sm:$0xff pattern:$0x73625140] }
 0x46a   : > { %v8334_v29 = vadd.f32 %v8333_v22, %v8321_v23  ;;  %v887_v2 = vld.sshfl [vmem:[#allocation1 + $0x18] sm:$0xff pattern:$0x73625140]  ;;  %v1964_v10 = vpack.c.bf16 %v884_v61, %v884_v61 }
 0x46f   : > { %v8322_v37 = vpop.f32.mrf.mxu2  ;;  %v8335_v38 = vpop.f32.mrf.mxu3 }
 0x470   : > { %v8346_v44 = vpop.f32.mrf.mxu0  ;;  %v8359_v45 = vpop.f32.mrf.mxu1  ;;  %v13212_v37 = vld [vmem:[%s15024_s24 + $0xc78] sm:$0x10]  ;;  %v13202_v38 = vld [vmem:[%s15024_s24 + $0x470] sm:$0xf] }
 0x471   : > { %v8347_v48 = vadd.f32 %v8346_v44, %v8334_v29  ;;  %v879_v29 = vld.sshfl [vmem:[#allocation1 + $0x28] sm:$0xff pattern:$0x73625140]  ;;  %v14261_v44 = vld [vmem:[%s15024_s24 + $0x474] sm:$0xf] }
 0x472   : > { %8761 = vmatmul.bf16.vlgmr.msrb.gmra.mxu0 %v1952_v39  ;;  %883 = vst [vmem:[#allocation1 + $0x20] ss:$4 sm:$0xff] %v346_v30  ;;  %v1961_v42 = vpack.c.bf16 %v879_v29, %v879_v29 }
 0x473   : > { %v8360_v53 = vadd.f32 %v8359_v45, %v8347_v48  ;;  %8774 = vmatmul.bf16.vlgmr.msrb.gmra.mxu1 %v1953_v40  ;;  %8864 = vmatpush.bf16.xpose.msrb.mxu0 %v13171_v51  ;;  %v13204_v45 = vld [vmem:[%s15024_s24 + $0xc70] sm:$0x10]  ;;  %v1962_v48 = vpack.c.bf16 %v880_v32, %v880_v32  ;;  %v13211_v51 = vor.u32 %v14518_v35, %v13210_v34  ;;  %v348_v32 = vld [vmem:[%s15017_s12 + $0x248] sm:$0xff] }
 0x474   : > { %8787 = vmatmul.bf16.vlgmr.msrb.gmra.mxu2 %v1954_v46  ;;  %8800 = vmatmul.bf16.vlgmr.msrb.gmra.mxu3 %v1955_v47 }
 0x475   : > { %8890 = vmatpush.bf16.xpose.msrb.mxu2 %v13179_v49  ;;  %8903 = vmatpush.bf16.xpose.msrb.mxu3 %v13183_v50  ;;  %v1963_v49 = vpack.c.bf16 %v881_v33, %v881_v33 }
 0x476   : > { %8877 = vmatpush.bf16.xpose.msrb.mxu1 %v13175_v52  ;;  %v13215_v52 = vor.u32 %v14262_v36, %v13212_v37  ;;  %v13242_v36 = vld [vmem:[%s15024_s24 + $0x498] sm:$0xf] }
 0x477   : > { %v8372_v54 = vpop.f32.mrf.mxu2  ;;  %v8385_v55 = vpop.f32.mrf.mxu3  ;;  %v14522_v37 = vld [vmem:[%s15024_s24 + $0xc94] sm:$0x10] }
 0x478   : > { %v8373_v56 = vadd.f32 %v8372_v54, %v8360_v53  ;;  %v8348_v57 = vpop.f32.mrf.mxu0  ;;  %v8361_v58 = vpop.f32.mrf.mxu1  ;;  %v13203_v53 = vor.u32 %v14517_v43, %v13202_v38  ;;  %v13207_v54 = vor.u32 %v14261_v44, %v13204_v45  ;;  %v14266_v38 = vld [vmem:[%s15024_s24 + $0x49c] sm:$0xf]  ;;  %v14521_v45 = vld [vmem:[%s15024_s24 + $0xc8c] sm:$0x10] }
 0x479   : > { %v888_v30 = vld.sshfl [vmem:[#allocation1 + $0x20] sm:$0xff pattern:$0x73625140]  ;;  %v890_v34 = vld.sshfl [vmem:[#allocation1 + $0x30] sm:$0xff pattern:$0x73625140] }
 0x47a   : > { %v8386_v62 = vadd.f32 %v8385_v55, %v8373_v56  ;;  %v891_v35 = vld.sshfl [vmem:[#allocation1 + $0x38] sm:$0xff pattern:$0x73625140]  ;;  %v1968_v43 = vpack.c.bf16 %v888_v30, %v888_v30 }
 0x47f   : > { %v8374_v6 = vpop.f32.mrf.mxu2  ;;  %v8387_v7 = vpop.f32.mrf.mxu3 }
 0x480   : > { %v8398_v13 = vpop.f32.mrf.mxu0  ;;  %v8411_v14 = vpop.f32.mrf.mxu1  ;;  %v13228_v6 = vld [vmem:[%s15024_s24 + $0xc88] sm:$0x10]  ;;  %v13218_v7 = vld [vmem:[%s15024_s24 + $0x480] sm:$0xf] }
 0x481   : > { %v8399_v17 = vadd.f32 %v8398_v13, %v8386_v62  ;;  %v885_v62 = vld.sshfl [vmem:[#allocation1 + $0x8] sm:$0xff pattern:$0x73625140] }
 0x482   : > { %8813 = vmatmul.bf16.vlgmr.msra.gmra.mxu0 %v1956_v8  ;;  %892 = vst [vmem:[#allocation1] ss:$4 sm:$0xff] %v347_v63  ;;  %v1965_v11 = vpack.c.bf16 %v885_v62, %v885_v62  ;;  %v14263_v13 = vld [vmem:[%s15024_s24 + $0x484] sm:$0xf] }
 0x483   : > { %v8412_v22 = vadd.f32 %v8411_v14, %v8399_v17  ;;  %8826 = vmatmul.bf16.vlgmr.msra.gmra.mxu1 %v1957_v9  ;;  %8916 = vmatpush.bf16.xpose.msra.mxu0 %v13187_v20  ;;  %v13220_v14 = vld [vmem:[%s15024_s24 + $0xc80] sm:$0x10]  ;;  %v1966_v17 = vpack.c.bf16 %v886_v1, %v886_v1  ;;  %v13227_v20 = vor.u32 %v14520_v4, %v13226_v3  ;;  %v349_v1 = vld [vmem:[%s15017_s12 + $0x250] sm:$0xff] }
 0x484   : > { %8839 = vmatmul.bf16.vlgmr.msra.gmra.mxu2 %v1958_v15  ;;  %8852 = vmatmul.bf16.vlgmr.msra.gmra.mxu3 %v1959_v16 }
 0x485   : > { %8942 = vmatpush.bf16.xpose.msra.mxu2 %v13195_v18  ;;  %8955 = vmatpush.bf16.xpose.msra.mxu3 %v13199_v19  ;;  %v1967_v18 = vpack.c.bf16 %v887_v2, %v887_v2 }
 0x486   : > { %8929 = vmatpush.bf16.xpose.msra.mxu1 %v13191_v21  ;;  %v13231_v21 = vor.u32 %v14264_v5, %v13228_v6  ;;  %v13258_v5 = vld [vmem:[%s15024_s24 + $0x4a8] sm:$0xf] }
 0x487   : > { %v8424_v23 = vpop.f32.mrf.mxu2  ;;  %v8437_v24 = vpop.f32.mrf.mxu3  ;;  %v14524_v6 = vld [vmem:[%s15024_s24 + $0xca4] sm:$0x10] }
 0x488   : > { %v8425_v25 = vadd.f32 %v8424_v23, %v8412_v22  ;;  %v8400_v26 = vpop.f32.mrf.mxu0  ;;  %v8413_v27 = vpop.f32.mrf.mxu1  ;;  %v13219_v22 = vor.u32 %v14519_v12, %v13218_v7  ;;  %v13223_v23 = vor.u32 %v14263_v13, %v13220_v14  ;;  %v14268_v7 = vld [vmem:[%s15024_s24 + $0x4ac] sm:$0xf]  ;;  %v14523_v14 = vld [vmem:[%s15024_s24 + $0xc9c] sm:$0x10] }
 0x489   : > { %v894_v63 = vld.sshfl [vmem:[#allocation1] sm:$0xff pattern:$0x73625140]  ;;  %v896_v3 = vld.sshfl [vmem:[#allocation1 + $0x10] sm:$0xff pattern:$0x73625140] }
 0x48a   : > { %v8438_v31 = vadd.f32 %v8437_v24, %v8425_v25  ;;  %v897_v4 = vld.sshfl [vmem:[#allocation1 + $0x18] sm:$0xff pattern:$0x73625140]  ;;  %v1972_v12 = vpack.c.bf16 %v894_v63, %v894_v63 }
 0x48f   : > { %v8426_v39 = vpop.f32.mrf.mxu2  ;;  %v8439_v40 = vpop.f32.mrf.mxu3 }
 0x490   : > { %v8450_v46 = vpop.f32.mrf.mxu0  ;;  %v8463_v47 = vpop.f32.mrf.mxu1  ;;  %v13244_v39 = vld [vmem:[%s15024_s24 + $0xc98] sm:$0x10]  ;;  %v13234_v40 = vld [vmem:[%s15024_s24 + $0x490] sm:$0xf] }
 0x491   : > { %v8451_v50 = vadd.f32 %v8450_v46, %v8438_v31  ;;  %v889_v31 = vld.sshfl [vmem:[#allocation1 + $0x28] sm:$0xff pattern:$0x73625140]  ;;  %v14265_v46 = vld [vmem:[%s15024_s24 + $0x494] sm:$0xf] }
 0x492   : > { %8865 = vmatmul.bf16.vlgmr.msrb.gmra.mxu0 %v1960_v41  ;;  %893 = vst [vmem:[#allocation1 + $0x20] ss:$4 sm:$0xff] %v348_v32  ;;  %v1969_v44 = vpack.c.bf16 %v889_v31, %v889_v31 }
 0x493   : > { %v8464_v55 = vadd.f32 %v8463_v47, %v8451_v50  ;;  %8878 = vmatmul.bf16.vlgmr.msrb.gmra.mxu1 %v1961_v42  ;;  %8968 = vmatpush.bf16.xpose.msrb.mxu0 %v13203_v53  ;;  %v13236_v47 = vld [vmem:[%s15024_s24 + $0xc90] sm:$0x10]  ;;  %v1970_v50 = vpack.c.bf16 %v890_v34, %v890_v34  ;;  %v13243_v53 = vor.u32 %v14522_v37, %v13242_v36  ;;  %v350_v34 = vld [vmem:[%s15017_s12 + $0x258] sm:$0xff] }
 0x494   : > { %8891 = vmatmul.bf16.vlgmr.msrb.gmra.mxu2 %v1962_v48  ;;  %8904 = vmatmul.bf16.vlgmr.msrb.gmra.mxu3 %v1963_v49 }
 0x495   : > { %8994 = vmatpush.bf16.xpose.msrb.mxu2 %v13211_v51  ;;  %9007 = vmatpush.bf16.xpose.msrb.mxu3 %v13215_v52  ;;  %v1971_v51 = vpack.c.bf16 %v891_v35, %v891_v35 }
 0x496   : > { %8981 = vmatpush.bf16.xpose.msrb.mxu1 %v13207_v54  ;;  %v13247_v54 = vor.u32 %v14266_v38, %v13244_v39  ;;  %v13274_v38 = vld [vmem:[%s15024_s24 + $0x4b8] sm:$0xf] }
 0x497   : > { %v8476_v56 = vpop.f32.mrf.mxu2  ;;  %v8489_v57 = vpop.f32.mrf.mxu3  ;;  %v14526_v39 = vld [vmem:[%s15024_s24 + $0xcb4] sm:$0x10] }
 0x498   : > { %v8477_v58 = vadd.f32 %v8476_v56, %v8464_v55  ;;  %v8452_v59 = vpop.f32.mrf.mxu0  ;;  %v8465_v60 = vpop.f32.mrf.mxu1  ;;  %v13235_v55 = vor.u32 %v14521_v45, %v13234_v40  ;;  %v13239_v56 = vor.u32 %v14265_v46, %v13236_v47  ;;  %v14270_v40 = vld [vmem:[%s15024_s24 + $0x4bc] sm:$0xf]  ;;  %v14525_v47 = vld [vmem:[%s15024_s24 + $0xcac] sm:$0x10] }
 0x499   : > { %v898_v32 = vld.sshfl [vmem:[#allocation1 + $0x20] sm:$0xff pattern:$0x73625140]  ;;  %v900_v36 = vld.sshfl [vmem:[#allocation1 + $0x30] sm:$0xff pattern:$0x73625140] }
 0x49a   : > { %v8490_v0 = vadd.f32 %v8489_v57, %v8477_v58  ;;  %v901_v37 = vld.sshfl [vmem:[#allocation1 + $0x38] sm:$0xff pattern:$0x73625140]  ;;  %v1976_v45 = vpack.c.bf16 %v898_v32, %v898_v32 }
 0x49f   : > { %v8478_v8 = vpop.f32.mrf.mxu2  ;;  %v8491_v9 = vpop.f32.mrf.mxu3 }
 0x4a0   : > { %v8502_v15 = vpop.f32.mrf.mxu0  ;;  %v8515_v16 = vpop.f32.mrf.mxu1  ;;  %v13260_v8 = vld [vmem:[%s15024_s24 + $0xca8] sm:$0x10]  ;;  %v13250_v9 = vld [vmem:[%s15024_s24 + $0x4a0] sm:$0xf] }
 0x4a1   : > { %v8503_v19 = vadd.f32 %v8502_v15, %v8490_v0  ;;  %v895_v0 = vld.sshfl [vmem:[#allocation1 + $0x8] sm:$0xff pattern:$0x73625140] }
 0x4a2   : > { %8917 = vmatmul.bf16.vlgmr.msra.gmra.mxu0 %v1964_v10  ;;  %902 = vst [vmem:[#allocation1] ss:$4 sm:$0xff] %v349_v1  ;;  %v1973_v13 = vpack.c.bf16 %v895_v0, %v895_v0  ;;  %v14267_v15 = vld [vmem:[%s15024_s24 + $0x4a4] sm:$0xf] }
 0x4a3   : > { %v8516_v24 = vadd.f32 %v8515_v16, %v8503_v19  ;;  %8930 = vmatmul.bf16.vlgmr.msra.gmra.mxu1 %v1965_v11  ;;  %9020 = vmatpush.bf16.xpose.msra.mxu0 %v13219_v22  ;;  %v13252_v16 = vld [vmem:[%s15024_s24 + $0xca0] sm:$0x10]  ;;  %v1974_v19 = vpack.c.bf16 %v896_v3, %v896_v3  ;;  %v13259_v22 = vor.u32 %v14524_v6, %v13258_v5 }
 0x4a4   : > { %8943 = vmatmul.bf16.vlgmr.msra.gmra.mxu2 %v1966_v17  ;;  %8956 = vmatmul.bf16.vlgmr.msra.gmra.mxu3 %v1967_v18  ;;  %v351_v3 = vld [vmem:[%s15017_s12 + $0x260] sm:$0xff] }
 0x4a5   : > { %9046 = vmatpush.bf16.xpose.msra.mxu2 %v13227_v20  ;;  %9059 = vmatpush.bf16.xpose.msra.mxu3 %v13231_v21  ;;  %v1975_v20 = vpack.c.bf16 %v897_v4, %v897_v4 }
 0x4a6   : > { %9033 = vmatpush.bf16.xpose.msra.mxu1 %v13223_v23  ;;  %v13263_v23 = vor.u32 %v14268_v7, %v13260_v8  ;;  %v13290_v7 = vld [vmem:[%s15024_s24 + $0x4c8] sm:$0xf] }
 0x4a7   : > { %v8528_v25 = vpop.f32.mrf.mxu2  ;;  %v8541_v26 = vpop.f32.mrf.mxu3  ;;  %v14528_v8 = vld [vmem:[%s15024_s24 + $0xcc4] sm:$0x10] }
 0x4a8   : > { %v8529_v27 = vadd.f32 %v8528_v25, %v8516_v24  ;;  %v8504_v28 = vpop.f32.mrf.mxu0  ;;  %v8517_v29 = vpop.f32.mrf.mxu1  ;;  %v13251_v24 = vor.u32 %v14523_v14, %v13250_v9  ;;  %v13255_v25 = vor.u32 %v14267_v15, %v13252_v16  ;;  %v14272_v9 = vld [vmem:[%s15024_s24 + $0x4cc] sm:$0xf]  ;;  %v14527_v16 = vld [vmem:[%s15024_s24 + $0xcbc] sm:$0x10] }
 0x4a9   : > { %v904_v1 = vld.sshfl [vmem:[#allocation1] sm:$0xff pattern:$0x73625140]  ;;  %v906_v5 = vld.sshfl [vmem:[#allocation1 + $0x10] sm:$0xff pattern:$0x73625140] }
 0x4aa   : > { %v8542_v33 = vadd.f32 %v8541_v26, %v8529_v27  ;;  %v907_v6 = vld.sshfl [vmem:[#allocation1 + $0x18] sm:$0xff pattern:$0x73625140]  ;;  %v1980_v14 = vpack.c.bf16 %v904_v1, %v904_v1 }
 0x4af   : > { %v8530_v41 = vpop.f32.mrf.mxu2  ;;  %v8543_v42 = vpop.f32.mrf.mxu3 }
 0x4b0   : > { %v8554_v48 = vpop.f32.mrf.mxu0  ;;  %v8567_v49 = vpop.f32.mrf.mxu1  ;;  %v13276_v41 = vld [vmem:[%s15024_s24 + $0xcb8] sm:$0x10]  ;;  %v13266_v42 = vld [vmem:[%s15024_s24 + $0x4b0] sm:$0xf] }
 0x4b1   : > { %v8555_v52 = vadd.f32 %v8554_v48, %v8542_v33  ;;  %v899_v33 = vld.sshfl [vmem:[#allocation1 + $0x28] sm:$0xff pattern:$0x73625140]  ;;  %v14269_v48 = vld [vmem:[%s15024_s24 + $0x4b4] sm:$0xf] }
 0x4b2   : > { %8969 = vmatmul.bf16.vlgmr.msrb.gmra.mxu0 %v1968_v43  ;;  %903 = vst [vmem:[#allocation1 + $0x20] ss:$4 sm:$0xff] %v350_v34  ;;  %v1977_v46 = vpack.c.bf16 %v899_v33, %v899_v33 }
 0x4b3   : > { %v8568_v57 = vadd.f32 %v8567_v49, %v8555_v52  ;;  %8982 = vmatmul.bf16.vlgmr.msrb.gmra.mxu1 %v1969_v44  ;;  %9072 = vmatpush.bf16.xpose.msrb.mxu0 %v13235_v55  ;;  %v13268_v49 = vld [vmem:[%s15024_s24 + $0xcb0] sm:$0x10]  ;;  %v1978_v52 = vpack.c.bf16 %v900_v36, %v900_v36  ;;  %v13275_v55 = vor.u32 %v14526_v39, %v13274_v38  ;;  %v352_v36 = vld [vmem:[%s15017_s12 + $0x268] sm:$0xff] }
 0x4b4   : > { %8995 = vmatmul.bf16.vlgmr.msrb.gmra.mxu2 %v1970_v50  ;;  %9008 = vmatmul.bf16.vlgmr.msrb.gmra.mxu3 %v1971_v51 }
 0x4b5   : > { %9098 = vmatpush.bf16.xpose.msrb.mxu2 %v13243_v53  ;;  %9111 = vmatpush.bf16.xpose.msrb.mxu3 %v13247_v54  ;;  %v1979_v53 = vpack.c.bf16 %v901_v37, %v901_v37 }
 0x4b6   : > { %9085 = vmatpush.bf16.xpose.msrb.mxu1 %v13239_v56  ;;  %v13279_v56 = vor.u32 %v14270_v40, %v13276_v41  ;;  %v13306_v40 = vld [vmem:[%s15024_s24 + $0x4d8] sm:$0xf] }
 0x4b7   : > { %v8580_v58 = vpop.f32.mrf.mxu2  ;;  %v8593_v59 = vpop.f32.mrf.mxu3  ;;  %v14530_v41 = vld [vmem:[%s15024_s24 + $0xcd4] sm:$0x10] }
 0x4b8   : > { %v8581_v60 = vadd.f32 %v8580_v58, %v8568_v57  ;;  %v8556_v61 = vpop.f32.mrf.mxu0  ;;  %v8569_v62 = vpop.f32.mrf.mxu1  ;;  %v13267_v57 = vor.u32 %v14525_v47, %v13266_v42  ;;  %v13271_v58 = vor.u32 %v14269_v48, %v13268_v49  ;;  %v14274_v42 = vld [vmem:[%s15024_s24 + $0x4dc] sm:$0xf]  ;;  %v14529_v49 = vld [vmem:[%s15024_s24 + $0xccc] sm:$0x10] }
 0x4b9   : > { %v908_v34 = vld.sshfl [vmem:[#allocation1 + $0x20] sm:$0xff pattern:$0x73625140]  ;;  %v910_v38 = vld.sshfl [vmem:[#allocation1 + $0x30] sm:$0xff pattern:$0x73625140] }
 0x4ba   : > { %v8594_v2 = vadd.f32 %v8593_v59, %v8581_v60  ;;  %v911_v39 = vld.sshfl [vmem:[#allocation1 + $0x38] sm:$0xff pattern:$0x73625140]  ;;  %v1984_v47 = vpack.c.bf16 %v908_v34, %v908_v34 }
 0x4bf   : > { %v8582_v10 = vpop.f32.mrf.mxu2  ;;  %v8595_v11 = vpop.f32.mrf.mxu3 }
 0x4c0   : > { %v8606_v17 = vpop.f32.mrf.mxu0  ;;  %v8619_v18 = vpop.f32.mrf.mxu1  ;;  %v13292_v10 = vld [vmem:[%s15024_s24 + $0xcc8] sm:$0x10]  ;;  %v13282_v11 = vld [vmem:[%s15024_s24 + $0x4c0] sm:$0xf] }
 0x4c1   : > { %v8607_v21 = vadd.f32 %v8606_v17, %v8594_v2  ;;  %v905_v2 = vld.sshfl [vmem:[#allocation1 + $0x8] sm:$0xff pattern:$0x73625140] }
 0x4c2   : > { %9021 = vmatmul.bf16.vlgmr.msra.gmra.mxu0 %v1972_v12  ;;  %912 = vst [vmem:[#allocation1] ss:$4 sm:$0xff] %v351_v3  ;;  %v1981_v15 = vpack.c.bf16 %v905_v2, %v905_v2  ;;  %v14271_v17 = vld [vmem:[%s15024_s24 + $0x4c4] sm:$0xf] }
 0x4c3   : > { %v8620_v26 = vadd.f32 %v8619_v18, %v8607_v21  ;;  %9034 = vmatmul.bf16.vlgmr.msra.gmra.mxu1 %v1973_v13  ;;  %9124 = vmatpush.bf16.xpose.msra.mxu0 %v13251_v24  ;;  %v13284_v18 = vld [vmem:[%s15024_s24 + $0xcc0] sm:$0x10]  ;;  %v1982_v21 = vpack.c.bf16 %v906_v5, %v906_v5  ;;  %v13291_v24 = vor.u32 %v14528_v8, %v13290_v7  ;;  %v353_v5 = vld [vmem:[%s15017_s12 + $0x270] sm:$0xff] }
 0x4c4   : > { %9047 = vmatmul.bf16.vlgmr.msra.gmra.mxu2 %v1974_v19  ;;  %9060 = vmatmul.bf16.vlgmr.msra.gmra.mxu3 %v1975_v20 }
 0x4c5   : > { %9150 = vmatpush.bf16.xpose.msra.mxu2 %v13259_v22  ;;  %9163 = vmatpush.bf16.xpose.msra.mxu3 %v13263_v23  ;;  %v1983_v22 = vpack.c.bf16 %v907_v6, %v907_v6 }
 0x4c6   : > { %9137 = vmatpush.bf16.xpose.msra.mxu1 %v13255_v25  ;;  %v13295_v25 = vor.u32 %v14272_v9, %v13292_v10  ;;  %v13322_v9 = vld [vmem:[%s15024_s24 + $0x4e8] sm:$0xf] }
 0x4c7   : > { %v8632_v27 = vpop.f32.mrf.mxu2  ;;  %v8645_v28 = vpop.f32.mrf.mxu3  ;;  %v14532_v10 = vld [vmem:[%s15024_s24 + $0xce4] sm:$0x10] }
 0x4c8   : > { %v8633_v29 = vadd.f32 %v8632_v27, %v8620_v26  ;;  %v8608_v30 = vpop.f32.mrf.mxu0  ;;  %v8621_v31 = vpop.f32.mrf.mxu1  ;;  %v13283_v26 = vor.u32 %v14527_v16, %v13282_v11  ;;  %v13287_v27 = vor.u32 %v14271_v17, %v13284_v18  ;;  %v14276_v11 = vld [vmem:[%s15024_s24 + $0x4ec] sm:$0xf]  ;;  %v14531_v18 = vld [vmem:[%s15024_s24 + $0xcdc] sm:$0x10] }
 0x4c9   : > { %v914_v3 = vld.sshfl [vmem:[#allocation1] sm:$0xff pattern:$0x73625140]  ;;  %v916_v7 = vld.sshfl [vmem:[#allocation1 + $0x10] sm:$0xff pattern:$0x73625140] }
 0x4ca   : > { %v8646_v35 = vadd.f32 %v8645_v28, %v8633_v29  ;;  %v917_v8 = vld.sshfl [vmem:[#allocation1 + $0x18] sm:$0xff pattern:$0x73625140]  ;;  %v1988_v16 = vpack.c.bf16 %v914_v3, %v914_v3 }
 0x4cf   : > { %v8634_v43 = vpop.f32.mrf.mxu2  ;;  %v8647_v44 = vpop.f32.mrf.mxu3 }
 0x4d0   : > { %v8658_v50 = vpop.f32.mrf.mxu0  ;;  %v8671_v51 = vpop.f32.mrf.mxu1  ;;  %v13308_v43 = vld [vmem:[%s15024_s24 + $0xcd8] sm:$0x10]  ;;  %v13298_v44 = vld [vmem:[%s15024_s24 + $0x4d0] sm:$0xf] }
 0x4d1   : > { %v8659_v54 = vadd.f32 %v8658_v50, %v8646_v35  ;;  %v909_v35 = vld.sshfl [vmem:[#allocation1 + $0x28] sm:$0xff pattern:$0x73625140]  ;;  %v14273_v50 = vld [vmem:[%s15024_s24 + $0x4d4] sm:$0xf] }
 0x4d2   : > { %9073 = vmatmul.bf16.vlgmr.msrb.gmra.mxu0 %v1976_v45  ;;  %913 = vst [vmem:[#allocation1 + $0x20] ss:$4 sm:$0xff] %v352_v36  ;;  %v1985_v48 = vpack.c.bf16 %v909_v35, %v909_v35 }
 0x4d3   : > { %v8672_v59 = vadd.f32 %v8671_v51, %v8659_v54  ;;  %9086 = vmatmul.bf16.vlgmr.msrb.gmra.mxu1 %v1977_v46  ;;  %9176 = vmatpush.bf16.xpose.msrb.mxu0 %v13267_v57  ;;  %v13300_v51 = vld [vmem:[%s15024_s24 + $0xcd0] sm:$0x10]  ;;  %v1986_v54 = vpack.c.bf16 %v910_v38, %v910_v38  ;;  %v13307_v57 = vor.u32 %v14530_v41, %v13306_v40  ;;  %v354_v38 = vld [vmem:[%s15017_s12 + $0x278] sm:$0xff] }
 0x4d4   : > { %9099 = vmatmul.bf16.vlgmr.msrb.gmra.mxu2 %v1978_v52  ;;  %9112 = vmatmul.bf16.vlgmr.msrb.gmra.mxu3 %v1979_v53 }
 0x4d5   : > { %9202 = vmatpush.bf16.xpose.msrb.mxu2 %v13275_v55  ;;  %9215 = vmatpush.bf16.xpose.msrb.mxu3 %v13279_v56  ;;  %v1987_v55 = vpack.c.bf16 %v911_v39, %v911_v39 }
 0x4d6   : > { %9189 = vmatpush.bf16.xpose.msrb.mxu1 %v13271_v58  ;;  %v13311_v58 = vor.u32 %v14274_v42, %v13308_v43  ;;  %v13338_v42 = vld [vmem:[%s15024_s24 + $0x4f8] sm:$0xf] }
 0x4d7   : > { %v8684_v60 = vpop.f32.mrf.mxu2  ;;  %v8697_v61 = vpop.f32.mrf.mxu3  ;;  %v14534_v43 = vld [vmem:[%s15024_s24 + $0xcf4] sm:$0x10] }
 0x4d8   : > { %v8685_v62 = vadd.f32 %v8684_v60, %v8672_v59  ;;  %v8660_v63 = vpop.f32.mrf.mxu0  ;;  %v8673_v0 = vpop.f32.mrf.mxu1  ;;  %v13299_v59 = vor.u32 %v14529_v49, %v13298_v44  ;;  %v13303_v60 = vor.u32 %v14273_v50, %v13300_v51  ;;  %v14278_v44 = vld [vmem:[%s15024_s24 + $0x4fc] sm:$0xf]  ;;  %v14533_v51 = vld [vmem:[%s15024_s24 + $0xcec] sm:$0x10] }
 0x4d9   : > { %v918_v36 = vld.sshfl [vmem:[#allocation1 + $0x20] sm:$0xff pattern:$0x73625140]  ;;  %v920_v40 = vld.sshfl [vmem:[#allocation1 + $0x30] sm:$0xff pattern:$0x73625140] }
 0x4da   : > { %v8698_v4 = vadd.f32 %v8697_v61, %v8685_v62  ;;  %v921_v41 = vld.sshfl [vmem:[#allocation1 + $0x38] sm:$0xff pattern:$0x73625140]  ;;  %v1992_v49 = vpack.c.bf16 %v918_v36, %v918_v36 }
 0x4df   : > { %v8686_v12 = vpop.f32.mrf.mxu2  ;;  %v8699_v13 = vpop.f32.mrf.mxu3 }
 0x4e0   : > { %v8710_v19 = vpop.f32.mrf.mxu0  ;;  %v8723_v20 = vpop.f32.mrf.mxu1  ;;  %v13324_v12 = vld [vmem:[%s15024_s24 + $0xce8] sm:$0x10]  ;;  %v13314_v13 = vld [vmem:[%s15024_s24 + $0x4e0] sm:$0xf] }
 0x4e1   : > { %v8711_v23 = vadd.f32 %v8710_v19, %v8698_v4  ;;  %v915_v4 = vld.sshfl [vmem:[#allocation1 + $0x8] sm:$0xff pattern:$0x73625140] }
 0x4e2   : > { %9125 = vmatmul.bf16.vlgmr.msra.gmra.mxu0 %v1980_v14  ;;  %922 = vst [vmem:[#allocation1] ss:$4 sm:$0xff] %v353_v5  ;;  %v1989_v17 = vpack.c.bf16 %v915_v4, %v915_v4  ;;  %v14275_v19 = vld [vmem:[%s15024_s24 + $0x4e4] sm:$0xf] }
 0x4e3   : > { %v8724_v28 = vadd.f32 %v8723_v20, %v8711_v23  ;;  %9138 = vmatmul.bf16.vlgmr.msra.gmra.mxu1 %v1981_v15  ;;  %9228 = vmatpush.bf16.xpose.msra.mxu0 %v13283_v26  ;;  %v13316_v20 = vld [vmem:[%s15024_s24 + $0xce0] sm:$0x10]  ;;  %v1990_v23 = vpack.c.bf16 %v916_v7, %v916_v7  ;;  %v13323_v26 = vor.u32 %v14532_v10, %v13322_v9 }
 0x4e4   : > { %9151 = vmatmul.bf16.vlgmr.msra.gmra.mxu2 %v1982_v21  ;;  %9164 = vmatmul.bf16.vlgmr.msra.gmra.mxu3 %v1983_v22  ;;  %v355_v7 = vld [vmem:[%s15017_s12 + $0x280] sm:$0xff] }
 0x4e5   : > { %9254 = vmatpush.bf16.xpose.msra.mxu2 %v13291_v24  ;;  %9267 = vmatpush.bf16.xpose.msra.mxu3 %v13295_v25  ;;  %v1991_v24 = vpack.c.bf16 %v917_v8, %v917_v8 }
 0x4e6   : > { %9241 = vmatpush.bf16.xpose.msra.mxu1 %v13287_v27  ;;  %v13327_v27 = vor.u32 %v14276_v11, %v13324_v12  ;;  %v13354_v11 = vld [vmem:[%s15024_s24 + $0x508] sm:$0xf] }
 0x4e7   : > { %v8736_v29 = vpop.f32.mrf.mxu2  ;;  %v8749_v30 = vpop.f32.mrf.mxu3  ;;  %v14536_v12 = vld [vmem:[%s15024_s24 + $0xd04] sm:$0x10] }
 0x4e8   : > { %v8737_v31 = vadd.f32 %v8736_v29, %v8724_v28  ;;  %v8712_v32 = vpop.f32.mrf.mxu0  ;;  %v8725_v33 = vpop.f32.mrf.mxu1  ;;  %v13315_v28 = vor.u32 %v14531_v18, %v13314_v13  ;;  %v13319_v29 = vor.u32 %v14275_v19, %v13316_v20  ;;  %v14280_v13 = vld [vmem:[%s15024_s24 + $0x50c] sm:$0xf]  ;;  %v14535_v20 = vld [vmem:[%s15024_s24 + $0xcfc] sm:$0x10] }
 0x4e9   : > { %v924_v5 = vld.sshfl [vmem:[#allocation1] sm:$0xff pattern:$0x73625140]  ;;  %v926_v9 = vld.sshfl [vmem:[#allocation1 + $0x10] sm:$0xff pattern:$0x73625140] }
 0x4ea   : > { %v8750_v37 = vadd.f32 %v8749_v30, %v8737_v31  ;;  %v927_v10 = vld.sshfl [vmem:[#allocation1 + $0x18] sm:$0xff pattern:$0x73625140]  ;;  %v1996_v18 = vpack.c.bf16 %v924_v5, %v924_v5 }
 0x4ef   : > { %v8738_v45 = vpop.f32.mrf.mxu2  ;;  %v8751_v46 = vpop.f32.mrf.mxu3 }
 0x4f0   : > { %v8762_v52 = vpop.f32.mrf.mxu0  ;;  %v8775_v53 = vpop.f32.mrf.mxu1  ;;  %v13340_v45 = vld [vmem:[%s15024_s24 + $0xcf8] sm:$0x10]  ;;  %v13330_v46 = vld [vmem:[%s15024_s24 + $0x4f0] sm:$0xf] }
 0x4f1   : > { %v8763_v56 = vadd.f32 %v8762_v52, %v8750_v37  ;;  %v919_v37 = vld.sshfl [vmem:[#allocation1 + $0x28] sm:$0xff pattern:$0x73625140]  ;;  %v14277_v52 = vld [vmem:[%s15024_s24 + $0x4f4] sm:$0xf] }
 0x4f2   : > { %9177 = vmatmul.bf16.vlgmr.msrb.gmra.mxu0 %v1984_v47  ;;  %923 = vst [vmem:[#allocation1 + $0x20] ss:$4 sm:$0xff] %v354_v38  ;;  %v1993_v50 = vpack.c.bf16 %v919_v37, %v919_v37 }
 0x4f3   : > { %v8776_v61 = vadd.f32 %v8775_v53, %v8763_v56  ;;  %9190 = vmatmul.bf16.vlgmr.msrb.gmra.mxu1 %v1985_v48  ;;  %9280 = vmatpush.bf16.xpose.msrb.mxu0 %v13299_v59  ;;  %v13332_v53 = vld [vmem:[%s15024_s24 + $0xcf0] sm:$0x10]  ;;  %v1994_v56 = vpack.c.bf16 %v920_v40, %v920_v40  ;;  %v13339_v59 = vor.u32 %v14534_v43, %v13338_v42  ;;  %v356_v40 = vld [vmem:[%s15017_s12 + $0x288] sm:$0xff] }
 0x4f4   : > { %9203 = vmatmul.bf16.vlgmr.msrb.gmra.mxu2 %v1986_v54  ;;  %9216 = vmatmul.bf16.vlgmr.msrb.gmra.mxu3 %v1987_v55 }
 0x4f5   : > { %9306 = vmatpush.bf16.xpose.msrb.mxu2 %v13307_v57  ;;  %9319 = vmatpush.bf16.xpose.msrb.mxu3 %v13311_v58  ;;  %v1995_v57 = vpack.c.bf16 %v921_v41, %v921_v41 }
 0x4f6   : > { %9293 = vmatpush.bf16.xpose.msrb.mxu1 %v13303_v60  ;;  %v13343_v60 = vor.u32 %v14278_v44, %v13340_v45  ;;  %v13370_v44 = vld [vmem:[%s15024_s24 + $0x518] sm:$0xf] }
 0x4f7   : > { %v8788_v62 = vpop.f32.mrf.mxu2  ;;  %v8801_v63 = vpop.f32.mrf.mxu3  ;;  %v14538_v45 = vld [vmem:[%s15024_s24 + $0xd14] sm:$0x10] }
 0x4f8   : > { %v8789_v0 = vadd.f32 %v8788_v62, %v8776_v61  ;;  %v8764_v1 = vpop.f32.mrf.mxu0  ;;  %v8777_v2 = vpop.f32.mrf.mxu1  ;;  %v13331_v61 = vor.u32 %v14533_v51, %v13330_v46  ;;  %v13335_v62 = vor.u32 %v14277_v52, %v13332_v53  ;;  %v14282_v46 = vld [vmem:[%s15024_s24 + $0x51c] sm:$0xf]  ;;  %v14537_v53 = vld [vmem:[%s15024_s24 + $0xd0c] sm:$0x10] }
 0x4f9   : > { %v928_v38 = vld.sshfl [vmem:[#allocation1 + $0x20] sm:$0xff pattern:$0x73625140]  ;;  %v930_v42 = vld.sshfl [vmem:[#allocation1 + $0x30] sm:$0xff pattern:$0x73625140] }
 0x4fa   : > { %v8802_v6 = vadd.f32 %v8801_v63, %v8789_v0  ;;  %v931_v43 = vld.sshfl [vmem:[#allocation1 + $0x38] sm:$0xff pattern:$0x73625140]  ;;  %v2000_v51 = vpack.c.bf16 %v928_v38, %v928_v38 }
 0x4ff   : > { %v8790_v14 = vpop.f32.mrf.mxu2  ;;  %v8803_v15 = vpop.f32.mrf.mxu3 }
 0x500   : > { %v8814_v21 = vpop.f32.mrf.mxu0  ;;  %v8827_v22 = vpop.f32.mrf.mxu1  ;;  %v13356_v14 = vld [vmem:[%s15024_s24 + $0xd08] sm:$0x10]  ;;  %v13346_v15 = vld [vmem:[%s15024_s24 + $0x500] sm:$0xf] }
 0x501   : > { %v8815_v25 = vadd.f32 %v8814_v21, %v8802_v6  ;;  %v925_v6 = vld.sshfl [vmem:[#allocation1 + $0x8] sm:$0xff pattern:$0x73625140] }
 0x502   : > { %9229 = vmatmul.bf16.vlgmr.msra.gmra.mxu0 %v1988_v16  ;;  %932 = vst [vmem:[#allocation1] ss:$4 sm:$0xff] %v355_v7  ;;  %v1997_v19 = vpack.c.bf16 %v925_v6, %v925_v6  ;;  %v14279_v21 = vld [vmem:[%s15024_s24 + $0x504] sm:$0xf] }
 0x503   : > { %v8828_v30 = vadd.f32 %v8827_v22, %v8815_v25  ;;  %9242 = vmatmul.bf16.vlgmr.msra.gmra.mxu1 %v1989_v17  ;;  %9332 = vmatpush.bf16.xpose.msra.mxu0 %v13315_v28  ;;  %v13348_v22 = vld [vmem:[%s15024_s24 + $0xd00] sm:$0x10]  ;;  %v1998_v25 = vpack.c.bf16 %v926_v9, %v926_v9  ;;  %v13355_v28 = vor.u32 %v14536_v12, %v13354_v11  ;;  %v357_v9 = vld [vmem:[%s15017_s12 + $0x290] sm:$0xff] }
 0x504   : > { %9255 = vmatmul.bf16.vlgmr.msra.gmra.mxu2 %v1990_v23  ;;  %9268 = vmatmul.bf16.vlgmr.msra.gmra.mxu3 %v1991_v24 }
 0x505   : > { %9358 = vmatpush.bf16.xpose.msra.mxu2 %v13323_v26  ;;  %9371 = vmatpush.bf16.xpose.msra.mxu3 %v13327_v27  ;;  %v1999_v26 = vpack.c.bf16 %v927_v10, %v927_v10 }
 0x506   : > { %9345 = vmatpush.bf16.xpose.msra.mxu1 %v13319_v29  ;;  %v13359_v29 = vor.u32 %v14280_v13, %v13356_v14  ;;  %v13386_v13 = vld [vmem:[%s15024_s24 + $0x528] sm:$0xf] }
 0x507   : > { %v8840_v31 = vpop.f32.mrf.mxu2  ;;  %v8853_v32 = vpop.f32.mrf.mxu3  ;;  %v14540_v14 = vld [vmem:[%s15024_s24 + $0xd24] sm:$0x10] }
 0x508   : > { %v8841_v33 = vadd.f32 %v8840_v31, %v8828_v30  ;;  %v8816_v34 = vpop.f32.mrf.mxu0  ;;  %v8829_v35 = vpop.f32.mrf.mxu1  ;;  %v13347_v30 = vor.u32 %v14535_v20, %v13346_v15  ;;  %v13351_v31 = vor.u32 %v14279_v21, %v13348_v22  ;;  %v14284_v15 = vld [vmem:[%s15024_s24 + $0x52c] sm:$0xf]  ;;  %v14539_v22 = vld [vmem:[%s15024_s24 + $0xd1c] sm:$0x10] }
 0x509   : > { %v934_v7 = vld.sshfl [vmem:[#allocation1] sm:$0xff pattern:$0x73625140]  ;;  %v936_v11 = vld.sshfl [vmem:[#allocation1 + $0x10] sm:$0xff pattern:$0x73625140] }
 0x50a   : > { %v8854_v39 = vadd.f32 %v8853_v32, %v8841_v33  ;;  %v937_v12 = vld.sshfl [vmem:[#allocation1 + $0x18] sm:$0xff pattern:$0x73625140]  ;;  %v2004_v20 = vpack.c.bf16 %v934_v7, %v934_v7 }
 0x50f   : > { %v8842_v47 = vpop.f32.mrf.mxu2  ;;  %v8855_v48 = vpop.f32.mrf.mxu3 }
 0x510   : > { %v8866_v54 = vpop.f32.mrf.mxu0  ;;  %v8879_v55 = vpop.f32.mrf.mxu1  ;;  %v13372_v47 = vld [vmem:[%s15024_s24 + $0xd18] sm:$0x10]  ;;  %v13362_v48 = vld [vmem:[%s15024_s24 + $0x510] sm:$0xf] }
 0x511   : > { %v8867_v58 = vadd.f32 %v8866_v54, %v8854_v39  ;;  %v929_v39 = vld.sshfl [vmem:[#allocation1 + $0x28] sm:$0xff pattern:$0x73625140]  ;;  %v14281_v54 = vld [vmem:[%s15024_s24 + $0x514] sm:$0xf] }
 0x512   : > { %9281 = vmatmul.bf16.vlgmr.msrb.gmra.mxu0 %v1992_v49  ;;  %933 = vst [vmem:[#allocation1 + $0x20] ss:$4 sm:$0xff] %v356_v40  ;;  %v2001_v52 = vpack.c.bf16 %v929_v39, %v929_v39 }
 0x513   : > { %v8880_v63 = vadd.f32 %v8879_v55, %v8867_v58  ;;  %9294 = vmatmul.bf16.vlgmr.msrb.gmra.mxu1 %v1993_v50  ;;  %9384 = vmatpush.bf16.xpose.msrb.mxu0 %v13331_v61  ;;  %v13364_v55 = vld [vmem:[%s15024_s24 + $0xd10] sm:$0x10]  ;;  %v2002_v58 = vpack.c.bf16 %v930_v42, %v930_v42  ;;  %v13371_v61 = vor.u32 %v14538_v45, %v13370_v44  ;;  %v358_v42 = vld [vmem:[%s15017_s12 + $0x298] sm:$0xff] }
 0x514   : > { %9307 = vmatmul.bf16.vlgmr.msrb.gmra.mxu2 %v1994_v56  ;;  %9320 = vmatmul.bf16.vlgmr.msrb.gmra.mxu3 %v1995_v57 }
 0x515   : > { %9410 = vmatpush.bf16.xpose.msrb.mxu2 %v13339_v59  ;;  %9423 = vmatpush.bf16.xpose.msrb.mxu3 %v13343_v60  ;;  %v2003_v59 = vpack.c.bf16 %v931_v43, %v931_v43 }
 0x516   : > { %9397 = vmatpush.bf16.xpose.msrb.mxu1 %v13335_v62  ;;  %v13375_v62 = vor.u32 %v14282_v46, %v13372_v47  ;;  %v13402_v46 = vld [vmem:[%s15024_s24 + $0x538] sm:$0xf] }
 0x517   : > { %v8892_v0 = vpop.f32.mrf.mxu2  ;;  %v8905_v1 = vpop.f32.mrf.mxu3  ;;  %v14542_v47 = vld [vmem:[%s15024_s24 + $0xd34] sm:$0x10] }
 0x518   : > { %v8893_v2 = vadd.f32 %v8892_v0, %v8880_v63  ;;  %v8868_v3 = vpop.f32.mrf.mxu0  ;;  %v8881_v4 = vpop.f32.mrf.mxu1  ;;  %v13363_v63 = vor.u32 %v14537_v53, %v13362_v48  ;;  %v13367_v0 = vor.u32 %v14281_v54, %v13364_v55  ;;  %v14286_v48 = vld [vmem:[%s15024_s24 + $0x53c] sm:$0xf]  ;;  %v14541_v55 = vld [vmem:[%s15024_s24 + $0xd2c] sm:$0x10] }
 0x519   : > { %v938_v40 = vld.sshfl [vmem:[#allocation1 + $0x20] sm:$0xff pattern:$0x73625140]  ;;  %v940_v44 = vld.sshfl [vmem:[#allocation1 + $0x30] sm:$0xff pattern:$0x73625140] }
 0x51a   : > { %v8906_v8 = vadd.f32 %v8905_v1, %v8893_v2  ;;  %v941_v45 = vld.sshfl [vmem:[#allocation1 + $0x38] sm:$0xff pattern:$0x73625140]  ;;  %v2008_v53 = vpack.c.bf16 %v938_v40, %v938_v40 }
 0x51f   : > { %v8894_v16 = vpop.f32.mrf.mxu2  ;;  %v8907_v17 = vpop.f32.mrf.mxu3 }
 0x520   : > { %v8918_v23 = vpop.f32.mrf.mxu0  ;;  %v8931_v24 = vpop.f32.mrf.mxu1  ;;  %v13388_v16 = vld [vmem:[%s15024_s24 + $0xd28] sm:$0x10]  ;;  %v13378_v17 = vld [vmem:[%s15024_s24 + $0x520] sm:$0xf] }
 0x521   : > { %v8919_v27 = vadd.f32 %v8918_v23, %v8906_v8  ;;  %v935_v8 = vld.sshfl [vmem:[#allocation1 + $0x8] sm:$0xff pattern:$0x73625140] }
 0x522   : > { %9333 = vmatmul.bf16.vlgmr.msra.gmra.mxu0 %v1996_v18  ;;  %942 = vst [vmem:[#allocation1] ss:$4 sm:$0xff] %v357_v9  ;;  %v2005_v21 = vpack.c.bf16 %v935_v8, %v935_v8  ;;  %v14283_v23 = vld [vmem:[%s15024_s24 + $0x524] sm:$0xf] }
 0x523   : > { %v8932_v32 = vadd.f32 %v8931_v24, %v8919_v27  ;;  %9346 = vmatmul.bf16.vlgmr.msra.gmra.mxu1 %v1997_v19  ;;  %9436 = vmatpush.bf16.xpose.msra.mxu0 %v13347_v30  ;;  %v13380_v24 = vld [vmem:[%s15024_s24 + $0xd20] sm:$0x10]  ;;  %v2006_v27 = vpack.c.bf16 %v936_v11, %v936_v11  ;;  %v13387_v30 = vor.u32 %v14540_v14, %v13386_v13 }
 0x524   : > { %9359 = vmatmul.bf16.vlgmr.msra.gmra.mxu2 %v1998_v25  ;;  %9372 = vmatmul.bf16.vlgmr.msra.gmra.mxu3 %v1999_v26  ;;  %v359_v11 = vld [vmem:[%s15017_s12 + $0x2a0] sm:$0xff] }
 0x525   : > { %9462 = vmatpush.bf16.xpose.msra.mxu2 %v13355_v28  ;;  %9475 = vmatpush.bf16.xpose.msra.mxu3 %v13359_v29  ;;  %v2007_v28 = vpack.c.bf16 %v937_v12, %v937_v12 }
 0x526   : > { %9449 = vmatpush.bf16.xpose.msra.mxu1 %v13351_v31  ;;  %v13391_v31 = vor.u32 %v14284_v15, %v13388_v16  ;;  %v13418_v15 = vld [vmem:[%s15024_s24 + $0x548] sm:$0xf] }
 0x527   : > { %v8944_v33 = vpop.f32.mrf.mxu2  ;;  %v8957_v34 = vpop.f32.mrf.mxu3  ;;  %v14544_v16 = vld [vmem:[%s15024_s24 + $0xd44] sm:$0x10] }
 0x528   : > { %v8945_v35 = vadd.f32 %v8944_v33, %v8932_v32  ;;  %v8920_v36 = vpop.f32.mrf.mxu0  ;;  %v8933_v37 = vpop.f32.mrf.mxu1  ;;  %v13379_v32 = vor.u32 %v14539_v22, %v13378_v17  ;;  %v13383_v33 = vor.u32 %v14283_v23, %v13380_v24  ;;  %v14288_v17 = vld [vmem:[%s15024_s24 + $0x54c] sm:$0xf]  ;;  %v14543_v24 = vld [vmem:[%s15024_s24 + $0xd3c] sm:$0x10] }
 0x529   : > { %v944_v9 = vld.sshfl [vmem:[#allocation1] sm:$0xff pattern:$0x73625140]  ;;  %v946_v13 = vld.sshfl [vmem:[#allocation1 + $0x10] sm:$0xff pattern:$0x73625140] }
 0x52a   : > { %v8958_v41 = vadd.f32 %v8957_v34, %v8945_v35  ;;  %v947_v14 = vld.sshfl [vmem:[#allocation1 + $0x18] sm:$0xff pattern:$0x73625140]  ;;  %v2012_v22 = vpack.c.bf16 %v944_v9, %v944_v9 }
 0x52f   : > { %v8946_v49 = vpop.f32.mrf.mxu2  ;;  %v8959_v50 = vpop.f32.mrf.mxu3 }
 0x530   : > { %v8970_v56 = vpop.f32.mrf.mxu0  ;;  %v8983_v57 = vpop.f32.mrf.mxu1  ;;  %v13404_v49 = vld [vmem:[%s15024_s24 + $0xd38] sm:$0x10]  ;;  %v13394_v50 = vld [vmem:[%s15024_s24 + $0x530] sm:$0xf] }
 0x531   : > { %v8971_v60 = vadd.f32 %v8970_v56, %v8958_v41  ;;  %v939_v41 = vld.sshfl [vmem:[#allocation1 + $0x28] sm:$0xff pattern:$0x73625140]  ;;  %v14285_v56 = vld [vmem:[%s15024_s24 + $0x534] sm:$0xf] }
 0x532   : > { %9385 = vmatmul.bf16.vlgmr.msrb.gmra.mxu0 %v2000_v51  ;;  %943 = vst [vmem:[#allocation1 + $0x20] ss:$4 sm:$0xff] %v358_v42  ;;  %v2009_v54 = vpack.c.bf16 %v939_v41, %v939_v41 }
 0x533   : > { %v8984_v1 = vadd.f32 %v8983_v57, %v8971_v60  ;;  %9398 = vmatmul.bf16.vlgmr.msrb.gmra.mxu1 %v2001_v52  ;;  %9488 = vmatpush.bf16.xpose.msrb.mxu0 %v13363_v63  ;;  %v13396_v57 = vld [vmem:[%s15024_s24 + $0xd30] sm:$0x10]  ;;  %v2010_v60 = vpack.c.bf16 %v940_v44, %v940_v44  ;;  %v13403_v63 = vor.u32 %v14542_v47, %v13402_v46  ;;  %v360_v44 = vld [vmem:[%s15017_s12 + $0x2a8] sm:$0xff] }
 0x534   : > { %9411 = vmatmul.bf16.vlgmr.msrb.gmra.mxu2 %v2002_v58  ;;  %9424 = vmatmul.bf16.vlgmr.msrb.gmra.mxu3 %v2003_v59 }
 0x535   : > { %9514 = vmatpush.bf16.xpose.msrb.mxu2 %v13371_v61  ;;  %9527 = vmatpush.bf16.xpose.msrb.mxu3 %v13375_v62  ;;  %v2011_v61 = vpack.c.bf16 %v941_v45, %v941_v45 }
 0x536   : > { %9501 = vmatpush.bf16.xpose.msrb.mxu1 %v13367_v0  ;;  %v13407_v0 = vor.u32 %v14286_v48, %v13404_v49  ;;  %v13434_v48 = vld [vmem:[%s15024_s24 + $0x558] sm:$0xf] }
 0x537   : > { %v8996_v2 = vpop.f32.mrf.mxu2  ;;  %v9009_v3 = vpop.f32.mrf.mxu3  ;;  %v14546_v49 = vld [vmem:[%s15024_s24 + $0xd54] sm:$0x10] }
 0x538   : > { %v8997_v4 = vadd.f32 %v8996_v2, %v8984_v1  ;;  %v8972_v5 = vpop.f32.mrf.mxu0  ;;  %v8985_v6 = vpop.f32.mrf.mxu1  ;;  %v13395_v1 = vor.u32 %v14541_v55, %v13394_v50  ;;  %v13399_v2 = vor.u32 %v14285_v56, %v13396_v57  ;;  %v14290_v50 = vld [vmem:[%s15024_s24 + $0x55c] sm:$0xf]  ;;  %v14545_v57 = vld [vmem:[%s15024_s24 + $0xd4c] sm:$0x10] }
 0x539   : > { %v948_v42 = vld.sshfl [vmem:[#allocation1 + $0x20] sm:$0xff pattern:$0x73625140]  ;;  %v950_v46 = vld.sshfl [vmem:[#allocation1 + $0x30] sm:$0xff pattern:$0x73625140] }
 0x53a   : > { %v9010_v10 = vadd.f32 %v9009_v3, %v8997_v4  ;;  %v951_v47 = vld.sshfl [vmem:[#allocation1 + $0x38] sm:$0xff pattern:$0x73625140]  ;;  %v2016_v55 = vpack.c.bf16 %v948_v42, %v948_v42 }
 0x53f   : > { %v8998_v18 = vpop.f32.mrf.mxu2  ;;  %v9011_v19 = vpop.f32.mrf.mxu3 }
 0x540   : > { %v9022_v25 = vpop.f32.mrf.mxu0  ;;  %v9035_v26 = vpop.f32.mrf.mxu1  ;;  %v13420_v18 = vld [vmem:[%s15024_s24 + $0xd48] sm:$0x10]  ;;  %v13410_v19 = vld [vmem:[%s15024_s24 + $0x540] sm:$0xf] }
 0x541   : > { %v9023_v29 = vadd.f32 %v9022_v25, %v9010_v10  ;;  %v945_v10 = vld.sshfl [vmem:[#allocation1 + $0x8] sm:$0xff pattern:$0x73625140] }
 0x542   : > { %9437 = vmatmul.bf16.vlgmr.msra.gmra.mxu0 %v2004_v20  ;;  %952 = vst [vmem:[#allocation1] ss:$4 sm:$0xff] %v359_v11  ;;  %v2013_v23 = vpack.c.bf16 %v945_v10, %v945_v10  ;;  %v14287_v25 = vld [vmem:[%s15024_s24 + $0x544] sm:$0xf] }
 0x543   : > { %v9036_v34 = vadd.f32 %v9035_v26, %v9023_v29  ;;  %9450 = vmatmul.bf16.vlgmr.msra.gmra.mxu1 %v2005_v21  ;;  %9540 = vmatpush.bf16.xpose.msra.mxu0 %v13379_v32  ;;  %v13412_v26 = vld [vmem:[%s15024_s24 + $0xd40] sm:$0x10]  ;;  %v2014_v29 = vpack.c.bf16 %v946_v13, %v946_v13  ;;  %v13419_v32 = vor.u32 %v14544_v16, %v13418_v15  ;;  %v361_v13 = vld [vmem:[%s15017_s12 + $0x2b0] sm:$0xff] }
 0x544   : > { %9463 = vmatmul.bf16.vlgmr.msra.gmra.mxu2 %v2006_v27  ;;  %9476 = vmatmul.bf16.vlgmr.msra.gmra.mxu3 %v2007_v28 }
 0x545   : > { %9566 = vmatpush.bf16.xpose.msra.mxu2 %v13387_v30  ;;  %9579 = vmatpush.bf16.xpose.msra.mxu3 %v13391_v31  ;;  %v2015_v30 = vpack.c.bf16 %v947_v14, %v947_v14 }
 0x546   : > { %9553 = vmatpush.bf16.xpose.msra.mxu1 %v13383_v33  ;;  %v13423_v33 = vor.u32 %v14288_v17, %v13420_v18  ;;  %v13450_v17 = vld [vmem:[%s15024_s24 + $0x568] sm:$0xf] }
 0x547   : > { %v9048_v35 = vpop.f32.mrf.mxu2  ;;  %v9061_v36 = vpop.f32.mrf.mxu3  ;;  %v14548_v18 = vld [vmem:[%s15024_s24 + $0xd64] sm:$0x10] }
 0x548   : > { %v9049_v37 = vadd.f32 %v9048_v35, %v9036_v34  ;;  %v9024_v38 = vpop.f32.mrf.mxu0  ;;  %v9037_v39 = vpop.f32.mrf.mxu1  ;;  %v13411_v34 = vor.u32 %v14543_v24, %v13410_v19  ;;  %v13415_v35 = vor.u32 %v14287_v25, %v13412_v26  ;;  %v14292_v19 = vld [vmem:[%s15024_s24 + $0x56c] sm:$0xf]  ;;  %v14547_v26 = vld [vmem:[%s15024_s24 + $0xd5c] sm:$0x10] }
 0x549   : > { %v954_v11 = vld.sshfl [vmem:[#allocation1] sm:$0xff pattern:$0x73625140]  ;;  %v956_v15 = vld.sshfl [vmem:[#allocation1 + $0x10] sm:$0xff pattern:$0x73625140] }
 0x54a   : > { %v9062_v43 = vadd.f32 %v9061_v36, %v9049_v37  ;;  %v957_v16 = vld.sshfl [vmem:[#allocation1 + $0x18] sm:$0xff pattern:$0x73625140]  ;;  %v2020_v24 = vpack.c.bf16 %v954_v11, %v954_v11 }
 0x54f   : > { %v9050_v51 = vpop.f32.mrf.mxu2  ;;  %v9063_v52 = vpop.f32.mrf.mxu3 }
 0x550   : > { %v9074_v58 = vpop.f32.mrf.mxu0  ;;  %v9087_v59 = vpop.f32.mrf.mxu1  ;;  %v13436_v51 = vld [vmem:[%s15024_s24 + $0xd58] sm:$0x10]  ;;  %v13426_v52 = vld [vmem:[%s15024_s24 + $0x550] sm:$0xf] }
 0x551   : > { %v9075_v62 = vadd.f32 %v9074_v58, %v9062_v43  ;;  %v949_v43 = vld.sshfl [vmem:[#allocation1 + $0x28] sm:$0xff pattern:$0x73625140]  ;;  %v14289_v58 = vld [vmem:[%s15024_s24 + $0x554] sm:$0xf] }
 0x552   : > { %9489 = vmatmul.bf16.vlgmr.msrb.gmra.mxu0 %v2008_v53  ;;  %953 = vst [vmem:[#allocation1 + $0x20] ss:$4 sm:$0xff] %v360_v44  ;;  %v2017_v56 = vpack.c.bf16 %v949_v43, %v949_v43 }
 0x553   : > { %v9088_v3 = vadd.f32 %v9087_v59, %v9075_v62  ;;  %9502 = vmatmul.bf16.vlgmr.msrb.gmra.mxu1 %v2009_v54  ;;  %9592 = vmatpush.bf16.xpose.msrb.mxu0 %v13395_v1  ;;  %v13428_v59 = vld [vmem:[%s15024_s24 + $0xd50] sm:$0x10]  ;;  %v2018_v62 = vpack.c.bf16 %v950_v46, %v950_v46  ;;  %v13435_v1 = vor.u32 %v14546_v49, %v13434_v48  ;;  %v362_v46 = vld [vmem:[%s15017_s12 + $0x2b8] sm:$0xff] }
 0x554   : > { %9515 = vmatmul.bf16.vlgmr.msrb.gmra.mxu2 %v2010_v60  ;;  %9528 = vmatmul.bf16.vlgmr.msrb.gmra.mxu3 %v2011_v61 }
 0x555   : > { %9618 = vmatpush.bf16.xpose.msrb.mxu2 %v13403_v63  ;;  %9631 = vmatpush.bf16.xpose.msrb.mxu3 %v13407_v0  ;;  %v2019_v63 = vpack.c.bf16 %v951_v47, %v951_v47 }
 0x556   : > { %9605 = vmatpush.bf16.xpose.msrb.mxu1 %v13399_v2  ;;  %v13439_v2 = vor.u32 %v14290_v50, %v13436_v51  ;;  %v13466_v50 = vld [vmem:[%s15024_s24 + $0x578] sm:$0xf] }
 0x557   : > { %v9100_v4 = vpop.f32.mrf.mxu2  ;;  %v9113_v5 = vpop.f32.mrf.mxu3  ;;  %v14550_v51 = vld [vmem:[%s15024_s24 + $0xd74] sm:$0x10] }
 0x558   : > { %v9101_v6 = vadd.f32 %v9100_v4, %v9088_v3  ;;  %v9076_v7 = vpop.f32.mrf.mxu0  ;;  %v9089_v8 = vpop.f32.mrf.mxu1  ;;  %v13427_v3 = vor.u32 %v14545_v57, %v13426_v52  ;;  %v13431_v4 = vor.u32 %v14289_v58, %v13428_v59  ;;  %v14294_v52 = vld [vmem:[%s15024_s24 + $0x57c] sm:$0xf]  ;;  %v14549_v59 = vld [vmem:[%s15024_s24 + $0xd6c] sm:$0x10] }
 0x559   : > { %v958_v44 = vld.sshfl [vmem:[#allocation1 + $0x20] sm:$0xff pattern:$0x73625140]  ;;  %v960_v48 = vld.sshfl [vmem:[#allocation1 + $0x30] sm:$0xff pattern:$0x73625140] }
 0x55a   : > { %v9114_v12 = vadd.f32 %v9113_v5, %v9101_v6  ;;  %v961_v49 = vld.sshfl [vmem:[#allocation1 + $0x38] sm:$0xff pattern:$0x73625140]  ;;  %v2024_v57 = vpack.c.bf16 %v958_v44, %v958_v44 }
 0x55f   : > { %v9102_v20 = vpop.f32.mrf.mxu2  ;;  %v9115_v21 = vpop.f32.mrf.mxu3 }
 0x560   : > { %v9126_v27 = vpop.f32.mrf.mxu0  ;;  %v9139_v28 = vpop.f32.mrf.mxu1  ;;  %v13452_v20 = vld [vmem:[%s15024_s24 + $0xd68] sm:$0x10]  ;;  %v13442_v21 = vld [vmem:[%s15024_s24 + $0x560] sm:$0xf] }
 0x561   : > { %v9127_v31 = vadd.f32 %v9126_v27, %v9114_v12  ;;  %v955_v12 = vld.sshfl [vmem:[#allocation1 + $0x8] sm:$0xff pattern:$0x73625140] }
 0x562   : > { %9541 = vmatmul.bf16.vlgmr.msra.gmra.mxu0 %v2012_v22  ;;  %962 = vst [vmem:[#allocation1] ss:$4 sm:$0xff] %v361_v13  ;;  %v2021_v25 = vpack.c.bf16 %v955_v12, %v955_v12  ;;  %v14291_v27 = vld [vmem:[%s15024_s24 + $0x564] sm:$0xf] }
 0x563   : > { %v9140_v36 = vadd.f32 %v9139_v28, %v9127_v31  ;;  %9554 = vmatmul.bf16.vlgmr.msra.gmra.mxu1 %v2013_v23  ;;  %9644 = vmatpush.bf16.xpose.msra.mxu0 %v13411_v34  ;;  %v13444_v28 = vld [vmem:[%s15024_s24 + $0xd60] sm:$0x10]  ;;  %v2022_v31 = vpack.c.bf16 %v956_v15, %v956_v15  ;;  %v13451_v34 = vor.u32 %v14548_v18, %v13450_v17 }
 0x564   : > { %9567 = vmatmul.bf16.vlgmr.msra.gmra.mxu2 %v2014_v29  ;;  %9580 = vmatmul.bf16.vlgmr.msra.gmra.mxu3 %v2015_v30  ;;  %v363_v15 = vld [vmem:[%s15017_s12 + $0x2c0] sm:$0xff] }
 0x565   : > { %9670 = vmatpush.bf16.xpose.msra.mxu2 %v13419_v32  ;;  %9683 = vmatpush.bf16.xpose.msra.mxu3 %v13423_v33  ;;  %v2023_v32 = vpack.c.bf16 %v957_v16, %v957_v16 }
 0x566   : > { %9657 = vmatpush.bf16.xpose.msra.mxu1 %v13415_v35  ;;  %v13455_v35 = vor.u32 %v14292_v19, %v13452_v20  ;;  %v13482_v19 = vld [vmem:[%s15024_s24 + $0x588] sm:$0xf] }
 0x567   : > { %v9152_v37 = vpop.f32.mrf.mxu2  ;;  %v9165_v38 = vpop.f32.mrf.mxu3  ;;  %v14552_v20 = vld [vmem:[%s15024_s24 + $0xd84] sm:$0x10] }
 0x568   : > { %v9153_v39 = vadd.f32 %v9152_v37, %v9140_v36  ;;  %v9128_v40 = vpop.f32.mrf.mxu0  ;;  %v9141_v41 = vpop.f32.mrf.mxu1  ;;  %v13443_v36 = vor.u32 %v14547_v26, %v13442_v21  ;;  %v13447_v37 = vor.u32 %v14291_v27, %v13444_v28  ;;  %v14296_v21 = vld [vmem:[%s15024_s24 + $0x58c] sm:$0xf]  ;;  %v14551_v28 = vld [vmem:[%s15024_s24 + $0xd7c] sm:$0x10] }
 0x569   : > { %v964_v13 = vld.sshfl [vmem:[#allocation1] sm:$0xff pattern:$0x73625140]  ;;  %v966_v17 = vld.sshfl [vmem:[#allocation1 + $0x10] sm:$0xff pattern:$0x73625140] }
 0x56a   : > { %v9166_v45 = vadd.f32 %v9165_v38, %v9153_v39  ;;  %v967_v18 = vld.sshfl [vmem:[#allocation1 + $0x18] sm:$0xff pattern:$0x73625140]  ;;  %v2028_v26 = vpack.c.bf16 %v964_v13, %v964_v13 }
 0x56f   : > { %v9154_v53 = vpop.f32.mrf.mxu2  ;;  %v9167_v54 = vpop.f32.mrf.mxu3 }
 0x570   : > { %v9178_v60 = vpop.f32.mrf.mxu0  ;;  %v9191_v61 = vpop.f32.mrf.mxu1  ;;  %v13468_v53 = vld [vmem:[%s15024_s24 + $0xd78] sm:$0x10]  ;;  %v13458_v54 = vld [vmem:[%s15024_s24 + $0x570] sm:$0xf] }
 0x571   : > { %v9179_v0 = vadd.f32 %v9178_v60, %v9166_v45  ;;  %v959_v45 = vld.sshfl [vmem:[#allocation1 + $0x28] sm:$0xff pattern:$0x73625140]  ;;  %v14293_v60 = vld [vmem:[%s15024_s24 + $0x574] sm:$0xf] }
 0x572   : > { %9593 = vmatmul.bf16.vlgmr.msrb.gmra.mxu0 %v2016_v55  ;;  %963 = vst [vmem:[#allocation1 + $0x20] ss:$4 sm:$0xff] %v362_v46  ;;  %v2025_v58 = vpack.c.bf16 %v959_v45, %v959_v45 }
 0x573   : > { %v9192_v5 = vadd.f32 %v9191_v61, %v9179_v0  ;;  %9606 = vmatmul.bf16.vlgmr.msrb.gmra.mxu1 %v2017_v56  ;;  %9696 = vmatpush.bf16.xpose.msrb.mxu0 %v13427_v3  ;;  %v13460_v61 = vld [vmem:[%s15024_s24 + $0xd70] sm:$0x10]  ;;  %v2026_v0 = vpack.c.bf16 %v960_v48, %v960_v48  ;;  %v13467_v3 = vor.u32 %v14550_v51, %v13466_v50  ;;  %v364_v48 = vld [vmem:[%s15017_s12 + $0x2c8] sm:$0xff] }
 0x574   : > { %9619 = vmatmul.bf16.vlgmr.msrb.gmra.mxu2 %v2018_v62  ;;  %9632 = vmatmul.bf16.vlgmr.msrb.gmra.mxu3 %v2019_v63 }
 0x575   : > { %9722 = vmatpush.bf16.xpose.msrb.mxu2 %v13435_v1  ;;  %9735 = vmatpush.bf16.xpose.msrb.mxu3 %v13439_v2  ;;  %v2027_v1 = vpack.c.bf16 %v961_v49, %v961_v49 }
 0x576   : > { %9709 = vmatpush.bf16.xpose.msrb.mxu1 %v13431_v4  ;;  %v13471_v4 = vor.u32 %v14294_v52, %v13468_v53  ;;  %v13498_v52 = vld [vmem:[%s15024_s24 + $0x598] sm:$0xf] }
 0x577   : > { %v9204_v6 = vpop.f32.mrf.mxu2  ;;  %v9217_v7 = vpop.f32.mrf.mxu3  ;;  %v14554_v53 = vld [vmem:[%s15024_s24 + $0xd94] sm:$0x10] }
 0x578   : > { %v9205_v8 = vadd.f32 %v9204_v6, %v9192_v5  ;;  %v9180_v9 = vpop.f32.mrf.mxu0  ;;  %v9193_v10 = vpop.f32.mrf.mxu1  ;;  %v13459_v5 = vor.u32 %v14549_v59, %v13458_v54  ;;  %v13463_v6 = vor.u32 %v14293_v60, %v13460_v61  ;;  %v14298_v54 = vld [vmem:[%s15024_s24 + $0x59c] sm:$0xf]  ;;  %v14553_v61 = vld [vmem:[%s15024_s24 + $0xd8c] sm:$0x10] }
 0x579   : > { %v968_v46 = vld.sshfl [vmem:[#allocation1 + $0x20] sm:$0xff pattern:$0x73625140]  ;;  %v970_v50 = vld.sshfl [vmem:[#allocation1 + $0x30] sm:$0xff pattern:$0x73625140] }
 0x57a   : > { %v9218_v14 = vadd.f32 %v9217_v7, %v9205_v8  ;;  %v971_v51 = vld.sshfl [vmem:[#allocation1 + $0x38] sm:$0xff pattern:$0x73625140]  ;;  %v2032_v59 = vpack.c.bf16 %v968_v46, %v968_v46 }
 0x57f   : > { %v9206_v22 = vpop.f32.mrf.mxu2  ;;  %v9219_v23 = vpop.f32.mrf.mxu3 }
 0x580   : > { %v9230_v29 = vpop.f32.mrf.mxu0  ;;  %v9243_v30 = vpop.f32.mrf.mxu1  ;;  %v13484_v22 = vld [vmem:[%s15024_s24 + $0xd88] sm:$0x10]  ;;  %v13474_v23 = vld [vmem:[%s15024_s24 + $0x580] sm:$0xf] }
 0x581   : > { %v9231_v33 = vadd.f32 %v9230_v29, %v9218_v14  ;;  %v965_v14 = vld.sshfl [vmem:[#allocation1 + $0x8] sm:$0xff pattern:$0x73625140] }
 0x582   : > { %9645 = vmatmul.bf16.vlgmr.msra.gmra.mxu0 %v2020_v24  ;;  %972 = vst [vmem:[#allocation1] ss:$4 sm:$0xff] %v363_v15  ;;  %v2029_v27 = vpack.c.bf16 %v965_v14, %v965_v14  ;;  %v14295_v29 = vld [vmem:[%s15024_s24 + $0x584] sm:$0xf] }
 0x583   : > { %v9244_v38 = vadd.f32 %v9243_v30, %v9231_v33  ;;  %9658 = vmatmul.bf16.vlgmr.msra.gmra.mxu1 %v2021_v25  ;;  %9748 = vmatpush.bf16.xpose.msra.mxu0 %v13443_v36  ;;  %v13476_v30 = vld [vmem:[%s15024_s24 + $0xd80] sm:$0x10]  ;;  %v2030_v33 = vpack.c.bf16 %v966_v17, %v966_v17  ;;  %v13483_v36 = vor.u32 %v14552_v20, %v13482_v19  ;;  %v365_v17 = vld [vmem:[%s15017_s12 + $0x2d0] sm:$0xff] }
 0x584   : > { %9671 = vmatmul.bf16.vlgmr.msra.gmra.mxu2 %v2022_v31  ;;  %9684 = vmatmul.bf16.vlgmr.msra.gmra.mxu3 %v2023_v32 }
 0x585   : > { %9774 = vmatpush.bf16.xpose.msra.mxu2 %v13451_v34  ;;  %9787 = vmatpush.bf16.xpose.msra.mxu3 %v13455_v35  ;;  %v2031_v34 = vpack.c.bf16 %v967_v18, %v967_v18 }
 0x586   : > { %9761 = vmatpush.bf16.xpose.msra.mxu1 %v13447_v37  ;;  %v13487_v37 = vor.u32 %v14296_v21, %v13484_v22  ;;  %v13514_v21 = vld [vmem:[%s15024_s24 + $0x5a8] sm:$0xf] }
 0x587   : > { %v9256_v39 = vpop.f32.mrf.mxu2  ;;  %v9269_v40 = vpop.f32.mrf.mxu3  ;;  %v14556_v22 = vld [vmem:[%s15024_s24 + $0xda4] sm:$0x10] }
 0x588   : > { %v9257_v41 = vadd.f32 %v9256_v39, %v9244_v38  ;;  %v9232_v42 = vpop.f32.mrf.mxu0  ;;  %v9245_v43 = vpop.f32.mrf.mxu1  ;;  %v13475_v38 = vor.u32 %v14551_v28, %v13474_v23  ;;  %v13479_v39 = vor.u32 %v14295_v29, %v13476_v30  ;;  %v14300_v23 = vld [vmem:[%s15024_s24 + $0x5ac] sm:$0xf]  ;;  %v14555_v30 = vld [vmem:[%s15024_s24 + $0xd9c] sm:$0x10] }
 0x589   : > { %v974_v15 = vld.sshfl [vmem:[#allocation1] sm:$0xff pattern:$0x73625140]  ;;  %v976_v19 = vld.sshfl [vmem:[#allocation1 + $0x10] sm:$0xff pattern:$0x73625140] }
 0x58a   : > { %v9270_v47 = vadd.f32 %v9269_v40, %v9257_v41  ;;  %v977_v20 = vld.sshfl [vmem:[#allocation1 + $0x18] sm:$0xff pattern:$0x73625140]  ;;  %v2036_v28 = vpack.c.bf16 %v974_v15, %v974_v15 }
 0x58f   : > { %v9258_v55 = vpop.f32.mrf.mxu2  ;;  %v9271_v56 = vpop.f32.mrf.mxu3 }
 0x590   : > { %v9282_v62 = vpop.f32.mrf.mxu0  ;;  %v9295_v63 = vpop.f32.mrf.mxu1  ;;  %v13500_v55 = vld [vmem:[%s15024_s24 + $0xd98] sm:$0x10]  ;;  %v13490_v56 = vld [vmem:[%s15024_s24 + $0x590] sm:$0xf] }
 0x591   : > { %v9283_v2 = vadd.f32 %v9282_v62, %v9270_v47  ;;  %v969_v47 = vld.sshfl [vmem:[#allocation1 + $0x28] sm:$0xff pattern:$0x73625140]  ;;  %v14297_v62 = vld [vmem:[%s15024_s24 + $0x594] sm:$0xf] }
 0x592   : > { %9697 = vmatmul.bf16.vlgmr.msrb.gmra.mxu0 %v2024_v57  ;;  %973 = vst [vmem:[#allocation1 + $0x20] ss:$4 sm:$0xff] %v364_v48  ;;  %v2033_v60 = vpack.c.bf16 %v969_v47, %v969_v47 }
 0x593   : > { %v9296_v7 = vadd.f32 %v9295_v63, %v9283_v2  ;;  %9710 = vmatmul.bf16.vlgmr.msrb.gmra.mxu1 %v2025_v58  ;;  %9800 = vmatpush.bf16.xpose.msrb.mxu0 %v13459_v5  ;;  %v13492_v63 = vld [vmem:[%s15024_s24 + $0xd90] sm:$0x10]  ;;  %v2034_v2 = vpack.c.bf16 %v970_v50, %v970_v50  ;;  %v13499_v5 = vor.u32 %v14554_v53, %v13498_v52  ;;  %v366_v50 = vld [vmem:[%s15017_s12 + $0x2d8] sm:$0xff] }
 0x594   : > { %9723 = vmatmul.bf16.vlgmr.msrb.gmra.mxu2 %v2026_v0  ;;  %9736 = vmatmul.bf16.vlgmr.msrb.gmra.mxu3 %v2027_v1 }
 0x595   : > { %9826 = vmatpush.bf16.xpose.msrb.mxu2 %v13467_v3  ;;  %9839 = vmatpush.bf16.xpose.msrb.mxu3 %v13471_v4  ;;  %v2035_v3 = vpack.c.bf16 %v971_v51, %v971_v51 }
 0x596   : > { %9813 = vmatpush.bf16.xpose.msrb.mxu1 %v13463_v6  ;;  %v13503_v6 = vor.u32 %v14298_v54, %v13500_v55  ;;  %v13530_v54 = vld [vmem:[%s15024_s24 + $0x5b8] sm:$0xf] }
 0x597   : > { %v9308_v8 = vpop.f32.mrf.mxu2  ;;  %v9321_v9 = vpop.f32.mrf.mxu3  ;;  %v14558_v55 = vld [vmem:[%s15024_s24 + $0xdb4] sm:$0x10] }
 0x598   : > { %v9309_v10 = vadd.f32 %v9308_v8, %v9296_v7  ;;  %v9284_v11 = vpop.f32.mrf.mxu0  ;;  %v9297_v12 = vpop.f32.mrf.mxu1  ;;  %v13491_v7 = vor.u32 %v14553_v61, %v13490_v56  ;;  %v13495_v8 = vor.u32 %v14297_v62, %v13492_v63  ;;  %v14302_v56 = vld [vmem:[%s15024_s24 + $0x5bc] sm:$0xf]  ;;  %v14557_v63 = vld [vmem:[%s15024_s24 + $0xdac] sm:$0x10] }
 0x599   : > { %v978_v48 = vld.sshfl [vmem:[#allocation1 + $0x20] sm:$0xff pattern:$0x73625140]  ;;  %v980_v52 = vld.sshfl [vmem:[#allocation1 + $0x30] sm:$0xff pattern:$0x73625140] }
 0x59a   : > { %v9322_v16 = vadd.f32 %v9321_v9, %v9309_v10  ;;  %v981_v53 = vld.sshfl [vmem:[#allocation1 + $0x38] sm:$0xff pattern:$0x73625140]  ;;  %v2040_v61 = vpack.c.bf16 %v978_v48, %v978_v48 }
 0x59f   : > { %v9310_v24 = vpop.f32.mrf.mxu2  ;;  %v9323_v25 = vpop.f32.mrf.mxu3 }
 0x5a0   : > { %v9334_v31 = vpop.f32.mrf.mxu0  ;;  %v9347_v32 = vpop.f32.mrf.mxu1  ;;  %v13516_v24 = vld [vmem:[%s15024_s24 + $0xda8] sm:$0x10]  ;;  %v13506_v25 = vld [vmem:[%s15024_s24 + $0x5a0] sm:$0xf] }
 0x5a1   : > { %v9335_v35 = vadd.f32 %v9334_v31, %v9322_v16  ;;  %v975_v16 = vld.sshfl [vmem:[#allocation1 + $0x8] sm:$0xff pattern:$0x73625140] }
 0x5a2   : > { %9749 = vmatmul.bf16.vlgmr.msra.gmra.mxu0 %v2028_v26  ;;  %982 = vst [vmem:[#allocation1] ss:$4 sm:$0xff] %v365_v17  ;;  %v2037_v29 = vpack.c.bf16 %v975_v16, %v975_v16  ;;  %v14299_v31 = vld [vmem:[%s15024_s24 + $0x5a4] sm:$0xf] }
 0x5a3   : > { %v9348_v40 = vadd.f32 %v9347_v32, %v9335_v35  ;;  %9762 = vmatmul.bf16.vlgmr.msra.gmra.mxu1 %v2029_v27  ;;  %9852 = vmatpush.bf16.xpose.msra.mxu0 %v13475_v38  ;;  %v13508_v32 = vld [vmem:[%s15024_s24 + $0xda0] sm:$0x10]  ;;  %v2038_v35 = vpack.c.bf16 %v976_v19, %v976_v19  ;;  %v13515_v38 = vor.u32 %v14556_v22, %v13514_v21 }
 0x5a4   : > { %9775 = vmatmul.bf16.vlgmr.msra.gmra.mxu2 %v2030_v33  ;;  %9788 = vmatmul.bf16.vlgmr.msra.gmra.mxu3 %v2031_v34  ;;  %v367_v19 = vld [vmem:[%s15017_s12 + $0x2e0] sm:$0xff] }
 0x5a5   : > { %9878 = vmatpush.bf16.xpose.msra.mxu2 %v13483_v36  ;;  %9891 = vmatpush.bf16.xpose.msra.mxu3 %v13487_v37  ;;  %v2039_v36 = vpack.c.bf16 %v977_v20, %v977_v20 }
 0x5a6   : > { %9865 = vmatpush.bf16.xpose.msra.mxu1 %v13479_v39  ;;  %v13519_v39 = vor.u32 %v14300_v23, %v13516_v24  ;;  %v13546_v23 = vld [vmem:[%s15024_s24 + $0x5c8] sm:$0xf] }
 0x5a7   : > { %v9360_v41 = vpop.f32.mrf.mxu2  ;;  %v9373_v42 = vpop.f32.mrf.mxu3  ;;  %v14560_v24 = vld [vmem:[%s15024_s24 + $0xdc4] sm:$0x10] }
 0x5a8   : > { %v9361_v43 = vadd.f32 %v9360_v41, %v9348_v40  ;;  %v9336_v44 = vpop.f32.mrf.mxu0  ;;  %v9349_v45 = vpop.f32.mrf.mxu1  ;;  %v13507_v40 = vor.u32 %v14555_v30, %v13506_v25  ;;  %v13511_v41 = vor.u32 %v14299_v31, %v13508_v32  ;;  %v14304_v25 = vld [vmem:[%s15024_s24 + $0x5cc] sm:$0xf]  ;;  %v14559_v32 = vld [vmem:[%s15024_s24 + $0xdbc] sm:$0x10] }
 0x5a9   : > { %v984_v17 = vld.sshfl [vmem:[#allocation1] sm:$0xff pattern:$0x73625140]  ;;  %v986_v21 = vld.sshfl [vmem:[#allocation1 + $0x10] sm:$0xff pattern:$0x73625140] }
 0x5aa   : > { %v9374_v49 = vadd.f32 %v9373_v42, %v9361_v43  ;;  %v987_v22 = vld.sshfl [vmem:[#allocation1 + $0x18] sm:$0xff pattern:$0x73625140]  ;;  %v2044_v30 = vpack.c.bf16 %v984_v17, %v984_v17 }
 0x5af   : > { %v9362_v57 = vpop.f32.mrf.mxu2  ;;  %v9375_v58 = vpop.f32.mrf.mxu3 }
 0x5b0   : > { %v9386_v0 = vpop.f32.mrf.mxu0  ;;  %v9399_v1 = vpop.f32.mrf.mxu1  ;;  %v13532_v57 = vld [vmem:[%s15024_s24 + $0xdb8] sm:$0x10]  ;;  %v13522_v58 = vld [vmem:[%s15024_s24 + $0x5b0] sm:$0xf] }
 0x5b1   : > { %v9387_v4 = vadd.f32 %v9386_v0, %v9374_v49  ;;  %v979_v49 = vld.sshfl [vmem:[#allocation1 + $0x28] sm:$0xff pattern:$0x73625140]  ;;  %v14301_v0 = vld [vmem:[%s15024_s24 + $0x5b4] sm:$0xf] }
 0x5b2   : > { %9801 = vmatmul.bf16.vlgmr.msrb.gmra.mxu0 %v2032_v59  ;;  %983 = vst [vmem:[#allocation1 + $0x20] ss:$4 sm:$0xff] %v366_v50  ;;  %v2041_v62 = vpack.c.bf16 %v979_v49, %v979_v49 }
 0x5b3   : > { %v9400_v9 = vadd.f32 %v9399_v1, %v9387_v4  ;;  %9814 = vmatmul.bf16.vlgmr.msrb.gmra.mxu1 %v2033_v60  ;;  %9904 = vmatpush.bf16.xpose.msrb.mxu0 %v13491_v7  ;;  %v13524_v1 = vld [vmem:[%s15024_s24 + $0xdb0] sm:$0x10]  ;;  %v2042_v4 = vpack.c.bf16 %v980_v52, %v980_v52  ;;  %v13531_v7 = vor.u32 %v14558_v55, %v13530_v54  ;;  %v368_v52 = vld [vmem:[%s15017_s12 + $0x2e8] sm:$0xff] }
 0x5b4   : > { %9827 = vmatmul.bf16.vlgmr.msrb.gmra.mxu2 %v2034_v2  ;;  %9840 = vmatmul.bf16.vlgmr.msrb.gmra.mxu3 %v2035_v3 }
 0x5b5   : > { %9930 = vmatpush.bf16.xpose.msrb.mxu2 %v13499_v5  ;;  %9943 = vmatpush.bf16.xpose.msrb.mxu3 %v13503_v6  ;;  %v2043_v5 = vpack.c.bf16 %v981_v53, %v981_v53 }
 0x5b6   : > { %9917 = vmatpush.bf16.xpose.msrb.mxu1 %v13495_v8  ;;  %v13535_v8 = vor.u32 %v14302_v56, %v13532_v57  ;;  %v13562_v56 = vld [vmem:[%s15024_s24 + $0x5d8] sm:$0xf] }
 0x5b7   : > { %v9412_v10 = vpop.f32.mrf.mxu2  ;;  %v9425_v11 = vpop.f32.mrf.mxu3  ;;  %v14562_v57 = vld [vmem:[%s15024_s24 + $0xdd4] sm:$0x10] }
 0x5b8   : > { %v9413_v12 = vadd.f32 %v9412_v10, %v9400_v9  ;;  %v9388_v13 = vpop.f32.mrf.mxu0  ;;  %v9401_v14 = vpop.f32.mrf.mxu1  ;;  %v13523_v9 = vor.u32 %v14557_v63, %v13522_v58  ;;  %v13527_v10 = vor.u32 %v14301_v0, %v13524_v1  ;;  %v14306_v58 = vld [vmem:[%s15024_s24 + $0x5dc] sm:$0xf]  ;;  %v14561_v1 = vld [vmem:[%s15024_s24 + $0xdcc] sm:$0x10] }
 0x5b9   : > { %v988_v50 = vld.sshfl [vmem:[#allocation1 + $0x20] sm:$0xff pattern:$0x73625140]  ;;  %v990_v54 = vld.sshfl [vmem:[#allocation1 + $0x30] sm:$0xff pattern:$0x73625140] }
 0x5ba   : > { %v9426_v18 = vadd.f32 %v9425_v11, %v9413_v12  ;;  %v991_v55 = vld.sshfl [vmem:[#allocation1 + $0x38] sm:$0xff pattern:$0x73625140]  ;;  %v2048_v63 = vpack.c.bf16 %v988_v50, %v988_v50 }
 0x5bf   : > { %v9414_v26 = vpop.f32.mrf.mxu2  ;;  %v9427_v27 = vpop.f32.mrf.mxu3 }
 0x5c0   : > { %v9438_v33 = vpop.f32.mrf.mxu0  ;;  %v9451_v34 = vpop.f32.mrf.mxu1  ;;  %v13548_v26 = vld [vmem:[%s15024_s24 + $0xdc8] sm:$0x10]  ;;  %v13538_v27 = vld [vmem:[%s15024_s24 + $0x5c0] sm:$0xf] }
 0x5c1   : > { %v9439_v37 = vadd.f32 %v9438_v33, %v9426_v18  ;;  %v985_v18 = vld.sshfl [vmem:[#allocation1 + $0x8] sm:$0xff pattern:$0x73625140] }
 0x5c2   : > { %9853 = vmatmul.bf16.vlgmr.msra.gmra.mxu0 %v2036_v28  ;;  %992 = vst [vmem:[#allocation1] ss:$4 sm:$0xff] %v367_v19  ;;  %v2045_v31 = vpack.c.bf16 %v985_v18, %v985_v18  ;;  %v14303_v33 = vld [vmem:[%s15024_s24 + $0x5c4] sm:$0xf] }
 0x5c3   : > { %v9452_v42 = vadd.f32 %v9451_v34, %v9439_v37  ;;  %9866 = vmatmul.bf16.vlgmr.msra.gmra.mxu1 %v2037_v29  ;;  %9956 = vmatpush.bf16.xpose.msra.mxu0 %v13507_v40  ;;  %v13540_v34 = vld [vmem:[%s15024_s24 + $0xdc0] sm:$0x10]  ;;  %v2046_v37 = vpack.c.bf16 %v986_v21, %v986_v21  ;;  %v13547_v40 = vor.u32 %v14560_v24, %v13546_v23  ;;  %v369_v21 = vld [vmem:[%s15017_s12 + $0x2f0] sm:$0xff] }
 0x5c4   : > { %9879 = vmatmul.bf16.vlgmr.msra.gmra.mxu2 %v2038_v35  ;;  %9892 = vmatmul.bf16.vlgmr.msra.gmra.mxu3 %v2039_v36 }
 0x5c5   : > { %9982 = vmatpush.bf16.xpose.msra.mxu2 %v13515_v38  ;;  %9995 = vmatpush.bf16.xpose.msra.mxu3 %v13519_v39  ;;  %v2047_v38 = vpack.c.bf16 %v987_v22, %v987_v22 }
 0x5c6   : > { %9969 = vmatpush.bf16.xpose.msra.mxu1 %v13511_v41  ;;  %v13551_v41 = vor.u32 %v14304_v25, %v13548_v26  ;;  %v13578_v25 = vld [vmem:[%s15024_s24 + $0x5e8] sm:$0xf] }
 0x5c7   : > { %v9464_v43 = vpop.f32.mrf.mxu2  ;;  %v9477_v44 = vpop.f32.mrf.mxu3  ;;  %v14564_v26 = vld [vmem:[%s15024_s24 + $0xde4] sm:$0x10] }
 0x5c8   : > { %v9465_v45 = vadd.f32 %v9464_v43, %v9452_v42  ;;  %v9440_v46 = vpop.f32.mrf.mxu0  ;;  %v9453_v47 = vpop.f32.mrf.mxu1  ;;  %v13539_v42 = vor.u32 %v14559_v32, %v13538_v27  ;;  %v13543_v43 = vor.u32 %v14303_v33, %v13540_v34  ;;  %v14308_v27 = vld [vmem:[%s15024_s24 + $0x5ec] sm:$0xf]  ;;  %v14563_v34 = vld [vmem:[%s15024_s24 + $0xddc] sm:$0x10] }
 0x5c9   : > { %v994_v19 = vld.sshfl [vmem:[#allocation1] sm:$0xff pattern:$0x73625140]  ;;  %v996_v23 = vld.sshfl [vmem:[#allocation1 + $0x10] sm:$0xff pattern:$0x73625140] }
 0x5ca   : > { %v9478_v51 = vadd.f32 %v9477_v44, %v9465_v45  ;;  %v997_v24 = vld.sshfl [vmem:[#allocation1 + $0x18] sm:$0xff pattern:$0x73625140]  ;;  %v2052_v32 = vpack.c.bf16 %v994_v19, %v994_v19 }
 0x5cf   : > { %v9466_v59 = vpop.f32.mrf.mxu2  ;;  %v9479_v60 = vpop.f32.mrf.mxu3 }
 0x5d0   : > { %v9490_v2 = vpop.f32.mrf.mxu0  ;;  %v9503_v3 = vpop.f32.mrf.mxu1  ;;  %v13564_v59 = vld [vmem:[%s15024_s24 + $0xdd8] sm:$0x10]  ;;  %v13554_v60 = vld [vmem:[%s15024_s24 + $0x5d0] sm:$0xf] }
 0x5d1   : > { %v9491_v6 = vadd.f32 %v9490_v2, %v9478_v51  ;;  %v989_v51 = vld.sshfl [vmem:[#allocation1 + $0x28] sm:$0xff pattern:$0x73625140]  ;;  %v14305_v2 = vld [vmem:[%s15024_s24 + $0x5d4] sm:$0xf] }
 0x5d2   : > { %9905 = vmatmul.bf16.vlgmr.msrb.gmra.mxu0 %v2040_v61  ;;  %993 = vst [vmem:[#allocation1 + $0x20] ss:$4 sm:$0xff] %v368_v52  ;;  %v2049_v0 = vpack.c.bf16 %v989_v51, %v989_v51 }
 0x5d3   : > { %v9504_v11 = vadd.f32 %v9503_v3, %v9491_v6  ;;  %9918 = vmatmul.bf16.vlgmr.msrb.gmra.mxu1 %v2041_v62  ;;  %10008 = vmatpush.bf16.xpose.msrb.mxu0 %v13523_v9  ;;  %v13556_v3 = vld [vmem:[%s15024_s24 + $0xdd0] sm:$0x10]  ;;  %v2050_v6 = vpack.c.bf16 %v990_v54, %v990_v54  ;;  %v13563_v9 = vor.u32 %v14562_v57, %v13562_v56  ;;  %v370_v54 = vld [vmem:[%s15017_s12 + $0x2f8] sm:$0xff] }
 0x5d4   : > { %9931 = vmatmul.bf16.vlgmr.msrb.gmra.mxu2 %v2042_v4  ;;  %9944 = vmatmul.bf16.vlgmr.msrb.gmra.mxu3 %v2043_v5 }
 0x5d5   : > { %10034 = vmatpush.bf16.xpose.msrb.mxu2 %v13531_v7  ;;  %10047 = vmatpush.bf16.xpose.msrb.mxu3 %v13535_v8  ;;  %v2051_v7 = vpack.c.bf16 %v991_v55, %v991_v55 }
 0x5d6   : > { %10021 = vmatpush.bf16.xpose.msrb.mxu1 %v13527_v10  ;;  %v13567_v10 = vor.u32 %v14306_v58, %v13564_v59  ;;  %v13594_v58 = vld [vmem:[%s15024_s24 + $0x5f8] sm:$0xf] }
 0x5d7   : > { %v9516_v12 = vpop.f32.mrf.mxu2  ;;  %v9529_v13 = vpop.f32.mrf.mxu3  ;;  %v14566_v59 = vld [vmem:[%s15024_s24 + $0xdf4] sm:$0x10] }
 0x5d8   : > { %v9517_v14 = vadd.f32 %v9516_v12, %v9504_v11  ;;  %v9492_v15 = vpop.f32.mrf.mxu0  ;;  %v9505_v16 = vpop.f32.mrf.mxu1  ;;  %v13555_v11 = vor.u32 %v14561_v1, %v13554_v60  ;;  %v13559_v12 = vor.u32 %v14305_v2, %v13556_v3  ;;  %v14310_v60 = vld [vmem:[%s15024_s24 + $0x5fc] sm:$0xf]  ;;  %v14565_v3 = vld [vmem:[%s15024_s24 + $0xdec] sm:$0x10] }
 0x5d9   : > { %v998_v52 = vld.sshfl [vmem:[#allocation1 + $0x20] sm:$0xff pattern:$0x73625140]  ;;  %v1000_v56 = vld.sshfl [vmem:[#allocation1 + $0x30] sm:$0xff pattern:$0x73625140] }
 0x5da   : > { %v9530_v20 = vadd.f32 %v9529_v13, %v9517_v14  ;;  %v1001_v57 = vld.sshfl [vmem:[#allocation1 + $0x38] sm:$0xff pattern:$0x73625140]  ;;  %v2056_v1 = vpack.c.bf16 %v998_v52, %v998_v52 }
 0x5df   : > { %v9518_v28 = vpop.f32.mrf.mxu2  ;;  %v9531_v29 = vpop.f32.mrf.mxu3 }
 0x5e0   : > { %v9542_v35 = vpop.f32.mrf.mxu0  ;;  %v9555_v36 = vpop.f32.mrf.mxu1  ;;  %v13580_v28 = vld [vmem:[%s15024_s24 + $0xde8] sm:$0x10]  ;;  %v13570_v29 = vld [vmem:[%s15024_s24 + $0x5e0] sm:$0xf] }
 0x5e1   : > { %v9543_v39 = vadd.f32 %v9542_v35, %v9530_v20  ;;  %v995_v20 = vld.sshfl [vmem:[#allocation1 + $0x8] sm:$0xff pattern:$0x73625140] }
 0x5e2   : > { %9957 = vmatmul.bf16.vlgmr.msra.gmra.mxu0 %v2044_v30  ;;  %1002 = vst [vmem:[#allocation1] ss:$4 sm:$0xff] %v369_v21  ;;  %v2053_v33 = vpack.c.bf16 %v995_v20, %v995_v20  ;;  %v14307_v35 = vld [vmem:[%s15024_s24 + $0x5e4] sm:$0xf] }
 0x5e3   : > { %v9556_v44 = vadd.f32 %v9555_v36, %v9543_v39  ;;  %9970 = vmatmul.bf16.vlgmr.msra.gmra.mxu1 %v2045_v31  ;;  %10060 = vmatpush.bf16.xpose.msra.mxu0 %v13539_v42  ;;  %v13572_v36 = vld [vmem:[%s15024_s24 + $0xde0] sm:$0x10]  ;;  %v2054_v39 = vpack.c.bf16 %v996_v23, %v996_v23  ;;  %v13579_v42 = vor.u32 %v14564_v26, %v13578_v25 }
 0x5e4   : > { %9983 = vmatmul.bf16.vlgmr.msra.gmra.mxu2 %v2046_v37  ;;  %9996 = vmatmul.bf16.vlgmr.msra.gmra.mxu3 %v2047_v38  ;;  %v371_v23 = vld [vmem:[%s15017_s12 + $0x300] sm:$0xff] }
 0x5e5   : > { %10086 = vmatpush.bf16.xpose.msra.mxu2 %v13547_v40  ;;  %10099 = vmatpush.bf16.xpose.msra.mxu3 %v13551_v41  ;;  %v2055_v40 = vpack.c.bf16 %v997_v24, %v997_v24 }
 0x5e6   : > { %10073 = vmatpush.bf16.xpose.msra.mxu1 %v13543_v43  ;;  %v13583_v43 = vor.u32 %v14308_v27, %v13580_v28  ;;  %v13610_v27 = vld [vmem:[%s15024_s24 + $0x608] sm:$0xf] }
 0x5e7   : > { %v9568_v45 = vpop.f32.mrf.mxu2  ;;  %v9581_v46 = vpop.f32.mrf.mxu3  ;;  %v14568_v28 = vld [vmem:[%s15024_s24 + $0xe04] sm:$0x10] }
 0x5e8   : > { %v9569_v47 = vadd.f32 %v9568_v45, %v9556_v44  ;;  %v9544_v48 = vpop.f32.mrf.mxu0  ;;  %v9557_v49 = vpop.f32.mrf.mxu1  ;;  %v13571_v44 = vor.u32 %v14563_v34, %v13570_v29  ;;  %v13575_v45 = vor.u32 %v14307_v35, %v13572_v36  ;;  %v14312_v29 = vld [vmem:[%s15024_s24 + $0x60c] sm:$0xf]  ;;  %v14567_v36 = vld [vmem:[%s15024_s24 + $0xdfc] sm:$0x10] }
 0x5e9   : > { %v1004_v21 = vld.sshfl [vmem:[#allocation1] sm:$0xff pattern:$0x73625140]  ;;  %v1006_v25 = vld.sshfl [vmem:[#allocation1 + $0x10] sm:$0xff pattern:$0x73625140] }
 0x5ea   : > { %v9582_v53 = vadd.f32 %v9581_v46, %v9569_v47  ;;  %v1007_v26 = vld.sshfl [vmem:[#allocation1 + $0x18] sm:$0xff pattern:$0x73625140]  ;;  %v2060_v34 = vpack.c.bf16 %v1004_v21, %v1004_v21 }
 0x5ef   : > { %v9570_v61 = vpop.f32.mrf.mxu2  ;;  %v9583_v62 = vpop.f32.mrf.mxu3 }
 0x5f0   : > { %v9594_v4 = vpop.f32.mrf.mxu0  ;;  %v9607_v5 = vpop.f32.mrf.mxu1  ;;  %v13596_v61 = vld [vmem:[%s15024_s24 + $0xdf8] sm:$0x10]  ;;  %v13586_v62 = vld [vmem:[%s15024_s24 + $0x5f0] sm:$0xf] }
 0x5f1   : > { %v9595_v8 = vadd.f32 %v9594_v4, %v9582_v53  ;;  %v999_v53 = vld.sshfl [vmem:[#allocation1 + $0x28] sm:$0xff pattern:$0x73625140]  ;;  %v14309_v4 = vld [vmem:[%s15024_s24 + $0x5f4] sm:$0xf] }
 0x5f2   : > { %10009 = vmatmul.bf16.vlgmr.msrb.gmra.mxu0 %v2048_v63  ;;  %1003 = vst [vmem:[#allocation1 + $0x20] ss:$4 sm:$0xff] %v370_v54  ;;  %v2057_v2 = vpack.c.bf16 %v999_v53, %v999_v53 }
 0x5f3   : > { %v9608_v13 = vadd.f32 %v9607_v5, %v9595_v8  ;;  %10022 = vmatmul.bf16.vlgmr.msrb.gmra.mxu1 %v2049_v0  ;;  %10112 = vmatpush.bf16.xpose.msrb.mxu0 %v13555_v11  ;;  %v13588_v5 = vld [vmem:[%s15024_s24 + $0xdf0] sm:$0x10]  ;;  %v2058_v8 = vpack.c.bf16 %v1000_v56, %v1000_v56  ;;  %v13595_v11 = vor.u32 %v14566_v59, %v13594_v58  ;;  %v372_v56 = vld [vmem:[%s15017_s12 + $0x308] sm:$0xff] }
 0x5f4   : > { %10035 = vmatmul.bf16.vlgmr.msrb.gmra.mxu2 %v2050_v6  ;;  %10048 = vmatmul.bf16.vlgmr.msrb.gmra.mxu3 %v2051_v7 }
 0x5f5   : > { %10138 = vmatpush.bf16.xpose.msrb.mxu2 %v13563_v9  ;;  %10151 = vmatpush.bf16.xpose.msrb.mxu3 %v13567_v10  ;;  %v2059_v9 = vpack.c.bf16 %v1001_v57, %v1001_v57 }
 0x5f6   : > { %10125 = vmatpush.bf16.xpose.msrb.mxu1 %v13559_v12  ;;  %v13599_v12 = vor.u32 %v14310_v60, %v13596_v61  ;;  %v13626_v60 = vld [vmem:[%s15024_s24 + $0x618] sm:$0xf] }
 0x5f7   : > { %v9620_v14 = vpop.f32.mrf.mxu2  ;;  %v9633_v15 = vpop.f32.mrf.mxu3  ;;  %v14570_v61 = vld [vmem:[%s15024_s24 + $0xe14] sm:$0x10] }
 0x5f8   : > { %v9621_v16 = vadd.f32 %v9620_v14, %v9608_v13  ;;  %v9596_v17 = vpop.f32.mrf.mxu0  ;;  %v9609_v18 = vpop.f32.mrf.mxu1  ;;  %v13587_v13 = vor.u32 %v14565_v3, %v13586_v62  ;;  %v13591_v14 = vor.u32 %v14309_v4, %v13588_v5  ;;  %v14314_v62 = vld [vmem:[%s15024_s24 + $0x61c] sm:$0xf]  ;;  %v14569_v5 = vld [vmem:[%s15024_s24 + $0xe0c] sm:$0x10] }
 0x5f9   : > { %v1008_v54 = vld.sshfl [vmem:[#allocation1 + $0x20] sm:$0xff pattern:$0x73625140]  ;;  %v1010_v58 = vld.sshfl [vmem:[#allocation1 + $0x30] sm:$0xff pattern:$0x73625140] }
 0x5fa   : > { %v9634_v22 = vadd.f32 %v9633_v15, %v9621_v16  ;;  %v1011_v59 = vld.sshfl [vmem:[#allocation1 + $0x38] sm:$0xff pattern:$0x73625140]  ;;  %v2064_v3 = vpack.c.bf16 %v1008_v54, %v1008_v54 }
 0x5ff   : > { %v9622_v30 = vpop.f32.mrf.mxu2  ;;  %v9635_v31 = vpop.f32.mrf.mxu3 }
 0x600   : > { %v9646_v37 = vpop.f32.mrf.mxu0  ;;  %v9659_v38 = vpop.f32.mrf.mxu1  ;;  %v13612_v30 = vld [vmem:[%s15024_s24 + $0xe08] sm:$0x10]  ;;  %v13602_v31 = vld [vmem:[%s15024_s24 + $0x600] sm:$0xf] }
 0x601   : > { %v9647_v41 = vadd.f32 %v9646_v37, %v9634_v22  ;;  %v1005_v22 = vld.sshfl [vmem:[#allocation1 + $0x8] sm:$0xff pattern:$0x73625140] }
 0x602   : > { %10061 = vmatmul.bf16.vlgmr.msra.gmra.mxu0 %v2052_v32  ;;  %1012 = vst [vmem:[#allocation1] ss:$4 sm:$0xff] %v371_v23  ;;  %v2061_v35 = vpack.c.bf16 %v1005_v22, %v1005_v22  ;;  %v14311_v37 = vld [vmem:[%s15024_s24 + $0x604] sm:$0xf] }
 0x603   : > { %v9660_v46 = vadd.f32 %v9659_v38, %v9647_v41  ;;  %10074 = vmatmul.bf16.vlgmr.msra.gmra.mxu1 %v2053_v33  ;;  %10164 = vmatpush.bf16.xpose.msra.mxu0 %v13571_v44  ;;  %v13604_v38 = vld [vmem:[%s15024_s24 + $0xe00] sm:$0x10]  ;;  %v2062_v41 = vpack.c.bf16 %v1006_v25, %v1006_v25  ;;  %v13611_v44 = vor.u32 %v14568_v28, %v13610_v27  ;;  %v373_v25 = vld [vmem:[%s15017_s12 + $0x310] sm:$0xff] }
 0x604   : > { %10087 = vmatmul.bf16.vlgmr.msra.gmra.mxu2 %v2054_v39  ;;  %10100 = vmatmul.bf16.vlgmr.msra.gmra.mxu3 %v2055_v40 }
 0x605   : > { %10190 = vmatpush.bf16.xpose.msra.mxu2 %v13579_v42  ;;  %10203 = vmatpush.bf16.xpose.msra.mxu3 %v13583_v43  ;;  %v2063_v42 = vpack.c.bf16 %v1007_v26, %v1007_v26 }
 0x606   : > { %10177 = vmatpush.bf16.xpose.msra.mxu1 %v13575_v45  ;;  %v13615_v45 = vor.u32 %v14312_v29, %v13612_v30  ;;  %v13642_v29 = vld [vmem:[%s15024_s24 + $0x628] sm:$0xf] }
 0x607   : > { %v9672_v47 = vpop.f32.mrf.mxu2  ;;  %v9685_v48 = vpop.f32.mrf.mxu3  ;;  %v14572_v30 = vld [vmem:[%s15024_s24 + $0xe24] sm:$0x10] }
 0x608   : > { %v9673_v49 = vadd.f32 %v9672_v47, %v9660_v46  ;;  %v9648_v50 = vpop.f32.mrf.mxu0  ;;  %v9661_v51 = vpop.f32.mrf.mxu1  ;;  %v13603_v46 = vor.u32 %v14567_v36, %v13602_v31  ;;  %v13607_v47 = vor.u32 %v14311_v37, %v13604_v38  ;;  %v14316_v31 = vld [vmem:[%s15024_s24 + $0x62c] sm:$0xf]  ;;  %v14571_v38 = vld [vmem:[%s15024_s24 + $0xe1c] sm:$0x10] }
 0x609   : > { %v1014_v23 = vld.sshfl [vmem:[#allocation1] sm:$0xff pattern:$0x73625140]  ;;  %v1016_v27 = vld.sshfl [vmem:[#allocation1 + $0x10] sm:$0xff pattern:$0x73625140] }
 0x60a   : > { %v9686_v55 = vadd.f32 %v9685_v48, %v9673_v49  ;;  %v1017_v28 = vld.sshfl [vmem:[#allocation1 + $0x18] sm:$0xff pattern:$0x73625140]  ;;  %v2068_v36 = vpack.c.bf16 %v1014_v23, %v1014_v23 }
 0x60f   : > { %v9674_v63 = vpop.f32.mrf.mxu2  ;;  %v9687_v0 = vpop.f32.mrf.mxu3 }
 0x610   : > { %v9698_v6 = vpop.f32.mrf.mxu0  ;;  %v9711_v7 = vpop.f32.mrf.mxu1  ;;  %v13628_v63 = vld [vmem:[%s15024_s24 + $0xe18] sm:$0x10]  ;;  %v13618_v0 = vld [vmem:[%s15024_s24 + $0x610] sm:$0xf] }
 0x611   : > { %v9699_v10 = vadd.f32 %v9698_v6, %v9686_v55  ;;  %v1009_v55 = vld.sshfl [vmem:[#allocation1 + $0x28] sm:$0xff pattern:$0x73625140]  ;;  %v14313_v6 = vld [vmem:[%s15024_s24 + $0x614] sm:$0xf] }
 0x612   : > { %10113 = vmatmul.bf16.vlgmr.msrb.gmra.mxu0 %v2056_v1  ;;  %1013 = vst [vmem:[#allocation1 + $0x20] ss:$4 sm:$0xff] %v372_v56  ;;  %v2065_v4 = vpack.c.bf16 %v1009_v55, %v1009_v55 }
 0x613   : > { %v9712_v15 = vadd.f32 %v9711_v7, %v9699_v10  ;;  %10126 = vmatmul.bf16.vlgmr.msrb.gmra.mxu1 %v2057_v2  ;;  %10216 = vmatpush.bf16.xpose.msrb.mxu0 %v13587_v13  ;;  %v13620_v7 = vld [vmem:[%s15024_s24 + $0xe10] sm:$0x10]  ;;  %v2066_v10 = vpack.c.bf16 %v1010_v58, %v1010_v58  ;;  %v13627_v13 = vor.u32 %v14570_v61, %v13626_v60  ;;  %v374_v58 = vld [vmem:[%s15017_s12 + $0x318] sm:$0xff] }
 0x614   : > { %10139 = vmatmul.bf16.vlgmr.msrb.gmra.mxu2 %v2058_v8  ;;  %10152 = vmatmul.bf16.vlgmr.msrb.gmra.mxu3 %v2059_v9 }
 0x615   : > { %10242 = vmatpush.bf16.xpose.msrb.mxu2 %v13595_v11  ;;  %10255 = vmatpush.bf16.xpose.msrb.mxu3 %v13599_v12  ;;  %v2067_v11 = vpack.c.bf16 %v1011_v59, %v1011_v59 }
 0x616   : > { %10229 = vmatpush.bf16.xpose.msrb.mxu1 %v13591_v14  ;;  %v13631_v14 = vor.u32 %v14314_v62, %v13628_v63  ;;  %v13658_v62 = vld [vmem:[%s15024_s24 + $0x638] sm:$0xf] }
 0x617   : > { %v9724_v16 = vpop.f32.mrf.mxu2  ;;  %v9737_v17 = vpop.f32.mrf.mxu3  ;;  %v14574_v63 = vld [vmem:[%s15024_s24 + $0xe34] sm:$0x10] }
 0x618   : > { %v9725_v18 = vadd.f32 %v9724_v16, %v9712_v15  ;;  %v9700_v19 = vpop.f32.mrf.mxu0  ;;  %v9713_v20 = vpop.f32.mrf.mxu1  ;;  %v13619_v15 = vor.u32 %v14569_v5, %v13618_v0  ;;  %v13623_v16 = vor.u32 %v14313_v6, %v13620_v7  ;;  %v14318_v0 = vld [vmem:[%s15024_s24 + $0x63c] sm:$0xf]  ;;  %v14573_v7 = vld [vmem:[%s15024_s24 + $0xe2c] sm:$0x10] }
 0x619   : > { %v1018_v56 = vld.sshfl [vmem:[#allocation1 + $0x20] sm:$0xff pattern:$0x73625140]  ;;  %v1020_v60 = vld.sshfl [vmem:[#allocation1 + $0x30] sm:$0xff pattern:$0x73625140] }
 0x61a   : > { %v9738_v24 = vadd.f32 %v9737_v17, %v9725_v18  ;;  %v1021_v61 = vld.sshfl [vmem:[#allocation1 + $0x38] sm:$0xff pattern:$0x73625140]  ;;  %v2072_v5 = vpack.c.bf16 %v1018_v56, %v1018_v56 }
 0x61f   : > { %v9726_v32 = vpop.f32.mrf.mxu2  ;;  %v9739_v33 = vpop.f32.mrf.mxu3 }
 0x620   : > { %v9750_v39 = vpop.f32.mrf.mxu0  ;;  %v9763_v40 = vpop.f32.mrf.mxu1  ;;  %v13644_v32 = vld [vmem:[%s15024_s24 + $0xe28] sm:$0x10]  ;;  %v13634_v33 = vld [vmem:[%s15024_s24 + $0x620] sm:$0xf] }
 0x621   : > { %v9751_v43 = vadd.f32 %v9750_v39, %v9738_v24  ;;  %v1015_v24 = vld.sshfl [vmem:[#allocation1 + $0x8] sm:$0xff pattern:$0x73625140] }
 0x622   : > { %10165 = vmatmul.bf16.vlgmr.msra.gmra.mxu0 %v2060_v34  ;;  %1022 = vst [vmem:[#allocation1] ss:$4 sm:$0xff] %v373_v25  ;;  %v2069_v37 = vpack.c.bf16 %v1015_v24, %v1015_v24  ;;  %v14315_v39 = vld [vmem:[%s15024_s24 + $0x624] sm:$0xf] }
 0x623   : > { %v9764_v48 = vadd.f32 %v9763_v40, %v9751_v43  ;;  %10178 = vmatmul.bf16.vlgmr.msra.gmra.mxu1 %v2061_v35  ;;  %10268 = vmatpush.bf16.xpose.msra.mxu0 %v13603_v46  ;;  %v13636_v40 = vld [vmem:[%s15024_s24 + $0xe20] sm:$0x10]  ;;  %v2070_v43 = vpack.c.bf16 %v1016_v27, %v1016_v27  ;;  %v13643_v46 = vor.u32 %v14572_v30, %v13642_v29 }
 0x624   : > { %10191 = vmatmul.bf16.vlgmr.msra.gmra.mxu2 %v2062_v41  ;;  %10204 = vmatmul.bf16.vlgmr.msra.gmra.mxu3 %v2063_v42  ;;  %v375_v27 = vld [vmem:[%s15017_s12 + $0x320] sm:$0xff] }
 0x625   : > { %10294 = vmatpush.bf16.xpose.msra.mxu2 %v13611_v44  ;;  %10307 = vmatpush.bf16.xpose.msra.mxu3 %v13615_v45  ;;  %v2071_v44 = vpack.c.bf16 %v1017_v28, %v1017_v28 }
 0x626   : > { %10281 = vmatpush.bf16.xpose.msra.mxu1 %v13607_v47  ;;  %v13647_v47 = vor.u32 %v14316_v31, %v13644_v32  ;;  %v13674_v31 = vld [vmem:[%s15024_s24 + $0x648] sm:$0xf] }
 0x627   : > { %v9776_v49 = vpop.f32.mrf.mxu2  ;;  %v9789_v50 = vpop.f32.mrf.mxu3  ;;  %v14576_v32 = vld [vmem:[%s15024_s24 + $0xe44] sm:$0x10] }
 0x628   : > { %v9777_v51 = vadd.f32 %v9776_v49, %v9764_v48  ;;  %v9752_v52 = vpop.f32.mrf.mxu0  ;;  %v9765_v53 = vpop.f32.mrf.mxu1  ;;  %v13635_v48 = vor.u32 %v14571_v38, %v13634_v33  ;;  %v13639_v49 = vor.u32 %v14315_v39, %v13636_v40  ;;  %v14320_v33 = vld [vmem:[%s15024_s24 + $0x64c] sm:$0xf]  ;;  %v14575_v40 = vld [vmem:[%s15024_s24 + $0xe3c] sm:$0x10] }
 0x629   : > { %v1024_v25 = vld.sshfl [vmem:[#allocation1] sm:$0xff pattern:$0x73625140]  ;;  %v1026_v29 = vld.sshfl [vmem:[#allocation1 + $0x10] sm:$0xff pattern:$0x73625140] }
 0x62a   : > { %v9790_v57 = vadd.f32 %v9789_v50, %v9777_v51  ;;  %v1027_v30 = vld.sshfl [vmem:[#allocation1 + $0x18] sm:$0xff pattern:$0x73625140]  ;;  %v2076_v38 = vpack.c.bf16 %v1024_v25, %v1024_v25 }
 0x62f   : > { %v9778_v1 = vpop.f32.mrf.mxu2  ;;  %v9791_v2 = vpop.f32.mrf.mxu3 }
 0x630   : > { %v9802_v8 = vpop.f32.mrf.mxu0  ;;  %v9815_v9 = vpop.f32.mrf.mxu1  ;;  %v13660_v1 = vld [vmem:[%s15024_s24 + $0xe38] sm:$0x10]  ;;  %v13650_v2 = vld [vmem:[%s15024_s24 + $0x630] sm:$0xf] }
 0x631   : > { %v9803_v12 = vadd.f32 %v9802_v8, %v9790_v57  ;;  %v1019_v57 = vld.sshfl [vmem:[#allocation1 + $0x28] sm:$0xff pattern:$0x73625140]  ;;  %v14317_v8 = vld [vmem:[%s15024_s24 + $0x634] sm:$0xf] }
 0x632   : > { %10217 = vmatmul.bf16.vlgmr.msrb.gmra.mxu0 %v2064_v3  ;;  %1023 = vst [vmem:[#allocation1 + $0x20] ss:$4 sm:$0xff] %v374_v58  ;;  %v2073_v6 = vpack.c.bf16 %v1019_v57, %v1019_v57 }
 0x633   : > { %v9816_v17 = vadd.f32 %v9815_v9, %v9803_v12  ;;  %10230 = vmatmul.bf16.vlgmr.msrb.gmra.mxu1 %v2065_v4  ;;  %10320 = vmatpush.bf16.xpose.msrb.mxu0 %v13619_v15  ;;  %v13652_v9 = vld [vmem:[%s15024_s24 + $0xe30] sm:$0x10]  ;;  %v2074_v12 = vpack.c.bf16 %v1020_v60, %v1020_v60  ;;  %v13659_v15 = vor.u32 %v14574_v63, %v13658_v62  ;;  %v376_v60 = vld [vmem:[%s15017_s12 + $0x328] sm:$0xff] }
 0x634   : > { %10243 = vmatmul.bf16.vlgmr.msrb.gmra.mxu2 %v2066_v10  ;;  %10256 = vmatmul.bf16.vlgmr.msrb.gmra.mxu3 %v2067_v11 }
 0x635   : > { %10346 = vmatpush.bf16.xpose.msrb.mxu2 %v13627_v13  ;;  %10359 = vmatpush.bf16.xpose.msrb.mxu3 %v13631_v14  ;;  %v2075_v13 = vpack.c.bf16 %v1021_v61, %v1021_v61 }
 0x636   : > { %10333 = vmatpush.bf16.xpose.msrb.mxu1 %v13623_v16  ;;  %v13663_v16 = vor.u32 %v14318_v0, %v13660_v1  ;;  %v13690_v0 = vld [vmem:[%s15024_s24 + $0x658] sm:$0xf] }
 0x637   : > { %v9828_v18 = vpop.f32.mrf.mxu2  ;;  %v9841_v19 = vpop.f32.mrf.mxu3  ;;  %v14578_v1 = vld [vmem:[%s15024_s24 + $0xe54] sm:$0x10] }
 0x638   : > { %v9829_v20 = vadd.f32 %v9828_v18, %v9816_v17  ;;  %v9804_v21 = vpop.f32.mrf.mxu0  ;;  %v9817_v22 = vpop.f32.mrf.mxu1  ;;  %v13651_v17 = vor.u32 %v14573_v7, %v13650_v2  ;;  %v13655_v18 = vor.u32 %v14317_v8, %v13652_v9  ;;  %v14322_v2 = vld [vmem:[%s15024_s24 + $0x65c] sm:$0xf]  ;;  %v14577_v9 = vld [vmem:[%s15024_s24 + $0xe4c] sm:$0x10] }
 0x639   : > { %v1028_v58 = vld.sshfl [vmem:[#allocation1 + $0x20] sm:$0xff pattern:$0x73625140]  ;;  %v1030_v62 = vld.sshfl [vmem:[#allocation1 + $0x30] sm:$0xff pattern:$0x73625140] }
 0x63a   : > { %v9842_v26 = vadd.f32 %v9841_v19, %v9829_v20  ;;  %v1031_v63 = vld.sshfl [vmem:[#allocation1 + $0x38] sm:$0xff pattern:$0x73625140]  ;;  %v2080_v7 = vpack.c.bf16 %v1028_v58, %v1028_v58 }
 0x63f   : > { %v9830_v34 = vpop.f32.mrf.mxu2  ;;  %v9843_v35 = vpop.f32.mrf.mxu3 }
 0x640   : > { %v9854_v41 = vpop.f32.mrf.mxu0  ;;  %v9867_v42 = vpop.f32.mrf.mxu1  ;;  %v13676_v34 = vld [vmem:[%s15024_s24 + $0xe48] sm:$0x10]  ;;  %v13666_v35 = vld [vmem:[%s15024_s24 + $0x640] sm:$0xf] }
 0x641   : > { %v9855_v45 = vadd.f32 %v9854_v41, %v9842_v26  ;;  %v1025_v26 = vld.sshfl [vmem:[#allocation1 + $0x8] sm:$0xff pattern:$0x73625140] }
 0x642   : > { %10269 = vmatmul.bf16.vlgmr.msra.gmra.mxu0 %v2068_v36  ;;  %1032 = vst [vmem:[#allocation1] ss:$4 sm:$0xff] %v375_v27  ;;  %v2077_v39 = vpack.c.bf16 %v1025_v26, %v1025_v26  ;;  %v14319_v41 = vld [vmem:[%s15024_s24 + $0x644] sm:$0xf] }
 0x643   : > { %v9868_v50 = vadd.f32 %v9867_v42, %v9855_v45  ;;  %10282 = vmatmul.bf16.vlgmr.msra.gmra.mxu1 %v2069_v37  ;;  %10372 = vmatpush.bf16.xpose.msra.mxu0 %v13635_v48  ;;  %v13668_v42 = vld [vmem:[%s15024_s24 + $0xe40] sm:$0x10]  ;;  %v2078_v45 = vpack.c.bf16 %v1026_v29, %v1026_v29  ;;  %v13675_v48 = vor.u32 %v14576_v32, %v13674_v31  ;;  %v377_v29 = vld [vmem:[%s15017_s12 + $0x330] sm:$0xff] }
 0x644   : > { %10295 = vmatmul.bf16.vlgmr.msra.gmra.mxu2 %v2070_v43  ;;  %10308 = vmatmul.bf16.vlgmr.msra.gmra.mxu3 %v2071_v44 }
 0x645   : > { %10398 = vmatpush.bf16.xpose.msra.mxu2 %v13643_v46  ;;  %10411 = vmatpush.bf16.xpose.msra.mxu3 %v13647_v47  ;;  %v2079_v46 = vpack.c.bf16 %v1027_v30, %v1027_v30 }
 0x646   : > { %10385 = vmatpush.bf16.xpose.msra.mxu1 %v13639_v49  ;;  %v13679_v49 = vor.u32 %v14320_v33, %v13676_v34  ;;  %v13706_v33 = vld [vmem:[%s15024_s24 + $0x668] sm:$0xf] }
 0x647   : > { %v9880_v51 = vpop.f32.mrf.mxu2  ;;  %v9893_v52 = vpop.f32.mrf.mxu3  ;;  %v14580_v34 = vld [vmem:[%s15024_s24 + $0xe64] sm:$0x10] }
 0x648   : > { %v9881_v53 = vadd.f32 %v9880_v51, %v9868_v50  ;;  %v9856_v54 = vpop.f32.mrf.mxu0  ;;  %v9869_v55 = vpop.f32.mrf.mxu1  ;;  %v13667_v50 = vor.u32 %v14575_v40, %v13666_v35  ;;  %v13671_v51 = vor.u32 %v14319_v41, %v13668_v42  ;;  %v14324_v35 = vld [vmem:[%s15024_s24 + $0x66c] sm:$0xf]  ;;  %v14579_v42 = vld [vmem:[%s15024_s24 + $0xe5c] sm:$0x10] }
 0x649   : > { %v1034_v27 = vld.sshfl [vmem:[#allocation1] sm:$0xff pattern:$0x73625140]  ;;  %v1036_v31 = vld.sshfl [vmem:[#allocation1 + $0x10] sm:$0xff pattern:$0x73625140] }
 0x64a   : > { %v9894_v59 = vadd.f32 %v9893_v52, %v9881_v53  ;;  %v1037_v32 = vld.sshfl [vmem:[#allocation1 + $0x18] sm:$0xff pattern:$0x73625140]  ;;  %v2084_v40 = vpack.c.bf16 %v1034_v27, %v1034_v27 }
 0x64f   : > { %v9882_v3 = vpop.f32.mrf.mxu2  ;;  %v9895_v4 = vpop.f32.mrf.mxu3 }
 0x650   : > { %v9906_v10 = vpop.f32.mrf.mxu0  ;;  %v9919_v11 = vpop.f32.mrf.mxu1  ;;  %v13692_v3 = vld [vmem:[%s15024_s24 + $0xe58] sm:$0x10]  ;;  %v13682_v4 = vld [vmem:[%s15024_s24 + $0x650] sm:$0xf] }
 0x651   : > { %v9907_v14 = vadd.f32 %v9906_v10, %v9894_v59  ;;  %v1029_v59 = vld.sshfl [vmem:[#allocation1 + $0x28] sm:$0xff pattern:$0x73625140]  ;;  %v14321_v10 = vld [vmem:[%s15024_s24 + $0x654] sm:$0xf] }
 0x652   : > { %10321 = vmatmul.bf16.vlgmr.msrb.gmra.mxu0 %v2072_v5  ;;  %1033 = vst [vmem:[#allocation1 + $0x20] ss:$4 sm:$0xff] %v376_v60  ;;  %v2081_v8 = vpack.c.bf16 %v1029_v59, %v1029_v59 }
 0x653   : > { %v9920_v19 = vadd.f32 %v9919_v11, %v9907_v14  ;;  %10334 = vmatmul.bf16.vlgmr.msrb.gmra.mxu1 %v2073_v6  ;;  %10424 = vmatpush.bf16.xpose.msrb.mxu0 %v13651_v17  ;;  %v13684_v11 = vld [vmem:[%s15024_s24 + $0xe50] sm:$0x10]  ;;  %v2082_v14 = vpack.c.bf16 %v1030_v62, %v1030_v62  ;;  %v13691_v17 = vor.u32 %v14578_v1, %v13690_v0  ;;  %v378_v62 = vld [vmem:[%s15017_s12 + $0x338] sm:$0xff] }
 0x654   : > { %10347 = vmatmul.bf16.vlgmr.msrb.gmra.mxu2 %v2074_v12  ;;  %10360 = vmatmul.bf16.vlgmr.msrb.gmra.mxu3 %v2075_v13 }
 0x655   : > { %10450 = vmatpush.bf16.xpose.msrb.mxu2 %v13659_v15  ;;  %10463 = vmatpush.bf16.xpose.msrb.mxu3 %v13663_v16  ;;  %v2083_v15 = vpack.c.bf16 %v1031_v63, %v1031_v63 }
 0x656   : > { %10437 = vmatpush.bf16.xpose.msrb.mxu1 %v13655_v18  ;;  %v13695_v18 = vor.u32 %v14322_v2, %v13692_v3  ;;  %v13722_v2 = vld [vmem:[%s15024_s24 + $0x678] sm:$0xf] }
 0x657   : > { %v9932_v20 = vpop.f32.mrf.mxu2  ;;  %v9945_v21 = vpop.f32.mrf.mxu3  ;;  %v14582_v3 = vld [vmem:[%s15024_s24 + $0xe74] sm:$0x10] }
 0x658   : > { %v9933_v22 = vadd.f32 %v9932_v20, %v9920_v19  ;;  %v9908_v23 = vpop.f32.mrf.mxu0  ;;  %v9921_v24 = vpop.f32.mrf.mxu1  ;;  %v13683_v19 = vor.u32 %v14577_v9, %v13682_v4  ;;  %v13687_v20 = vor.u32 %v14321_v10, %v13684_v11  ;;  %v14326_v4 = vld [vmem:[%s15024_s24 + $0x67c] sm:$0xf]  ;;  %v14581_v11 = vld [vmem:[%s15024_s24 + $0xe6c] sm:$0x10] }
 0x659   : > { %v1038_v60 = vld.sshfl [vmem:[#allocation1 + $0x20] sm:$0xff pattern:$0x73625140]  ;;  %v1040_v0 = vld.sshfl [vmem:[#allocation1 + $0x30] sm:$0xff pattern:$0x73625140] }
 0x65a   : > { %v9946_v28 = vadd.f32 %v9945_v21, %v9933_v22  ;;  %v1041_v1 = vld.sshfl [vmem:[#allocation1 + $0x38] sm:$0xff pattern:$0x73625140]  ;;  %v2088_v9 = vpack.c.bf16 %v1038_v60, %v1038_v60 }
 0x65f   : > { %v9934_v36 = vpop.f32.mrf.mxu2  ;;  %v9947_v37 = vpop.f32.mrf.mxu3 }
 0x660   : > { %v9958_v43 = vpop.f32.mrf.mxu0  ;;  %v9971_v44 = vpop.f32.mrf.mxu1  ;;  %v13708_v36 = vld [vmem:[%s15024_s24 + $0xe68] sm:$0x10]  ;;  %v13698_v37 = vld [vmem:[%s15024_s24 + $0x660] sm:$0xf] }
 0x661   : > { %v9959_v47 = vadd.f32 %v9958_v43, %v9946_v28  ;;  %v1035_v28 = vld.sshfl [vmem:[#allocation1 + $0x8] sm:$0xff pattern:$0x73625140] }
 0x662   : > { %10373 = vmatmul.bf16.vlgmr.msra.gmra.mxu0 %v2076_v38  ;;  %1042 = vst [vmem:[#allocation1] ss:$4 sm:$0xff] %v377_v29  ;;  %v2085_v41 = vpack.c.bf16 %v1035_v28, %v1035_v28  ;;  %v14323_v43 = vld [vmem:[%s15024_s24 + $0x664] sm:$0xf] }
 0x663   : > { %v9972_v52 = vadd.f32 %v9971_v44, %v9959_v47  ;;  %10386 = vmatmul.bf16.vlgmr.msra.gmra.mxu1 %v2077_v39  ;;  %10476 = vmatpush.bf16.xpose.msra.mxu0 %v13667_v50  ;;  %v13700_v44 = vld [vmem:[%s15024_s24 + $0xe60] sm:$0x10]  ;;  %v2086_v47 = vpack.c.bf16 %v1036_v31, %v1036_v31  ;;  %v13707_v50 = vor.u32 %v14580_v34, %v13706_v33 }
 0x664   : > { %10399 = vmatmul.bf16.vlgmr.msra.gmra.mxu2 %v2078_v45  ;;  %10412 = vmatmul.bf16.vlgmr.msra.gmra.mxu3 %v2079_v46  ;;  %v379_v31 = vld [vmem:[%s15017_s12 + $0x340] sm:$0xff] }
 0x665   : > { %10502 = vmatpush.bf16.xpose.msra.mxu2 %v13675_v48  ;;  %10515 = vmatpush.bf16.xpose.msra.mxu3 %v13679_v49  ;;  %v2087_v48 = vpack.c.bf16 %v1037_v32, %v1037_v32 }
 0x666   : > { %10489 = vmatpush.bf16.xpose.msra.mxu1 %v13671_v51  ;;  %v13711_v51 = vor.u32 %v14324_v35, %v13708_v36  ;;  %v13738_v35 = vld [vmem:[%s15024_s24 + $0x688] sm:$0xf] }
 0x667   : > { %v9984_v53 = vpop.f32.mrf.mxu2  ;;  %v9997_v54 = vpop.f32.mrf.mxu3  ;;  %v14584_v36 = vld [vmem:[%s15024_s24 + $0xe84] sm:$0x10] }
 0x668   : > { %v9985_v55 = vadd.f32 %v9984_v53, %v9972_v52  ;;  %v9960_v56 = vpop.f32.mrf.mxu0  ;;  %v9973_v57 = vpop.f32.mrf.mxu1  ;;  %v13699_v52 = vor.u32 %v14579_v42, %v13698_v37  ;;  %v13703_v53 = vor.u32 %v14323_v43, %v13700_v44  ;;  %v14328_v37 = vld [vmem:[%s15024_s24 + $0x68c] sm:$0xf]  ;;  %v14583_v44 = vld [vmem:[%s15024_s24 + $0xe7c] sm:$0x10] }
 0x669   : > { %v1044_v29 = vld.sshfl [vmem:[#allocation1] sm:$0xff pattern:$0x73625140]  ;;  %v1046_v33 = vld.sshfl [vmem:[#allocation1 + $0x10] sm:$0xff pattern:$0x73625140] }
 0x66a   : > { %v9998_v61 = vadd.f32 %v9997_v54, %v9985_v55  ;;  %v1047_v34 = vld.sshfl [vmem:[#allocation1 + $0x18] sm:$0xff pattern:$0x73625140]  ;;  %v2092_v42 = vpack.c.bf16 %v1044_v29, %v1044_v29 }
 0x66f   : > { %v9986_v5 = vpop.f32.mrf.mxu2  ;;  %v9999_v6 = vpop.f32.mrf.mxu3 }
 0x670   : > { %v10010_v12 = vpop.f32.mrf.mxu0  ;;  %v10023_v13 = vpop.f32.mrf.mxu1  ;;  %v13724_v5 = vld [vmem:[%s15024_s24 + $0xe78] sm:$0x10]  ;;  %v13714_v6 = vld [vmem:[%s15024_s24 + $0x670] sm:$0xf] }
 0x671   : > { %v10011_v16 = vadd.f32 %v10010_v12, %v9998_v61  ;;  %v1039_v61 = vld.sshfl [vmem:[#allocation1 + $0x28] sm:$0xff pattern:$0x73625140]  ;;  %v14325_v12 = vld [vmem:[%s15024_s24 + $0x674] sm:$0xf] }
 0x672   : > { %10425 = vmatmul.bf16.vlgmr.msrb.gmra.mxu0 %v2080_v7  ;;  %1043 = vst [vmem:[#allocation1 + $0x20] ss:$4 sm:$0xff] %v378_v62  ;;  %v2089_v10 = vpack.c.bf16 %v1039_v61, %v1039_v61 }
 0x673   : > { %v10024_v21 = vadd.f32 %v10023_v13, %v10011_v16  ;;  %10438 = vmatmul.bf16.vlgmr.msrb.gmra.mxu1 %v2081_v8  ;;  %10528 = vmatpush.bf16.xpose.msrb.mxu0 %v13683_v19  ;;  %v13716_v13 = vld [vmem:[%s15024_s24 + $0xe70] sm:$0x10]  ;;  %v2090_v16 = vpack.c.bf16 %v1040_v0, %v1040_v0  ;;  %v13723_v19 = vor.u32 %v14582_v3, %v13722_v2  ;;  %v380_v0 = vld [vmem:[%s15017_s12 + $0x348] sm:$0xff] }
 0x674   : > { %10451 = vmatmul.bf16.vlgmr.msrb.gmra.mxu2 %v2082_v14  ;;  %10464 = vmatmul.bf16.vlgmr.msrb.gmra.mxu3 %v2083_v15 }
 0x675   : > { %10554 = vmatpush.bf16.xpose.msrb.mxu2 %v13691_v17  ;;  %10567 = vmatpush.bf16.xpose.msrb.mxu3 %v13695_v18  ;;  %v2091_v17 = vpack.c.bf16 %v1041_v1, %v1041_v1 }
 0x676   : > { %10541 = vmatpush.bf16.xpose.msrb.mxu1 %v13687_v20  ;;  %v13727_v20 = vor.u32 %v14326_v4, %v13724_v5  ;;  %v13754_v4 = vld [vmem:[%s15024_s24 + $0x698] sm:$0xf] }
 0x677   : > { %v10036_v22 = vpop.f32.mrf.mxu2  ;;  %v10049_v23 = vpop.f32.mrf.mxu3  ;;  %v14586_v5 = vld [vmem:[%s15024_s24 + $0xe94] sm:$0x10] }
 0x678   : > { %v10037_v24 = vadd.f32 %v10036_v22, %v10024_v21  ;;  %v10012_v25 = vpop.f32.mrf.mxu0  ;;  %v10025_v26 = vpop.f32.mrf.mxu1  ;;  %v13715_v21 = vor.u32 %v14581_v11, %v13714_v6  ;;  %v13719_v22 = vor.u32 %v14325_v12, %v13716_v13  ;;  %v14330_v6 = vld [vmem:[%s15024_s24 + $0x69c] sm:$0xf]  ;;  %v14585_v13 = vld [vmem:[%s15024_s24 + $0xe8c] sm:$0x10] }
 0x679   : > { %v1048_v62 = vld.sshfl [vmem:[#allocation1 + $0x20] sm:$0xff pattern:$0x73625140]  ;;  %v1050_v2 = vld.sshfl [vmem:[#allocation1 + $0x30] sm:$0xff pattern:$0x73625140] }
 0x67a   : > { %v10050_v30 = vadd.f32 %v10049_v23, %v10037_v24  ;;  %v1051_v3 = vld.sshfl [vmem:[#allocation1 + $0x38] sm:$0xff pattern:$0x73625140]  ;;  %v2096_v11 = vpack.c.bf16 %v1048_v62, %v1048_v62 }
 0x67f   : > { %v10038_v38 = vpop.f32.mrf.mxu2  ;;  %v10051_v39 = vpop.f32.mrf.mxu3 }
 0x680   : > { %v10062_v45 = vpop.f32.mrf.mxu0  ;;  %v10075_v46 = vpop.f32.mrf.mxu1  ;;  %v13740_v38 = vld [vmem:[%s15024_s24 + $0xe88] sm:$0x10]  ;;  %v13730_v39 = vld [vmem:[%s15024_s24 + $0x680] sm:$0xf] }
 0x681   : > { %v10063_v49 = vadd.f32 %v10062_v45, %v10050_v30  ;;  %v1045_v30 = vld.sshfl [vmem:[#allocation1 + $0x8] sm:$0xff pattern:$0x73625140] }
 0x682   : > { %10477 = vmatmul.bf16.vlgmr.msra.gmra.mxu0 %v2084_v40  ;;  %1052 = vst [vmem:[#allocation1] ss:$4 sm:$0xff] %v379_v31  ;;  %v2093_v43 = vpack.c.bf16 %v1045_v30, %v1045_v30  ;;  %v14327_v45 = vld [vmem:[%s15024_s24 + $0x684] sm:$0xf] }
 0x683   : > { %v10076_v54 = vadd.f32 %v10075_v46, %v10063_v49  ;;  %10490 = vmatmul.bf16.vlgmr.msra.gmra.mxu1 %v2085_v41  ;;  %10580 = vmatpush.bf16.xpose.msra.mxu0 %v13699_v52  ;;  %v13732_v46 = vld [vmem:[%s15024_s24 + $0xe80] sm:$0x10]  ;;  %v2094_v49 = vpack.c.bf16 %v1046_v33, %v1046_v33  ;;  %v13739_v52 = vor.u32 %v14584_v36, %v13738_v35  ;;  %v381_v33 = vld [vmem:[%s15017_s12 + $0x350] sm:$0xff] }
 0x684   : > { %10503 = vmatmul.bf16.vlgmr.msra.gmra.mxu2 %v2086_v47  ;;  %10516 = vmatmul.bf16.vlgmr.msra.gmra.mxu3 %v2087_v48 }
 0x685   : > { %10606 = vmatpush.bf16.xpose.msra.mxu2 %v13707_v50  ;;  %10619 = vmatpush.bf16.xpose.msra.mxu3 %v13711_v51  ;;  %v2095_v50 = vpack.c.bf16 %v1047_v34, %v1047_v34 }
 0x686   : > { %10593 = vmatpush.bf16.xpose.msra.mxu1 %v13703_v53  ;;  %v13743_v53 = vor.u32 %v14328_v37, %v13740_v38  ;;  %v13770_v37 = vld [vmem:[%s15024_s24 + $0x6a8] sm:$0xf] }
 0x687   : > { %v10088_v55 = vpop.f32.mrf.mxu2  ;;  %v10101_v56 = vpop.f32.mrf.mxu3  ;;  %v14588_v38 = vld [vmem:[%s15024_s24 + $0xea4] sm:$0x10] }
 0x688   : > { %v10089_v57 = vadd.f32 %v10088_v55, %v10076_v54  ;;  %v10064_v58 = vpop.f32.mrf.mxu0  ;;  %v10077_v59 = vpop.f32.mrf.mxu1  ;;  %v13731_v54 = vor.u32 %v14583_v44, %v13730_v39  ;;  %v13735_v55 = vor.u32 %v14327_v45, %v13732_v46  ;;  %v14332_v39 = vld [vmem:[%s15024_s24 + $0x6ac] sm:$0xf]  ;;  %v14587_v46 = vld [vmem:[%s15024_s24 + $0xe9c] sm:$0x10] }
 0x689   : > { %v1054_v31 = vld.sshfl [vmem:[#allocation1] sm:$0xff pattern:$0x73625140]  ;;  %v1056_v35 = vld.sshfl [vmem:[#allocation1 + $0x10] sm:$0xff pattern:$0x73625140] }
 0x68a   : > { %v10102_v63 = vadd.f32 %v10101_v56, %v10089_v57  ;;  %v1057_v36 = vld.sshfl [vmem:[#allocation1 + $0x18] sm:$0xff pattern:$0x73625140]  ;;  %v2100_v44 = vpack.c.bf16 %v1054_v31, %v1054_v31 }
 0x68f   : > { %v10090_v7 = vpop.f32.mrf.mxu2  ;;  %v10103_v8 = vpop.f32.mrf.mxu3 }
 0x690   : > { %v10114_v14 = vpop.f32.mrf.mxu0  ;;  %v10127_v15 = vpop.f32.mrf.mxu1  ;;  %v13756_v7 = vld [vmem:[%s15024_s24 + $0xe98] sm:$0x10]  ;;  %v13746_v8 = vld [vmem:[%s15024_s24 + $0x690] sm:$0xf] }
 0x691   : > { %v10115_v18 = vadd.f32 %v10114_v14, %v10102_v63  ;;  %v1049_v63 = vld.sshfl [vmem:[#allocation1 + $0x28] sm:$0xff pattern:$0x73625140]  ;;  %v14329_v14 = vld [vmem:[%s15024_s24 + $0x694] sm:$0xf] }
 0x692   : > { %10529 = vmatmul.bf16.vlgmr.msrb.gmra.mxu0 %v2088_v9  ;;  %1053 = vst [vmem:[#allocation1 + $0x20] ss:$4 sm:$0xff] %v380_v0  ;;  %v2097_v12 = vpack.c.bf16 %v1049_v63, %v1049_v63 }
 0x693   : > { %v10128_v23 = vadd.f32 %v10127_v15, %v10115_v18  ;;  %10542 = vmatmul.bf16.vlgmr.msrb.gmra.mxu1 %v2089_v10  ;;  %10632 = vmatpush.bf16.xpose.msrb.mxu0 %v13715_v21  ;;  %v13748_v15 = vld [vmem:[%s15024_s24 + $0xe90] sm:$0x10]  ;;  %v2098_v18 = vpack.c.bf16 %v1050_v2, %v1050_v2  ;;  %v13755_v21 = vor.u32 %v14586_v5, %v13754_v4  ;;  %v382_v2 = vld [vmem:[%s15017_s12 + $0x358] sm:$0xff] }
 0x694   : > { %10555 = vmatmul.bf16.vlgmr.msrb.gmra.mxu2 %v2090_v16  ;;  %10568 = vmatmul.bf16.vlgmr.msrb.gmra.mxu3 %v2091_v17 }
 0x695   : > { %10658 = vmatpush.bf16.xpose.msrb.mxu2 %v13723_v19  ;;  %10671 = vmatpush.bf16.xpose.msrb.mxu3 %v13727_v20  ;;  %v2099_v19 = vpack.c.bf16 %v1051_v3, %v1051_v3 }
 0x696   : > { %10645 = vmatpush.bf16.xpose.msrb.mxu1 %v13719_v22  ;;  %v13759_v22 = vor.u32 %v14330_v6, %v13756_v7  ;;  %v13786_v6 = vld [vmem:[%s15024_s24 + $0x6b8] sm:$0xf] }
 0x697   : > { %v10140_v24 = vpop.f32.mrf.mxu2  ;;  %v10153_v25 = vpop.f32.mrf.mxu3  ;;  %v14590_v7 = vld [vmem:[%s15024_s24 + $0xeb4] sm:$0x10] }
 0x698   : > { %v10141_v26 = vadd.f32 %v10140_v24, %v10128_v23  ;;  %v10116_v27 = vpop.f32.mrf.mxu0  ;;  %v10129_v28 = vpop.f32.mrf.mxu1  ;;  %v13747_v23 = vor.u32 %v14585_v13, %v13746_v8  ;;  %v13751_v24 = vor.u32 %v14329_v14, %v13748_v15  ;;  %v14334_v8 = vld [vmem:[%s15024_s24 + $0x6bc] sm:$0xf]  ;;  %v14589_v15 = vld [vmem:[%s15024_s24 + $0xeac] sm:$0x10] }
 0x699   : > { %v1058_v0 = vld.sshfl [vmem:[#allocation1 + $0x20] sm:$0xff pattern:$0x73625140]  ;;  %v1060_v4 = vld.sshfl [vmem:[#allocation1 + $0x30] sm:$0xff pattern:$0x73625140] }
 0x69a   : > { %v10154_v32 = vadd.f32 %v10153_v25, %v10141_v26  ;;  %v1061_v5 = vld.sshfl [vmem:[#allocation1 + $0x38] sm:$0xff pattern:$0x73625140]  ;;  %v2104_v13 = vpack.c.bf16 %v1058_v0, %v1058_v0 }
 0x69f   : > { %v10142_v40 = vpop.f32.mrf.mxu2  ;;  %v10155_v41 = vpop.f32.mrf.mxu3 }
 0x6a0   : > { %v10166_v47 = vpop.f32.mrf.mxu0  ;;  %v10179_v48 = vpop.f32.mrf.mxu1  ;;  %v13772_v40 = vld [vmem:[%s15024_s24 + $0xea8] sm:$0x10]  ;;  %v13762_v41 = vld [vmem:[%s15024_s24 + $0x6a0] sm:$0xf] }
 0x6a1   : > { %v10167_v51 = vadd.f32 %v10166_v47, %v10154_v32  ;;  %v1055_v32 = vld.sshfl [vmem:[#allocation1 + $0x8] sm:$0xff pattern:$0x73625140] }
 0x6a2   : > { %10581 = vmatmul.bf16.vlgmr.msra.gmra.mxu0 %v2092_v42  ;;  %1062 = vst [vmem:[#allocation1] ss:$4 sm:$0xff] %v381_v33  ;;  %v2101_v45 = vpack.c.bf16 %v1055_v32, %v1055_v32  ;;  %v14331_v47 = vld [vmem:[%s15024_s24 + $0x6a4] sm:$0xf] }
 0x6a3   : > { %v10180_v56 = vadd.f32 %v10179_v48, %v10167_v51  ;;  %10594 = vmatmul.bf16.vlgmr.msra.gmra.mxu1 %v2093_v43  ;;  %10684 = vmatpush.bf16.xpose.msra.mxu0 %v13731_v54  ;;  %v13764_v48 = vld [vmem:[%s15024_s24 + $0xea0] sm:$0x10]  ;;  %v2102_v51 = vpack.c.bf16 %v1056_v35, %v1056_v35  ;;  %v13771_v54 = vor.u32 %v14588_v38, %v13770_v37 }
 0x6a4   : > { %10607 = vmatmul.bf16.vlgmr.msra.gmra.mxu2 %v2094_v49  ;;  %10620 = vmatmul.bf16.vlgmr.msra.gmra.mxu3 %v2095_v50  ;;  %v383_v35 = vld [vmem:[%s15017_s12 + $0x360] sm:$0xff] }
 0x6a5   : > { %10710 = vmatpush.bf16.xpose.msra.mxu2 %v13739_v52  ;;  %10723 = vmatpush.bf16.xpose.msra.mxu3 %v13743_v53  ;;  %v2103_v52 = vpack.c.bf16 %v1057_v36, %v1057_v36 }
 0x6a6   : > { %10697 = vmatpush.bf16.xpose.msra.mxu1 %v13735_v55  ;;  %v13775_v55 = vor.u32 %v14332_v39, %v13772_v40  ;;  %v13802_v39 = vld [vmem:[%s15024_s24 + $0x6c8] sm:$0xf] }
 0x6a7   : > { %v10192_v57 = vpop.f32.mrf.mxu2  ;;  %v10205_v58 = vpop.f32.mrf.mxu3  ;;  %v14592_v40 = vld [vmem:[%s15024_s24 + $0xec4] sm:$0x10] }
 0x6a8   : > { %v10193_v59 = vadd.f32 %v10192_v57, %v10180_v56  ;;  %v10168_v60 = vpop.f32.mrf.mxu0  ;;  %v10181_v61 = vpop.f32.mrf.mxu1  ;;  %v13763_v56 = vor.u32 %v14587_v46, %v13762_v41  ;;  %v13767_v57 = vor.u32 %v14331_v47, %v13764_v48  ;;  %v14336_v41 = vld [vmem:[%s15024_s24 + $0x6cc] sm:$0xf]  ;;  %v14591_v48 = vld [vmem:[%s15024_s24 + $0xebc] sm:$0x10] }
 0x6a9   : > { %v1064_v33 = vld.sshfl [vmem:[#allocation1] sm:$0xff pattern:$0x73625140]  ;;  %v1066_v37 = vld.sshfl [vmem:[#allocation1 + $0x10] sm:$0xff pattern:$0x73625140] }
 0x6aa   : > { %v10206_v1 = vadd.f32 %v10205_v58, %v10193_v59  ;;  %v1067_v38 = vld.sshfl [vmem:[#allocation1 + $0x18] sm:$0xff pattern:$0x73625140]  ;;  %v2108_v46 = vpack.c.bf16 %v1064_v33, %v1064_v33 }
 0x6af   : > { %v10194_v9 = vpop.f32.mrf.mxu2  ;;  %v10207_v10 = vpop.f32.mrf.mxu3 }
 0x6b0   : > { %v10218_v16 = vpop.f32.mrf.mxu0  ;;  %v10231_v17 = vpop.f32.mrf.mxu1  ;;  %v13788_v9 = vld [vmem:[%s15024_s24 + $0xeb8] sm:$0x10]  ;;  %v13778_v10 = vld [vmem:[%s15024_s24 + $0x6b0] sm:$0xf] }
 0x6b1   : > { %v10219_v20 = vadd.f32 %v10218_v16, %v10206_v1  ;;  %v1059_v1 = vld.sshfl [vmem:[#allocation1 + $0x28] sm:$0xff pattern:$0x73625140]  ;;  %v14333_v16 = vld [vmem:[%s15024_s24 + $0x6b4] sm:$0xf] }
 0x6b2   : > { %10633 = vmatmul.bf16.vlgmr.msrb.gmra.mxu0 %v2096_v11  ;;  %1063 = vst [vmem:[#allocation1 + $0x20] ss:$4 sm:$0xff] %v382_v2  ;;  %v2105_v14 = vpack.c.bf16 %v1059_v1, %v1059_v1 }
 0x6b3   : > { %v10232_v25 = vadd.f32 %v10231_v17, %v10219_v20  ;;  %10646 = vmatmul.bf16.vlgmr.msrb.gmra.mxu1 %v2097_v12  ;;  %10736 = vmatpush.bf16.xpose.msrb.mxu0 %v13747_v23  ;;  %v13780_v17 = vld [vmem:[%s15024_s24 + $0xeb0] sm:$0x10]  ;;  %v2106_v20 = vpack.c.bf16 %v1060_v4, %v1060_v4  ;;  %v13787_v23 = vor.u32 %v14590_v7, %v13786_v6  ;;  %v384_v4 = vld [vmem:[%s15017_s12 + $0x368] sm:$0xff] }
 0x6b4   : > { %10659 = vmatmul.bf16.vlgmr.msrb.gmra.mxu2 %v2098_v18  ;;  %10672 = vmatmul.bf16.vlgmr.msrb.gmra.mxu3 %v2099_v19 }
 0x6b5   : > { %10762 = vmatpush.bf16.xpose.msrb.mxu2 %v13755_v21  ;;  %10775 = vmatpush.bf16.xpose.msrb.mxu3 %v13759_v22  ;;  %v2107_v21 = vpack.c.bf16 %v1061_v5, %v1061_v5 }
 0x6b6   : > { %10749 = vmatpush.bf16.xpose.msrb.mxu1 %v13751_v24  ;;  %v13791_v24 = vor.u32 %v14334_v8, %v13788_v9  ;;  %v13818_v8 = vld [vmem:[%s15024_s24 + $0x6d8] sm:$0xf] }
 0x6b7   : > { %v10244_v26 = vpop.f32.mrf.mxu2  ;;  %v10257_v27 = vpop.f32.mrf.mxu3  ;;  %v14594_v9 = vld [vmem:[%s15024_s24 + $0xed4] sm:$0x10] }
 0x6b8   : > { %v10245_v28 = vadd.f32 %v10244_v26, %v10232_v25  ;;  %v10220_v29 = vpop.f32.mrf.mxu0  ;;  %v10233_v30 = vpop.f32.mrf.mxu1  ;;  %v13779_v25 = vor.u32 %v14589_v15, %v13778_v10  ;;  %v13783_v26 = vor.u32 %v14333_v16, %v13780_v17  ;;  %v14338_v10 = vld [vmem:[%s15024_s24 + $0x6dc] sm:$0xf]  ;;  %v14593_v17 = vld [vmem:[%s15024_s24 + $0xecc] sm:$0x10] }
 0x6b9   : > { %v1068_v2 = vld.sshfl [vmem:[#allocation1 + $0x20] sm:$0xff pattern:$0x73625140]  ;;  %v1070_v6 = vld.sshfl [vmem:[#allocation1 + $0x30] sm:$0xff pattern:$0x73625140] }
 0x6ba   : > { %v10258_v34 = vadd.f32 %v10257_v27, %v10245_v28  ;;  %v1071_v7 = vld.sshfl [vmem:[#allocation1 + $0x38] sm:$0xff pattern:$0x73625140]  ;;  %v2112_v15 = vpack.c.bf16 %v1068_v2, %v1068_v2 }
 0x6bf   : > { %v10246_v42 = vpop.f32.mrf.mxu2  ;;  %v10259_v43 = vpop.f32.mrf.mxu3 }
 0x6c0   : > { %v10270_v49 = vpop.f32.mrf.mxu0  ;;  %v10283_v50 = vpop.f32.mrf.mxu1  ;;  %v13804_v42 = vld [vmem:[%s15024_s24 + $0xec8] sm:$0x10]  ;;  %v13794_v43 = vld [vmem:[%s15024_s24 + $0x6c0] sm:$0xf] }
 0x6c1   : > { %v10271_v53 = vadd.f32 %v10270_v49, %v10258_v34  ;;  %v1065_v34 = vld.sshfl [vmem:[#allocation1 + $0x8] sm:$0xff pattern:$0x73625140] }
 0x6c2   : > { %10685 = vmatmul.bf16.vlgmr.msra.gmra.mxu0 %v2100_v44  ;;  %1072 = vst [vmem:[#allocation1] ss:$4 sm:$0xff] %v383_v35  ;;  %v2109_v47 = vpack.c.bf16 %v1065_v34, %v1065_v34  ;;  %v14335_v49 = vld [vmem:[%s15024_s24 + $0x6c4] sm:$0xf] }
 0x6c3   : > { %v10284_v58 = vadd.f32 %v10283_v50, %v10271_v53  ;;  %10698 = vmatmul.bf16.vlgmr.msra.gmra.mxu1 %v2101_v45  ;;  %10788 = vmatpush.bf16.xpose.msra.mxu0 %v13763_v56  ;;  %v13796_v50 = vld [vmem:[%s15024_s24 + $0xec0] sm:$0x10]  ;;  %v2110_v53 = vpack.c.bf16 %v1066_v37, %v1066_v37  ;;  %v13803_v56 = vor.u32 %v14592_v40, %v13802_v39  ;;  %v385_v37 = vld [vmem:[%s15017_s12 + $0x370] sm:$0xff] }
 0x6c4   : > { %10711 = vmatmul.bf16.vlgmr.msra.gmra.mxu2 %v2102_v51  ;;  %10724 = vmatmul.bf16.vlgmr.msra.gmra.mxu3 %v2103_v52 }
 0x6c5   : > { %10814 = vmatpush.bf16.xpose.msra.mxu2 %v13771_v54  ;;  %10827 = vmatpush.bf16.xpose.msra.mxu3 %v13775_v55  ;;  %v2111_v54 = vpack.c.bf16 %v1067_v38, %v1067_v38 }
 0x6c6   : > { %10801 = vmatpush.bf16.xpose.msra.mxu1 %v13767_v57  ;;  %v13807_v57 = vor.u32 %v14336_v41, %v13804_v42  ;;  %v13834_v41 = vld [vmem:[%s15024_s24 + $0x6e8] sm:$0xf] }
 0x6c7   : > { %v10296_v59 = vpop.f32.mrf.mxu2  ;;  %v10309_v60 = vpop.f32.mrf.mxu3  ;;  %v14596_v42 = vld [vmem:[%s15024_s24 + $0xee4] sm:$0x10] }
 0x6c8   : > { %v10297_v61 = vadd.f32 %v10296_v59, %v10284_v58  ;;  %v10272_v62 = vpop.f32.mrf.mxu0  ;;  %v10285_v63 = vpop.f32.mrf.mxu1  ;;  %v13795_v58 = vor.u32 %v14591_v48, %v13794_v43  ;;  %v13799_v59 = vor.u32 %v14335_v49, %v13796_v50  ;;  %v14340_v43 = vld [vmem:[%s15024_s24 + $0x6ec] sm:$0xf]  ;;  %v14595_v50 = vld [vmem:[%s15024_s24 + $0xedc] sm:$0x10] }
 0x6c9   : > { %v1074_v35 = vld.sshfl [vmem:[#allocation1] sm:$0xff pattern:$0x73625140]  ;;  %v1076_v39 = vld.sshfl [vmem:[#allocation1 + $0x10] sm:$0xff pattern:$0x73625140] }
 0x6ca   : > { %v10310_v3 = vadd.f32 %v10309_v60, %v10297_v61  ;;  %v1077_v40 = vld.sshfl [vmem:[#allocation1 + $0x18] sm:$0xff pattern:$0x73625140]  ;;  %v2116_v48 = vpack.c.bf16 %v1074_v35, %v1074_v35 }
 0x6cf   : > { %v10298_v11 = vpop.f32.mrf.mxu2  ;;  %v10311_v12 = vpop.f32.mrf.mxu3 }
 0x6d0   : > { %v10322_v18 = vpop.f32.mrf.mxu0  ;;  %v10335_v19 = vpop.f32.mrf.mxu1  ;;  %v13820_v11 = vld [vmem:[%s15024_s24 + $0xed8] sm:$0x10]  ;;  %v13810_v12 = vld [vmem:[%s15024_s24 + $0x6d0] sm:$0xf] }
 0x6d1   : > { %v10323_v22 = vadd.f32 %v10322_v18, %v10310_v3  ;;  %v1069_v3 = vld.sshfl [vmem:[#allocation1 + $0x28] sm:$0xff pattern:$0x73625140]  ;;  %v14337_v18 = vld [vmem:[%s15024_s24 + $0x6d4] sm:$0xf] }
 0x6d2   : > { %10737 = vmatmul.bf16.vlgmr.msrb.gmra.mxu0 %v2104_v13  ;;  %1073 = vst [vmem:[#allocation1 + $0x20] ss:$4 sm:$0xff] %v384_v4  ;;  %v2113_v16 = vpack.c.bf16 %v1069_v3, %v1069_v3 }
 0x6d3   : > { %v10336_v27 = vadd.f32 %v10335_v19, %v10323_v22  ;;  %10750 = vmatmul.bf16.vlgmr.msrb.gmra.mxu1 %v2105_v14  ;;  %10840 = vmatpush.bf16.xpose.msrb.mxu0 %v13779_v25  ;;  %v13812_v19 = vld [vmem:[%s15024_s24 + $0xed0] sm:$0x10]  ;;  %v2114_v22 = vpack.c.bf16 %v1070_v6, %v1070_v6  ;;  %v13819_v25 = vor.u32 %v14594_v9, %v13818_v8  ;;  %v386_v6 = vld [vmem:[%s15017_s12 + $0x378] sm:$0xff] }
 0x6d4   : > { %10763 = vmatmul.bf16.vlgmr.msrb.gmra.mxu2 %v2106_v20  ;;  %10776 = vmatmul.bf16.vlgmr.msrb.gmra.mxu3 %v2107_v21 }
 0x6d5   : > { %10866 = vmatpush.bf16.xpose.msrb.mxu2 %v13787_v23  ;;  %10879 = vmatpush.bf16.xpose.msrb.mxu3 %v13791_v24  ;;  %v2115_v23 = vpack.c.bf16 %v1071_v7, %v1071_v7 }
 0x6d6   : > { %10853 = vmatpush.bf16.xpose.msrb.mxu1 %v13783_v26  ;;  %v13823_v26 = vor.u32 %v14338_v10, %v13820_v11  ;;  %v13850_v10 = vld [vmem:[%s15024_s24 + $0x6f8] sm:$0xf] }
 0x6d7   : > { %v10348_v28 = vpop.f32.mrf.mxu2  ;;  %v10361_v29 = vpop.f32.mrf.mxu3  ;;  %v14598_v11 = vld [vmem:[%s15024_s24 + $0xef4] sm:$0x10] }
 0x6d8   : > { %v10349_v30 = vadd.f32 %v10348_v28, %v10336_v27  ;;  %v10324_v31 = vpop.f32.mrf.mxu0  ;;  %v10337_v32 = vpop.f32.mrf.mxu1  ;;  %v13811_v27 = vor.u32 %v14593_v17, %v13810_v12  ;;  %v13815_v28 = vor.u32 %v14337_v18, %v13812_v19  ;;  %v14342_v12 = vld [vmem:[%s15024_s24 + $0x6fc] sm:$0xf]  ;;  %v14597_v19 = vld [vmem:[%s15024_s24 + $0xeec] sm:$0x10] }
 0x6d9   : > { %v1078_v4 = vld.sshfl [vmem:[#allocation1 + $0x20] sm:$0xff pattern:$0x73625140]  ;;  %v1080_v8 = vld.sshfl [vmem:[#allocation1 + $0x30] sm:$0xff pattern:$0x73625140] }
 0x6da   : > { %v10362_v36 = vadd.f32 %v10361_v29, %v10349_v30  ;;  %v1081_v9 = vld.sshfl [vmem:[#allocation1 + $0x38] sm:$0xff pattern:$0x73625140]  ;;  %v2120_v17 = vpack.c.bf16 %v1078_v4, %v1078_v4 }
 0x6df   : > { %v10350_v44 = vpop.f32.mrf.mxu2  ;;  %v10363_v45 = vpop.f32.mrf.mxu3 }
 0x6e0   : > { %v10374_v51 = vpop.f32.mrf.mxu0  ;;  %v10387_v52 = vpop.f32.mrf.mxu1  ;;  %v13836_v44 = vld [vmem:[%s15024_s24 + $0xee8] sm:$0x10]  ;;  %v13826_v45 = vld [vmem:[%s15024_s24 + $0x6e0] sm:$0xf] }
 0x6e1   : > { %v10375_v55 = vadd.f32 %v10374_v51, %v10362_v36  ;;  %v1075_v36 = vld.sshfl [vmem:[#allocation1 + $0x8] sm:$0xff pattern:$0x73625140] }
 0x6e2   : > { %10789 = vmatmul.bf16.vlgmr.msra.gmra.mxu0 %v2108_v46  ;;  %1082 = vst [vmem:[#allocation1] ss:$4 sm:$0xff] %v385_v37  ;;  %v2117_v49 = vpack.c.bf16 %v1075_v36, %v1075_v36  ;;  %v14339_v51 = vld [vmem:[%s15024_s24 + $0x6e4] sm:$0xf] }
 0x6e3   : > { %v10388_v60 = vadd.f32 %v10387_v52, %v10375_v55  ;;  %10802 = vmatmul.bf16.vlgmr.msra.gmra.mxu1 %v2109_v47  ;;  %10892 = vmatpush.bf16.xpose.msra.mxu0 %v13795_v58  ;;  %v13828_v52 = vld [vmem:[%s15024_s24 + $0xee0] sm:$0x10]  ;;  %v2118_v55 = vpack.c.bf16 %v1076_v39, %v1076_v39  ;;  %v13835_v58 = vor.u32 %v14596_v42, %v13834_v41 }
 0x6e4   : > { %10815 = vmatmul.bf16.vlgmr.msra.gmra.mxu2 %v2110_v53  ;;  %10828 = vmatmul.bf16.vlgmr.msra.gmra.mxu3 %v2111_v54  ;;  %v387_v39 = vld [vmem:[%s15017_s12 + $0x380] sm:$0xff] }
 0x6e5   : > { %10918 = vmatpush.bf16.xpose.msra.mxu2 %v13803_v56  ;;  %10931 = vmatpush.bf16.xpose.msra.mxu3 %v13807_v57  ;;  %v2119_v56 = vpack.c.bf16 %v1077_v40, %v1077_v40 }
 0x6e6   : > { %10905 = vmatpush.bf16.xpose.msra.mxu1 %v13799_v59  ;;  %v13839_v59 = vor.u32 %v14340_v43, %v13836_v44  ;;  %v13866_v43 = vld [vmem:[%s15024_s24 + $0x708] sm:$0xf] }
 0x6e7   : > { %v10400_v61 = vpop.f32.mrf.mxu2  ;;  %v10413_v62 = vpop.f32.mrf.mxu3  ;;  %v14600_v44 = vld [vmem:[%s15024_s24 + $0xf04] sm:$0x10] }
 0x6e8   : > { %v10401_v63 = vadd.f32 %v10400_v61, %v10388_v60  ;;  %v10376_v0 = vpop.f32.mrf.mxu0  ;;  %v10389_v1 = vpop.f32.mrf.mxu1  ;;  %v13827_v60 = vor.u32 %v14595_v50, %v13826_v45  ;;  %v13831_v61 = vor.u32 %v14339_v51, %v13828_v52  ;;  %v14344_v45 = vld [vmem:[%s15024_s24 + $0x70c] sm:$0xf]  ;;  %v14599_v52 = vld [vmem:[%s15024_s24 + $0xefc] sm:$0x10] }
 0x6e9   : > { %v1084_v37 = vld.sshfl [vmem:[#allocation1] sm:$0xff pattern:$0x73625140]  ;;  %v1086_v41 = vld.sshfl [vmem:[#allocation1 + $0x10] sm:$0xff pattern:$0x73625140] }
 0x6ea   : > { %v10414_v5 = vadd.f32 %v10413_v62, %v10401_v63  ;;  %v1087_v42 = vld.sshfl [vmem:[#allocation1 + $0x18] sm:$0xff pattern:$0x73625140]  ;;  %v2124_v50 = vpack.c.bf16 %v1084_v37, %v1084_v37 }
 0x6ef   : > { %v10402_v13 = vpop.f32.mrf.mxu2  ;;  %v10415_v14 = vpop.f32.mrf.mxu3 }
 0x6f0   : > { %v10426_v20 = vpop.f32.mrf.mxu0  ;;  %v10439_v21 = vpop.f32.mrf.mxu1  ;;  %v13852_v13 = vld [vmem:[%s15024_s24 + $0xef8] sm:$0x10]  ;;  %v13842_v14 = vld [vmem:[%s15024_s24 + $0x6f0] sm:$0xf] }
 0x6f1   : > { %v10427_v24 = vadd.f32 %v10426_v20, %v10414_v5  ;;  %v1079_v5 = vld.sshfl [vmem:[#allocation1 + $0x28] sm:$0xff pattern:$0x73625140]  ;;  %v14341_v20 = vld [vmem:[%s15024_s24 + $0x6f4] sm:$0xf] }
 0x6f2   : > { %10841 = vmatmul.bf16.vlgmr.msrb.gmra.mxu0 %v2112_v15  ;;  %1083 = vst [vmem:[#allocation1 + $0x20] ss:$4 sm:$0xff] %v386_v6  ;;  %v2121_v18 = vpack.c.bf16 %v1079_v5, %v1079_v5 }
 0x6f3   : > { %v10440_v29 = vadd.f32 %v10439_v21, %v10427_v24  ;;  %10854 = vmatmul.bf16.vlgmr.msrb.gmra.mxu1 %v2113_v16  ;;  %10944 = vmatpush.bf16.xpose.msrb.mxu0 %v13811_v27  ;;  %v13844_v21 = vld [vmem:[%s15024_s24 + $0xef0] sm:$0x10]  ;;  %v2122_v24 = vpack.c.bf16 %v1080_v8, %v1080_v8  ;;  %v13851_v27 = vor.u32 %v14598_v11, %v13850_v10  ;;  %v388_v8 = vld [vmem:[%s15017_s12 + $0x388] sm:$0xff] }
 0x6f4   : > { %10867 = vmatmul.bf16.vlgmr.msrb.gmra.mxu2 %v2114_v22  ;;  %10880 = vmatmul.bf16.vlgmr.msrb.gmra.mxu3 %v2115_v23 }
 0x6f5   : > { %10970 = vmatpush.bf16.xpose.msrb.mxu2 %v13819_v25  ;;  %10983 = vmatpush.bf16.xpose.msrb.mxu3 %v13823_v26  ;;  %v2123_v25 = vpack.c.bf16 %v1081_v9, %v1081_v9 }
 0x6f6   : > { %10957 = vmatpush.bf16.xpose.msrb.mxu1 %v13815_v28  ;;  %v13855_v28 = vor.u32 %v14342_v12, %v13852_v13  ;;  %v13882_v12 = vld [vmem:[%s15024_s24 + $0x718] sm:$0xf] }
 0x6f7   : > { %v10452_v30 = vpop.f32.mrf.mxu2  ;;  %v10465_v31 = vpop.f32.mrf.mxu3  ;;  %v14602_v13 = vld [vmem:[%s15024_s24 + $0xf14] sm:$0x10] }
 0x6f8   : > { %v10453_v32 = vadd.f32 %v10452_v30, %v10440_v29  ;;  %v10428_v33 = vpop.f32.mrf.mxu0  ;;  %v10441_v34 = vpop.f32.mrf.mxu1  ;;  %v13843_v29 = vor.u32 %v14597_v19, %v13842_v14  ;;  %v13847_v30 = vor.u32 %v14341_v20, %v13844_v21  ;;  %v14346_v14 = vld [vmem:[%s15024_s24 + $0x71c] sm:$0xf]  ;;  %v14601_v21 = vld [vmem:[%s15024_s24 + $0xf0c] sm:$0x10] }
 0x6f9   : > { %v1088_v6 = vld.sshfl [vmem:[#allocation1 + $0x20] sm:$0xff pattern:$0x73625140]  ;;  %v1090_v10 = vld.sshfl [vmem:[#allocation1 + $0x30] sm:$0xff pattern:$0x73625140] }
 0x6fa   : > { %v10466_v38 = vadd.f32 %v10465_v31, %v10453_v32  ;;  %v1091_v11 = vld.sshfl [vmem:[#allocation1 + $0x38] sm:$0xff pattern:$0x73625140]  ;;  %v2128_v19 = vpack.c.bf16 %v1088_v6, %v1088_v6 }
 0x6ff   : > { %v10454_v46 = vpop.f32.mrf.mxu2  ;;  %v10467_v47 = vpop.f32.mrf.mxu3 }
 0x700   : > { %v10478_v53 = vpop.f32.mrf.mxu0  ;;  %v10491_v54 = vpop.f32.mrf.mxu1  ;;  %v13868_v46 = vld [vmem:[%s15024_s24 + $0xf08] sm:$0x10]  ;;  %v13858_v47 = vld [vmem:[%s15024_s24 + $0x700] sm:$0xf] }
 0x701   : > { %v10479_v57 = vadd.f32 %v10478_v53, %v10466_v38  ;;  %v1085_v38 = vld.sshfl [vmem:[#allocation1 + $0x8] sm:$0xff pattern:$0x73625140] }
 0x702   : > { %10893 = vmatmul.bf16.vlgmr.msra.gmra.mxu0 %v2116_v48  ;;  %1092 = vst [vmem:[#allocation1] ss:$4 sm:$0xff] %v387_v39  ;;  %v2125_v51 = vpack.c.bf16 %v1085_v38, %v1085_v38  ;;  %v14343_v53 = vld [vmem:[%s15024_s24 + $0x704] sm:$0xf] }
 0x703   : > { %v10492_v62 = vadd.f32 %v10491_v54, %v10479_v57  ;;  %10906 = vmatmul.bf16.vlgmr.msra.gmra.mxu1 %v2117_v49  ;;  %10996 = vmatpush.bf16.xpose.msra.mxu0 %v13827_v60  ;;  %v13860_v54 = vld [vmem:[%s15024_s24 + $0xf00] sm:$0x10]  ;;  %v2126_v57 = vpack.c.bf16 %v1086_v41, %v1086_v41  ;;  %v13867_v60 = vor.u32 %v14600_v44, %v13866_v43  ;;  %v389_v41 = vld [vmem:[%s15017_s12 + $0x390] sm:$0xff] }
 0x704   : > { %10919 = vmatmul.bf16.vlgmr.msra.gmra.mxu2 %v2118_v55  ;;  %10932 = vmatmul.bf16.vlgmr.msra.gmra.mxu3 %v2119_v56 }
 0x705   : > { %11022 = vmatpush.bf16.xpose.msra.mxu2 %v13835_v58  ;;  %11035 = vmatpush.bf16.xpose.msra.mxu3 %v13839_v59  ;;  %v2127_v58 = vpack.c.bf16 %v1087_v42, %v1087_v42 }
 0x706   : > { %11009 = vmatpush.bf16.xpose.msra.mxu1 %v13831_v61  ;;  %v13871_v61 = vor.u32 %v14344_v45, %v13868_v46  ;;  %v13898_v45 = vld [vmem:[%s15024_s24 + $0x728] sm:$0xf] }
 0x707   : > { %v10504_v63 = vpop.f32.mrf.mxu2  ;;  %v10517_v0 = vpop.f32.mrf.mxu3  ;;  %v14604_v46 = vld [vmem:[%s15024_s24 + $0xf24] sm:$0x10] }
 0x708   : > { %v10505_v1 = vadd.f32 %v10504_v63, %v10492_v62  ;;  %v10480_v2 = vpop.f32.mrf.mxu0  ;;  %v10493_v3 = vpop.f32.mrf.mxu1  ;;  %v13859_v62 = vor.u32 %v14599_v52, %v13858_v47  ;;  %v13863_v63 = vor.u32 %v14343_v53, %v13860_v54  ;;  %v14348_v47 = vld [vmem:[%s15024_s24 + $0x72c] sm:$0xf]  ;;  %v14603_v54 = vld [vmem:[%s15024_s24 + $0xf1c] sm:$0x10] }
 0x709   : > { %v1094_v39 = vld.sshfl [vmem:[#allocation1] sm:$0xff pattern:$0x73625140]  ;;  %v1096_v43 = vld.sshfl [vmem:[#allocation1 + $0x10] sm:$0xff pattern:$0x73625140] }
 0x70a   : > { %v10518_v7 = vadd.f32 %v10517_v0, %v10505_v1  ;;  %v1097_v44 = vld.sshfl [vmem:[#allocation1 + $0x18] sm:$0xff pattern:$0x73625140]  ;;  %v2132_v52 = vpack.c.bf16 %v1094_v39, %v1094_v39 }
 0x70f   : > { %v10506_v15 = vpop.f32.mrf.mxu2  ;;  %v10519_v16 = vpop.f32.mrf.mxu3 }
 0x710   : > { %v10530_v22 = vpop.f32.mrf.mxu0  ;;  %v10543_v23 = vpop.f32.mrf.mxu1  ;;  %v13884_v15 = vld [vmem:[%s15024_s24 + $0xf18] sm:$0x10]  ;;  %v13874_v16 = vld [vmem:[%s15024_s24 + $0x710] sm:$0xf] }
 0x711   : > { %v10531_v26 = vadd.f32 %v10530_v22, %v10518_v7  ;;  %v1089_v7 = vld.sshfl [vmem:[#allocation1 + $0x28] sm:$0xff pattern:$0x73625140]  ;;  %v14345_v22 = vld [vmem:[%s15024_s24 + $0x714] sm:$0xf] }
 0x712   : > { %10945 = vmatmul.bf16.vlgmr.msrb.gmra.mxu0 %v2120_v17  ;;  %1093 = vst [vmem:[#allocation1 + $0x20] ss:$4 sm:$0xff] %v388_v8  ;;  %v2129_v20 = vpack.c.bf16 %v1089_v7, %v1089_v7 }
 0x713   : > { %v10544_v31 = vadd.f32 %v10543_v23, %v10531_v26  ;;  %10958 = vmatmul.bf16.vlgmr.msrb.gmra.mxu1 %v2121_v18  ;;  %11048 = vmatpush.bf16.xpose.msrb.mxu0 %v13843_v29  ;;  %v13876_v23 = vld [vmem:[%s15024_s24 + $0xf10] sm:$0x10]  ;;  %v2130_v26 = vpack.c.bf16 %v1090_v10, %v1090_v10  ;;  %v13883_v29 = vor.u32 %v14602_v13, %v13882_v12  ;;  %v390_v10 = vld [vmem:[%s15017_s12 + $0x398] sm:$0xff] }
 0x714   : > { %10971 = vmatmul.bf16.vlgmr.msrb.gmra.mxu2 %v2122_v24  ;;  %10984 = vmatmul.bf16.vlgmr.msrb.gmra.mxu3 %v2123_v25 }
 0x715   : > { %11074 = vmatpush.bf16.xpose.msrb.mxu2 %v13851_v27  ;;  %11087 = vmatpush.bf16.xpose.msrb.mxu3 %v13855_v28  ;;  %v2131_v27 = vpack.c.bf16 %v1091_v11, %v1091_v11 }
 0x716   : > { %11061 = vmatpush.bf16.xpose.msrb.mxu1 %v13847_v30  ;;  %v13887_v30 = vor.u32 %v14346_v14, %v13884_v15  ;;  %v13914_v14 = vld [vmem:[%s15024_s24 + $0x738] sm:$0xf] }
 0x717   : > { %v10556_v32 = vpop.f32.mrf.mxu2  ;;  %v10569_v33 = vpop.f32.mrf.mxu3  ;;  %v14606_v15 = vld [vmem:[%s15024_s24 + $0xf34] sm:$0x10] }
 0x718   : > { %v10557_v34 = vadd.f32 %v10556_v32, %v10544_v31  ;;  %v10532_v35 = vpop.f32.mrf.mxu0  ;;  %v10545_v36 = vpop.f32.mrf.mxu1  ;;  %v13875_v31 = vor.u32 %v14601_v21, %v13874_v16  ;;  %v13879_v32 = vor.u32 %v14345_v22, %v13876_v23  ;;  %v14350_v16 = vld [vmem:[%s15024_s24 + $0x73c] sm:$0xf]  ;;  %v14605_v23 = vld [vmem:[%s15024_s24 + $0xf2c] sm:$0x10] }
 0x719   : > { %v1098_v8 = vld.sshfl [vmem:[#allocation1 + $0x20] sm:$0xff pattern:$0x73625140]  ;;  %v1100_v12 = vld.sshfl [vmem:[#allocation1 + $0x30] sm:$0xff pattern:$0x73625140] }
 0x71a   : > { %v10570_v40 = vadd.f32 %v10569_v33, %v10557_v34  ;;  %v1101_v13 = vld.sshfl [vmem:[#allocation1 + $0x38] sm:$0xff pattern:$0x73625140]  ;;  %v2136_v21 = vpack.c.bf16 %v1098_v8, %v1098_v8 }
 0x71f   : > { %v10558_v48 = vpop.f32.mrf.mxu2  ;;  %v10571_v49 = vpop.f32.mrf.mxu3 }
 0x720   : > { %v10582_v55 = vpop.f32.mrf.mxu0  ;;  %v10595_v56 = vpop.f32.mrf.mxu1  ;;  %v13900_v48 = vld [vmem:[%s15024_s24 + $0xf28] sm:$0x10]  ;;  %v13890_v49 = vld [vmem:[%s15024_s24 + $0x720] sm:$0xf] }
 0x721   : > { %v10583_v59 = vadd.f32 %v10582_v55, %v10570_v40  ;;  %v1095_v40 = vld.sshfl [vmem:[#allocation1 + $0x8] sm:$0xff pattern:$0x73625140] }
 0x722   : > { %10997 = vmatmul.bf16.vlgmr.msra.gmra.mxu0 %v2124_v50  ;;  %1102 = vst [vmem:[#allocation1] ss:$4 sm:$0xff] %v389_v41  ;;  %v2133_v53 = vpack.c.bf16 %v1095_v40, %v1095_v40  ;;  %v14347_v55 = vld [vmem:[%s15024_s24 + $0x724] sm:$0xf] }
 0x723   : > { %v10596_v0 = vadd.f32 %v10595_v56, %v10583_v59  ;;  %11010 = vmatmul.bf16.vlgmr.msra.gmra.mxu1 %v2125_v51  ;;  %11100 = vmatpush.bf16.xpose.msra.mxu0 %v13859_v62  ;;  %v13892_v56 = vld [vmem:[%s15024_s24 + $0xf20] sm:$0x10]  ;;  %v2134_v59 = vpack.c.bf16 %v1096_v43, %v1096_v43  ;;  %v13899_v62 = vor.u32 %v14604_v46, %v13898_v45 }
 0x724   : > { %11023 = vmatmul.bf16.vlgmr.msra.gmra.mxu2 %v2126_v57  ;;  %11036 = vmatmul.bf16.vlgmr.msra.gmra.mxu3 %v2127_v58  ;;  %v391_v43 = vld [vmem:[%s15017_s12 + $0x3a0] sm:$0xff] }
 0x725   : > { %11126 = vmatpush.bf16.xpose.msra.mxu2 %v13867_v60  ;;  %11139 = vmatpush.bf16.xpose.msra.mxu3 %v13871_v61  ;;  %v2135_v60 = vpack.c.bf16 %v1097_v44, %v1097_v44 }
 0x726   : > { %11113 = vmatpush.bf16.xpose.msra.mxu1 %v13863_v63  ;;  %v13903_v63 = vor.u32 %v14348_v47, %v13900_v48  ;;  %v13930_v47 = vld [vmem:[%s15024_s24 + $0x748] sm:$0xf] }
 0x727   : > { %v10608_v1 = vpop.f32.mrf.mxu2  ;;  %v10621_v2 = vpop.f32.mrf.mxu3  ;;  %v14608_v48 = vld [vmem:[%s15024_s24 + $0xf44] sm:$0x10] }
 0x728   : > { %v10609_v3 = vadd.f32 %v10608_v1, %v10596_v0  ;;  %v10584_v4 = vpop.f32.mrf.mxu0  ;;  %v10597_v5 = vpop.f32.mrf.mxu1  ;;  %v13891_v0 = vor.u32 %v14603_v54, %v13890_v49  ;;  %v13895_v1 = vor.u32 %v14347_v55, %v13892_v56  ;;  %v14352_v49 = vld [vmem:[%s15024_s24 + $0x74c] sm:$0xf]  ;;  %v14607_v56 = vld [vmem:[%s15024_s24 + $0xf3c] sm:$0x10] }
 0x729   : > { %v1104_v41 = vld.sshfl [vmem:[#allocation1] sm:$0xff pattern:$0x73625140]  ;;  %v1106_v45 = vld.sshfl [vmem:[#allocation1 + $0x10] sm:$0xff pattern:$0x73625140] }
 0x72a   : > { %v10622_v9 = vadd.f32 %v10621_v2, %v10609_v3  ;;  %v1107_v46 = vld.sshfl [vmem:[#allocation1 + $0x18] sm:$0xff pattern:$0x73625140]  ;;  %v2140_v54 = vpack.c.bf16 %v1104_v41, %v1104_v41 }
 0x72f   : > { %v10610_v17 = vpop.f32.mrf.mxu2  ;;  %v10623_v18 = vpop.f32.mrf.mxu3 }
 0x730   : > { %v10634_v24 = vpop.f32.mrf.mxu0  ;;  %v10647_v25 = vpop.f32.mrf.mxu1  ;;  %v13916_v17 = vld [vmem:[%s15024_s24 + $0xf38] sm:$0x10]  ;;  %v13906_v18 = vld [vmem:[%s15024_s24 + $0x730] sm:$0xf] }
 0x731   : > { %v10635_v28 = vadd.f32 %v10634_v24, %v10622_v9  ;;  %v1099_v9 = vld.sshfl [vmem:[#allocation1 + $0x28] sm:$0xff pattern:$0x73625140]  ;;  %v14349_v24 = vld [vmem:[%s15024_s24 + $0x734] sm:$0xf] }
 0x732   : > { %11049 = vmatmul.bf16.vlgmr.msrb.gmra.mxu0 %v2128_v19  ;;  %1103 = vst [vmem:[#allocation1 + $0x20] ss:$4 sm:$0xff] %v390_v10  ;;  %v2137_v22 = vpack.c.bf16 %v1099_v9, %v1099_v9 }
 0x733   : > { %v10648_v33 = vadd.f32 %v10647_v25, %v10635_v28  ;;  %11062 = vmatmul.bf16.vlgmr.msrb.gmra.mxu1 %v2129_v20  ;;  %11152 = vmatpush.bf16.xpose.msrb.mxu0 %v13875_v31  ;;  %v13908_v25 = vld [vmem:[%s15024_s24 + $0xf30] sm:$0x10]  ;;  %v2138_v28 = vpack.c.bf16 %v1100_v12, %v1100_v12  ;;  %v13915_v31 = vor.u32 %v14606_v15, %v13914_v14  ;;  %v392_v12 = vld [vmem:[%s15017_s12 + $0x3a8] sm:$0xff] }
 0x734   : > { %11075 = vmatmul.bf16.vlgmr.msrb.gmra.mxu2 %v2130_v26  ;;  %11088 = vmatmul.bf16.vlgmr.msrb.gmra.mxu3 %v2131_v27 }
 0x735   : > { %11178 = vmatpush.bf16.xpose.msrb.mxu2 %v13883_v29  ;;  %11191 = vmatpush.bf16.xpose.msrb.mxu3 %v13887_v30  ;;  %v2139_v29 = vpack.c.bf16 %v1101_v13, %v1101_v13 }
 0x736   : > { %11165 = vmatpush.bf16.xpose.msrb.mxu1 %v13879_v32  ;;  %v13919_v32 = vor.u32 %v14350_v16, %v13916_v17  ;;  %v13946_v16 = vld [vmem:[%s15024_s24 + $0x758] sm:$0xf] }
 0x737   : > { %v10660_v34 = vpop.f32.mrf.mxu2  ;;  %v10673_v35 = vpop.f32.mrf.mxu3  ;;  %v14610_v17 = vld [vmem:[%s15024_s24 + $0xf54] sm:$0x10] }
 0x738   : > { %v10661_v36 = vadd.f32 %v10660_v34, %v10648_v33  ;;  %v10636_v37 = vpop.f32.mrf.mxu0  ;;  %v10649_v38 = vpop.f32.mrf.mxu1  ;;  %v13907_v33 = vor.u32 %v14605_v23, %v13906_v18  ;;  %v13911_v34 = vor.u32 %v14349_v24, %v13908_v25  ;;  %v14354_v18 = vld [vmem:[%s15024_s24 + $0x75c] sm:$0xf]  ;;  %v14609_v25 = vld [vmem:[%s15024_s24 + $0xf4c] sm:$0x10] }
 0x739   : > { %v1108_v10 = vld.sshfl [vmem:[#allocation1 + $0x20] sm:$0xff pattern:$0x73625140]  ;;  %v1110_v14 = vld.sshfl [vmem:[#allocation1 + $0x30] sm:$0xff pattern:$0x73625140] }
 0x73a   : > { %v10674_v42 = vadd.f32 %v10673_v35, %v10661_v36  ;;  %v1111_v15 = vld.sshfl [vmem:[#allocation1 + $0x38] sm:$0xff pattern:$0x73625140]  ;;  %v2144_v23 = vpack.c.bf16 %v1108_v10, %v1108_v10 }
 0x73f   : > { %v10662_v50 = vpop.f32.mrf.mxu2  ;;  %v10675_v51 = vpop.f32.mrf.mxu3 }
 0x740   : > { %v10686_v57 = vpop.f32.mrf.mxu0  ;;  %v10699_v58 = vpop.f32.mrf.mxu1  ;;  %v13932_v50 = vld [vmem:[%s15024_s24 + $0xf48] sm:$0x10]  ;;  %v13922_v51 = vld [vmem:[%s15024_s24 + $0x740] sm:$0xf] }
 0x741   : > { %v10687_v61 = vadd.f32 %v10686_v57, %v10674_v42  ;;  %v1105_v42 = vld.sshfl [vmem:[#allocation1 + $0x8] sm:$0xff pattern:$0x73625140] }
 0x742   : > { %11101 = vmatmul.bf16.vlgmr.msra.gmra.mxu0 %v2132_v52  ;;  %1112 = vst [vmem:[#allocation1] ss:$4 sm:$0xff] %v391_v43  ;;  %v2141_v55 = vpack.c.bf16 %v1105_v42, %v1105_v42  ;;  %v14351_v57 = vld [vmem:[%s15024_s24 + $0x744] sm:$0xf] }
 0x743   : > { %v10700_v2 = vadd.f32 %v10699_v58, %v10687_v61  ;;  %11114 = vmatmul.bf16.vlgmr.msra.gmra.mxu1 %v2133_v53  ;;  %11204 = vmatpush.bf16.xpose.msra.mxu0 %v13891_v0  ;;  %v13924_v58 = vld [vmem:[%s15024_s24 + $0xf40] sm:$0x10]  ;;  %v2142_v61 = vpack.c.bf16 %v1106_v45, %v1106_v45  ;;  %v13931_v0 = vor.u32 %v14608_v48, %v13930_v47  ;;  %v393_v45 = vld [vmem:[%s15017_s12 + $0x3b0] sm:$0xff] }
 0x744   : > { %11127 = vmatmul.bf16.vlgmr.msra.gmra.mxu2 %v2134_v59  ;;  %11140 = vmatmul.bf16.vlgmr.msra.gmra.mxu3 %v2135_v60 }
 0x745   : > { %11230 = vmatpush.bf16.xpose.msra.mxu2 %v13899_v62  ;;  %11243 = vmatpush.bf16.xpose.msra.mxu3 %v13903_v63  ;;  %v2143_v62 = vpack.c.bf16 %v1107_v46, %v1107_v46 }
 0x746   : > { %11217 = vmatpush.bf16.xpose.msra.mxu1 %v13895_v1  ;;  %v13935_v1 = vor.u32 %v14352_v49, %v13932_v50  ;;  %v13962_v49 = vld [vmem:[%s15024_s24 + $0x768] sm:$0xf] }
 0x747   : > { %v10712_v3 = vpop.f32.mrf.mxu2  ;;  %v10725_v4 = vpop.f32.mrf.mxu3  ;;  %v14612_v50 = vld [vmem:[%s15024_s24 + $0xf64] sm:$0x10] }
 0x748   : > { %v10713_v5 = vadd.f32 %v10712_v3, %v10700_v2  ;;  %v10688_v6 = vpop.f32.mrf.mxu0  ;;  %v10701_v7 = vpop.f32.mrf.mxu1  ;;  %v13923_v2 = vor.u32 %v14607_v56, %v13922_v51  ;;  %v13927_v3 = vor.u32 %v14351_v57, %v13924_v58  ;;  %v14356_v51 = vld [vmem:[%s15024_s24 + $0x76c] sm:$0xf]  ;;  %v14611_v58 = vld [vmem:[%s15024_s24 + $0xf5c] sm:$0x10] }
 0x749   : > { %v1114_v43 = vld.sshfl [vmem:[#allocation1] sm:$0xff pattern:$0x73625140]  ;;  %v1116_v47 = vld.sshfl [vmem:[#allocation1 + $0x10] sm:$0xff pattern:$0x73625140] }
 0x74a   : > { %v10726_v11 = vadd.f32 %v10725_v4, %v10713_v5  ;;  %v1117_v48 = vld.sshfl [vmem:[#allocation1 + $0x18] sm:$0xff pattern:$0x73625140]  ;;  %v2148_v56 = vpack.c.bf16 %v1114_v43, %v1114_v43 }
 0x74f   : > { %v10714_v19 = vpop.f32.mrf.mxu2  ;;  %v10727_v20 = vpop.f32.mrf.mxu3 }
 0x750   : > { %v10738_v26 = vpop.f32.mrf.mxu0  ;;  %v10751_v27 = vpop.f32.mrf.mxu1  ;;  %v13948_v19 = vld [vmem:[%s15024_s24 + $0xf58] sm:$0x10]  ;;  %v13938_v20 = vld [vmem:[%s15024_s24 + $0x750] sm:$0xf] }
 0x751   : > { %v10739_v30 = vadd.f32 %v10738_v26, %v10726_v11  ;;  %v1109_v11 = vld.sshfl [vmem:[#allocation1 + $0x28] sm:$0xff pattern:$0x73625140]  ;;  %v14353_v26 = vld [vmem:[%s15024_s24 + $0x754] sm:$0xf] }
 0x752   : > { %11153 = vmatmul.bf16.vlgmr.msrb.gmra.mxu0 %v2136_v21  ;;  %1113 = vst [vmem:[#allocation1 + $0x20] ss:$4 sm:$0xff] %v392_v12  ;;  %v2145_v24 = vpack.c.bf16 %v1109_v11, %v1109_v11 }
 0x753   : > { %v10752_v35 = vadd.f32 %v10751_v27, %v10739_v30  ;;  %11166 = vmatmul.bf16.vlgmr.msrb.gmra.mxu1 %v2137_v22  ;;  %11256 = vmatpush.bf16.xpose.msrb.mxu0 %v13907_v33  ;;  %v13940_v27 = vld [vmem:[%s15024_s24 + $0xf50] sm:$0x10]  ;;  %v2146_v30 = vpack.c.bf16 %v1110_v14, %v1110_v14  ;;  %v13947_v33 = vor.u32 %v14610_v17, %v13946_v16  ;;  %v394_v14 = vld [vmem:[%s15017_s12 + $0x3b8] sm:$0xff] }
 0x754   : > { %11179 = vmatmul.bf16.vlgmr.msrb.gmra.mxu2 %v2138_v28  ;;  %11192 = vmatmul.bf16.vlgmr.msrb.gmra.mxu3 %v2139_v29 }
 0x755   : > { %11282 = vmatpush.bf16.xpose.msrb.mxu2 %v13915_v31  ;;  %11295 = vmatpush.bf16.xpose.msrb.mxu3 %v13919_v32  ;;  %v2147_v31 = vpack.c.bf16 %v1111_v15, %v1111_v15 }
 0x756   : > { %11269 = vmatpush.bf16.xpose.msrb.mxu1 %v13911_v34  ;;  %v13951_v34 = vor.u32 %v14354_v18, %v13948_v19  ;;  %v13978_v18 = vld [vmem:[%s15024_s24 + $0x778] sm:$0xf] }
 0x757   : > { %v10764_v36 = vpop.f32.mrf.mxu2  ;;  %v10777_v37 = vpop.f32.mrf.mxu3  ;;  %v14614_v19 = vld [vmem:[%s15024_s24 + $0xf74] sm:$0x10] }
 0x758   : > { %v10765_v38 = vadd.f32 %v10764_v36, %v10752_v35  ;;  %v10740_v39 = vpop.f32.mrf.mxu0  ;;  %v10753_v40 = vpop.f32.mrf.mxu1  ;;  %v13939_v35 = vor.u32 %v14609_v25, %v13938_v20  ;;  %v13943_v36 = vor.u32 %v14353_v26, %v13940_v27  ;;  %v14358_v20 = vld [vmem:[%s15024_s24 + $0x77c] sm:$0xf]  ;;  %v14613_v27 = vld [vmem:[%s15024_s24 + $0xf6c] sm:$0x10] }
 0x759   : > { %v1118_v12 = vld.sshfl [vmem:[#allocation1 + $0x20] sm:$0xff pattern:$0x73625140]  ;;  %v1120_v16 = vld.sshfl [vmem:[#allocation1 + $0x30] sm:$0xff pattern:$0x73625140] }
 0x75a   : > { %v10778_v44 = vadd.f32 %v10777_v37, %v10765_v38  ;;  %v1121_v17 = vld.sshfl [vmem:[#allocation1 + $0x38] sm:$0xff pattern:$0x73625140]  ;;  %v2152_v25 = vpack.c.bf16 %v1118_v12, %v1118_v12 }
 0x75f   : > { %v10766_v52 = vpop.f32.mrf.mxu2  ;;  %v10779_v53 = vpop.f32.mrf.mxu3 }
 0x760   : > { %v10790_v59 = vpop.f32.mrf.mxu0  ;;  %v10803_v60 = vpop.f32.mrf.mxu1  ;;  %v13964_v52 = vld [vmem:[%s15024_s24 + $0xf68] sm:$0x10]  ;;  %v13954_v53 = vld [vmem:[%s15024_s24 + $0x760] sm:$0xf] }
 0x761   : > { %v10791_v63 = vadd.f32 %v10790_v59, %v10778_v44  ;;  %v1115_v44 = vld.sshfl [vmem:[#allocation1 + $0x8] sm:$0xff pattern:$0x73625140] }
 0x762   : > { %11205 = vmatmul.bf16.vlgmr.msra.gmra.mxu0 %v2140_v54  ;;  %1122 = vst [vmem:[#allocation1] ss:$4 sm:$0xff] %v393_v45  ;;  %v2149_v57 = vpack.c.bf16 %v1115_v44, %v1115_v44  ;;  %v14355_v59 = vld [vmem:[%s15024_s24 + $0x764] sm:$0xf] }
 0x763   : > { %v10804_v4 = vadd.f32 %v10803_v60, %v10791_v63  ;;  %11218 = vmatmul.bf16.vlgmr.msra.gmra.mxu1 %v2141_v55  ;;  %11308 = vmatpush.bf16.xpose.msra.mxu0 %v13923_v2  ;;  %v13956_v60 = vld [vmem:[%s15024_s24 + $0xf60] sm:$0x10]  ;;  %v2150_v63 = vpack.c.bf16 %v1116_v47, %v1116_v47  ;;  %v13963_v2 = vor.u32 %v14612_v50, %v13962_v49 }
 0x764   : > { %11231 = vmatmul.bf16.vlgmr.msra.gmra.mxu2 %v2142_v61  ;;  %11244 = vmatmul.bf16.vlgmr.msra.gmra.mxu3 %v2143_v62  ;;  %v395_v47 = vld [vmem:[%s15017_s12 + $0x3c0] sm:$0xff] }
 0x765   : > { %11334 = vmatpush.bf16.xpose.msra.mxu2 %v13931_v0  ;;  %11347 = vmatpush.bf16.xpose.msra.mxu3 %v13935_v1  ;;  %v2151_v0 = vpack.c.bf16 %v1117_v48, %v1117_v48 }
 0x766   : > { %11321 = vmatpush.bf16.xpose.msra.mxu1 %v13927_v3  ;;  %v13967_v3 = vor.u32 %v14356_v51, %v13964_v52  ;;  %v13994_v51 = vld [vmem:[%s15024_s24 + $0x788] sm:$0xf] }
 0x767   : > { %v10816_v5 = vpop.f32.mrf.mxu2  ;;  %v10829_v6 = vpop.f32.mrf.mxu3  ;;  %v14616_v52 = vld [vmem:[%s15024_s24 + $0xf84] sm:$0x10] }
 0x768   : > { %v10817_v7 = vadd.f32 %v10816_v5, %v10804_v4  ;;  %v10792_v8 = vpop.f32.mrf.mxu0  ;;  %v10805_v9 = vpop.f32.mrf.mxu1  ;;  %v13955_v4 = vor.u32 %v14611_v58, %v13954_v53  ;;  %v13959_v5 = vor.u32 %v14355_v59, %v13956_v60  ;;  %v14360_v53 = vld [vmem:[%s15024_s24 + $0x78c] sm:$0xf]  ;;  %v14615_v60 = vld [vmem:[%s15024_s24 + $0xf7c] sm:$0x10] }
 0x769   : > { %v1124_v45 = vld.sshfl [vmem:[#allocation1] sm:$0xff pattern:$0x73625140]  ;;  %v1126_v49 = vld.sshfl [vmem:[#allocation1 + $0x10] sm:$0xff pattern:$0x73625140] }
 0x76a   : > { %v10830_v13 = vadd.f32 %v10829_v6, %v10817_v7  ;;  %v1127_v50 = vld.sshfl [vmem:[#allocation1 + $0x18] sm:$0xff pattern:$0x73625140]  ;;  %v2156_v58 = vpack.c.bf16 %v1124_v45, %v1124_v45 }
 0x76f   : > { %v10818_v21 = vpop.f32.mrf.mxu2  ;;  %v10831_v22 = vpop.f32.mrf.mxu3 }
 0x770   : > { %v10842_v28 = vpop.f32.mrf.mxu0  ;;  %v10855_v29 = vpop.f32.mrf.mxu1  ;;  %v13980_v21 = vld [vmem:[%s15024_s24 + $0xf78] sm:$0x10]  ;;  %v13970_v22 = vld [vmem:[%s15024_s24 + $0x770] sm:$0xf] }
 0x771   : > { %v10843_v32 = vadd.f32 %v10842_v28, %v10830_v13  ;;  %v1119_v13 = vld.sshfl [vmem:[#allocation1 + $0x28] sm:$0xff pattern:$0x73625140]  ;;  %v14357_v28 = vld [vmem:[%s15024_s24 + $0x774] sm:$0xf] }
 0x772   : > { %11257 = vmatmul.bf16.vlgmr.msrb.gmra.mxu0 %v2144_v23  ;;  %1123 = vst [vmem:[#allocation1 + $0x20] ss:$4 sm:$0xff] %v394_v14  ;;  %v2153_v26 = vpack.c.bf16 %v1119_v13, %v1119_v13 }
 0x773   : > { %v10856_v37 = vadd.f32 %v10855_v29, %v10843_v32  ;;  %11270 = vmatmul.bf16.vlgmr.msrb.gmra.mxu1 %v2145_v24  ;;  %11360 = vmatpush.bf16.xpose.msrb.mxu0 %v13939_v35  ;;  %v13972_v29 = vld [vmem:[%s15024_s24 + $0xf70] sm:$0x10]  ;;  %v2154_v32 = vpack.c.bf16 %v1120_v16, %v1120_v16  ;;  %v13979_v35 = vor.u32 %v14614_v19, %v13978_v18  ;;  %v396_v16 = vld [vmem:[%s15017_s12 + $0x3c8] sm:$0xff] }
 0x774   : > { %11283 = vmatmul.bf16.vlgmr.msrb.gmra.mxu2 %v2146_v30  ;;  %11296 = vmatmul.bf16.vlgmr.msrb.gmra.mxu3 %v2147_v31 }
 0x775   : > { %11386 = vmatpush.bf16.xpose.msrb.mxu2 %v13947_v33  ;;  %11399 = vmatpush.bf16.xpose.msrb.mxu3 %v13951_v34  ;;  %v2155_v33 = vpack.c.bf16 %v1121_v17, %v1121_v17 }
 0x776   : > { %11373 = vmatpush.bf16.xpose.msrb.mxu1 %v13943_v36  ;;  %v13983_v36 = vor.u32 %v14358_v20, %v13980_v21  ;;  %v14010_v20 = vld [vmem:[%s15024_s24 + $0x798] sm:$0xf] }
 0x777   : > { %v10868_v38 = vpop.f32.mrf.mxu2  ;;  %v10881_v39 = vpop.f32.mrf.mxu3  ;;  %v14618_v21 = vld [vmem:[%s15024_s24 + $0xf94] sm:$0x10] }
 0x778   : > { %v10869_v40 = vadd.f32 %v10868_v38, %v10856_v37  ;;  %v10844_v41 = vpop.f32.mrf.mxu0  ;;  %v10857_v42 = vpop.f32.mrf.mxu1  ;;  %v13971_v37 = vor.u32 %v14613_v27, %v13970_v22  ;;  %v13975_v38 = vor.u32 %v14357_v28, %v13972_v29  ;;  %v14362_v22 = vld [vmem:[%s15024_s24 + $0x79c] sm:$0xf]  ;;  %v14617_v29 = vld [vmem:[%s15024_s24 + $0xf8c] sm:$0x10] }
 0x779   : > { %v1128_v14 = vld.sshfl [vmem:[#allocation1 + $0x20] sm:$0xff pattern:$0x73625140]  ;;  %v1130_v18 = vld.sshfl [vmem:[#allocation1 + $0x30] sm:$0xff pattern:$0x73625140] }
 0x77a   : > { %v10882_v46 = vadd.f32 %v10881_v39, %v10869_v40  ;;  %v1131_v19 = vld.sshfl [vmem:[#allocation1 + $0x38] sm:$0xff pattern:$0x73625140]  ;;  %v2160_v27 = vpack.c.bf16 %v1128_v14, %v1128_v14 }
 0x77f   : > { %v10870_v54 = vpop.f32.mrf.mxu2  ;;  %v10883_v55 = vpop.f32.mrf.mxu3 }
 0x780   : > { %v10894_v61 = vpop.f32.mrf.mxu0  ;;  %v10907_v62 = vpop.f32.mrf.mxu1  ;;  %v13996_v54 = vld [vmem:[%s15024_s24 + $0xf88] sm:$0x10]  ;;  %v13986_v55 = vld [vmem:[%s15024_s24 + $0x780] sm:$0xf] }
 0x781   : > { %v10895_v1 = vadd.f32 %v10894_v61, %v10882_v46  ;;  %v1125_v46 = vld.sshfl [vmem:[#allocation1 + $0x8] sm:$0xff pattern:$0x73625140] }
 0x782   : > { %11309 = vmatmul.bf16.vlgmr.msra.gmra.mxu0 %v2148_v56  ;;  %1132 = vst [vmem:[#allocation1] ss:$4 sm:$0xff] %v395_v47  ;;  %v2157_v59 = vpack.c.bf16 %v1125_v46, %v1125_v46  ;;  %v14359_v61 = vld [vmem:[%s15024_s24 + $0x784] sm:$0xf] }
 0x783   : > { %v10908_v6 = vadd.f32 %v10907_v62, %v10895_v1  ;;  %11322 = vmatmul.bf16.vlgmr.msra.gmra.mxu1 %v2149_v57  ;;  %11412 = vmatpush.bf16.xpose.msra.mxu0 %v13955_v4  ;;  %v13988_v62 = vld [vmem:[%s15024_s24 + $0xf80] sm:$0x10]  ;;  %v2158_v1 = vpack.c.bf16 %v1126_v49, %v1126_v49  ;;  %v13995_v4 = vor.u32 %v14616_v52, %v13994_v51  ;;  %v397_v49 = vld [vmem:[%s15017_s12 + $0x3d0] sm:$0xff] }
 0x784   : > { %11335 = vmatmul.bf16.vlgmr.msra.gmra.mxu2 %v2150_v63  ;;  %11348 = vmatmul.bf16.vlgmr.msra.gmra.mxu3 %v2151_v0 }
 0x785   : > { %11438 = vmatpush.bf16.xpose.msra.mxu2 %v13963_v2  ;;  %11451 = vmatpush.bf16.xpose.msra.mxu3 %v13967_v3  ;;  %v2159_v2 = vpack.c.bf16 %v1127_v50, %v1127_v50 }
 0x786   : > { %11425 = vmatpush.bf16.xpose.msra.mxu1 %v13959_v5  ;;  %v13999_v5 = vor.u32 %v14360_v53, %v13996_v54  ;;  %v14026_v53 = vld [vmem:[%s15024_s24 + $0x7a8] sm:$0xf] }
 0x787   : > { %v10920_v7 = vpop.f32.mrf.mxu2  ;;  %v10933_v8 = vpop.f32.mrf.mxu3  ;;  %v14620_v54 = vld [vmem:[%s15024_s24 + $0xfa4] sm:$0x10] }
 0x788   : > { %v10921_v9 = vadd.f32 %v10920_v7, %v10908_v6  ;;  %v10896_v10 = vpop.f32.mrf.mxu0  ;;  %v10909_v11 = vpop.f32.mrf.mxu1  ;;  %v13987_v6 = vor.u32 %v14615_v60, %v13986_v55  ;;  %v13991_v7 = vor.u32 %v14359_v61, %v13988_v62  ;;  %v14364_v55 = vld [vmem:[%s15024_s24 + $0x7ac] sm:$0xf]  ;;  %v14619_v62 = vld [vmem:[%s15024_s24 + $0xf9c] sm:$0x10] }
 0x789   : > { %v1134_v47 = vld.sshfl [vmem:[#allocation1] sm:$0xff pattern:$0x73625140]  ;;  %v1136_v51 = vld.sshfl [vmem:[#allocation1 + $0x10] sm:$0xff pattern:$0x73625140] }
 0x78a   : > { %v10934_v15 = vadd.f32 %v10933_v8, %v10921_v9  ;;  %v1137_v52 = vld.sshfl [vmem:[#allocation1 + $0x18] sm:$0xff pattern:$0x73625140]  ;;  %v2164_v60 = vpack.c.bf16 %v1134_v47, %v1134_v47 }
 0x78f   : > { %v10922_v23 = vpop.f32.mrf.mxu2  ;;  %v10935_v24 = vpop.f32.mrf.mxu3 }
 0x790   : > { %v10946_v30 = vpop.f32.mrf.mxu0  ;;  %v10959_v31 = vpop.f32.mrf.mxu1  ;;  %v14012_v23 = vld [vmem:[%s15024_s24 + $0xf98] sm:$0x10]  ;;  %v14002_v24 = vld [vmem:[%s15024_s24 + $0x790] sm:$0xf] }
 0x791   : > { %v10947_v34 = vadd.f32 %v10946_v30, %v10934_v15  ;;  %v1129_v15 = vld.sshfl [vmem:[#allocation1 + $0x28] sm:$0xff pattern:$0x73625140]  ;;  %v14361_v30 = vld [vmem:[%s15024_s24 + $0x794] sm:$0xf] }
 0x792   : > { %11361 = vmatmul.bf16.vlgmr.msrb.gmra.mxu0 %v2152_v25  ;;  %1133 = vst [vmem:[#allocation1 + $0x20] ss:$4 sm:$0xff] %v396_v16  ;;  %v2161_v28 = vpack.c.bf16 %v1129_v15, %v1129_v15 }
 0x793   : > { %v10960_v39 = vadd.f32 %v10959_v31, %v10947_v34  ;;  %11374 = vmatmul.bf16.vlgmr.msrb.gmra.mxu1 %v2153_v26  ;;  %11464 = vmatpush.bf16.xpose.msrb.mxu0 %v13971_v37  ;;  %v14004_v31 = vld [vmem:[%s15024_s24 + $0xf90] sm:$0x10]  ;;  %v2162_v34 = vpack.c.bf16 %v1130_v18, %v1130_v18  ;;  %v14011_v37 = vor.u32 %v14618_v21, %v14010_v20  ;;  %v398_v18 = vld [vmem:[%s15017_s12 + $0x3d8] sm:$0xff] }
 0x794   : > { %11387 = vmatmul.bf16.vlgmr.msrb.gmra.mxu2 %v2154_v32  ;;  %11400 = vmatmul.bf16.vlgmr.msrb.gmra.mxu3 %v2155_v33 }
 0x795   : > { %11490 = vmatpush.bf16.xpose.msrb.mxu2 %v13979_v35  ;;  %11503 = vmatpush.bf16.xpose.msrb.mxu3 %v13983_v36  ;;  %v2163_v35 = vpack.c.bf16 %v1131_v19, %v1131_v19 }
 0x796   : > { %11477 = vmatpush.bf16.xpose.msrb.mxu1 %v13975_v38  ;;  %v14015_v38 = vor.u32 %v14362_v22, %v14012_v23  ;;  %v14042_v22 = vld [vmem:[%s15024_s24 + $0x7b8] sm:$0xf] }
 0x797   : > { %v10972_v40 = vpop.f32.mrf.mxu2  ;;  %v10985_v41 = vpop.f32.mrf.mxu3  ;;  %v14622_v23 = vld [vmem:[%s15024_s24 + $0xfb4] sm:$0x10] }
 0x798   : > { %v10973_v42 = vadd.f32 %v10972_v40, %v10960_v39  ;;  %v10948_v43 = vpop.f32.mrf.mxu0  ;;  %v10961_v44 = vpop.f32.mrf.mxu1  ;;  %v14003_v39 = vor.u32 %v14617_v29, %v14002_v24  ;;  %v14007_v40 = vor.u32 %v14361_v30, %v14004_v31  ;;  %v14366_v24 = vld [vmem:[%s15024_s24 + $0x7bc] sm:$0xf]  ;;  %v14621_v31 = vld [vmem:[%s15024_s24 + $0xfac] sm:$0x10] }
 0x799   : > { %v1138_v16 = vld.sshfl [vmem:[#allocation1 + $0x20] sm:$0xff pattern:$0x73625140]  ;;  %v1140_v20 = vld.sshfl [vmem:[#allocation1 + $0x30] sm:$0xff pattern:$0x73625140] }
 0x79a   : > { %v10986_v48 = vadd.f32 %v10985_v41, %v10973_v42  ;;  %v1141_v21 = vld.sshfl [vmem:[#allocation1 + $0x38] sm:$0xff pattern:$0x73625140]  ;;  %v2168_v29 = vpack.c.bf16 %v1138_v16, %v1138_v16 }
 0x79f   : > { %v10974_v56 = vpop.f32.mrf.mxu2  ;;  %v10987_v57 = vpop.f32.mrf.mxu3 }
 0x7a0   : > { %v10998_v63 = vpop.f32.mrf.mxu0  ;;  %v11011_v0 = vpop.f32.mrf.mxu1  ;;  %v14028_v56 = vld [vmem:[%s15024_s24 + $0xfa8] sm:$0x10]  ;;  %v14018_v57 = vld [vmem:[%s15024_s24 + $0x7a0] sm:$0xf] }
 0x7a1   : > { %v10999_v3 = vadd.f32 %v10998_v63, %v10986_v48  ;;  %v1135_v48 = vld.sshfl [vmem:[#allocation1 + $0x8] sm:$0xff pattern:$0x73625140] }
 0x7a2   : > { %11413 = vmatmul.bf16.vlgmr.msra.gmra.mxu0 %v2156_v58  ;;  %1142 = vst [vmem:[#allocation1] ss:$4 sm:$0xff] %v397_v49  ;;  %v2165_v61 = vpack.c.bf16 %v1135_v48, %v1135_v48  ;;  %v14363_v63 = vld [vmem:[%s15024_s24 + $0x7a4] sm:$0xf] }
 0x7a3   : > { %v11012_v8 = vadd.f32 %v11011_v0, %v10999_v3  ;;  %11426 = vmatmul.bf16.vlgmr.msra.gmra.mxu1 %v2157_v59  ;;  %11516 = vmatpush.bf16.xpose.msra.mxu0 %v13987_v6  ;;  %v14020_v0 = vld [vmem:[%s15024_s24 + $0xfa0] sm:$0x10]  ;;  %v2166_v3 = vpack.c.bf16 %v1136_v51, %v1136_v51  ;;  %v14027_v6 = vor.u32 %v14620_v54, %v14026_v53 }
 0x7a4   : > { %11439 = vmatmul.bf16.vlgmr.msra.gmra.mxu2 %v2158_v1  ;;  %11452 = vmatmul.bf16.vlgmr.msra.gmra.mxu3 %v2159_v2  ;;  %v399_v51 = vld [vmem:[%s15017_s12 + $0x3e0] sm:$0xff] }
 0x7a5   : > { %11542 = vmatpush.bf16.xpose.msra.mxu2 %v13995_v4  ;;  %11555 = vmatpush.bf16.xpose.msra.mxu3 %v13999_v5  ;;  %v2167_v4 = vpack.c.bf16 %v1137_v52, %v1137_v52 }
 0x7a6   : > { %11529 = vmatpush.bf16.xpose.msra.mxu1 %v13991_v7  ;;  %v14031_v7 = vor.u32 %v14364_v55, %v14028_v56  ;;  %v14058_v55 = vld [vmem:[%s15024_s24 + $0x7c8] sm:$0xf] }
 0x7a7   : > { %v11024_v9 = vpop.f32.mrf.mxu2  ;;  %v11037_v10 = vpop.f32.mrf.mxu3  ;;  %v14624_v56 = vld [vmem:[%s15024_s24 + $0xfc4] sm:$0x10] }
 0x7a8   : > { %v11025_v11 = vadd.f32 %v11024_v9, %v11012_v8  ;;  %v11000_v12 = vpop.f32.mrf.mxu0  ;;  %v11013_v13 = vpop.f32.mrf.mxu1  ;;  %v14019_v8 = vor.u32 %v14619_v62, %v14018_v57  ;;  %v14023_v9 = vor.u32 %v14363_v63, %v14020_v0  ;;  %v14368_v57 = vld [vmem:[%s15024_s24 + $0x7cc] sm:$0xf]  ;;  %v14623_v0 = vld [vmem:[%s15024_s24 + $0xfbc] sm:$0x10] }
 0x7a9   : > { %v1144_v49 = vld.sshfl [vmem:[#allocation1] sm:$0xff pattern:$0x73625140]  ;;  %v1146_v53 = vld.sshfl [vmem:[#allocation1 + $0x10] sm:$0xff pattern:$0x73625140] }
 0x7aa   : > { %v11038_v17 = vadd.f32 %v11037_v10, %v11025_v11  ;;  %v1147_v54 = vld.sshfl [vmem:[#allocation1 + $0x18] sm:$0xff pattern:$0x73625140]  ;;  %v2172_v62 = vpack.c.bf16 %v1144_v49, %v1144_v49 }
 0x7af   : > { %v11026_v25 = vpop.f32.mrf.mxu2  ;;  %v11039_v26 = vpop.f32.mrf.mxu3 }
 0x7b0   : > { %v11050_v32 = vpop.f32.mrf.mxu0  ;;  %v11063_v33 = vpop.f32.mrf.mxu1  ;;  %v14044_v25 = vld [vmem:[%s15024_s24 + $0xfb8] sm:$0x10]  ;;  %v14034_v26 = vld [vmem:[%s15024_s24 + $0x7b0] sm:$0xf] }
 0x7b1   : > { %v11051_v36 = vadd.f32 %v11050_v32, %v11038_v17  ;;  %v1139_v17 = vld.sshfl [vmem:[#allocation1 + $0x28] sm:$0xff pattern:$0x73625140]  ;;  %v14365_v32 = vld [vmem:[%s15024_s24 + $0x7b4] sm:$0xf] }
 0x7b2   : > { %11465 = vmatmul.bf16.vlgmr.msrb.gmra.mxu0 %v2160_v27  ;;  %1143 = vst [vmem:[#allocation1 + $0x20] ss:$4 sm:$0xff] %v398_v18  ;;  %v2169_v30 = vpack.c.bf16 %v1139_v17, %v1139_v17 }
 0x7b3   : > { %v11064_v41 = vadd.f32 %v11063_v33, %v11051_v36  ;;  %11478 = vmatmul.bf16.vlgmr.msrb.gmra.mxu1 %v2161_v28  ;;  %11568 = vmatpush.bf16.xpose.msrb.mxu0 %v14003_v39  ;;  %v14036_v33 = vld [vmem:[%s15024_s24 + $0xfb0] sm:$0x10]  ;;  %v2170_v36 = vpack.c.bf16 %v1140_v20, %v1140_v20  ;;  %v14043_v39 = vor.u32 %v14622_v23, %v14042_v22  ;;  %v400_v20 = vld [vmem:[%s15017_s12 + $0x3e8] sm:$0xff] }
 0x7b4   : > { %11491 = vmatmul.bf16.vlgmr.msrb.gmra.mxu2 %v2162_v34  ;;  %11504 = vmatmul.bf16.vlgmr.msrb.gmra.mxu3 %v2163_v35 }
 0x7b5   : > { %11594 = vmatpush.bf16.xpose.msrb.mxu2 %v14011_v37  ;;  %11607 = vmatpush.bf16.xpose.msrb.mxu3 %v14015_v38  ;;  %v2171_v37 = vpack.c.bf16 %v1141_v21, %v1141_v21 }
 0x7b6   : > { %11581 = vmatpush.bf16.xpose.msrb.mxu1 %v14007_v40  ;;  %v14047_v40 = vor.u32 %v14366_v24, %v14044_v25  ;;  %v14074_v24 = vld [vmem:[%s15024_s24 + $0x7d8] sm:$0xf] }
 0x7b7   : > { %v11076_v42 = vpop.f32.mrf.mxu2  ;;  %v11089_v43 = vpop.f32.mrf.mxu3  ;;  %v14626_v25 = vld [vmem:[%s15024_s24 + $0xfd4] sm:$0x10] }
 0x7b8   : > { %v11077_v44 = vadd.f32 %v11076_v42, %v11064_v41  ;;  %v11052_v45 = vpop.f32.mrf.mxu0  ;;  %v11065_v46 = vpop.f32.mrf.mxu1  ;;  %v14035_v41 = vor.u32 %v14621_v31, %v14034_v26  ;;  %v14039_v42 = vor.u32 %v14365_v32, %v14036_v33  ;;  %v14370_v26 = vld [vmem:[%s15024_s24 + $0x7dc] sm:$0xf]  ;;  %v14625_v33 = vld [vmem:[%s15024_s24 + $0xfcc] sm:$0x10] }
 0x7b9   : > { %v1148_v18 = vld.sshfl [vmem:[#allocation1 + $0x20] sm:$0xff pattern:$0x73625140]  ;;  %v1150_v22 = vld.sshfl [vmem:[#allocation1 + $0x30] sm:$0xff pattern:$0x73625140] }
 0x7ba   : > { %v11090_v50 = vadd.f32 %v11089_v43, %v11077_v44  ;;  %v1151_v23 = vld.sshfl [vmem:[#allocation1 + $0x38] sm:$0xff pattern:$0x73625140]  ;;  %v2176_v31 = vpack.c.bf16 %v1148_v18, %v1148_v18 }
 0x7bf   : > { %v11078_v58 = vpop.f32.mrf.mxu2  ;;  %v11091_v59 = vpop.f32.mrf.mxu3 }
 0x7c0   : > { %v11102_v1 = vpop.f32.mrf.mxu0  ;;  %v11115_v2 = vpop.f32.mrf.mxu1  ;;  %v14060_v58 = vld [vmem:[%s15024_s24 + $0xfc8] sm:$0x10]  ;;  %v14050_v59 = vld [vmem:[%s15024_s24 + $0x7c0] sm:$0xf] }
 0x7c1   : > { %v11103_v5 = vadd.f32 %v11102_v1, %v11090_v50  ;;  %v1145_v50 = vld.sshfl [vmem:[#allocation1 + $0x8] sm:$0xff pattern:$0x73625140] }
 0x7c2   : > { %11517 = vmatmul.bf16.vlgmr.msra.gmra.mxu0 %v2164_v60  ;;  %1152 = vst [vmem:[#allocation1] ss:$4 sm:$0xff] %v399_v51  ;;  %v2173_v63 = vpack.c.bf16 %v1145_v50, %v1145_v50  ;;  %v14367_v1 = vld [vmem:[%s15024_s24 + $0x7c4] sm:$0xf] }
 0x7c3   : > { %v11116_v10 = vadd.f32 %v11115_v2, %v11103_v5  ;;  %11530 = vmatmul.bf16.vlgmr.msra.gmra.mxu1 %v2165_v61  ;;  %11620 = vmatpush.bf16.xpose.msra.mxu0 %v14019_v8  ;;  %v14052_v2 = vld [vmem:[%s15024_s24 + $0xfc0] sm:$0x10]  ;;  %v2174_v5 = vpack.c.bf16 %v1146_v53, %v1146_v53  ;;  %v14059_v8 = vor.u32 %v14624_v56, %v14058_v55  ;;  %v401_v53 = vld [vmem:[%s15017_s12 + $0x3f0] sm:$0xff] }
 0x7c4   : > { %11543 = vmatmul.bf16.vlgmr.msra.gmra.mxu2 %v2166_v3  ;;  %11556 = vmatmul.bf16.vlgmr.msra.gmra.mxu3 %v2167_v4 }
 0x7c5   : > { %11646 = vmatpush.bf16.xpose.msra.mxu2 %v14027_v6  ;;  %11659 = vmatpush.bf16.xpose.msra.mxu3 %v14031_v7  ;;  %v2175_v6 = vpack.c.bf16 %v1147_v54, %v1147_v54 }
 0x7c6   : > { %11633 = vmatpush.bf16.xpose.msra.mxu1 %v14023_v9  ;;  %v14063_v9 = vor.u32 %v14368_v57, %v14060_v58  ;;  %v14090_v57 = vld [vmem:[%s15024_s24 + $0x7e8] sm:$0xf] }
 0x7c7   : > { %v11128_v11 = vpop.f32.mrf.mxu2  ;;  %v11141_v12 = vpop.f32.mrf.mxu3  ;;  %v14628_v58 = vld [vmem:[%s15024_s24 + $0xfe4] sm:$0x10] }
 0x7c8   : > { %v11129_v13 = vadd.f32 %v11128_v11, %v11116_v10  ;;  %v11104_v14 = vpop.f32.mrf.mxu0  ;;  %v11117_v15 = vpop.f32.mrf.mxu1  ;;  %v14051_v10 = vor.u32 %v14623_v0, %v14050_v59  ;;  %v14055_v11 = vor.u32 %v14367_v1, %v14052_v2  ;;  %v14372_v59 = vld [vmem:[%s15024_s24 + $0x7ec] sm:$0xf]  ;;  %v14627_v2 = vld [vmem:[%s15024_s24 + $0xfdc] sm:$0x10] }
 0x7c9   : > { %v1154_v51 = vld.sshfl [vmem:[#allocation1] sm:$0xff pattern:$0x73625140]  ;;  %v1156_v55 = vld.sshfl [vmem:[#allocation1 + $0x10] sm:$0xff pattern:$0x73625140] }
 0x7ca   : > { %v11142_v19 = vadd.f32 %v11141_v12, %v11129_v13  ;;  %v1157_v56 = vld.sshfl [vmem:[#allocation1 + $0x18] sm:$0xff pattern:$0x73625140]  ;;  %v2180_v0 = vpack.c.bf16 %v1154_v51, %v1154_v51 }
 0x7cf   : > { %v11130_v27 = vpop.f32.mrf.mxu2  ;;  %v11143_v28 = vpop.f32.mrf.mxu3 }
 0x7d0   : > { %v11154_v34 = vpop.f32.mrf.mxu0  ;;  %v11167_v35 = vpop.f32.mrf.mxu1  ;;  %v14076_v27 = vld [vmem:[%s15024_s24 + $0xfd8] sm:$0x10]  ;;  %v14066_v28 = vld [vmem:[%s15024_s24 + $0x7d0] sm:$0xf] }
 0x7d1   : > { %v11155_v38 = vadd.f32 %v11154_v34, %v11142_v19  ;;  %v1149_v19 = vld.sshfl [vmem:[#allocation1 + $0x28] sm:$0xff pattern:$0x73625140]  ;;  %v14369_v34 = vld [vmem:[%s15024_s24 + $0x7d4] sm:$0xf] }
 0x7d2   : > { %11569 = vmatmul.bf16.vlgmr.msrb.gmra.mxu0 %v2168_v29  ;;  %1153 = vst [vmem:[#allocation1 + $0x20] ss:$4 sm:$0xff] %v400_v20  ;;  %v2177_v32 = vpack.c.bf16 %v1149_v19, %v1149_v19 }
 0x7d3   : > { %v11168_v43 = vadd.f32 %v11167_v35, %v11155_v38  ;;  %11582 = vmatmul.bf16.vlgmr.msrb.gmra.mxu1 %v2169_v30  ;;  %11672 = vmatpush.bf16.xpose.msrb.mxu0 %v14035_v41  ;;  %v14068_v35 = vld [vmem:[%s15024_s24 + $0xfd0] sm:$0x10]  ;;  %v2178_v38 = vpack.c.bf16 %v1150_v22, %v1150_v22  ;;  %v14075_v41 = vor.u32 %v14626_v25, %v14074_v24  ;;  %v402_v22 = vld [vmem:[%s15017_s12 + $0x3f8] sm:$0xff] }
 0x7d4   : > { %11595 = vmatmul.bf16.vlgmr.msrb.gmra.mxu2 %v2170_v36  ;;  %11608 = vmatmul.bf16.vlgmr.msrb.gmra.mxu3 %v2171_v37 }
 0x7d5   : > { %11698 = vmatpush.bf16.xpose.msrb.mxu2 %v14043_v39  ;;  %11711 = vmatpush.bf16.xpose.msrb.mxu3 %v14047_v40  ;;  %v2179_v39 = vpack.c.bf16 %v1151_v23, %v1151_v23 }
 0x7d6   : > { %11685 = vmatpush.bf16.xpose.msrb.mxu1 %v14039_v42  ;;  %v14079_v42 = vor.u32 %v14370_v26, %v14076_v27  ;;  %v14106_v26 = vld [vmem:[%s15024_s24 + $0x7f8] sm:$0xf] }
 0x7d7   : > { %v11180_v44 = vpop.f32.mrf.mxu2  ;;  %v11193_v45 = vpop.f32.mrf.mxu3  ;;  %v14630_v27 = vld [vmem:[%s15024_s24 + $0xff4] sm:$0x10] }
 0x7d8   : > { %v11181_v46 = vadd.f32 %v11180_v44, %v11168_v43  ;;  %v11156_v47 = vpop.f32.mrf.mxu0  ;;  %v11169_v48 = vpop.f32.mrf.mxu1  ;;  %v14067_v43 = vor.u32 %v14625_v33, %v14066_v28  ;;  %v14071_v44 = vor.u32 %v14369_v34, %v14068_v35  ;;  %v14374_v28 = vld [vmem:[%s15024_s24 + $0x7fc] sm:$0xf]  ;;  %v14629_v35 = vld [vmem:[%s15024_s24 + $0xfec] sm:$0x10] }
 0x7d9   : > { %v1158_v20 = vld.sshfl [vmem:[#allocation1 + $0x20] sm:$0xff pattern:$0x73625140]  ;;  %v1160_v24 = vld.sshfl [vmem:[#allocation1 + $0x30] sm:$0xff pattern:$0x73625140] }
 0x7da   : > { %v11194_v52 = vadd.f32 %v11193_v45, %v11181_v46  ;;  %v1161_v25 = vld.sshfl [vmem:[#allocation1 + $0x38] sm:$0xff pattern:$0x73625140]  ;;  %v2184_v33 = vpack.c.bf16 %v1158_v20, %v1158_v20 }
 0x7df   : > { %v11182_v60 = vpop.f32.mrf.mxu2  ;;  %v11195_v61 = vpop.f32.mrf.mxu3 }
 0x7e0   : > { %v11206_v3 = vpop.f32.mrf.mxu0  ;;  %v11219_v4 = vpop.f32.mrf.mxu1  ;;  %v14092_v60 = vld [vmem:[%s15024_s24 + $0xfe8] sm:$0x10]  ;;  %v14082_v61 = vld [vmem:[%s15024_s24 + $0x7e0] sm:$0xf] }
 0x7e1   : > { %v11207_v7 = vadd.f32 %v11206_v3, %v11194_v52  ;;  %v1155_v52 = vld.sshfl [vmem:[#allocation1 + $0x8] sm:$0xff pattern:$0x73625140] }
 0x7e2   : > { %11621 = vmatmul.bf16.vlgmr.msra.gmra.mxu0 %v2172_v62  ;;  %1162 = vst [vmem:[#allocation1] ss:$4 sm:$0xff] %v401_v53  ;;  %v2181_v1 = vpack.c.bf16 %v1155_v52, %v1155_v52  ;;  %v14371_v3 = vld [vmem:[%s15024_s24 + $0x7e4] sm:$0xf] }
 0x7e3   : > { %v11220_v12 = vadd.f32 %v11219_v4, %v11207_v7  ;;  %11634 = vmatmul.bf16.vlgmr.msra.gmra.mxu1 %v2173_v63  ;;  %11724 = vmatpush.bf16.xpose.msra.mxu0 %v14051_v10  ;;  %v14084_v4 = vld [vmem:[%s15024_s24 + $0xfe0] sm:$0x10]  ;;  %v2182_v7 = vpack.c.bf16 %v1156_v55, %v1156_v55  ;;  %v14091_v10 = vor.u32 %v14628_v58, %v14090_v57 }
 0x7e4   : > { %11647 = vmatmul.bf16.vlgmr.msra.gmra.mxu2 %v2174_v5  ;;  %11660 = vmatmul.bf16.vlgmr.msra.gmra.mxu3 %v2175_v6 }
 0x7e5   : > { %11750 = vmatpush.bf16.xpose.msra.mxu2 %v14059_v8  ;;  %11763 = vmatpush.bf16.xpose.msra.mxu3 %v14063_v9  ;;  %v2183_v8 = vpack.c.bf16 %v1157_v56, %v1157_v56 }
 0x7e6   : > { %11737 = vmatpush.bf16.xpose.msra.mxu1 %v14055_v11  ;;  %v14095_v11 = vor.u32 %v14372_v59, %v14092_v60 }
 0x7e7   : > { %v11232_v13 = vpop.f32.mrf.mxu2  ;;  %v11245_v14 = vpop.f32.mrf.mxu3 }
 0x7e8   : > { %v11233_v15 = vadd.f32 %v11232_v13, %v11220_v12  ;;  %v11208_v16 = vpop.f32.mrf.mxu0  ;;  %v11221_v17 = vpop.f32.mrf.mxu1  ;;  %v14083_v12 = vor.u32 %v14627_v2, %v14082_v61  ;;  %v14087_v13 = vor.u32 %v14371_v3, %v14084_v4 }
 0x7e9   : > { %v1165_v55 = vld.sshfl [vmem:[#allocation1 + $0x8] sm:$0xff pattern:$0x73625140]  ;;  %v1166_v56 = vld.sshfl [vmem:[#allocation1 + $0x10] sm:$0xff pattern:$0x73625140] }
 0x7ea   : > { %v11246_v21 = vadd.f32 %v11245_v14, %v11233_v15  ;;  %v1167_v57 = vld.sshfl [vmem:[#allocation1 + $0x18] sm:$0xff pattern:$0x73625140]  ;;  %v2189_v61 = vpack.c.bf16 %v1165_v55, %v1165_v55 }
 0x7ef   : > { %v11234_v29 = vpop.f32.mrf.mxu2  ;;  %v11247_v30 = vpop.f32.mrf.mxu3 }
 0x7f0   : > { %v11258_v36 = vpop.f32.mrf.mxu0  ;;  %v11271_v37 = vpop.f32.mrf.mxu1  ;;  %v14108_v29 = vld [vmem:[%s15024_s24 + $0xff8] sm:$0x10]  ;;  %v14098_v30 = vld [vmem:[%s15024_s24 + $0x7f0] sm:$0xf] }
 0x7f1   : > { %v11259_v40 = vadd.f32 %v11258_v36, %v11246_v21  ;;  %v1159_v21 = vld.sshfl [vmem:[#allocation1 + $0x28] sm:$0xff pattern:$0x73625140]  ;;  %v14373_v36 = vld [vmem:[%s15024_s24 + $0x7f4] sm:$0xf] }
 0x7f2   : > { %11673 = vmatmul.bf16.vlgmr.msrb.gmra.mxu0 %v2176_v31  ;;  %1163 = vst [vmem:[#allocation1 + $0x20] ss:$4 sm:$0xff] %v402_v22  ;;  %v2185_v34 = vpack.c.bf16 %v1159_v21, %v1159_v21 }
 0x7f3   : > { %v11272_v45 = vadd.f32 %v11271_v37, %v11259_v40  ;;  %11686 = vmatmul.bf16.vlgmr.msrb.gmra.mxu1 %v2177_v32  ;;  %11776 = vmatpush.bf16.xpose.msrb.mxu0 %v14067_v43  ;;  %v14100_v37 = vld [vmem:[%s15024_s24 + $0xff0] sm:$0x10]  ;;  %v2186_v40 = vpack.c.bf16 %v1160_v24, %v1160_v24  ;;  %v14107_v43 = vor.u32 %v14630_v27, %v14106_v26 }
 0x7f4   : > { %11699 = vmatmul.bf16.vlgmr.msrb.gmra.mxu2 %v2178_v38  ;;  %11712 = vmatmul.bf16.vlgmr.msrb.gmra.mxu3 %v2179_v39 }
 0x7f5   : > { %11802 = vmatpush.bf16.xpose.msrb.mxu2 %v14075_v41  ;;  %11815 = vmatpush.bf16.xpose.msrb.mxu3 %v14079_v42  ;;  %v2187_v41 = vpack.c.bf16 %v1161_v25, %v1161_v25 }
 0x7f6   : > { %11789 = vmatpush.bf16.xpose.msrb.mxu1 %v14071_v44  ;;  %v14111_v44 = vor.u32 %v14374_v28, %v14108_v29 }
 0x7f7   : > { %v11284_v46 = vpop.f32.mrf.mxu2  ;;  %v11297_v47 = vpop.f32.mrf.mxu3 }
 0x7f8   : > { %v11285_v48 = vadd.f32 %v11284_v46, %v11272_v45  ;;  %v11260_v49 = vpop.f32.mrf.mxu0  ;;  %v11273_v50 = vpop.f32.mrf.mxu1  ;;  %v14099_v45 = vor.u32 %v14629_v35, %v14098_v30  ;;  %v14103_v46 = vor.u32 %v14373_v36, %v14100_v37 }
 0x7fa   : > { %v11298_v54 = vadd.f32 %v11297_v47, %v11285_v48 }
 0x7ff   : > { %v11286_v62 = vpop.f32.mrf.mxu2  ;;  %v11299_v63 = vpop.f32.mrf.mxu3 }
 0x800   : > { %v11310_v5 = vpop.f32.mrf.mxu0  ;;  %v11323_v6 = vpop.f32.mrf.mxu1 }
 0x801   : > { %v11311_v9 = vadd.f32 %v11310_v5, %v11298_v54  ;;  %v1164_v54 = vld.sshfl [vmem:[#allocation1] sm:$0xff pattern:$0x73625140] }
 0x802   : > { %11725 = vmatmul.bf16.vlgmr.msra.gmra.mxu0 %v2180_v0  ;;  %v2188_v60 = vpack.c.bf16 %v1164_v54, %v1164_v54  ;;  %v2190_v0 = vpack.c.bf16 %v1166_v56, %v1166_v56 }
 0x803   : > { %v11324_v14 = vadd.f32 %v11323_v6, %v11311_v9  ;;  %11738 = vmatmul.bf16.vlgmr.msra.gmra.mxu1 %v2181_v1  ;;  %11828 = vmatpush.bf16.xpose.msra.mxu0 %v14083_v12  ;;  %v2191_v1 = vpack.c.bf16 %v1167_v57, %v1167_v57  ;;  %v1170_v12 = vld.sshfl [vmem:[#allocation1 + $0x30] sm:$0xff pattern:$0x73625140] }
 0x804   : > { %11751 = vmatmul.bf16.vlgmr.msra.gmra.mxu2 %v2182_v7  ;;  %11764 = vmatmul.bf16.vlgmr.msra.gmra.mxu3 %v2183_v8  ;;  %v2194_v20 = vpack.c.bf16 %v1170_v12, %v1170_v12 }
 0x805   : > { %11854 = vmatpush.bf16.xpose.msra.mxu2 %v14091_v10  ;;  %11867 = vmatpush.bf16.xpose.msra.mxu3 %v14095_v11  ;;  %v1168_v10 = vld.sshfl [vmem:[#allocation1 + $0x20] sm:$0xff pattern:$0x73625140]  ;;  %v1169_v11 = vld.sshfl [vmem:[#allocation1 + $0x28] sm:$0xff pattern:$0x73625140] }
 0x806   : > { %11841 = vmatpush.bf16.xpose.msra.mxu1 %v14087_v13  ;;  %v1171_v13 = vld.sshfl [vmem:[#allocation1 + $0x38] sm:$0xff pattern:$0x73625140] }
 0x807   : > { %v11336_v15 = vpop.f32.mrf.mxu2  ;;  %v11349_v16 = vpop.f32.mrf.mxu3  ;;  %v2195_v21 = vpack.c.bf16 %v1171_v13, %v1171_v13 }
 0x808   : > { %v11337_v17 = vadd.f32 %v11336_v15, %v11324_v14  ;;  %v11312_v18 = vpop.f32.mrf.mxu0  ;;  %v11325_v19 = vpop.f32.mrf.mxu1 }
 0x80a   : > { %v11350_v23 = vadd.f32 %v11349_v16, %v11337_v17  ;;  %v2192_v16 = vpack.c.bf16 %v1168_v10, %v1168_v10  ;;  %v2193_v17 = vpack.c.bf16 %v1169_v11, %v1169_v11 }
 0x80f   : > { %v11338_v31 = vpop.f32.mrf.mxu2  ;;  %v11351_v32 = vpop.f32.mrf.mxu3 }
 0x810   : > { %v11362_v38 = vpop.f32.mrf.mxu0  ;;  %v11375_v39 = vpop.f32.mrf.mxu1 }
 0x811   : > { %v11363_v42 = vadd.f32 %v11362_v38, %v11350_v23 }
 0x812   : > { %11777 = vmatmul.bf16.vlgmr.msrb.gmra.mxu0 %v2184_v33 }
 0x813   : > { %v11376_v47 = vadd.f32 %v11375_v39, %v11363_v42  ;;  %11790 = vmatmul.bf16.vlgmr.msrb.gmra.mxu1 %v2185_v34  ;;  %11880 = vmatpush.bf16.xpose.msrb.mxu0 %v14099_v45 }
 0x814   : > { %11803 = vmatmul.bf16.vlgmr.msrb.gmra.mxu2 %v2186_v40  ;;  %11816 = vmatmul.bf16.vlgmr.msrb.gmra.mxu3 %v2187_v41 }
 0x815   : > { %11906 = vmatpush.bf16.xpose.msrb.mxu2 %v14107_v43  ;;  %11919 = vmatpush.bf16.xpose.msrb.mxu3 %v14111_v44 }
 0x816   : > { %11893 = vmatpush.bf16.xpose.msrb.mxu1 %v14103_v46 }
 0x817   : > { %v11388_v48 = vpop.f32.mrf.mxu2  ;;  %v11401_v49 = vpop.f32.mrf.mxu3 }
 0x818   : > { %v11389_v50 = vadd.f32 %v11388_v48, %v11376_v47  ;;  %v11364_v51 = vpop.f32.mrf.mxu0  ;;  %v11377_v52 = vpop.f32.mrf.mxu1 }
 0x81a   : > { %v11402_v53 = vadd.f32 %v11401_v49, %v11389_v50 }
 0x81f   : > { %v11390_v58 = vpop.f32.mrf.mxu2  ;;  %v11403_v59 = vpop.f32.mrf.mxu3 }
 0x820   : > { %v11414_v62 = vpop.f32.mrf.mxu0  ;;  %v11427_v63 = vpop.f32.mrf.mxu1 }
 0x821   : > { %v11415_v2 = vadd.f32 %v11414_v62, %v11402_v53 }
 0x822   : > { %11829 = vmatmul.bf16.vlgmr.msra.gmra.mxu0 %v2188_v60 }
 0x823   : > { %v11428_v3 = vadd.f32 %v11427_v63, %v11415_v2  ;;  %11842 = vmatmul.bf16.vlgmr.msra.gmra.mxu1 %v2189_v61 }
 0x824   : > { %11855 = vmatmul.bf16.vlgmr.msra.gmra.mxu2 %v2190_v0  ;;  %11868 = vmatmul.bf16.vlgmr.msra.gmra.mxu3 %v2191_v1 }
 0x827   : > { %v11440_v4 = vpop.f32.mrf.mxu2  ;;  %v11453_v5 = vpop.f32.mrf.mxu3 }
 0x828   : > { %v11441_v6 = vadd.f32 %v11440_v4, %v11428_v3  ;;  %v11416_v7 = vpop.f32.mrf.mxu0  ;;  %v11429_v8 = vpop.f32.mrf.mxu1 }
 0x82a   : > { %v11454_v9 = vadd.f32 %v11453_v5, %v11441_v6 }
 0x82f   : > { %v11442_v14 = vpop.f32.mrf.mxu2  ;;  %v11455_v15 = vpop.f32.mrf.mxu3 }
 0x830   : > { %v11466_v18 = vpop.f32.mrf.mxu0  ;;  %v11479_v19 = vpop.f32.mrf.mxu1 }
 0x831   : > { %v11467_v22 = vadd.f32 %v11466_v18, %v11454_v9 }
 0x832   : > { %11881 = vmatmul.bf16.vlgmr.msrb.gmra.mxu0 %v2192_v16 }
 0x833   : > { %v11480_v23 = vadd.f32 %v11479_v19, %v11467_v22  ;;  %11894 = vmatmul.bf16.vlgmr.msrb.gmra.mxu1 %v2193_v17 }
 0x834   : > { %11907 = vmatmul.bf16.vlgmr.msrb.gmra.mxu2 %v2194_v20  ;;  %11920 = vmatmul.bf16.vlgmr.msrb.gmra.mxu3 %v2195_v21 }
 0x837   : > { %v11492_v24 = vpop.f32.mrf.mxu2  ;;  %v11505_v25 = vpop.f32.mrf.mxu3 }
 0x838   : > { %v11493_v26 = vadd.f32 %v11492_v24, %v11480_v23  ;;  %v11468_v27 = vpop.f32.mrf.mxu0  ;;  %v11481_v28 = vpop.f32.mrf.mxu1 }
 0x83a   : > { %v11506_v29 = vadd.f32 %v11505_v25, %v11493_v26 }
 0x83f   : > { %v11494_v30 = vpop.f32.mrf.mxu2  ;;  %v11507_v31 = vpop.f32.mrf.mxu3 }
 0x840   : > { %v11518_v32 = vpop.f32.mrf.mxu0  ;;  %v11531_v33 = vpop.f32.mrf.mxu1 }
 0x841   : > { %v11519_v46 = vadd.f32 %v11518_v32, %v11506_v29 }
 0x843   : > { %v11532_v51 = vadd.f32 %v11531_v33, %v11519_v46 }
 0x847   : > { %v11544_v34 = vpop.f32.mrf.mxu2  ;;  %v11557_v35 = vpop.f32.mrf.mxu3 }
 0x848   : > { %v11520_v36 = vpop.f32.mrf.mxu0  ;;  %v11533_v37 = vpop.f32.mrf.mxu1  ;;  %v11545_v52 = vadd.f32 %v11544_v34, %v11532_v51 }
 0x84a   : > { %v11558_v55 = vadd.f32 %v11557_v35, %v11545_v52 }
 0x84f   : > { %v11546_v38 = vpop.f32.mrf.mxu2  ;;  %v11559_v39 = vpop.f32.mrf.mxu3 }
 0x850   : > { %v11570_v40 = vpop.f32.mrf.mxu0  ;;  %v11583_v41 = vpop.f32.mrf.mxu1 }
 0x851   : > { %v11571_v58 = vadd.f32 %v11570_v40, %v11558_v55 }
 0x853   : > { %v11584_v59 = vadd.f32 %v11583_v41, %v11571_v58 }
 0x857   : > { %v11596_v42 = vpop.f32.mrf.mxu2  ;;  %v11609_v43 = vpop.f32.mrf.mxu3 }
 0x858   : > { %v11572_v44 = vpop.f32.mrf.mxu0  ;;  %v11585_v45 = vpop.f32.mrf.mxu1  ;;  %v11597_v62 = vadd.f32 %v11596_v42, %v11584_v59 }
 0x85a   : > { %v11610_v1 = vadd.f32 %v11609_v43, %v11597_v62 }
 0x85f   : > { %v11598_v47 = vpop.f32.mrf.mxu2  ;;  %v11611_v48 = vpop.f32.mrf.mxu3 }
 0x860   : > { %v11622_v49 = vpop.f32.mrf.mxu0  ;;  %v11635_v50 = vpop.f32.mrf.mxu1 }
 0x861   : > { %v11623_v2 = vadd.f32 %v11622_v49, %v11610_v1 }
 0x863   : > { %v11636_v7 = vadd.f32 %v11635_v50, %v11623_v2 }
 0x867   : > { %v11648_v53 = vpop.f32.mrf.mxu2  ;;  %v11661_v54 = vpop.f32.mrf.mxu3 }
 0x868   : > { %v11624_v56 = vpop.f32.mrf.mxu0  ;;  %v11637_v57 = vpop.f32.mrf.mxu1  ;;  %v11649_v8 = vadd.f32 %v11648_v53, %v11636_v7 }
 0x86a   : > { %v11662_v11 = vadd.f32 %v11661_v54, %v11649_v8 }
 0x86f   : > { %v11650_v60 = vpop.f32.mrf.mxu2  ;;  %v11663_v61 = vpop.f32.mrf.mxu3 }
 0x870   : > { %v11674_v63 = vpop.f32.mrf.mxu0  ;;  %v11687_v0 = vpop.f32.mrf.mxu1  ;;  %v2196_v61 = vld [vmem:[#allocation8] sm:$0x3] }
 0x871   : > { %v11675_v14 = vadd.f32 %v11674_v63, %v11662_v11 }
 0x873   : > { %v11688_v15 = vadd.f32 %v11687_v0, %v11675_v14 }
 0x877   : > { %v11700_v3 = vpop.f32.mrf.mxu2  ;;  %v11713_v4 = vpop.f32.mrf.mxu3 }
 0x878   : > { %v11676_v5 = vpop.f32.mrf.mxu0  ;;  %v11689_v6 = vpop.f32.mrf.mxu1  ;;  %v11701_v18 = vadd.f32 %v11700_v3, %v11688_v15  ;;  %v14714_v3 = vld [vmem:[#allocation7] ss:$0 sm:$0xff] (%p11928_p1) }
 0x87a   : > { %v11714_v21 = vadd.f32 %v11713_v4, %v11701_v18 }
 0x87f   : > { %v11702_v9 = vpop.f32.mrf.mxu2  ;;  %v11715_v10 = vpop.f32.mrf.mxu3 }
 0x880   : > { %v11726_v12 = vpop.f32.mrf.mxu0  ;;  %v11739_v13 = vpop.f32.mrf.mxu1 }
 0x881   : > { %v11727_v22 = vadd.f32 %v11726_v12, %v11714_v21 }
 0x883   : > { %v11740_v27 = vadd.f32 %v11739_v13, %v11727_v22 }
 0x887   : > { %v11752_v16 = vpop.f32.mrf.mxu2  ;;  %v11765_v17 = vpop.f32.mrf.mxu3 }
 0x888   : > { %v11728_v19 = vpop.f32.mrf.mxu0  ;;  %v11741_v20 = vpop.f32.mrf.mxu1  ;;  %v11753_v28 = vadd.f32 %v11752_v16, %v11740_v27 }
 0x88a   : > { %v11766_v31 = vadd.f32 %v11765_v17, %v11753_v28 }
 0x88f   : > { %v11754_v23 = vpop.f32.mrf.mxu2  ;;  %v11767_v24 = vpop.f32.mrf.mxu3 }
 0x890   : > { %v11778_v25 = vpop.f32.mrf.mxu0  ;;  %v11791_v26 = vpop.f32.mrf.mxu1 }
 0x891   : > { %v11779_v34 = vadd.f32 %v11778_v25, %v11766_v31 }
 0x893   : > { %v11792_v35 = vadd.f32 %v11791_v26, %v11779_v34 }
 0x897   : > { %v11804_v29 = vpop.f32.mrf.mxu2  ;;  %v11817_v30 = vpop.f32.mrf.mxu3 }
 0x898   : > { %v11780_v32 = vpop.f32.mrf.mxu0  ;;  %v11793_v33 = vpop.f32.mrf.mxu1  ;;  %v11805_v38 = vadd.f32 %v11804_v29, %v11792_v35 }
 0x89a   : > { %v11818_v41 = vadd.f32 %v11817_v30, %v11805_v38 }
 0x89f   : > { %v11806_v36 = vpop.f32.mrf.mxu2  ;;  %v11819_v37 = vpop.f32.mrf.mxu3 }
 0x8a0   : > { %v11830_v39 = vpop.f32.mrf.mxu0  ;;  %v11843_v40 = vpop.f32.mrf.mxu1 }
 0x8a1   : > { %v11831_v42 = vadd.f32 %v11830_v39, %v11818_v41 }
 0x8a3   : > { %v11844_v47 = vadd.f32 %v11843_v40, %v11831_v42 }
 0x8a7   : > { %v11856_v43 = vpop.f32.mrf.mxu2  ;;  %v11869_v44 = vpop.f32.mrf.mxu3 }
 0x8a8   : > { %v11832_v45 = vpop.f32.mrf.mxu0  ;;  %v11845_v46 = vpop.f32.mrf.mxu1  ;;  %v11857_v48 = vadd.f32 %v11856_v43, %v11844_v47 }
 0x8aa   : > { %v11870_v51 = vadd.f32 %v11869_v44, %v11857_v48 }
 0x8af   : > { %v11858_v49 = vpop.f32.mrf.mxu2  ;;  %v11871_v50 = vpop.f32.mrf.mxu3 }
 0x8b0   : > { %v11882_v52 = vpop.f32.mrf.mxu0  ;;  %v11895_v53 = vpop.f32.mrf.mxu1 }
 0x8b1   : > { %v11883_v54 = vadd.f32 %v11882_v52, %v11870_v51 }
 0x8b3   : > { %v11896_v55 = vadd.f32 %v11895_v53, %v11883_v54 }
 0x8b7   : > { %v11908_v56 = vpop.f32.mrf.mxu2  ;;  %v11921_v57 = vpop.f32.mrf.mxu3 }
 0x8b8   : > { %v11909_v58 = vadd.f32 %v11908_v56, %v11896_v55  ;;  %v11884_v59 = vpop.f32.mrf.mxu0  ;;  %v11897_v60 = vpop.f32.mrf.mxu1 }
 0x8ba   : > { %v11922_v62 = vadd.f32 %v11921_v57, %v11909_v58 }
 0x8bb   : > { %11933 = sbr.rel (!%p11928_p1) target bundleno = 2249 (0x8c9), region = 52 }
 0x8bc   : > { %v11925_v63 = vadd.f32 %v11922_v62, %v2196_v61 }
 0x8be   : > { %11927 = vst.msk [vmem:[#allocation8] sm:$0x3] %vm11926_vm1, %v11925_v63 }
 0x8bf   : > { %v11910_v0 = vpop.f32.mrf.mxu2  ;;  %v11923_v1 = vpop.f32.mrf.mxu3 }
 0x8c5   : > { %v11934_v2 = vld [vmem:[#allocation8] sm:$0x3] }
 0x8c6   : > { %v11939_v4 = vadd.f32 %v14714_v3, %v11934_v2 }
 0x8c8   : > { %11940 = vst.msk [vmem:[#allocation8] sm:$0x3] %vm11926_vm1, %v11939_v4 }
 0x8c9 PF: > { %p14658_p3 = scmp.eq.s32.totalorder %s14952_s18, 2  ;;  %s11951_s25 = sshll.u32 %s16215_s3, 4  ;;  %s11952_s25 = int_to_ptr.hbm [resolvable:$true] %s11951_s25 }
 0x8ca   : > { %s14902_s27 = smov [#allocation8]  }
 0x8cb   : > { %s11949_s29 = sshll.u32 %s14902_s27, 4  ;;  %s11950_s29 = int_to_ptr.vmem [resolvable:$true] %s11949_s29 }
 0x8cc   : > { %14641 = dma.vmem_to_hbm [thread:$0]  (%p14658_p3), %s11950_s29, 32, %s11952_s25, [#allocation4]  }
 0x8cd   : > { %14870 = dma.done.wait (%p14658_p3), [#allocation4], 32  }
 0x8ce   : > { %14872 = vsyncadd (%p14658_p3), [#allocation4], 4294967264 }
 0x8cf PF: > { %s20_s17 = sadd.s32 1, %s14895_s17   ;;  %s16222_s12 = smov %s14879_s13 }
 0x8d0   : > { %p17_p4 = scmp.ge.s32.totalorder %s20_s17, 5   ;;  %s16223_s13 = smov %s14883_s14 }
 0x8d1   : > { %s16224_s14 = smov %s14992_s6  ;;  %s16225_s15 = smov %s14891_s16 }
 0x8d2   : > { %s16226_s16 = smov %s16228_s26  ;;  %19 = sbr.rel (!%p17_p4) target bundleno = 9 (0x9), region = 96 }
 0x8d7   :  { %11965 = vsyncpa [#allocation3], 1 }
 0x8d8   :  { %11967 = vsyncpa [#allocation3 + $0x1], 1 }
 0x8d9   :  { %11968 = vsyncpa [#allocation6], 1 }
 0x8da   :  { %11970 = vsyncpa [#allocation6 + $0x1], 1 }
 0x8db   :  { %11971 = vsyncpa [#allocation4], 1 }
 0x8dc   :  { %11973 = vsyncpa [#allocation4 + $0x1], 1 }

</bundles_post_ra>
